<compile_context>
chip_gen: v7x
topology: tpu7x:2x2x1
jax: 0.10.0
libtpu: 0.0.40
codegen_flags: <defaults>
</compile_context>

<pallas_src>
import functools
import math

import jax
import jax.numpy as jnp
from jax.experimental import pallas as pl
from jax.experimental.pallas import tpu as pltpu


# ----------------------------- helpers --------------------------------------

_PARALLEL1 = pltpu.CompilerParams(dimension_semantics=("parallel",))


def _row_tile(m):
    """Largest row tile (multiple of 8) that divides m with >= 2 grid steps
    (so the "parallel" axis can shard across both v7x TensorCores); else m."""
    for t in (1024, 512, 256, 128, 64, 32, 16, 8):
        if m % t == 0 and m // t >= 2:
            return t
    return m


# ------------------------ in-kernel building blocks --------------------------

def _causal_bias(L):
    # Autoregressive mask generated in-kernel: ones(L,L).tril(-1).T == strict
    # upper triangle (col > row) marks illegal connections.
    row = jax.lax.broadcasted_iota(jnp.int32, (L, L), 0)
    col = jax.lax.broadcasted_iota(jnp.int32, (L, L), 1)
    return jnp.where(col > row, -1e9, 0.0).astype(jnp.float32)


def _mha_accum(q, k, v, wo, n_heads, scale, bias=None):
    # Multi-head attention fused with the output projection: each head's
    # context is accumulated into an f32 (Lq, D) accumulator via a
    # sublane-aligned row slice of wo -> no lane concat of the heads.
    # NOTE(v6e/v7x): with dh=32 the score matmuls underfill the 256-wide MXU;
    # batching heads into one dot_general (one-time relayout to (H, L, dh))
    # would raise MXU occupancy, at the cost of extra XLU relayouts at these
    # tiny shapes -- per-head accumulation keeps lowering simple here.
    Lq, D = q.shape
    dh = D // n_heads
    acc = jnp.zeros((Lq, D), jnp.float32)
    for h in range(n_heads):                       # static, unrolled
        sl = slice(h * dh, (h + 1) * dh)
        s = jax.lax.dot_general(q[:, sl], k[:, sl],
                                (((1,), (1,)), ((), ())),
                                preferred_element_type=jnp.float32) * scale
        if bias is not None:
            s = s + bias
        s = s - jnp.max(s, axis=-1, keepdims=True)
        p = jnp.exp(s)
        p = p * pl.reciprocal(jnp.sum(p, axis=-1, keepdims=True), approx=True)
        ctx = jnp.dot(p.astype(v.dtype), v[:, sl],
                      preferred_element_type=jnp.float32)
        acc = acc + jnp.dot(ctx.astype(q.dtype), wo[sl, :],
                            preferred_element_type=jnp.float32)
    return acc


def _add_ln(res_f32, sub_f32, g, b, eps=1e-5):
    # Residual add + LayerNorm in f32 (eps matches nn.LayerNorm).
    x = res_f32 + sub_f32
    mu = jnp.mean(x, axis=-1, keepdims=True)
    var = jnp.mean(jnp.square(x - mu), axis=-1, keepdims=True)
    return ((x - mu) * jax.lax.rsqrt(var + eps)) * g + b


def _ffn_f32(x_bf16, w1, b1, w2, b2):
    h = jnp.dot(x_bf16, w1, preferred_element_type=jnp.float32) + b1
    h = jnp.maximum(h, 0.0).astype(x_bf16.dtype)
    return jnp.dot(h, w2, preferred_element_type=jnp.float32) + b2


# ----------------------------- Pallas kernels --------------------------------

def _embed_align_kernel(emb_ref, w_ref, b_ref, pe_ref, o_ref):
    # PositionalEmbedding: alignment linear (emb -> dim_m) + sinusoid add.
    # Dropout is identity (eval).
    y = jnp.dot(emb_ref[...], w_ref[...], preferred_element_type=jnp.float32)
    o_ref[...] = (y + b_ref[...] + pe_ref[...]).astype(o_ref.dtype)


def _encoder_layer_kernel(x_ref, wqkv_ref, bqkv_ref, wo_ref, bo_ref,
                          g1_ref, c1_ref,
                          w1_ref, b1_ref, w2_ref, b2_ref,
                          g2_ref, c2_ref,
                          o_ref, *, n_heads):
    # Whole encoder layer for one batch element, fully in VMEM.
    x = x_ref[...]                                   # (L, D) bf16
    L, D = x.shape
    scale = 1.0 / math.sqrt(D // n_heads)

    qkv = (jnp.dot(x, wqkv_ref[...], preferred_element_type=jnp.float32)
           + bqkv_ref[...]).astype(x.dtype)          # (L, 3D) bf16
    a = _mha_accum(qkv[:, :D], qkv[:, D:2 * D], qkv[:, 2 * D:],
                   wo_ref[...], n_heads, scale) + bo_ref[...]
    h1 = _add_ln(x.astype(jnp.float32), a, g1_ref[...], c1_ref[...])

    f = _ffn_f32(h1.astype(x.dtype), w1_ref[...], b1_ref[...],
                 w2_ref[...], b2_ref[...])
    h2 = _add_ln(h1, f, g2_ref[...], c2_ref[...])
    o_ref[...] = h2.astype(o_ref.dtype)


def _decoder_layer_kernel(x_ref, mem_ref,
                          wqkv_ref, bqkv_ref, wo1_ref, bo1_ref,
                          g1_ref, c1_ref,
                          wq_ref, bq_ref, wkv_ref, bkv_ref, wo2_ref, bo2_ref,
                          g2_ref, c2_ref,
                          w1_ref, b1_ref, w2_ref, b2_ref,
                          g3_ref, c3_ref,
                          o_ref, *, n_heads):
    # Whole decoder layer for one batch element, fully in VMEM.
    x = x_ref[...]                                   # (Lt, D) bf16
    mem = mem_ref[...]                               # (Ls, D) bf16
    Lt, D = x.shape
    scale = 1.0 / math.sqrt(D // n_heads)

    # masked self-attention + out-proj + add&LN
    qkv = (jnp.dot(x, wqkv_ref[...], preferred_element_type=jnp.float32)
           + bqkv_ref[...]).astype(x.dtype)
    a = _mha_accum(qkv[:, :D], qkv[:, D:2 * D], qkv[:, 2 * D:],
                   wo1_ref[...], n_heads, scale,
                   bias=_causal_bias(Lt)) + bo1_ref[...]
    h1 = _add_ln(x.astype(jnp.float32), a, g1_ref[...], c1_ref[...])
    h1b = h1.astype(x.dtype)

    # cross-attention over the encoder memory (unmasked) + out-proj + add&LN
    q2 = (jnp.dot(h1b, wq_ref[...], preferred_element_type=jnp.float32)
          + bq_ref[...]).astype(x.dtype)
    kv = (jnp.dot(mem, wkv_ref[...], preferred_element_type=jnp.float32)
          + bkv_ref[...]).astype(x.dtype)            # (Ls, 2D)
    c = _mha_accum(q2, kv[:, :D], kv[:, D:], wo2_ref[...],
                   n_heads, scale) + bo2_ref[...]
    h2 = _add_ln(h1, c, g2_ref[...], c2_ref[...])

    # FFN + add&LN
    f = _ffn_f32(h2.astype(x.dtype), w1_ref[...], b1_ref[...],
                 w2_ref[...], b2_ref[...])
    h3 = _add_ln(h2, f, g3_ref[...], c3_ref[...])
    o_ref[...] = h3.astype(o_ref.dtype)


def _wordprob_kernel(x_ref, w_ref, b_ref, lp_ref):
    # Vocab projection + log-softmax (log-probs only; probs = exp outside).
    # TODO(synk): for realistic (30-50k) vocabularies tile the vocab axis
    # (e.g. (tm, 1024) output blocks) with a two-pass / online softmax and set
    # vmem_limit_bytes explicitly; a single block is fine at V=256.
    logits = jnp.dot(x_ref[...], w_ref[...],
                     preferred_element_type=jnp.float32) + b_ref[...]
    z = logits - jnp.max(logits, axis=-1, keepdims=True)
    se = jnp.sum(jnp.exp(z), axis=-1, keepdims=True)
    lp_ref[...] = (z - jnp.log(se)).astype(lp_ref.dtype)


# ---------------------------- kernel wrappers --------------------------------

def positional_encoding(params, seq):
    # Token embedding lookup stays an XLA gather; alignment + PE add fused.
    B, L = seq.shape
    emb = params["embedding"][seq]                   # (B, L, E) bf16
    E = emb.shape[-1]
    D = params["align_w"].shape[1]
    pe = params["pe_table"][:L]                      # (L, D) f32, shared block
    return pl.pallas_call(
        _embed_align_kernel,
        out_shape=jax.ShapeDtypeStruct((B, L, D), jnp.bfloat16),
        grid=(B,),
        in_specs=[pl.BlockSpec((None, L, E), lambda b: (b, 0, 0)),
                  pl.BlockSpec((E, D), lambda b: (0, 0)),
                  pl.BlockSpec((1, D), lambda b: (0, 0)),
                  pl.BlockSpec((L, D), lambda b: (0, 0))],
        out_specs=pl.BlockSpec((None, L, D), lambda b: (b, 0, 0)),
        compiler_params=_PARALLEL1,
    )(emb, params["align_w"], params["align_b"], pe)


def encoder_layer(p, x, n_heads):
    B, L, D = x.shape
    Di = p["ffn"]["w1"].shape[1]
    xspec = pl.BlockSpec((None, L, D), lambda b: (b, 0, 0))
    wspec = lambda shape: pl.BlockSpec(shape, lambda b: (0, 0))
    return pl.pallas_call(
        functools.partial(_encoder_layer_kernel, n_heads=n_heads),
        out_shape=jax.ShapeDtypeStruct((B, L, D), x.dtype),
        grid=(B,),
        in_specs=[xspec,
                  wspec((D, 3 * D)), wspec((1, 3 * D)),
                  wspec((D, D)), wspec((1, D)),
                  wspec((1, D)), wspec((1, D)),
                  wspec((D, Di)), wspec((1, Di)),
                  wspec((Di, D)), wspec((1, D)),
                  wspec((1, D)), wspec((1, D))],
        out_specs=xspec,
        compiler_params=_PARALLEL1,
    )(x,
      p["attn"]["w_qkv"], p["attn"]["b_qkv"], p["attn"]["wo"], p["attn"]["bo"],
      p["ln1"]["g"], p["ln1"]["b"],
      p["ffn"]["w1"], p["ffn"]["b1"], p["ffn"]["w2"], p["ffn"]["b2"],
      p["ln2"]["g"], p["ln2"]["b"])


def decoder_layer(p, x, mem, n_heads):
    B, Lt, D = x.shape
    Ls = mem.shape[1]
    Di = p["ffn"]["w1"].shape[1]
    xspec = pl.BlockSpec((None, Lt, D), lambda b: (b, 0, 0))
    mspec = pl.BlockSpec((None, Ls, D), lambda b: (b, 0, 0))
    wspec = lambda shape: pl.BlockSpec(shape, lambda b: (0, 0))
    return pl.pallas_call(
        functools.partial(_decoder_layer_kernel, n_heads=n_heads),
        out_shape=jax.ShapeDtypeStruct((B, Lt, D), x.dtype),
        grid=(B,),
        in_specs=[xspec, mspec,
                  wspec((D, 3 * D)), wspec((1, 3 * D)),
                  wspec((D, D)), wspec((1, D)),
                  wspec((1, D)), wspec((1, D)),
                  wspec((D, D)), wspec((1, D)),
                  wspec((D, 2 * D)), wspec((1, 2 * D)),
                  wspec((D, D)), wspec((1, D)),
                  wspec((1, D)), wspec((1, D)),
                  wspec((D, Di)), wspec((1, Di)),
                  wspec((Di, D)), wspec((1, D)),
                  wspec((1, D)), wspec((1, D))],
        out_specs=xspec,
        compiler_params=_PARALLEL1,
    )(x, mem,
      p["self_attn"]["w_qkv"], p["self_attn"]["b_qkv"],
      p["self_attn"]["wo"], p["self_attn"]["bo"],
      p["ln1"]["g"], p["ln1"]["b"],
      p["cross_attn"]["wq"], p["cross_attn"]["bq"],
      p["cross_attn"]["w_kv"], p["cross_attn"]["b_kv"],
      p["cross_attn"]["wo"], p["cross_attn"]["bo"],
      p["ln2"]["g"], p["ln2"]["b"],
      p["ffn"]["w1"], p["ffn"]["b1"], p["ffn"]["w2"], p["ffn"]["b2"],
      p["ln3"]["g"], p["ln3"]["b"])


def pallas_word_logprob(x2d, w, b):
    M, D = x2d.shape
    V = w.shape[1]
    tm = _row_tile(M)
    return pl.pallas_call(
        _wordprob_kernel,
        out_shape=jax.ShapeDtypeStruct((M, V), jnp.float32),
        grid=(M // tm,),
        in_specs=[pl.BlockSpec((tm, D), lambda i: (i, 0)),
                  pl.BlockSpec((D, V), lambda i: (0, 0)),
                  pl.BlockSpec((1, V), lambda i: (0, 0))],
        out_specs=pl.BlockSpec((tm, V), lambda i: (i, 0)),
        compiler_params=_PARALLEL1,
    )(x2d, w, b)


# ------------------------------ model forward --------------------------------

def sinusoid_table(max_len, dim):
    pos = jnp.arange(max_len, dtype=jnp.float32)[:, None]
    i = jnp.arange(dim, dtype=jnp.float32)[None, :]
    angle = pos / jnp.power(10000.0, (2.0 * jnp.floor(i / 2.0)) / dim)
    even = (jnp.arange(dim)[None, :] % 2) == 0
    return jnp.where(even, jnp.sin(angle), jnp.cos(angle)).astype(jnp.float32)


def label_smoothing_loss(logp2d, targets, vocab_size, smoothing=0.1):
    # TODO(synk): original LabelSmoothing internals unavailable; standard
    # smoothed cross-entropy computed from log-probs via a target gather
    # (no dense one-hot, no padding ignore_index).
    tgt_lp = jnp.take_along_axis(logp2d, targets[:, None], axis=-1)[:, 0]
    sum_lp = jnp.sum(logp2d, axis=-1)
    off = smoothing / (vocab_size - 1)
    per_row = -((1.0 - smoothing - off) * tgt_lp + off * sum_lp)
    return jnp.mean(per_row)


def forward(params, source_seq, target_seq, *, n_heads, vocab_size, initial_idx):
    B, Ls = source_seq.shape
    Lt = target_seq.shape[1]

    encoder_state = positional_encoding(params, source_seq)
    dec_state = positional_encoding(params, target_seq)
    # TODO(synk): lexical_switch feeds the raw embeddings into custom
    # sub-layers whose definition is unavailable; standard transformer
    # sub-layers are used (topic / global_encoding default-off paths).

    x = encoder_state
    for lp in params["encoder"]:
        x = encoder_layer(lp, x, n_heads)
    middle_state = x

    y = dec_state
    for lp in params["decoder"]:
        y = decoder_layer(lp, y, middle_state, n_heads)

    logp = pallas_word_logprob(y.reshape(B * Lt, -1),
                               params["word_prob"]["w"],
                               params["word_prob"]["b"]
                               ).reshape(B, Lt, vocab_size)
    probs = jnp.exp(logp)                             # (B, Lt, V) f32

    # probs = cat(initial_probs, output[:, :-1]); seq = argmax; loss = LS-CE.
    init_p = jnp.zeros((vocab_size,), jnp.float32).at[initial_idx].set(1.0)
    init_lp = jnp.log(init_p + 1e-12)
    logp_shift = jnp.concatenate(
        [jnp.broadcast_to(init_lp[None, None, :], (B, 1, vocab_size)),
         logp[:, :-1, :]], axis=1)
    seq = jnp.argmax(logp_shift, axis=-1)
    loss = label_smoothing_loss(logp_shift.reshape(-1, vocab_size),
                                target_seq.reshape(-1), vocab_size)
    return loss, seq, probs


# ----------------------------- parameter init --------------------------------

def init_params(key, *, vocab_size, emb_size, dim_m, dim_i, n_heads,
                enc_layers, dec_layers, max_seq_len):
    keys = iter(jax.random.split(key, 1024))

    def dense(din, dout):
        w = (jax.random.normal(next(keys), (din, dout), jnp.float32)
             / math.sqrt(din)).astype(jnp.bfloat16)
        return w, jnp.zeros((1, dout), jnp.float32)

    def self_attn_params():
        w_qkv, b_qkv = dense(dim_m, 3 * dim_m)
        wo, bo = dense(dim_m, dim_m)
        return dict(w_qkv=w_qkv, b_qkv=b_qkv, wo=wo, bo=bo)

    def cross_attn_params():
        wq, bq = dense(dim_m, dim_m)
        w_kv, b_kv = dense(dim_m, 2 * dim_m)
        wo, bo = dense(dim_m, dim_m)
        return dict(wq=wq, bq=bq, w_kv=w_kv, b_kv=b_kv, wo=wo, bo=bo)

    def ln_params():
        return dict(g=jnp.ones((1, dim_m), jnp.float32),
                    b=jnp.zeros((1, dim_m), jnp.float32))

    def ffn_params():
        w1, b1 = dense(dim_m, dim_i)
        w2, b2 = dense(dim_i, dim_m)
        return dict(w1=w1, b1=b1, w2=w2, b2=b2)

    embedding = (jax.random.normal(next(keys), (vocab_size, emb_size),
                                   jnp.float32) * 0.1).astype(jnp.bfloat16)
    align_w, align_b = dense(emb_size, dim_m)

    encoder = [dict(attn=self_attn_params(), ln1=ln_params(),
                    ffn=ffn_params(), ln2=ln_params())
               for _ in range(enc_layers)]
    decoder = [dict(self_attn=self_attn_params(), ln1=ln_params(),
                    cross_attn=cross_attn_params(), ln2=ln_params(),
                    ffn=ffn_params(), ln3=ln_params())
               for _ in range(dec_layers)]

    wp_w, wp_b = dense(dim_m, vocab_size)

    return dict(
        embedding=embedding,
        align_w=align_w, align_b=align_b,
        pe_table=sinusoid_table(max_seq_len, dim_m),
        encoder=encoder,
        decoder=decoder,
        word_prob=dict(w=wp_w, b=wp_b),
    )


# ---------------------------------- main --------------------------------------

if __name__ == "__main__":
    # Small, lane-friendly shapes consistent with the module.
    B, Ls, Lt = 2, 8, 8
    vocab_size = 256
    emb_size = 64
    dim_m = 128            # multiple of 128 -> lane-dense activations
    n_heads = 4            # head dim 32
    dim_i = 256
    enc_layers, dec_layers = 2, 2
    max_seq_len = 16
    initial_idx = 2

    key = jax.random.PRNGKey(0)
    pkey, skey, tkey = jax.random.split(key, 3)
    params = init_params(pkey, vocab_size=vocab_size, emb_size=emb_size,
                         dim_m=dim_m, dim_i=dim_i, n_heads=n_heads,
                         enc_layers=enc_layers, dec_layers=dec_layers,
                         max_seq_len=max_seq_len)

    source_seq = jax.random.randint(skey, (B, Ls), 1, vocab_size, dtype=jnp.int32)
    target_seq = jax.random.randint(tkey, (B, Lt), 1, vocab_size, dtype=jnp.int32)

    fwd = jax.jit(functools.partial(forward, n_heads=n_heads,
                                    vocab_size=vocab_size,
                                    initial_idx=initial_idx))
    loss, seq, output = fwd(params, source_seq, target_seq)
    jax.block_until_ready((loss, seq, output))

    assert output.shape == (B, Lt, vocab_size)
    assert seq.shape == (B, Lt)
    assert bool(jnp.isfinite(loss))
    print("KERNEL_OK")
</pallas_src>

<mosaic_0001>
module attributes {stable_mosaic.version = 11 : i64} {
  func.func @_encoder_layer_kernel(%arg0: i32, %arg1: memref<1x8x128xbf16, #tpu.memory_space<vmem>>, %arg2: memref<128x384xbf16, #tpu.memory_space<vmem>>, %arg3: memref<1x384xf32, #tpu.memory_space<vmem>>, %arg4: memref<128x128xbf16, #tpu.memory_space<vmem>>, %arg5: memref<1x128xf32, #tpu.memory_space<vmem>>, %arg6: memref<1x128xf32, #tpu.memory_space<vmem>>, %arg7: memref<1x128xf32, #tpu.memory_space<vmem>>, %arg8: memref<128x256xbf16, #tpu.memory_space<vmem>>, %arg9: memref<1x256xf32, #tpu.memory_space<vmem>>, %arg10: memref<256x128xbf16, #tpu.memory_space<vmem>>, %arg11: memref<1x128xf32, #tpu.memory_space<vmem>>, %arg12: memref<1x128xf32, #tpu.memory_space<vmem>>, %arg13: memref<1x128xf32, #tpu.memory_space<vmem>>, %arg14: memref<1x8x128xbf16, #tpu.memory_space<vmem>>) attributes {dimension_semantics = [#tpu.dimension_semantics<parallel>], iteration_bounds = array<i64: 2>, scalar_prefetch = 0 : i64, scratch_operands = 0 : i64, tpu.core_type = #tpu.core_type<tc>, window_params = [{transform_indices = @transform_0, window_bounds = array<i64: 1, 8, 128>}, {pipeline_mode = #tpu.pipeline_mode<synchronous>, transform_indices = @transform_1, window_bounds = array<i64: 128, 384>}, {pipeline_mode = #tpu.pipeline_mode<synchronous>, transform_indices = @transform_2, window_bounds = array<i64: 1, 384>}, {pipeline_mode = #tpu.pipeline_mode<synchronous>, transform_indices = @transform_3, window_bounds = array<i64: 128, 128>}, {pipeline_mode = #tpu.pipeline_mode<synchronous>, transform_indices = @transform_4, window_bounds = array<i64: 1, 128>}, {pipeline_mode = #tpu.pipeline_mode<synchronous>, transform_indices = @transform_5, window_bounds = array<i64: 1, 128>}, {pipeline_mode = #tpu.pipeline_mode<synchronous>, transform_indices = @transform_6, window_bounds = array<i64: 1, 128>}, {pipeline_mode = #tpu.pipeline_mode<synchronous>, transform_indices = @transform_7, window_bounds = array<i64: 128, 256>}, {pipeline_mode = #tpu.pipeline_mode<synchronous>, transform_indices = @transform_8, window_bounds = array<i64: 1, 256>}, {pipeline_mode = #tpu.pipeline_mode<synchronous>, transform_indices = @transform_9, window_bounds = array<i64: 256, 128>}, {pipeline_mode = #tpu.pipeline_mode<synchronous>, transform_indices = @transform_10, window_bounds = array<i64: 1, 128>}, {pipeline_mode = #tpu.pipeline_mode<synchronous>, transform_indices = @transform_11, window_bounds = array<i64: 1, 128>}, {pipeline_mode = #tpu.pipeline_mode<synchronous>, transform_indices = @transform_12, window_bounds = array<i64: 1, 128>}, {transform_indices = @transform_13, window_bounds = array<i64: 1, 8, 128>}]} {
    %c0 = arith.constant 0 : index
    %c0_0 = arith.constant 0 : index
    %c0_1 = arith.constant 0 : index
    %0 = vector.load %arg1[%c0, %c0_0, %c0_1] : memref<1x8x128xbf16, #tpu.memory_space<vmem>>, vector<1x8x128xbf16>
    %1 = vector.shape_cast %0 : vector<1x8x128xbf16> to vector<8x128xbf16>
    %c0_2 = arith.constant 0 : index
    %c0_3 = arith.constant 0 : index
    %2 = vector.load %arg2[%c0_2, %c0_3] : memref<128x384xbf16, #tpu.memory_space<vmem>>, vector<128x384xbf16>
    %cst = arith.constant dense<0.000000e+00> : vector<8x384xf32>
    %3 = tpu.matmul %1, %2, %cst {dimension_numbers = #tpu.dot_dimension_numbers<[1], [0], [0], [1], [0, 0, 1, 1], [], []>} : vector<8x128xbf16>, vector<128x384xbf16>, vector<8x384xf32> -> vector<8x384xf32>
    %c0_4 = arith.constant 0 : index
    %c0_5 = arith.constant 0 : index
    %4 = vector.load %arg3[%c0_4, %c0_5] : memref<1x384xf32, #tpu.memory_space<vmem>>, vector<1x384xf32>
    %5 = vector.broadcast %4 : vector<1x384xf32> to vector<8x384xf32>
    %6 = arith.addf %3, %5 : vector<8x384xf32>
    %7 = arith.truncf %6 : vector<8x384xf32> to vector<8x384xbf16>
    %8 = vector.extract_strided_slice %7 {offsets = [0, 0], sizes = [8, 128], strides = [1, 1]} : vector<8x384xbf16> to vector<8x128xbf16>
    %9 = vector.extract_strided_slice %7 {offsets = [0, 128], sizes = [8, 128], strides = [1, 1]} : vector<8x384xbf16> to vector<8x128xbf16>
    %10 = vector.extract_strided_slice %7 {offsets = [0, 256], sizes = [8, 128], strides = [1, 1]} : vector<8x384xbf16> to vector<8x128xbf16>
    %c0_6 = arith.constant 0 : index
    %c0_7 = arith.constant 0 : index
    %11 = vector.load %arg4[%c0_6, %c0_7] : memref<128x128xbf16, #tpu.memory_space<vmem>>, vector<128x128xbf16>
    %cst_8 = arith.constant 0.000000e+00 : f32
    %12 = vector.broadcast %cst_8 : f32 to vector<8x128xf32>
    %13 = vector.extract_strided_slice %8 {offsets = [0, 0], sizes = [8, 32], strides = [1, 1]} : vector<8x128xbf16> to vector<8x32xbf16>
    %14 = vector.extract_strided_slice %9 {offsets = [0, 0], sizes = [8, 32], strides = [1, 1]} : vector<8x128xbf16> to vector<8x32xbf16>
    %cst_9 = arith.constant dense<0.000000e+00> : vector<8x8xf32>
    %15 = tpu.matmul %13, %14, %cst_9 {dimension_numbers = #tpu.dot_dimension_numbers<[1], [1], [0], [0], [0, 0, 1, 0], [], []>} : vector<8x32xbf16>, vector<8x32xbf16>, vector<8x8xf32> -> vector<8x8xf32>
    %cst_10 = arith.constant 0.176776692 : f32
    %16 = vector.broadcast %cst_10 : f32 to vector<8x8xf32>
    %17 = arith.mulf %15, %16 : vector<8x8xf32>
    %cst_11 = arith.constant dense<0xFF800000> : vector<8xf32>
    %18 = vector.multi_reduction <maximumf>, %17, %cst_11 [1] : vector<8x8xf32> to vector<8xf32>
    %19 = vector.shape_cast %18 : vector<8xf32> to vector<8x1xf32>
    %20 = vector.broadcast %19 : vector<8x1xf32> to vector<8x8xf32>
    %21 = arith.subf %17, %20 : vector<8x8xf32>
    %22 = math.exp %21 : vector<8x8xf32>
    %cst_12 = arith.constant dense<0.000000e+00> : vector<8xf32>
    %23 = vector.multi_reduction <add>, %22, %cst_12 [1] : vector<8x8xf32> to vector<8xf32>
    %24 = vector.shape_cast %23 : vector<8xf32> to vector<8x1xf32>
    %25 = tpu.reciprocal %24 {approx = true} : vector<8x1xf32> -> vector<8x1xf32>
    %26 = vector.broadcast %25 : vector<8x1xf32> to vector<8x8xf32>
    %27 = arith.mulf %22, %26 : vector<8x8xf32>
    %28 = arith.truncf %27 : vector<8x8xf32> to vector<8x8xbf16>
    %29 = vector.extract_strided_slice %10 {offsets = [0, 0], sizes = [8, 32], strides = [1, 1]} : vector<8x128xbf16> to vector<8x32xbf16>
    %cst_13 = arith.constant dense<0.000000e+00> : vector<8x32xf32>
    %30 = tpu.matmul %28, %29, %cst_13 {dimension_numbers = #tpu.dot_dimension_numbers<[1], [0], [0], [1], [0, 0, 1, 1], [], []>} : vector<8x8xbf16>, vector<8x32xbf16>, vector<8x32xf32> -> vector<8x32xf32>
    %31 = arith.truncf %30 : vector<8x32xf32> to vector<8x32xbf16>
    %32 = vector.extract_strided_slice %11 {offsets = [0, 0], sizes = [32, 128], strides = [1, 1]} : vector<128x128xbf16> to vector<32x128xbf16>
    %cst_14 = arith.constant dense<0.000000e+00> : vector<8x128xf32>
    %33 = tpu.matmul %31, %32, %cst_14 {dimension_numbers = #tpu.dot_dimension_numbers<[1], [0], [0], [1], [0, 0, 1, 1], [], []>} : vector<8x32xbf16>, vector<32x128xbf16>, vector<8x128xf32> -> vector<8x128xf32>
    %34 = arith.addf %12, %33 : vector<8x128xf32>
    %35 = vector.extract_strided_slice %8 {offsets = [0, 32], sizes = [8, 32], strides = [1, 1]} : vector<8x128xbf16> to vector<8x32xbf16>
    %36 = vector.extract_strided_slice %9 {offsets = [0, 32], sizes = [8, 32], strides = [1, 1]} : vector<8x128xbf16> to vector<8x32xbf16>
    %cst_15 = arith.constant dense<0.000000e+00> : vector<8x8xf32>
    %37 = tpu.matmul %35, %36, %cst_15 {dimension_numbers = #tpu.dot_dimension_numbers<[1], [1], [0], [0], [0, 0, 1, 0], [], []>} : vector<8x32xbf16>, vector<8x32xbf16>, vector<8x8xf32> -> vector<8x8xf32>
    %cst_16 = arith.constant 0.176776692 : f32
    %38 = vector.broadcast %cst_16 : f32 to vector<8x8xf32>
    %39 = arith.mulf %37, %38 : vector<8x8xf32>
    %cst_17 = arith.constant dense<0xFF800000> : vector<8xf32>
    %40 = vector.multi_reduction <maximumf>, %39, %cst_17 [1] : vector<8x8xf32> to vector<8xf32>
    %41 = vector.shape_cast %40 : vector<8xf32> to vector<8x1xf32>
    %42 = vector.broadcast %41 : vector<8x1xf32> to vector<8x8xf32>
    %43 = arith.subf %39, %42 : vector<8x8xf32>
    %44 = math.exp %43 : vector<8x8xf32>
    %cst_18 = arith.constant dense<0.000000e+00> : vector<8xf32>
    %45 = vector.multi_reduction <add>, %44, %cst_18 [1] : vector<8x8xf32> to vector<8xf32>
    %46 = vector.shape_cast %45 : vector<8xf32> to vector<8x1xf32>
    %47 = tpu.reciprocal %46 {approx = true} : vector<8x1xf32> -> vector<8x1xf32>
    %48 = vector.broadcast %47 : vector<8x1xf32> to vector<8x8xf32>
    %49 = arith.mulf %44, %48 : vector<8x8xf32>
    %50 = arith.truncf %49 : vector<8x8xf32> to vector<8x8xbf16>
    %51 = vector.extract_strided_slice %10 {offsets = [0, 32], sizes = [8, 32], strides = [1, 1]} : vector<8x128xbf16> to vector<8x32xbf16>
    %cst_19 = arith.constant dense<0.000000e+00> : vector<8x32xf32>
    %52 = tpu.matmul %50, %51, %cst_19 {dimension_numbers = #tpu.dot_dimension_numbers<[1], [0], [0], [1], [0, 0, 1, 1], [], []>} : vector<8x8xbf16>, vector<8x32xbf16>, vector<8x32xf32> -> vector<8x32xf32>
    %53 = arith.truncf %52 : vector<8x32xf32> to vector<8x32xbf16>
    %54 = vector.extract_strided_slice %11 {offsets = [32, 0], sizes = [32, 128], strides = [1, 1]} : vector<128x128xbf16> to vector<32x128xbf16>
    %cst_20 = arith.constant dense<0.000000e+00> : vector<8x128xf32>
    %55 = tpu.matmul %53, %54, %cst_20 {dimension_numbers = #tpu.dot_dimension_numbers<[1], [0], [0], [1], [0, 0, 1, 1], [], []>} : vector<8x32xbf16>, vector<32x128xbf16>, vector<8x128xf32> -> vector<8x128xf32>
    %56 = arith.addf %34, %55 : vector<8x128xf32>
    %57 = vector.extract_strided_slice %8 {offsets = [0, 64], sizes = [8, 32], strides = [1, 1]} : vector<8x128xbf16> to vector<8x32xbf16>
    %58 = vector.extract_strided_slice %9 {offsets = [0, 64], sizes = [8, 32], strides = [1, 1]} : vector<8x128xbf16> to vector<8x32xbf16>
    %cst_21 = arith.constant dense<0.000000e+00> : vector<8x8xf32>
    %59 = tpu.matmul %57, %58, %cst_21 {dimension_numbers = #tpu.dot_dimension_numbers<[1], [1], [0], [0], [0, 0, 1, 0], [], []>} : vector<8x32xbf16>, vector<8x32xbf16>, vector<8x8xf32> -> vector<8x8xf32>
    %cst_22 = arith.constant 0.176776692 : f32
    %60 = vector.broadcast %cst_22 : f32 to vector<8x8xf32>
    %61 = arith.mulf %59, %60 : vector<8x8xf32>
    %cst_23 = arith.constant dense<0xFF800000> : vector<8xf32>
    %62 = vector.multi_reduction <maximumf>, %61, %cst_23 [1] : vector<8x8xf32> to vector<8xf32>
    %63 = vector.shape_cast %62 : vector<8xf32> to vector<8x1xf32>
    %64 = vector.broadcast %63 : vector<8x1xf32> to vector<8x8xf32>
    %65 = arith.subf %61, %64 : vector<8x8xf32>
    %66 = math.exp %65 : vector<8x8xf32>
    %cst_24 = arith.constant dense<0.000000e+00> : vector<8xf32>
    %67 = vector.multi_reduction <add>, %66, %cst_24 [1] : vector<8x8xf32> to vector<8xf32>
    %68 = vector.shape_cast %67 : vector<8xf32> to vector<8x1xf32>
    %69 = tpu.reciprocal %68 {approx = true} : vector<8x1xf32> -> vector<8x1xf32>
    %70 = vector.broadcast %69 : vector<8x1xf32> to vector<8x8xf32>
    %71 = arith.mulf %66, %70 : vector<8x8xf32>
    %72 = arith.truncf %71 : vector<8x8xf32> to vector<8x8xbf16>
    %73 = vector.extract_strided_slice %10 {offsets = [0, 64], sizes = [8, 32], strides = [1, 1]} : vector<8x128xbf16> to vector<8x32xbf16>
    %cst_25 = arith.constant dense<0.000000e+00> : vector<8x32xf32>
    %74 = tpu.matmul %72, %73, %cst_25 {dimension_numbers = #tpu.dot_dimension_numbers<[1], [0], [0], [1], [0, 0, 1, 1], [], []>} : vector<8x8xbf16>, vector<8x32xbf16>, vector<8x32xf32> -> vector<8x32xf32>
    %75 = arith.truncf %74 : vector<8x32xf32> to vector<8x32xbf16>
    %76 = vector.extract_strided_slice %11 {offsets = [64, 0], sizes = [32, 128], strides = [1, 1]} : vector<128x128xbf16> to vector<32x128xbf16>
    %cst_26 = arith.constant dense<0.000000e+00> : vector<8x128xf32>
    %77 = tpu.matmul %75, %76, %cst_26 {dimension_numbers = #tpu.dot_dimension_numbers<[1], [0], [0], [1], [0, 0, 1, 1], [], []>} : vector<8x32xbf16>, vector<32x128xbf16>, vector<8x128xf32> -> vector<8x128xf32>
    %78 = arith.addf %56, %77 : vector<8x128xf32>
    %79 = vector.extract_strided_slice %8 {offsets = [0, 96], sizes = [8, 32], strides = [1, 1]} : vector<8x128xbf16> to vector<8x32xbf16>
    %80 = vector.extract_strided_slice %9 {offsets = [0, 96], sizes = [8, 32], strides = [1, 1]} : vector<8x128xbf16> to vector<8x32xbf16>
    %cst_27 = arith.constant dense<0.000000e+00> : vector<8x8xf32>
    %81 = tpu.matmul %79, %80, %cst_27 {dimension_numbers = #tpu.dot_dimension_numbers<[1], [1], [0], [0], [0, 0, 1, 0], [], []>} : vector<8x32xbf16>, vector<8x32xbf16>, vector<8x8xf32> -> vector<8x8xf32>
    %cst_28 = arith.constant 0.176776692 : f32
    %82 = vector.broadcast %cst_28 : f32 to vector<8x8xf32>
    %83 = arith.mulf %81, %82 : vector<8x8xf32>
    %cst_29 = arith.constant dense<0xFF800000> : vector<8xf32>
    %84 = vector.multi_reduction <maximumf>, %83, %cst_29 [1] : vector<8x8xf32> to vector<8xf32>
    %85 = vector.shape_cast %84 : vector<8xf32> to vector<8x1xf32>
    %86 = vector.broadcast %85 : vector<8x1xf32> to vector<8x8xf32>
    %87 = arith.subf %83, %86 : vector<8x8xf32>
    %88 = math.exp %87 : vector<8x8xf32>
    %cst_30 = arith.constant dense<0.000000e+00> : vector<8xf32>
    %89 = vector.multi_reduction <add>, %88, %cst_30 [1] : vector<8x8xf32> to vector<8xf32>
    %90 = vector.shape_cast %89 : vector<8xf32> to vector<8x1xf32>
    %91 = tpu.reciprocal %90 {approx = true} : vector<8x1xf32> -> vector<8x1xf32>
    %92 = vector.broadcast %91 : vector<8x1xf32> to vector<8x8xf32>
    %93 = arith.mulf %88, %92 : vector<8x8xf32>
    %94 = arith.truncf %93 : vector<8x8xf32> to vector<8x8xbf16>
    %95 = vector.extract_strided_slice %10 {offsets = [0, 96], sizes = [8, 32], strides = [1, 1]} : vector<8x128xbf16> to vector<8x32xbf16>
    %cst_31 = arith.constant dense<0.000000e+00> : vector<8x32xf32>
    %96 = tpu.matmul %94, %95, %cst_31 {dimension_numbers = #tpu.dot_dimension_numbers<[1], [0], [0], [1], [0, 0, 1, 1], [], []>} : vector<8x8xbf16>, vector<8x32xbf16>, vector<8x32xf32> -> vector<8x32xf32>
    %97 = arith.truncf %96 : vector<8x32xf32> to vector<8x32xbf16>
    %98 = vector.extract_strided_slice %11 {offsets = [96, 0], sizes = [32, 128], strides = [1, 1]} : vector<128x128xbf16> to vector<32x128xbf16>
    %cst_32 = arith.constant dense<0.000000e+00> : vector<8x128xf32>
    %99 = tpu.matmul %97, %98, %cst_32 {dimension_numbers = #tpu.dot_dimension_numbers<[1], [0], [0], [1], [0, 0, 1, 1], [], []>} : vector<8x32xbf16>, vector<32x128xbf16>, vector<8x128xf32> -> vector<8x128xf32>
    %100 = arith.addf %78, %99 : vector<8x128xf32>
    %c0_33 = arith.constant 0 : index
    %c0_34 = arith.constant 0 : index
    %101 = vector.load %arg5[%c0_33, %c0_34] : memref<1x128xf32, #tpu.memory_space<vmem>>, vector<1x128xf32>
    %102 = vector.broadcast %101 : vector<1x128xf32> to vector<8x128xf32>
    %103 = arith.addf %100, %102 : vector<8x128xf32>
    %104 = arith.extf %1 : vector<8x128xbf16> to vector<8x128xf32>
    %c0_35 = arith.constant 0 : index
    %c0_36 = arith.constant 0 : index
    %105 = vector.load %arg6[%c0_35, %c0_36] : memref<1x128xf32, #tpu.memory_space<vmem>>, vector<1x128xf32>
    %c0_37 = arith.constant 0 : index
    %c0_38 = arith.constant 0 : index
    %106 = vector.load %arg7[%c0_37, %c0_38] : memref<1x128xf32, #tpu.memory_space<vmem>>, vector<1x128xf32>
    %107 = arith.addf %104, %103 : vector<8x128xf32>
    %cst_39 = arith.constant dense<0.000000e+00> : vector<8xf32>
    %108 = vector.multi_reduction <add>, %107, %cst_39 [1] : vector<8x128xf32> to vector<8xf32>
    %109 = vector.shape_cast %108 : vector<8xf32> to vector<8x1xf32>
    %cst_40 = arith.constant 1.280000e+02 : f32
    %110 = vector.broadcast %cst_40 : f32 to vector<8x1xf32>
    %111 = arith.divf %109, %110 : vector<8x1xf32>
    %112 = vector.broadcast %111 : vector<8x1xf32> to vector<8x128xf32>
    %113 = arith.subf %107, %112 : vector<8x128xf32>
    %114 = arith.mulf %113, %113 : vector<8x128xf32>
    %cst_41 = arith.constant dense<0.000000e+00> : vector<8xf32>
    %115 = vector.multi_reduction <add>, %114, %cst_41 [1] : vector<8x128xf32> to vector<8xf32>
    %116 = vector.shape_cast %115 : vector<8xf32> to vector<8x1xf32>
    %cst_42 = arith.constant 1.280000e+02 : f32
    %117 = vector.broadcast %cst_42 : f32 to vector<8x1xf32>
    %118 = arith.divf %116, %117 : vector<8x1xf32>
    %119 = vector.broadcast %111 : vector<8x1xf32> to vector<8x128xf32>
    %120 = arith.subf %107, %119 : vector<8x128xf32>
    %cst_43 = arith.constant 9.99999974E-6 : f32
    %121 = vector.broadcast %cst_43 : f32 to vector<8x1xf32>
    %122 = arith.addf %118, %121 : vector<8x1xf32>
    %123 = math.rsqrt %122 : vector<8x1xf32>
    %124 = vector.broadcast %123 : vector<8x1xf32> to vector<8x128xf32>
    %125 = arith.mulf %120, %124 : vector<8x128xf32>
    %126 = vector.broadcast %105 : vector<1x128xf32> to vector<8x128xf32>
    %127 = arith.mulf %125, %126 : vector<8x128xf32>
    %128 = vector.broadcast %106 : vector<1x128xf32> to vector<8x128xf32>
    %129 = arith.addf %127, %128 : vector<8x128xf32>
    %130 = arith.truncf %129 : vector<8x128xf32> to vector<8x128xbf16>
    %c0_44 = arith.constant 0 : index
    %c0_45 = arith.constant 0 : index
    %131 = vector.load %arg8[%c0_44, %c0_45] : memref<128x256xbf16, #tpu.memory_space<vmem>>, vector<128x256xbf16>
    %c0_46 = arith.constant 0 : index
    %c0_47 = arith.constant 0 : index
    %132 = vector.load %arg9[%c0_46, %c0_47] : memref<1x256xf32, #tpu.memory_space<vmem>>, vector<1x256xf32>
    %c0_48 = arith.constant 0 : index
    %c0_49 = arith.constant 0 : index
    %133 = vector.load %arg10[%c0_48, %c0_49] : memref<256x128xbf16, #tpu.memory_space<vmem>>, vector<256x128xbf16>
    %c0_50 = arith.constant 0 : index
    %c0_51 = arith.constant 0 : index
    %134 = vector.load %arg11[%c0_50, %c0_51] : memref<1x128xf32, #tpu.memory_space<vmem>>, vector<1x128xf32>
    %cst_52 = arith.constant dense<0.000000e+00> : vector<8x256xf32>
    %135 = tpu.matmul %130, %131, %cst_52 {dimension_numbers = #tpu.dot_dimension_numbers<[1], [0], [0], [1], [0, 0, 1, 1], [], []>} : vector<8x128xbf16>, vector<128x256xbf16>, vector<8x256xf32> -> vector<8x256xf32>
    %136 = vector.broadcast %132 : vector<1x256xf32> to vector<8x256xf32>
    %137 = arith.addf %135, %136 : vector<8x256xf32>
    %cst_53 = arith.constant 0.000000e+00 : f32
    %138 = vector.broadcast %cst_53 : f32 to vector<8x256xf32>
    %139 = arith.maximumf %137, %138 : vector<8x256xf32>
    %140 = arith.truncf %139 : vector<8x256xf32> to vector<8x256xbf16>
    %cst_54 = arith.constant dense<0.000000e+00> : vector<8x128xf32>
    %141 = tpu.matmul %140, %133, %cst_54 {dimension_numbers = #tpu.dot_dimension_numbers<[1], [0], [0], [1], [0, 0, 1, 1], [], []>} : vector<8x256xbf16>, vector<256x128xbf16>, vector<8x128xf32> -> vector<8x128xf32>
    %142 = vector.broadcast %134 : vector<1x128xf32> to vector<8x128xf32>
    %143 = arith.addf %141, %142 : vector<8x128xf32>
    %c0_55 = arith.constant 0 : index
    %c0_56 = arith.constant 0 : index
    %144 = vector.load %arg12[%c0_55, %c0_56] : memref<1x128xf32, #tpu.memory_space<vmem>>, vector<1x128xf32>
    %c0_57 = arith.constant 0 : index
    %c0_58 = arith.constant 0 : index
    %145 = vector.load %arg13[%c0_57, %c0_58] : memref<1x128xf32, #tpu.memory_space<vmem>>, vector<1x128xf32>
    %146 = arith.addf %129, %143 : vector<8x128xf32>
    %cst_59 = arith.constant dense<0.000000e+00> : vector<8xf32>
    %147 = vector.multi_reduction <add>, %146, %cst_59 [1] : vector<8x128xf32> to vector<8xf32>
    %148 = vector.shape_cast %147 : vector<8xf32> to vector<8x1xf32>
    %cst_60 = arith.constant 1.280000e+02 : f32
    %149 = vector.broadcast %cst_60 : f32 to vector<8x1xf32>
    %150 = arith.divf %148, %149 : vector<8x1xf32>
    %151 = vector.broadcast %150 : vector<8x1xf32> to vector<8x128xf32>
    %152 = arith.subf %146, %151 : vector<8x128xf32>
    %153 = arith.mulf %152, %152 : vector<8x128xf32>
    %cst_61 = arith.constant dense<0.000000e+00> : vector<8xf32>
    %154 = vector.multi_reduction <add>, %153, %cst_61 [1] : vector<8x128xf32> to vector<8xf32>
    %155 = vector.shape_cast %154 : vector<8xf32> to vector<8x1xf32>
    %cst_62 = arith.constant 1.280000e+02 : f32
    %156 = vector.broadcast %cst_62 : f32 to vector<8x1xf32>
    %157 = arith.divf %155, %156 : vector<8x1xf32>
    %158 = vector.broadcast %150 : vector<8x1xf32> to vector<8x128xf32>
    %159 = arith.subf %146, %158 : vector<8x128xf32>
    %cst_63 = arith.constant 9.99999974E-6 : f32
    %160 = vector.broadcast %cst_63 : f32 to vector<8x1xf32>
    %161 = arith.addf %157, %160 : vector<8x1xf32>
    %162 = math.rsqrt %161 : vector<8x1xf32>
    %163 = vector.broadcast %162 : vector<8x1xf32> to vector<8x128xf32>
    %164 = arith.mulf %159, %163 : vector<8x128xf32>
    %165 = vector.broadcast %144 : vector<1x128xf32> to vector<8x128xf32>
    %166 = arith.mulf %164, %165 : vector<8x128xf32>
    %167 = vector.broadcast %145 : vector<1x128xf32> to vector<8x128xf32>
    %168 = arith.addf %166, %167 : vector<8x128xf32>
    %169 = arith.truncf %168 : vector<8x128xf32> to vector<8x128xbf16>
    %c0_64 = arith.constant 0 : index
    %c0_65 = arith.constant 0 : index
    %c0_66 = arith.constant 0 : index
    %170 = vector.load %arg14[%c0_64, %c0_65, %c0_66] : memref<1x8x128xbf16, #tpu.memory_space<vmem>>, vector<1x8x128xbf16>
    %171 = vector.shape_cast %170 : vector<1x8x128xbf16> to vector<8x128xbf16>
    %172 = vector.shape_cast %169 : vector<8x128xbf16> to vector<1x8x128xbf16>
    tpu.vector_store %arg14[%c0_64, %c0_65, %c0_66], %172 {strides = array<i32>} : memref<1x8x128xbf16, #tpu.memory_space<vmem>>, vector<1x8x128xbf16>,
    return
  }
  func.func @transform_0(%arg0: i32) -> (i32, i32, i32) {
    %c0_i32 = arith.constant 0 : i32
    %c0_i32_0 = arith.constant 0 : i32
    %c0_i32_1 = arith.constant 0 : i32
    return %arg0, %c0_i32, %c0_i32_0 : i32, i32, i32
  }
  func.func @transform_1(%arg0: i32) -> (i32, i32) {
    %c0_i32 = arith.constant 0 : i32
    %c0_i32_0 = arith.constant 0 : i32
    %c0_i32_1 = arith.constant 0 : i32
    return %c0_i32, %c0_i32_0 : i32, i32
  }
  func.func @transform_2(%arg0: i32) -> (i32, i32) {
    %c0_i32 = arith.constant 0 : i32
    %c0_i32_0 = arith.constant 0 : i32
    %c0_i32_1 = arith.constant 0 : i32
    return %c0_i32, %c0_i32_0 : i32, i32
  }
  func.func @transform_3(%arg0: i32) -> (i32, i32) {
    %c0_i32 = arith.constant 0 : i32
    %c0_i32_0 = arith.constant 0 : i32
    %c0_i32_1 = arith.constant 0 : i32
    return %c0_i32, %c0_i32_0 : i32, i32
  }
  func.func @transform_4(%arg0: i32) -> (i32, i32) {
    %c0_i32 = arith.constant 0 : i32
    %c0_i32_0 = arith.constant 0 : i32
    %c0_i32_1 = arith.constant 0 : i32
    return %c0_i32, %c0_i32_0 : i32, i32
  }
  func.func @transform_5(%arg0: i32) -> (i32, i32) {
    %c0_i32 = arith.constant 0 : i32
    %c0_i32_0 = arith.constant 0 : i32
    %c0_i32_1 = arith.constant 0 : i32
    return %c0_i32, %c0_i32_0 : i32, i32
  }
  func.func @transform_6(%arg0: i32) -> (i32, i32) {
    %c0_i32 = arith.constant 0 : i32
    %c0_i32_0 = arith.constant 0 : i32
    %c0_i32_1 = arith.constant 0 : i32
    return %c0_i32, %c0_i32_0 : i32, i32
  }
  func.func @transform_7(%arg0: i32) -> (i32, i32) {
    %c0_i32 = arith.constant 0 : i32
    %c0_i32_0 = arith.constant 0 : i32
    %c0_i32_1 = arith.constant 0 : i32
    return %c0_i32, %c0_i32_0 : i32, i32
  }
  func.func @transform_8(%arg0: i32) -> (i32, i32) {
    %c0_i32 = arith.constant 0 : i32
    %c0_i32_0 = arith.constant 0 : i32
    %c0_i32_1 = arith.constant 0 : i32
    return %c0_i32, %c0_i32_0 : i32, i32
  }
  func.func @transform_9(%arg0: i32) -> (i32, i32) {
    %c0_i32 = arith.constant 0 : i32
    %c0_i32_0 = arith.constant 0 : i32
    %c0_i32_1 = arith.constant 0 : i32
    return %c0_i32, %c0_i32_0 : i32, i32
  }
  func.func @transform_10(%arg0: i32) -> (i32, i32) {
    %c0_i32 = arith.constant 0 : i32
    %c0_i32_0 = arith.constant 0 : i32
    %c0_i32_1 = arith.constant 0 : i32
    return %c0_i32, %c0_i32_0 : i32, i32
  }
  func.func @transform_11(%arg0: i32) -> (i32, i32) {
    %c0_i32 = arith.constant 0 : i32
    %c0_i32_0 = arith.constant 0 : i32
    %c0_i32_1 = arith.constant 0 : i32
    return %c0_i32, %c0_i32_0 : i32, i32
  }
  func.func @transform_12(%arg0: i32) -> (i32, i32) {
    %c0_i32 = arith.constant 0 : i32
    %c0_i32_0 = arith.constant 0 : i32
    %c0_i32_1 = arith.constant 0 : i32
    return %c0_i32, %c0_i32_0 : i32, i32
  }
  func.func @transform_13(%arg0: i32) -> (i32, i32, i32) {
    %c0_i32 = arith.constant 0 : i32
    %c0_i32_0 = arith.constant 0 : i32
    %c0_i32_1 = arith.constant 0 : i32
    return %arg0, %c0_i32, %c0_i32_0 : i32, i32, i32
  }
}

module attributes {stable_mosaic.version = 11 : i64} {
  func.func @_embed_align_kernel(%arg0: i32, %arg1: memref<1x8x64xbf16, #tpu.memory_space<vmem>>, %arg2: memref<64x128xbf16, #tpu.memory_space<vmem>>, %arg3: memref<1x128xf32, #tpu.memory_space<vmem>>, %arg4: memref<8x128xf32, #tpu.memory_space<vmem>>, %arg5: memref<1x8x128xbf16, #tpu.memory_space<vmem>>) attributes {dimension_semantics = [#tpu.dimension_semantics<parallel>], iteration_bounds = array<i64: 2>, scalar_prefetch = 0 : i64, scratch_operands = 0 : i64, tpu.core_type = #tpu.core_type<tc>, window_params = [{transform_indices = @transform_0, window_bounds = array<i64: 1, 8, 64>}, {pipeline_mode = #tpu.pipeline_mode<synchronous>, transform_indices = @transform_1, window_bounds = array<i64: 64, 128>}, {pipeline_mode = #tpu.pipeline_mode<synchronous>, transform_indices = @transform_2, window_bounds = array<i64: 1, 128>}, {pipeline_mode = #tpu.pipeline_mode<synchronous>, transform_indices = @transform_3, window_bounds = array<i64: 8, 128>}, {transform_indices = @transform_4, window_bounds = array<i64: 1, 8, 128>}]} {
    %c0 = arith.constant 0 : index
    %c0_0 = arith.constant 0 : index
    %c0_1 = arith.constant 0 : index
    %0 = vector.load %arg1[%c0, %c0_0, %c0_1] : memref<1x8x64xbf16, #tpu.memory_space<vmem>>, vector<1x8x64xbf16>
    %1 = vector.shape_cast %0 : vector<1x8x64xbf16> to vector<8x64xbf16>
    %c0_2 = arith.constant 0 : index
    %c0_3 = arith.constant 0 : index
    %2 = vector.load %arg2[%c0_2, %c0_3] : memref<64x128xbf16, #tpu.memory_space<vmem>>, vector<64x128xbf16>
    %cst = arith.constant dense<0.000000e+00> : vector<8x128xf32>
    %3 = tpu.matmul %1, %2, %cst {dimension_numbers = #tpu.dot_dimension_numbers<[1], [0], [0], [1], [0, 0, 1, 1], [], []>} : vector<8x64xbf16>, vector<64x128xbf16>, vector<8x128xf32> -> vector<8x128xf32>
    %c0_4 = arith.constant 0 : index
    %c0_5 = arith.constant 0 : index
    %4 = vector.load %arg3[%c0_4, %c0_5] : memref<1x128xf32, #tpu.memory_space<vmem>>, vector<1x128xf32>
    %5 = vector.broadcast %4 : vector<1x128xf32> to vector<8x128xf32>
    %6 = arith.addf %3, %5 : vector<8x128xf32>
    %c0_6 = arith.constant 0 : index
    %c0_7 = arith.constant 0 : index
    %7 = vector.load %arg4[%c0_6, %c0_7] : memref<8x128xf32, #tpu.memory_space<vmem>>, vector<8x128xf32>
    %8 = arith.addf %6, %7 : vector<8x128xf32>
    %9 = arith.truncf %8 : vector<8x128xf32> to vector<8x128xbf16>
    %c0_8 = arith.constant 0 : index
    %c0_9 = arith.constant 0 : index
    %c0_10 = arith.constant 0 : index
    %10 = vector.load %arg5[%c0_8, %c0_9, %c0_10] : memref<1x8x128xbf16, #tpu.memory_space<vmem>>, vector<1x8x128xbf16>
    %11 = vector.shape_cast %10 : vector<1x8x128xbf16> to vector<8x128xbf16>
    %12 = vector.shape_cast %9 : vector<8x128xbf16> to vector<1x8x128xbf16>
    tpu.vector_store %arg5[%c0_8, %c0_9, %c0_10], %12 {strides = array<i32>} : memref<1x8x128xbf16, #tpu.memory_space<vmem>>, vector<1x8x128xbf16>,
    return
  }
  func.func @transform_0(%arg0: i32) -> (i32, i32, i32) {
    %c0_i32 = arith.constant 0 : i32
    %c0_i32_0 = arith.constant 0 : i32
    %c0_i32_1 = arith.constant 0 : i32
    return %arg0, %c0_i32, %c0_i32_0 : i32, i32, i32
  }
  func.func @transform_1(%arg0: i32) -> (i32, i32) {
    %c0_i32 = arith.constant 0 : i32
    %c0_i32_0 = arith.constant 0 : i32
    %c0_i32_1 = arith.constant 0 : i32
    return %c0_i32, %c0_i32_0 : i32, i32
  }
  func.func @transform_2(%arg0: i32) -> (i32, i32) {
    %c0_i32 = arith.constant 0 : i32
    %c0_i32_0 = arith.constant 0 : i32
    %c0_i32_1 = arith.constant 0 : i32
    return %c0_i32, %c0_i32_0 : i32, i32
  }
  func.func @transform_3(%arg0: i32) -> (i32, i32) {
    %c0_i32 = arith.constant 0 : i32
    %c0_i32_0 = arith.constant 0 : i32
    %c0_i32_1 = arith.constant 0 : i32
    return %c0_i32, %c0_i32_0 : i32, i32
  }
  func.func @transform_4(%arg0: i32) -> (i32, i32, i32) {
    %c0_i32 = arith.constant 0 : i32
    %c0_i32_0 = arith.constant 0 : i32
    %c0_i32_1 = arith.constant 0 : i32
    return %arg0, %c0_i32, %c0_i32_0 : i32, i32, i32
  }
}

module attributes {stable_mosaic.version = 11 : i64} {
  func.func @_encoder_layer_kernel(%arg0: i32, %arg1: memref<1x8x128xbf16, #tpu.memory_space<vmem>>, %arg2: memref<128x384xbf16, #tpu.memory_space<vmem>>, %arg3: memref<1x384xf32, #tpu.memory_space<vmem>>, %arg4: memref<128x128xbf16, #tpu.memory_space<vmem>>, %arg5: memref<1x128xf32, #tpu.memory_space<vmem>>, %arg6: memref<1x128xf32, #tpu.memory_space<vmem>>, %arg7: memref<1x128xf32, #tpu.memory_space<vmem>>, %arg8: memref<128x256xbf16, #tpu.memory_space<vmem>>, %arg9: memref<1x256xf32, #tpu.memory_space<vmem>>, %arg10: memref<256x128xbf16, #tpu.memory_space<vmem>>, %arg11: memref<1x128xf32, #tpu.memory_space<vmem>>, %arg12: memref<1x128xf32, #tpu.memory_space<vmem>>, %arg13: memref<1x128xf32, #tpu.memory_space<vmem>>, %arg14: memref<1x8x128xbf16, #tpu.memory_space<vmem>>) attributes {dimension_semantics = [#tpu.dimension_semantics<parallel>], iteration_bounds = array<i64: 2>, scalar_prefetch = 0 : i64, scratch_operands = 0 : i64, tpu.core_type = #tpu.core_type<tc>, window_params = [{transform_indices = @transform_0, window_bounds = array<i64: 1, 8, 128>}, {pipeline_mode = #tpu.pipeline_mode<synchronous>, transform_indices = @transform_1, window_bounds = array<i64: 128, 384>}, {pipeline_mode = #tpu.pipeline_mode<synchronous>, transform_indices = @transform_2, window_bounds = array<i64: 1, 384>}, {pipeline_mode = #tpu.pipeline_mode<synchronous>, transform_indices = @transform_3, window_bounds = array<i64: 128, 128>}, {pipeline_mode = #tpu.pipeline_mode<synchronous>, transform_indices = @transform_4, window_bounds = array<i64: 1, 128>}, {pipeline_mode = #tpu.pipeline_mode<synchronous>, transform_indices = @transform_5, window_bounds = array<i64: 1, 128>}, {pipeline_mode = #tpu.pipeline_mode<synchronous>, transform_indices = @transform_6, window_bounds = array<i64: 1, 128>}, {pipeline_mode = #tpu.pipeline_mode<synchronous>, transform_indices = @transform_7, window_bounds = array<i64: 128, 256>}, {pipeline_mode = #tpu.pipeline_mode<synchronous>, transform_indices = @transform_8, window_bounds = array<i64: 1, 256>}, {pipeline_mode = #tpu.pipeline_mode<synchronous>, transform_indices = @transform_9, window_bounds = array<i64: 256, 128>}, {pipeline_mode = #tpu.pipeline_mode<synchronous>, transform_indices = @transform_10, window_bounds = array<i64: 1, 128>}, {pipeline_mode = #tpu.pipeline_mode<synchronous>, transform_indices = @transform_11, window_bounds = array<i64: 1, 128>}, {pipeline_mode = #tpu.pipeline_mode<synchronous>, transform_indices = @transform_12, window_bounds = array<i64: 1, 128>}, {transform_indices = @transform_13, window_bounds = array<i64: 1, 8, 128>}]} {
    %c0 = arith.constant 0 : index
    %c0_0 = arith.constant 0 : index
    %c0_1 = arith.constant 0 : index
    %0 = vector.load %arg1[%c0, %c0_0, %c0_1] : memref<1x8x128xbf16, #tpu.memory_space<vmem>>, vector<1x8x128xbf16>
    %1 = vector.shape_cast %0 : vector<1x8x128xbf16> to vector<8x128xbf16>
    %c0_2 = arith.constant 0 : index
    %c0_3 = arith.constant 0 : index
    %2 = vector.load %arg2[%c0_2, %c0_3] : memref<128x384xbf16, #tpu.memory_space<vmem>>, vector<128x384xbf16>
    %cst = arith.constant dense<0.000000e+00> : vector<8x384xf32>
    %3 = tpu.matmul %1, %2, %cst {dimension_numbers = #tpu.dot_dimension_numbers<[1], [0], [0], [1], [0, 0, 1, 1], [], []>} : vector<8x128xbf16>, vector<128x384xbf16>, vector<8x384xf32> -> vector<8x384xf32>
    %c0_4 = arith.constant 0 : index
    %c0_5 = arith.constant 0 : index
    %4 = vector.load %arg3[%c0_4, %c0_5] : memref<1x384xf32, #tpu.memory_space<vmem>>, vector<1x384xf32>
    %5 = vector.broadcast %4 : vector<1x384xf32> to vector<8x384xf32>
    %6 = arith.addf %3, %5 : vector<8x384xf32>
    %7 = arith.truncf %6 : vector<8x384xf32> to vector<8x384xbf16>
    %8 = vector.extract_strided_slice %7 {offsets = [0, 0], sizes = [8, 128], strides = [1, 1]} : vector<8x384xbf16> to vector<8x128xbf16>
    %9 = vector.extract_strided_slice %7 {offsets = [0, 128], sizes = [8, 128], strides = [1, 1]} : vector<8x384xbf16> to vector<8x128xbf16>
    %10 = vector.extract_strided_slice %7 {offsets = [0, 256], sizes = [8, 128], strides = [1, 1]} : vector<8x384xbf16> to vector<8x128xbf16>
    %c0_6 = arith.constant 0 : index
    %c0_7 = arith.constant 0 : index
    %11 = vector.load %arg4[%c0_6, %c0_7] : memref<128x128xbf16, #tpu.memory_space<vmem>>, vector<128x128xbf16>
    %cst_8 = arith.constant 0.000000e+00 : f32
    %12 = vector.broadcast %cst_8 : f32 to vector<8x128xf32>
    %13 = vector.extract_strided_slice %8 {offsets = [0, 0], sizes = [8, 32], strides = [1, 1]} : vector<8x128xbf16> to vector<8x32xbf16>
    %14 = vector.extract_strided_slice %9 {offsets = [0, 0], sizes = [8, 32], strides = [1, 1]} : vector<8x128xbf16> to vector<8x32xbf16>
    %cst_9 = arith.constant dense<0.000000e+00> : vector<8x8xf32>
    %15 = tpu.matmul %13, %14, %cst_9 {dimension_numbers = #tpu.dot_dimension_numbers<[1], [1], [0], [0], [0, 0, 1, 0], [], []>} : vector<8x32xbf16>, vector<8x32xbf16>, vector<8x8xf32> -> vector<8x8xf32>
    %cst_10 = arith.constant 0.176776692 : f32
    %16 = vector.broadcast %cst_10 : f32 to vector<8x8xf32>
    %17 = arith.mulf %15, %16 : vector<8x8xf32>
    %cst_11 = arith.constant dense<0xFF800000> : vector<8xf32>
    %18 = vector.multi_reduction <maximumf>, %17, %cst_11 [1] : vector<8x8xf32> to vector<8xf32>
    %19 = vector.shape_cast %18 : vector<8xf32> to vector<8x1xf32>
    %20 = vector.broadcast %19 : vector<8x1xf32> to vector<8x8xf32>
    %21 = arith.subf %17, %20 : vector<8x8xf32>
    %22 = math.exp %21 : vector<8x8xf32>
    %cst_12 = arith.constant dense<0.000000e+00> : vector<8xf32>
    %23 = vector.multi_reduction <add>, %22, %cst_12 [1] : vector<8x8xf32> to vector<8xf32>
    %24 = vector.shape_cast %23 : vector<8xf32> to vector<8x1xf32>
    %25 = tpu.reciprocal %24 {approx = true} : vector<8x1xf32> -> vector<8x1xf32>
    %26 = vector.broadcast %25 : vector<8x1xf32> to vector<8x8xf32>
    %27 = arith.mulf %22, %26 : vector<8x8xf32>
    %28 = arith.truncf %27 : vector<8x8xf32> to vector<8x8xbf16>
    %29 = vector.extract_strided_slice %10 {offsets = [0, 0], sizes = [8, 32], strides = [1, 1]} : vector<8x128xbf16> to vector<8x32xbf16>
    %cst_13 = arith.constant dense<0.000000e+00> : vector<8x32xf32>
    %30 = tpu.matmul %28, %29, %cst_13 {dimension_numbers = #tpu.dot_dimension_numbers<[1], [0], [0], [1], [0, 0, 1, 1], [], []>} : vector<8x8xbf16>, vector<8x32xbf16>, vector<8x32xf32> -> vector<8x32xf32>
    %31 = arith.truncf %30 : vector<8x32xf32> to vector<8x32xbf16>
    %32 = vector.extract_strided_slice %11 {offsets = [0, 0], sizes = [32, 128], strides = [1, 1]} : vector<128x128xbf16> to vector<32x128xbf16>
    %cst_14 = arith.constant dense<0.000000e+00> : vector<8x128xf32>
    %33 = tpu.matmul %31, %32, %cst_14 {dimension_numbers = #tpu.dot_dimension_numbers<[1], [0], [0], [1], [0, 0, 1, 1], [], []>} : vector<8x32xbf16>, vector<32x128xbf16>, vector<8x128xf32> -> vector<8x128xf32>
    %34 = arith.addf %12, %33 : vector<8x128xf32>
    %35 = vector.extract_strided_slice %8 {offsets = [0, 32], sizes = [8, 32], strides = [1, 1]} : vector<8x128xbf16> to vector<8x32xbf16>
    %36 = vector.extract_strided_slice %9 {offsets = [0, 32], sizes = [8, 32], strides = [1, 1]} : vector<8x128xbf16> to vector<8x32xbf16>
    %cst_15 = arith.constant dense<0.000000e+00> : vector<8x8xf32>
    %37 = tpu.matmul %35, %36, %cst_15 {dimension_numbers = #tpu.dot_dimension_numbers<[1], [1], [0], [0], [0, 0, 1, 0], [], []>} : vector<8x32xbf16>, vector<8x32xbf16>, vector<8x8xf32> -> vector<8x8xf32>
    %cst_16 = arith.constant 0.176776692 : f32
    %38 = vector.broadcast %cst_16 : f32 to vector<8x8xf32>
    %39 = arith.mulf %37, %38 : vector<8x8xf32>
    %cst_17 = arith.constant dense<0xFF800000> : vector<8xf32>
    %40 = vector.multi_reduction <maximumf>, %39, %cst_17 [1] : vector<8x8xf32> to vector<8xf32>
    %41 = vector.shape_cast %40 : vector<8xf32> to vector<8x1xf32>
    %42 = vector.broadcast %41 : vector<8x1xf32> to vector<8x8xf32>
    %43 = arith.subf %39, %42 : vector<8x8xf32>
    %44 = math.exp %43 : vector<8x8xf32>
    %cst_18 = arith.constant dense<0.000000e+00> : vector<8xf32>
    %45 = vector.multi_reduction <add>, %44, %cst_18 [1] : vector<8x8xf32> to vector<8xf32>
    %46 = vector.shape_cast %45 : vector<8xf32> to vector<8x1xf32>
    %47 = tpu.reciprocal %46 {approx = true} : vector<8x1xf32> -> vector<8x1xf32>
    %48 = vector.broadcast %47 : vector<8x1xf32> to vector<8x8xf32>
    %49 = arith.mulf %44, %48 : vector<8x8xf32>
    %50 = arith.truncf %49 : vector<8x8xf32> to vector<8x8xbf16>
    %51 = vector.extract_strided_slice %10 {offsets = [0, 32], sizes = [8, 32], strides = [1, 1]} : vector<8x128xbf16> to vector<8x32xbf16>
    %cst_19 = arith.constant dense<0.000000e+00> : vector<8x32xf32>
    %52 = tpu.matmul %50, %51, %cst_19 {dimension_numbers = #tpu.dot_dimension_numbers<[1], [0], [0], [1], [0, 0, 1, 1], [], []>} : vector<8x8xbf16>, vector<8x32xbf16>, vector<8x32xf32> -> vector<8x32xf32>
    %53 = arith.truncf %52 : vector<8x32xf32> to vector<8x32xbf16>
    %54 = vector.extract_strided_slice %11 {offsets = [32, 0], sizes = [32, 128], strides = [1, 1]} : vector<128x128xbf16> to vector<32x128xbf16>
    %cst_20 = arith.constant dense<0.000000e+00> : vector<8x128xf32>
    %55 = tpu.matmul %53, %54, %cst_20 {dimension_numbers = #tpu.dot_dimension_numbers<[1], [0], [0], [1], [0, 0, 1, 1], [], []>} : vector<8x32xbf16>, vector<32x128xbf16>, vector<8x128xf32> -> vector<8x128xf32>
    %56 = arith.addf %34, %55 : vector<8x128xf32>
    %57 = vector.extract_strided_slice %8 {offsets = [0, 64], sizes = [8, 32], strides = [1, 1]} : vector<8x128xbf16> to vector<8x32xbf16>
    %58 = vector.extract_strided_slice %9 {offsets = [0, 64], sizes = [8, 32], strides = [1, 1]} : vector<8x128xbf16> to vector<8x32xbf16>
    %cst_21 = arith.constant dense<0.000000e+00> : vector<8x8xf32>
    %59 = tpu.matmul %57, %58, %cst_21 {dimension_numbers = #tpu.dot_dimension_numbers<[1], [1], [0], [0], [0, 0, 1, 0], [], []>} : vector<8x32xbf16>, vector<8x32xbf16>, vector<8x8xf32> -> vector<8x8xf32>
    %cst_22 = arith.constant 0.176776692 : f32
    %60 = vector.broadcast %cst_22 : f32 to vector<8x8xf32>
    %61 = arith.mulf %59, %60 : vector<8x8xf32>
    %cst_23 = arith.constant dense<0xFF800000> : vector<8xf32>
    %62 = vector.multi_reduction <maximumf>, %61, %cst_23 [1] : vector<8x8xf32> to vector<8xf32>
    %63 = vector.shape_cast %62 : vector<8xf32> to vector<8x1xf32>
    %64 = vector.broadcast %63 : vector<8x1xf32> to vector<8x8xf32>
    %65 = arith.subf %61, %64 : vector<8x8xf32>
    %66 = math.exp %65 : vector<8x8xf32>
    %cst_24 = arith.constant dense<0.000000e+00> : vector<8xf32>
    %67 = vector.multi_reduction <add>, %66, %cst_24 [1] : vector<8x8xf32> to vector<8xf32>
    %68 = vector.shape_cast %67 : vector<8xf32> to vector<8x1xf32>
    %69 = tpu.reciprocal %68 {approx = true} : vector<8x1xf32> -> vector<8x1xf32>
    %70 = vector.broadcast %69 : vector<8x1xf32> to vector<8x8xf32>
    %71 = arith.mulf %66, %70 : vector<8x8xf32>
    %72 = arith.truncf %71 : vector<8x8xf32> to vector<8x8xbf16>
    %73 = vector.extract_strided_slice %10 {offsets = [0, 64], sizes = [8, 32], strides = [1, 1]} : vector<8x128xbf16> to vector<8x32xbf16>
    %cst_25 = arith.constant dense<0.000000e+00> : vector<8x32xf32>
    %74 = tpu.matmul %72, %73, %cst_25 {dimension_numbers = #tpu.dot_dimension_numbers<[1], [0], [0], [1], [0, 0, 1, 1], [], []>} : vector<8x8xbf16>, vector<8x32xbf16>, vector<8x32xf32> -> vector<8x32xf32>
    %75 = arith.truncf %74 : vector<8x32xf32> to vector<8x32xbf16>
    %76 = vector.extract_strided_slice %11 {offsets = [64, 0], sizes = [32, 128], strides = [1, 1]} : vector<128x128xbf16> to vector<32x128xbf16>
    %cst_26 = arith.constant dense<0.000000e+00> : vector<8x128xf32>
    %77 = tpu.matmul %75, %76, %cst_26 {dimension_numbers = #tpu.dot_dimension_numbers<[1], [0], [0], [1], [0, 0, 1, 1], [], []>} : vector<8x32xbf16>, vector<32x128xbf16>, vector<8x128xf32> -> vector<8x128xf32>
    %78 = arith.addf %56, %77 : vector<8x128xf32>
    %79 = vector.extract_strided_slice %8 {offsets = [0, 96], sizes = [8, 32], strides = [1, 1]} : vector<8x128xbf16> to vector<8x32xbf16>
    %80 = vector.extract_strided_slice %9 {offsets = [0, 96], sizes = [8, 32], strides = [1, 1]} : vector<8x128xbf16> to vector<8x32xbf16>
    %cst_27 = arith.constant dense<0.000000e+00> : vector<8x8xf32>
    %81 = tpu.matmul %79, %80, %cst_27 {dimension_numbers = #tpu.dot_dimension_numbers<[1], [1], [0], [0], [0, 0, 1, 0], [], []>} : vector<8x32xbf16>, vector<8x32xbf16>, vector<8x8xf32> -> vector<8x8xf32>
    %cst_28 = arith.constant 0.176776692 : f32
    %82 = vector.broadcast %cst_28 : f32 to vector<8x8xf32>
    %83 = arith.mulf %81, %82 : vector<8x8xf32>
    %cst_29 = arith.constant dense<0xFF800000> : vector<8xf32>
    %84 = vector.multi_reduction <maximumf>, %83, %cst_29 [1] : vector<8x8xf32> to vector<8xf32>
    %85 = vector.shape_cast %84 : vector<8xf32> to vector<8x1xf32>
    %86 = vector.broadcast %85 : vector<8x1xf32> to vector<8x8xf32>
    %87 = arith.subf %83, %86 : vector<8x8xf32>
    %88 = math.exp %87 : vector<8x8xf32>
    %cst_30 = arith.constant dense<0.000000e+00> : vector<8xf32>
    %89 = vector.multi_reduction <add>, %88, %cst_30 [1] : vector<8x8xf32> to vector<8xf32>
    %90 = vector.shape_cast %89 : vector<8xf32> to vector<8x1xf32>
    %91 = tpu.reciprocal %90 {approx = true} : vector<8x1xf32> -> vector<8x1xf32>
    %92 = vector.broadcast %91 : vector<8x1xf32> to vector<8x8xf32>
    %93 = arith.mulf %88, %92 : vector<8x8xf32>
    %94 = arith.truncf %93 : vector<8x8xf32> to vector<8x8xbf16>
    %95 = vector.extract_strided_slice %10 {offsets = [0, 96], sizes = [8, 32], strides = [1, 1]} : vector<8x128xbf16> to vector<8x32xbf16>
    %cst_31 = arith.constant dense<0.000000e+00> : vector<8x32xf32>
    %96 = tpu.matmul %94, %95, %cst_31 {dimension_numbers = #tpu.dot_dimension_numbers<[1], [0], [0], [1], [0, 0, 1, 1], [], []>} : vector<8x8xbf16>, vector<8x32xbf16>, vector<8x32xf32> -> vector<8x32xf32>
    %97 = arith.truncf %96 : vector<8x32xf32> to vector<8x32xbf16>
    %98 = vector.extract_strided_slice %11 {offsets = [96, 0], sizes = [32, 128], strides = [1, 1]} : vector<128x128xbf16> to vector<32x128xbf16>
    %cst_32 = arith.constant dense<0.000000e+00> : vector<8x128xf32>
    %99 = tpu.matmul %97, %98, %cst_32 {dimension_numbers = #tpu.dot_dimension_numbers<[1], [0], [0], [1], [0, 0, 1, 1], [], []>} : vector<8x32xbf16>, vector<32x128xbf16>, vector<8x128xf32> -> vector<8x128xf32>
    %100 = arith.addf %78, %99 : vector<8x128xf32>
    %c0_33 = arith.constant 0 : index
    %c0_34 = arith.constant 0 : index
    %101 = vector.load %arg5[%c0_33, %c0_34] : memref<1x128xf32, #tpu.memory_space<vmem>>, vector<1x128xf32>
    %102 = vector.broadcast %101 : vector<1x128xf32> to vector<8x128xf32>
    %103 = arith.addf %100, %102 : vector<8x128xf32>
    %104 = arith.extf %1 : vector<8x128xbf16> to vector<8x128xf32>
    %c0_35 = arith.constant 0 : index
    %c0_36 = arith.constant 0 : index
    %105 = vector.load %arg6[%c0_35, %c0_36] : memref<1x128xf32, #tpu.memory_space<vmem>>, vector<1x128xf32>
    %c0_37 = arith.constant 0 : index
    %c0_38 = arith.constant 0 : index
    %106 = vector.load %arg7[%c0_37, %c0_38] : memref<1x128xf32, #tpu.memory_space<vmem>>, vector<1x128xf32>
    %107 = arith.addf %104, %103 : vector<8x128xf32>
    %cst_39 = arith.constant dense<0.000000e+00> : vector<8xf32>
    %108 = vector.multi_reduction <add>, %107, %cst_39 [1] : vector<8x128xf32> to vector<8xf32>
    %109 = vector.shape_cast %108 : vector<8xf32> to vector<8x1xf32>
    %cst_40 = arith.constant 1.280000e+02 : f32
    %110 = vector.broadcast %cst_40 : f32 to vector<8x1xf32>
    %111 = arith.divf %109, %110 : vector<8x1xf32>
    %112 = vector.broadcast %111 : vector<8x1xf32> to vector<8x128xf32>
    %113 = arith.subf %107, %112 : vector<8x128xf32>
    %114 = arith.mulf %113, %113 : vector<8x128xf32>
    %cst_41 = arith.constant dense<0.000000e+00> : vector<8xf32>
    %115 = vector.multi_reduction <add>, %114, %cst_41 [1] : vector<8x128xf32> to vector<8xf32>
    %116 = vector.shape_cast %115 : vector<8xf32> to vector<8x1xf32>
    %cst_42 = arith.constant 1.280000e+02 : f32
    %117 = vector.broadcast %cst_42 : f32 to vector<8x1xf32>
    %118 = arith.divf %116, %117 : vector<8x1xf32>
    %119 = vector.broadcast %111 : vector<8x1xf32> to vector<8x128xf32>
    %120 = arith.subf %107, %119 : vector<8x128xf32>
    %cst_43 = arith.constant 9.99999974E-6 : f32
    %121 = vector.broadcast %cst_43 : f32 to vector<8x1xf32>
    %122 = arith.addf %118, %121 : vector<8x1xf32>
    %123 = math.rsqrt %122 : vector<8x1xf32>
    %124 = vector.broadcast %123 : vector<8x1xf32> to vector<8x128xf32>
    %125 = arith.mulf %120, %124 : vector<8x128xf32>
    %126 = vector.broadcast %105 : vector<1x128xf32> to vector<8x128xf32>
    %127 = arith.mulf %125, %126 : vector<8x128xf32>
    %128 = vector.broadcast %106 : vector<1x128xf32> to vector<8x128xf32>
    %129 = arith.addf %127, %128 : vector<8x128xf32>
    %130 = arith.truncf %129 : vector<8x128xf32> to vector<8x128xbf16>
    %c0_44 = arith.constant 0 : index
    %c0_45 = arith.constant 0 : index
    %131 = vector.load %arg8[%c0_44, %c0_45] : memref<128x256xbf16, #tpu.memory_space<vmem>>, vector<128x256xbf16>
    %c0_46 = arith.constant 0 : index
    %c0_47 = arith.constant 0 : index
    %132 = vector.load %arg9[%c0_46, %c0_47] : memref<1x256xf32, #tpu.memory_space<vmem>>, vector<1x256xf32>
    %c0_48 = arith.constant 0 : index
    %c0_49 = arith.constant 0 : index
    %133 = vector.load %arg10[%c0_48, %c0_49] : memref<256x128xbf16, #tpu.memory_space<vmem>>, vector<256x128xbf16>
    %c0_50 = arith.constant 0 : index
    %c0_51 = arith.constant 0 : index
    %134 = vector.load %arg11[%c0_50, %c0_51] : memref<1x128xf32, #tpu.memory_space<vmem>>, vector<1x128xf32>
    %cst_52 = arith.constant dense<0.000000e+00> : vector<8x256xf32>
    %135 = tpu.matmul %130, %131, %cst_52 {dimension_numbers = #tpu.dot_dimension_numbers<[1], [0], [0], [1], [0, 0, 1, 1], [], []>} : vector<8x128xbf16>, vector<128x256xbf16>, vector<8x256xf32> -> vector<8x256xf32>
    %136 = vector.broadcast %132 : vector<1x256xf32> to vector<8x256xf32>
    %137 = arith.addf %135, %136 : vector<8x256xf32>
    %cst_53 = arith.constant 0.000000e+00 : f32
    %138 = vector.broadcast %cst_53 : f32 to vector<8x256xf32>
    %139 = arith.maximumf %137, %138 : vector<8x256xf32>
    %140 = arith.truncf %139 : vector<8x256xf32> to vector<8x256xbf16>
    %cst_54 = arith.constant dense<0.000000e+00> : vector<8x128xf32>
    %141 = tpu.matmul %140, %133, %cst_54 {dimension_numbers = #tpu.dot_dimension_numbers<[1], [0], [0], [1], [0, 0, 1, 1], [], []>} : vector<8x256xbf16>, vector<256x128xbf16>, vector<8x128xf32> -> vector<8x128xf32>
    %142 = vector.broadcast %134 : vector<1x128xf32> to vector<8x128xf32>
    %143 = arith.addf %141, %142 : vector<8x128xf32>
    %c0_55 = arith.constant 0 : index
    %c0_56 = arith.constant 0 : index
    %144 = vector.load %arg12[%c0_55, %c0_56] : memref<1x128xf32, #tpu.memory_space<vmem>>, vector<1x128xf32>
    %c0_57 = arith.constant 0 : index
    %c0_58 = arith.constant 0 : index
    %145 = vector.load %arg13[%c0_57, %c0_58] : memref<1x128xf32, #tpu.memory_space<vmem>>, vector<1x128xf32>
    %146 = arith.addf %129, %143 : vector<8x128xf32>
    %cst_59 = arith.constant dense<0.000000e+00> : vector<8xf32>
    %147 = vector.multi_reduction <add>, %146, %cst_59 [1] : vector<8x128xf32> to vector<8xf32>
    %148 = vector.shape_cast %147 : vector<8xf32> to vector<8x1xf32>
    %cst_60 = arith.constant 1.280000e+02 : f32
    %149 = vector.broadcast %cst_60 : f32 to vector<8x1xf32>
    %150 = arith.divf %148, %149 : vector<8x1xf32>
    %151 = vector.broadcast %150 : vector<8x1xf32> to vector<8x128xf32>
    %152 = arith.subf %146, %151 : vector<8x128xf32>
    %153 = arith.mulf %152, %152 : vector<8x128xf32>
    %cst_61 = arith.constant dense<0.000000e+00> : vector<8xf32>
    %154 = vector.multi_reduction <add>, %153, %cst_61 [1] : vector<8x128xf32> to vector<8xf32>
    %155 = vector.shape_cast %154 : vector<8xf32> to vector<8x1xf32>
    %cst_62 = arith.constant 1.280000e+02 : f32
    %156 = vector.broadcast %cst_62 : f32 to vector<8x1xf32>
    %157 = arith.divf %155, %156 : vector<8x1xf32>
    %158 = vector.broadcast %150 : vector<8x1xf32> to vector<8x128xf32>
    %159 = arith.subf %146, %158 : vector<8x128xf32>
    %cst_63 = arith.constant 9.99999974E-6 : f32
    %160 = vector.broadcast %cst_63 : f32 to vector<8x1xf32>
    %161 = arith.addf %157, %160 : vector<8x1xf32>
    %162 = math.rsqrt %161 : vector<8x1xf32>
    %163 = vector.broadcast %162 : vector<8x1xf32> to vector<8x128xf32>
    %164 = arith.mulf %159, %163 : vector<8x128xf32>
    %165 = vector.broadcast %144 : vector<1x128xf32> to vector<8x128xf32>
    %166 = arith.mulf %164, %165 : vector<8x128xf32>
    %167 = vector.broadcast %145 : vector<1x128xf32> to vector<8x128xf32>
    %168 = arith.addf %166, %167 : vector<8x128xf32>
    %169 = arith.truncf %168 : vector<8x128xf32> to vector<8x128xbf16>
    %c0_64 = arith.constant 0 : index
    %c0_65 = arith.constant 0 : index
    %c0_66 = arith.constant 0 : index
    %170 = vector.load %arg14[%c0_64, %c0_65, %c0_66] : memref<1x8x128xbf16, #tpu.memory_space<vmem>>, vector<1x8x128xbf16>
    %171 = vector.shape_cast %170 : vector<1x8x128xbf16> to vector<8x128xbf16>
    %172 = vector.shape_cast %169 : vector<8x128xbf16> to vector<1x8x128xbf16>
    tpu.vector_store %arg14[%c0_64, %c0_65, %c0_66], %172 {strides = array<i32>} : memref<1x8x128xbf16, #tpu.memory_space<vmem>>, vector<1x8x128xbf16>,
    return
  }
  func.func @transform_0(%arg0: i32) -> (i32, i32, i32) {
    %c0_i32 = arith.constant 0 : i32
    %c0_i32_0 = arith.constant 0 : i32
    %c0_i32_1 = arith.constant 0 : i32
    return %arg0, %c0_i32, %c0_i32_0 : i32, i32, i32
  }
  func.func @transform_1(%arg0: i32) -> (i32, i32) {
    %c0_i32 = arith.constant 0 : i32
    %c0_i32_0 = arith.constant 0 : i32
    %c0_i32_1 = arith.constant 0 : i32
    return %c0_i32, %c0_i32_0 : i32, i32
  }
  func.func @transform_2(%arg0: i32) -> (i32, i32) {
    %c0_i32 = arith.constant 0 : i32
    %c0_i32_0 = arith.constant 0 : i32
    %c0_i32_1 = arith.constant 0 : i32
    return %c0_i32, %c0_i32_0 : i32, i32
  }
  func.func @transform_3(%arg0: i32) -> (i32, i32) {
    %c0_i32 = arith.constant 0 : i32
    %c0_i32_0 = arith.constant 0 : i32
    %c0_i32_1 = arith.constant 0 : i32
    return %c0_i32, %c0_i32_0 : i32, i32
  }
  func.func @transform_4(%arg0: i32) -> (i32, i32) {
    %c0_i32 = arith.constant 0 : i32
    %c0_i32_0 = arith.constant 0 : i32
    %c0_i32_1 = arith.constant 0 : i32
    return %c0_i32, %c0_i32_0 : i32, i32
  }
  func.func @transform_5(%arg0: i32) -> (i32, i32) {
    %c0_i32 = arith.constant 0 : i32
    %c0_i32_0 = arith.constant 0 : i32
    %c0_i32_1 = arith.constant 0 : i32
    return %c0_i32, %c0_i32_0 : i32, i32
  }
  func.func @transform_6(%arg0: i32) -> (i32, i32) {
    %c0_i32 = arith.constant 0 : i32
    %c0_i32_0 = arith.constant 0 : i32
    %c0_i32_1 = arith.constant 0 : i32
    return %c0_i32, %c0_i32_0 : i32, i32
  }
  func.func @transform_7(%arg0: i32) -> (i32, i32) {
    %c0_i32 = arith.constant 0 : i32
    %c0_i32_0 = arith.constant 0 : i32
    %c0_i32_1 = arith.constant 0 : i32
    return %c0_i32, %c0_i32_0 : i32, i32
  }
  func.func @transform_8(%arg0: i32) -> (i32, i32) {
    %c0_i32 = arith.constant 0 : i32
    %c0_i32_0 = arith.constant 0 : i32
    %c0_i32_1 = arith.constant 0 : i32
    return %c0_i32, %c0_i32_0 : i32, i32
  }
  func.func @transform_9(%arg0: i32) -> (i32, i32) {
    %c0_i32 = arith.constant 0 : i32
    %c0_i32_0 = arith.constant 0 : i32
    %c0_i32_1 = arith.constant 0 : i32
    return %c0_i32, %c0_i32_0 : i32, i32
  }
  func.func @transform_10(%arg0: i32) -> (i32, i32) {
    %c0_i32 = arith.constant 0 : i32
    %c0_i32_0 = arith.constant 0 : i32
    %c0_i32_1 = arith.constant 0 : i32
    return %c0_i32, %c0_i32_0 : i32, i32
  }
  func.func @transform_11(%arg0: i32) -> (i32, i32) {
    %c0_i32 = arith.constant 0 : i32
    %c0_i32_0 = arith.constant 0 : i32
    %c0_i32_1 = arith.constant 0 : i32
    return %c0_i32, %c0_i32_0 : i32, i32
  }
  func.func @transform_12(%arg0: i32) -> (i32, i32) {
    %c0_i32 = arith.constant 0 : i32
    %c0_i32_0 = arith.constant 0 : i32
    %c0_i32_1 = arith.constant 0 : i32
    return %c0_i32, %c0_i32_0 : i32, i32
  }
  func.func @transform_13(%arg0: i32) -> (i32, i32, i32) {
    %c0_i32 = arith.constant 0 : i32
    %c0_i32_0 = arith.constant 0 : i32
    %c0_i32_1 = arith.constant 0 : i32
    return %arg0, %c0_i32, %c0_i32_0 : i32, i32, i32
  }
}

module attributes {stable_mosaic.version = 11 : i64} {
  func.func @_decoder_layer_kernel(%arg0: i32, %arg1: memref<1x8x128xbf16, #tpu.memory_space<vmem>>, %arg2: memref<1x8x128xbf16, #tpu.memory_space<vmem>>, %arg3: memref<128x384xbf16, #tpu.memory_space<vmem>>, %arg4: memref<1x384xf32, #tpu.memory_space<vmem>>, %arg5: memref<128x128xbf16, #tpu.memory_space<vmem>>, %arg6: memref<1x128xf32, #tpu.memory_space<vmem>>, %arg7: memref<1x128xf32, #tpu.memory_space<vmem>>, %arg8: memref<1x128xf32, #tpu.memory_space<vmem>>, %arg9: memref<128x128xbf16, #tpu.memory_space<vmem>>, %arg10: memref<1x128xf32, #tpu.memory_space<vmem>>, %arg11: memref<128x256xbf16, #tpu.memory_space<vmem>>, %arg12: memref<1x256xf32, #tpu.memory_space<vmem>>, %arg13: memref<128x128xbf16, #tpu.memory_space<vmem>>, %arg14: memref<1x128xf32, #tpu.memory_space<vmem>>, %arg15: memref<1x128xf32, #tpu.memory_space<vmem>>, %arg16: memref<1x128xf32, #tpu.memory_space<vmem>>, %arg17: memref<128x256xbf16, #tpu.memory_space<vmem>>, %arg18: memref<1x256xf32, #tpu.memory_space<vmem>>, %arg19: memref<256x128xbf16, #tpu.memory_space<vmem>>, %arg20: memref<1x128xf32, #tpu.memory_space<vmem>>, %arg21: memref<1x128xf32, #tpu.memory_space<vmem>>, %arg22: memref<1x128xf32, #tpu.memory_space<vmem>>, %arg23: memref<1x8x128xbf16, #tpu.memory_space<vmem>>) attributes {dimension_semantics = [#tpu.dimension_semantics<parallel>], iteration_bounds = array<i64: 2>, scalar_prefetch = 0 : i64, scratch_operands = 0 : i64, tpu.core_type = #tpu.core_type<tc>, window_params = [{transform_indices = @transform_0, window_bounds = array<i64: 1, 8, 128>}, {transform_indices = @transform_1, window_bounds = array<i64: 1, 8, 128>}, {pipeline_mode = #tpu.pipeline_mode<synchronous>, transform_indices = @transform_2, window_bounds = array<i64: 128, 384>}, {pipeline_mode = #tpu.pipeline_mode<synchronous>, transform_indices = @transform_3, window_bounds = array<i64: 1, 384>}, {pipeline_mode = #tpu.pipeline_mode<synchronous>, transform_indices = @transform_4, window_bounds = array<i64: 128, 128>}, {pipeline_mode = #tpu.pipeline_mode<synchronous>, transform_indices = @transform_5, window_bounds = array<i64: 1, 128>}, {pipeline_mode = #tpu.pipeline_mode<synchronous>, transform_indices = @transform_6, window_bounds = array<i64: 1, 128>}, {pipeline_mode = #tpu.pipeline_mode<synchronous>, transform_indices = @transform_7, window_bounds = array<i64: 1, 128>}, {pipeline_mode = #tpu.pipeline_mode<synchronous>, transform_indices = @transform_8, window_bounds = array<i64: 128, 128>}, {pipeline_mode = #tpu.pipeline_mode<synchronous>, transform_indices = @transform_9, window_bounds = array<i64: 1, 128>}, {pipeline_mode = #tpu.pipeline_mode<synchronous>, transform_indices = @transform_10, window_bounds = array<i64: 128, 256>}, {pipeline_mode = #tpu.pipeline_mode<synchronous>, transform_indices = @transform_11, window_bounds = array<i64: 1, 256>}, {pipeline_mode = #tpu.pipeline_mode<synchronous>, transform_indices = @transform_12, window_bounds = array<i64: 128, 128>}, {pipeline_mode = #tpu.pipeline_mode<synchronous>, transform_indices = @transform_13, window_bounds = array<i64: 1, 128>}, {pipeline_mode = #tpu.pipeline_mode<synchronous>, transform_indices = @transform_14, window_bounds = array<i64: 1, 128>}, {pipeline_mode = #tpu.pipeline_mode<synchronous>, transform_indices = @transform_15, window_bounds = array<i64: 1, 128>}, {pipeline_mode = #tpu.pipeline_mode<synchronous>, transform_indices = @transform_16, window_bounds = array<i64: 128, 256>}, {pipeline_mode = #tpu.pipeline_mode<synchronous>, transform_indices = @transform_17, window_bounds = array<i64: 1, 256>}, {pipeline_mode = #tpu.pipeline_mode<synchronous>, transform_indices = @transform_18, window_bounds = array<i64: 256, 128>}, {pipeline_mode = #tpu.pipeline_mode<synchronous>, transform_indices = @transform_19, window_bounds = array<i64: 1, 128>}, {pipeline_mode = #tpu.pipeline_mode<synchronous>, transform_indices = @transform_20, window_bounds = array<i64: 1, 128>}, {pipeline_mode = #tpu.pipeline_mode<synchronous>, transform_indices = @transform_21, window_bounds = array<i64: 1, 128>}, {transform_indices = @transform_22, window_bounds = array<i64: 1, 8, 128>}]} {
    %c0 = arith.constant 0 : index
    %c0_0 = arith.constant 0 : index
    %c0_1 = arith.constant 0 : index
    %0 = vector.load %arg1[%c0, %c0_0, %c0_1] : memref<1x8x128xbf16, #tpu.memory_space<vmem>>, vector<1x8x128xbf16>
    %1 = vector.shape_cast %0 : vector<1x8x128xbf16> to vector<8x128xbf16>
    %c0_2 = arith.constant 0 : index
    %c0_3 = arith.constant 0 : index
    %c0_4 = arith.constant 0 : index
    %2 = vector.load %arg2[%c0_2, %c0_3, %c0_4] : memref<1x8x128xbf16, #tpu.memory_space<vmem>>, vector<1x8x128xbf16>
    %3 = vector.shape_cast %2 : vector<1x8x128xbf16> to vector<8x128xbf16>
    %c0_5 = arith.constant 0 : index
    %c0_6 = arith.constant 0 : index
    %4 = vector.load %arg3[%c0_5, %c0_6] : memref<128x384xbf16, #tpu.memory_space<vmem>>, vector<128x384xbf16>
    %cst = arith.constant dense<0.000000e+00> : vector<8x384xf32>
    %5 = tpu.matmul %1, %4, %cst {dimension_numbers = #tpu.dot_dimension_numbers<[1], [0], [0], [1], [0, 0, 1, 1], [], []>} : vector<8x128xbf16>, vector<128x384xbf16>, vector<8x384xf32> -> vector<8x384xf32>
    %c0_7 = arith.constant 0 : index
    %c0_8 = arith.constant 0 : index
    %6 = vector.load %arg4[%c0_7, %c0_8] : memref<1x384xf32, #tpu.memory_space<vmem>>, vector<1x384xf32>
    %7 = vector.broadcast %6 : vector<1x384xf32> to vector<8x384xf32>
    %8 = arith.addf %5, %7 : vector<8x384xf32>
    %9 = arith.truncf %8 : vector<8x384xf32> to vector<8x384xbf16>
    %10 = vector.extract_strided_slice %9 {offsets = [0, 0], sizes = [8, 128], strides = [1, 1]} : vector<8x384xbf16> to vector<8x128xbf16>
    %11 = vector.extract_strided_slice %9 {offsets = [0, 128], sizes = [8, 128], strides = [1, 1]} : vector<8x384xbf16> to vector<8x128xbf16>
    %12 = vector.extract_strided_slice %9 {offsets = [0, 256], sizes = [8, 128], strides = [1, 1]} : vector<8x384xbf16> to vector<8x128xbf16>
    %c0_9 = arith.constant 0 : index
    %c0_10 = arith.constant 0 : index
    %13 = vector.load %arg5[%c0_9, %c0_10] : memref<128x128xbf16, #tpu.memory_space<vmem>>, vector<128x128xbf16>
    %14 = tpu.iota {dimensions = array<i32: 0>} : vector<8x8xi32>
    %15 = tpu.iota {dimensions = array<i32: 1>} : vector<8x8xi32>
    %16 = arith.cmpi sgt, %15, %14 : vector<8x8xi32>
    %cst_11 = arith.constant -1.000000e+09 : f32
    %cst_12 = arith.constant 0.000000e+00 : f32
    %17 = vector.broadcast %cst_11 : f32 to vector<8x8xf32>
    %18 = vector.broadcast %cst_12 : f32 to vector<8x8xf32>
    %19 = arith.select %16, %17, %18 : vector<8x8xi1>, vector<8x8xf32>
    %cst_13 = arith.constant 0.000000e+00 : f32
    %20 = vector.broadcast %cst_13 : f32 to vector<8x128xf32>
    %21 = vector.extract_strided_slice %10 {offsets = [0, 0], sizes = [8, 32], strides = [1, 1]} : vector<8x128xbf16> to vector<8x32xbf16>
    %22 = vector.extract_strided_slice %11 {offsets = [0, 0], sizes = [8, 32], strides = [1, 1]} : vector<8x128xbf16> to vector<8x32xbf16>
    %cst_14 = arith.constant dense<0.000000e+00> : vector<8x8xf32>
    %23 = tpu.matmul %21, %22, %cst_14 {dimension_numbers = #tpu.dot_dimension_numbers<[1], [1], [0], [0], [0, 0, 1, 0], [], []>} : vector<8x32xbf16>, vector<8x32xbf16>, vector<8x8xf32> -> vector<8x8xf32>
    %cst_15 = arith.constant 0.176776692 : f32
    %24 = vector.broadcast %cst_15 : f32 to vector<8x8xf32>
    %25 = arith.mulf %23, %24 : vector<8x8xf32>
    %26 = arith.addf %25, %19 : vector<8x8xf32>
    %cst_16 = arith.constant dense<0xFF800000> : vector<8xf32>
    %27 = vector.multi_reduction <maximumf>, %26, %cst_16 [1] : vector<8x8xf32> to vector<8xf32>
    %28 = vector.shape_cast %27 : vector<8xf32> to vector<8x1xf32>
    %29 = vector.broadcast %28 : vector<8x1xf32> to vector<8x8xf32>
    %30 = arith.subf %26, %29 : vector<8x8xf32>
    %31 = math.exp %30 : vector<8x8xf32>
    %cst_17 = arith.constant dense<0.000000e+00> : vector<8xf32>
    %32 = vector.multi_reduction <add>, %31, %cst_17 [1] : vector<8x8xf32> to vector<8xf32>
    %33 = vector.shape_cast %32 : vector<8xf32> to vector<8x1xf32>
    %34 = tpu.reciprocal %33 {approx = true} : vector<8x1xf32> -> vector<8x1xf32>
    %35 = vector.broadcast %34 : vector<8x1xf32> to vector<8x8xf32>
    %36 = arith.mulf %31, %35 : vector<8x8xf32>
    %37 = arith.truncf %36 : vector<8x8xf32> to vector<8x8xbf16>
    %38 = vector.extract_strided_slice %12 {offsets = [0, 0], sizes = [8, 32], strides = [1, 1]} : vector<8x128xbf16> to vector<8x32xbf16>
    %cst_18 = arith.constant dense<0.000000e+00> : vector<8x32xf32>
    %39 = tpu.matmul %37, %38, %cst_18 {dimension_numbers = #tpu.dot_dimension_numbers<[1], [0], [0], [1], [0, 0, 1, 1], [], []>} : vector<8x8xbf16>, vector<8x32xbf16>, vector<8x32xf32> -> vector<8x32xf32>
    %40 = arith.truncf %39 : vector<8x32xf32> to vector<8x32xbf16>
    %41 = vector.extract_strided_slice %13 {offsets = [0, 0], sizes = [32, 128], strides = [1, 1]} : vector<128x128xbf16> to vector<32x128xbf16>
    %cst_19 = arith.constant dense<0.000000e+00> : vector<8x128xf32>
    %42 = tpu.matmul %40, %41, %cst_19 {dimension_numbers = #tpu.dot_dimension_numbers<[1], [0], [0], [1], [0, 0, 1, 1], [], []>} : vector<8x32xbf16>, vector<32x128xbf16>, vector<8x128xf32> -> vector<8x128xf32>
    %43 = arith.addf %20, %42 : vector<8x128xf32>
    %44 = vector.extract_strided_slice %10 {offsets = [0, 32], sizes = [8, 32], strides = [1, 1]} : vector<8x128xbf16> to vector<8x32xbf16>
    %45 = vector.extract_strided_slice %11 {offsets = [0, 32], sizes = [8, 32], strides = [1, 1]} : vector<8x128xbf16> to vector<8x32xbf16>
    %cst_20 = arith.constant dense<0.000000e+00> : vector<8x8xf32>
    %46 = tpu.matmul %44, %45, %cst_20 {dimension_numbers = #tpu.dot_dimension_numbers<[1], [1], [0], [0], [0, 0, 1, 0], [], []>} : vector<8x32xbf16>, vector<8x32xbf16>, vector<8x8xf32> -> vector<8x8xf32>
    %cst_21 = arith.constant 0.176776692 : f32
    %47 = vector.broadcast %cst_21 : f32 to vector<8x8xf32>
    %48 = arith.mulf %46, %47 : vector<8x8xf32>
    %49 = arith.addf %48, %19 : vector<8x8xf32>
    %cst_22 = arith.constant dense<0xFF800000> : vector<8xf32>
    %50 = vector.multi_reduction <maximumf>, %49, %cst_22 [1] : vector<8x8xf32> to vector<8xf32>
    %51 = vector.shape_cast %50 : vector<8xf32> to vector<8x1xf32>
    %52 = vector.broadcast %51 : vector<8x1xf32> to vector<8x8xf32>
    %53 = arith.subf %49, %52 : vector<8x8xf32>
    %54 = math.exp %53 : vector<8x8xf32>
    %cst_23 = arith.constant dense<0.000000e+00> : vector<8xf32>
    %55 = vector.multi_reduction <add>, %54, %cst_23 [1] : vector<8x8xf32> to vector<8xf32>
    %56 = vector.shape_cast %55 : vector<8xf32> to vector<8x1xf32>
    %57 = tpu.reciprocal %56 {approx = true} : vector<8x1xf32> -> vector<8x1xf32>
    %58 = vector.broadcast %57 : vector<8x1xf32> to vector<8x8xf32>
    %59 = arith.mulf %54, %58 : vector<8x8xf32>
    %60 = arith.truncf %59 : vector<8x8xf32> to vector<8x8xbf16>
    %61 = vector.extract_strided_slice %12 {offsets = [0, 32], sizes = [8, 32], strides = [1, 1]} : vector<8x128xbf16> to vector<8x32xbf16>
    %cst_24 = arith.constant dense<0.000000e+00> : vector<8x32xf32>
    %62 = tpu.matmul %60, %61, %cst_24 {dimension_numbers = #tpu.dot_dimension_numbers<[1], [0], [0], [1], [0, 0, 1, 1], [], []>} : vector<8x8xbf16>, vector<8x32xbf16>, vector<8x32xf32> -> vector<8x32xf32>
    %63 = arith.truncf %62 : vector<8x32xf32> to vector<8x32xbf16>
    %64 = vector.extract_strided_slice %13 {offsets = [32, 0], sizes = [32, 128], strides = [1, 1]} : vector<128x128xbf16> to vector<32x128xbf16>
    %cst_25 = arith.constant dense<0.000000e+00> : vector<8x128xf32>
    %65 = tpu.matmul %63, %64, %cst_25 {dimension_numbers = #tpu.dot_dimension_numbers<[1], [0], [0], [1], [0, 0, 1, 1], [], []>} : vector<8x32xbf16>, vector<32x128xbf16>, vector<8x128xf32> -> vector<8x128xf32>
    %66 = arith.addf %43, %65 : vector<8x128xf32>
    %67 = vector.extract_strided_slice %10 {offsets = [0, 64], sizes = [8, 32], strides = [1, 1]} : vector<8x128xbf16> to vector<8x32xbf16>
    %68 = vector.extract_strided_slice %11 {offsets = [0, 64], sizes = [8, 32], strides = [1, 1]} : vector<8x128xbf16> to vector<8x32xbf16>
    %cst_26 = arith.constant dense<0.000000e+00> : vector<8x8xf32>
    %69 = tpu.matmul %67, %68, %cst_26 {dimension_numbers = #tpu.dot_dimension_numbers<[1], [1], [0], [0], [0, 0, 1, 0], [], []>} : vector<8x32xbf16>, vector<8x32xbf16>, vector<8x8xf32> -> vector<8x8xf32>
    %cst_27 = arith.constant 0.176776692 : f32
    %70 = vector.broadcast %cst_27 : f32 to vector<8x8xf32>
    %71 = arith.mulf %69, %70 : vector<8x8xf32>
    %72 = arith.addf %71, %19 : vector<8x8xf32>
    %cst_28 = arith.constant dense<0xFF800000> : vector<8xf32>
    %73 = vector.multi_reduction <maximumf>, %72, %cst_28 [1] : vector<8x8xf32> to vector<8xf32>
    %74 = vector.shape_cast %73 : vector<8xf32> to vector<8x1xf32>
    %75 = vector.broadcast %74 : vector<8x1xf32> to vector<8x8xf32>
    %76 = arith.subf %72, %75 : vector<8x8xf32>
    %77 = math.exp %76 : vector<8x8xf32>
    %cst_29 = arith.constant dense<0.000000e+00> : vector<8xf32>
    %78 = vector.multi_reduction <add>, %77, %cst_29 [1] : vector<8x8xf32> to vector<8xf32>
    %79 = vector.shape_cast %78 : vector<8xf32> to vector<8x1xf32>
    %80 = tpu.reciprocal %79 {approx = true} : vector<8x1xf32> -> vector<8x1xf32>
    %81 = vector.broadcast %80 : vector<8x1xf32> to vector<8x8xf32>
    %82 = arith.mulf %77, %81 : vector<8x8xf32>
    %83 = arith.truncf %82 : vector<8x8xf32> to vector<8x8xbf16>
    %84 = vector.extract_strided_slice %12 {offsets = [0, 64], sizes = [8, 32], strides = [1, 1]} : vector<8x128xbf16> to vector<8x32xbf16>
    %cst_30 = arith.constant dense<0.000000e+00> : vector<8x32xf32>
    %85 = tpu.matmul %83, %84, %cst_30 {dimension_numbers = #tpu.dot_dimension_numbers<[1], [0], [0], [1], [0, 0, 1, 1], [], []>} : vector<8x8xbf16>, vector<8x32xbf16>, vector<8x32xf32> -> vector<8x32xf32>
    %86 = arith.truncf %85 : vector<8x32xf32> to vector<8x32xbf16>
    %87 = vector.extract_strided_slice %13 {offsets = [64, 0], sizes = [32, 128], strides = [1, 1]} : vector<128x128xbf16> to vector<32x128xbf16>
    %cst_31 = arith.constant dense<0.000000e+00> : vector<8x128xf32>
    %88 = tpu.matmul %86, %87, %cst_31 {dimension_numbers = #tpu.dot_dimension_numbers<[1], [0], [0], [1], [0, 0, 1, 1], [], []>} : vector<8x32xbf16>, vector<32x128xbf16>, vector<8x128xf32> -> vector<8x128xf32>
    %89 = arith.addf %66, %88 : vector<8x128xf32>
    %90 = vector.extract_strided_slice %10 {offsets = [0, 96], sizes = [8, 32], strides = [1, 1]} : vector<8x128xbf16> to vector<8x32xbf16>
    %91 = vector.extract_strided_slice %11 {offsets = [0, 96], sizes = [8, 32], strides = [1, 1]} : vector<8x128xbf16> to vector<8x32xbf16>
    %cst_32 = arith.constant dense<0.000000e+00> : vector<8x8xf32>
    %92 = tpu.matmul %90, %91, %cst_32 {dimension_numbers = #tpu.dot_dimension_numbers<[1], [1], [0], [0], [0, 0, 1, 0], [], []>} : vector<8x32xbf16>, vector<8x32xbf16>, vector<8x8xf32> -> vector<8x8xf32>
    %cst_33 = arith.constant 0.176776692 : f32
    %93 = vector.broadcast %cst_33 : f32 to vector<8x8xf32>
    %94 = arith.mulf %92, %93 : vector<8x8xf32>
    %95 = arith.addf %94, %19 : vector<8x8xf32>
    %cst_34 = arith.constant dense<0xFF800000> : vector<8xf32>
    %96 = vector.multi_reduction <maximumf>, %95, %cst_34 [1] : vector<8x8xf32> to vector<8xf32>
    %97 = vector.shape_cast %96 : vector<8xf32> to vector<8x1xf32>
    %98 = vector.broadcast %97 : vector<8x1xf32> to vector<8x8xf32>
    %99 = arith.subf %95, %98 : vector<8x8xf32>
    %100 = math.exp %99 : vector<8x8xf32>
    %cst_35 = arith.constant dense<0.000000e+00> : vector<8xf32>
    %101 = vector.multi_reduction <add>, %100, %cst_35 [1] : vector<8x8xf32> to vector<8xf32>
    %102 = vector.shape_cast %101 : vector<8xf32> to vector<8x1xf32>
    %103 = tpu.reciprocal %102 {approx = true} : vector<8x1xf32> -> vector<8x1xf32>
    %104 = vector.broadcast %103 : vector<8x1xf32> to vector<8x8xf32>
    %105 = arith.mulf %100, %104 : vector<8x8xf32>
    %106 = arith.truncf %105 : vector<8x8xf32> to vector<8x8xbf16>
    %107 = vector.extract_strided_slice %12 {offsets = [0, 96], sizes = [8, 32], strides = [1, 1]} : vector<8x128xbf16> to vector<8x32xbf16>
    %cst_36 = arith.constant dense<0.000000e+00> : vector<8x32xf32>
    %108 = tpu.matmul %106, %107, %cst_36 {dimension_numbers = #tpu.dot_dimension_numbers<[1], [0], [0], [1], [0, 0, 1, 1], [], []>} : vector<8x8xbf16>, vector<8x32xbf16>, vector<8x32xf32> -> vector<8x32xf32>
    %109 = arith.truncf %108 : vector<8x32xf32> to vector<8x32xbf16>
    %110 = vector.extract_strided_slice %13 {offsets = [96, 0], sizes = [32, 128], strides = [1, 1]} : vector<128x128xbf16> to vector<32x128xbf16>
    %cst_37 = arith.constant dense<0.000000e+00> : vector<8x128xf32>
    %111 = tpu.matmul %109, %110, %cst_37 {dimension_numbers = #tpu.dot_dimension_numbers<[1], [0], [0], [1], [0, 0, 1, 1], [], []>} : vector<8x32xbf16>, vector<32x128xbf16>, vector<8x128xf32> -> vector<8x128xf32>
    %112 = arith.addf %89, %111 : vector<8x128xf32>
    %c0_38 = arith.constant 0 : index
    %c0_39 = arith.constant 0 : index
    %113 = vector.load %arg6[%c0_38, %c0_39] : memref<1x128xf32, #tpu.memory_space<vmem>>, vector<1x128xf32>
    %114 = vector.broadcast %113 : vector<1x128xf32> to vector<8x128xf32>
    %115 = arith.addf %112, %114 : vector<8x128xf32>
    %116 = arith.extf %1 : vector<8x128xbf16> to vector<8x128xf32>
    %c0_40 = arith.constant 0 : index
    %c0_41 = arith.constant 0 : index
    %117 = vector.load %arg7[%c0_40, %c0_41] : memref<1x128xf32, #tpu.memory_space<vmem>>, vector<1x128xf32>
    %c0_42 = arith.constant 0 : index
    %c0_43 = arith.constant 0 : index
    %118 = vector.load %arg8[%c0_42, %c0_43] : memref<1x128xf32, #tpu.memory_space<vmem>>, vector<1x128xf32>
    %119 = arith.addf %116, %115 : vector<8x128xf32>
    %cst_44 = arith.constant dense<0.000000e+00> : vector<8xf32>
    %120 = vector.multi_reduction <add>, %119, %cst_44 [1] : vector<8x128xf32> to vector<8xf32>
    %121 = vector.shape_cast %120 : vector<8xf32> to vector<8x1xf32>
    %cst_45 = arith.constant 1.280000e+02 : f32
    %122 = vector.broadcast %cst_45 : f32 to vector<8x1xf32>
    %123 = arith.divf %121, %122 : vector<8x1xf32>
    %124 = vector.broadcast %123 : vector<8x1xf32> to vector<8x128xf32>
    %125 = arith.subf %119, %124 : vector<8x128xf32>
    %126 = arith.mulf %125, %125 : vector<8x128xf32>
    %cst_46 = arith.constant dense<0.000000e+00> : vector<8xf32>
    %127 = vector.multi_reduction <add>, %126, %cst_46 [1] : vector<8x128xf32> to vector<8xf32>
    %128 = vector.shape_cast %127 : vector<8xf32> to vector<8x1xf32>
    %cst_47 = arith.constant 1.280000e+02 : f32
    %129 = vector.broadcast %cst_47 : f32 to vector<8x1xf32>
    %130 = arith.divf %128, %129 : vector<8x1xf32>
    %131 = vector.broadcast %123 : vector<8x1xf32> to vector<8x128xf32>
    %132 = arith.subf %119, %131 : vector<8x128xf32>
    %cst_48 = arith.constant 9.99999974E-6 : f32
    %133 = vector.broadcast %cst_48 : f32 to vector<8x1xf32>
    %134 = arith.addf %130, %133 : vector<8x1xf32>
    %135 = math.rsqrt %134 : vector<8x1xf32>
    %136 = vector.broadcast %135 : vector<8x1xf32> to vector<8x128xf32>
    %137 = arith.mulf %132, %136 : vector<8x128xf32>
    %138 = vector.broadcast %117 : vector<1x128xf32> to vector<8x128xf32>
    %139 = arith.mulf %137, %138 : vector<8x128xf32>
    %140 = vector.broadcast %118 : vector<1x128xf32> to vector<8x128xf32>
    %141 = arith.addf %139, %140 : vector<8x128xf32>
    %142 = arith.truncf %141 : vector<8x128xf32> to vector<8x128xbf16>
    %c0_49 = arith.constant 0 : index
    %c0_50 = arith.constant 0 : index
    %143 = vector.load %arg9[%c0_49, %c0_50] : memref<128x128xbf16, #tpu.memory_space<vmem>>, vector<128x128xbf16>
    %cst_51 = arith.constant dense<0.000000e+00> : vector<8x128xf32>
    %144 = tpu.matmul %142, %143, %cst_51 {dimension_numbers = #tpu.dot_dimension_numbers<[1], [0], [0], [1], [0, 0, 1, 1], [], []>} : vector<8x128xbf16>, vector<128x128xbf16>, vector<8x128xf32> -> vector<8x128xf32>
    %c0_52 = arith.constant 0 : index
    %c0_53 = arith.constant 0 : index
    %145 = vector.load %arg10[%c0_52, %c0_53] : memref<1x128xf32, #tpu.memory_space<vmem>>, vector<1x128xf32>
    %146 = vector.broadcast %145 : vector<1x128xf32> to vector<8x128xf32>
    %147 = arith.addf %144, %146 : vector<8x128xf32>
    %148 = arith.truncf %147 : vector<8x128xf32> to vector<8x128xbf16>
    %c0_54 = arith.constant 0 : index
    %c0_55 = arith.constant 0 : index
    %149 = vector.load %arg11[%c0_54, %c0_55] : memref<128x256xbf16, #tpu.memory_space<vmem>>, vector<128x256xbf16>
    %cst_56 = arith.constant dense<0.000000e+00> : vector<8x256xf32>
    %150 = tpu.matmul %3, %149, %cst_56 {dimension_numbers = #tpu.dot_dimension_numbers<[1], [0], [0], [1], [0, 0, 1, 1], [], []>} : vector<8x128xbf16>, vector<128x256xbf16>, vector<8x256xf32> -> vector<8x256xf32>
    %c0_57 = arith.constant 0 : index
    %c0_58 = arith.constant 0 : index
    %151 = vector.load %arg12[%c0_57, %c0_58] : memref<1x256xf32, #tpu.memory_space<vmem>>, vector<1x256xf32>
    %152 = vector.broadcast %151 : vector<1x256xf32> to vector<8x256xf32>
    %153 = arith.addf %150, %152 : vector<8x256xf32>
    %154 = arith.truncf %153 : vector<8x256xf32> to vector<8x256xbf16>
    %155 = vector.extract_strided_slice %154 {offsets = [0, 0], sizes = [8, 128], strides = [1, 1]} : vector<8x256xbf16> to vector<8x128xbf16>
    %156 = vector.extract_strided_slice %154 {offsets = [0, 128], sizes = [8, 128], strides = [1, 1]} : vector<8x256xbf16> to vector<8x128xbf16>
    %c0_59 = arith.constant 0 : index
    %c0_60 = arith.constant 0 : index
    %157 = vector.load %arg13[%c0_59, %c0_60] : memref<128x128xbf16, #tpu.memory_space<vmem>>, vector<128x128xbf16>
    %cst_61 = arith.constant 0.000000e+00 : f32
    %158 = vector.broadcast %cst_61 : f32 to vector<8x128xf32>
    %159 = vector.extract_strided_slice %148 {offsets = [0, 0], sizes = [8, 32], strides = [1, 1]} : vector<8x128xbf16> to vector<8x32xbf16>
    %160 = vector.extract_strided_slice %155 {offsets = [0, 0], sizes = [8, 32], strides = [1, 1]} : vector<8x128xbf16> to vector<8x32xbf16>
    %cst_62 = arith.constant dense<0.000000e+00> : vector<8x8xf32>
    %161 = tpu.matmul %159, %160, %cst_62 {dimension_numbers = #tpu.dot_dimension_numbers<[1], [1], [0], [0], [0, 0, 1, 0], [], []>} : vector<8x32xbf16>, vector<8x32xbf16>, vector<8x8xf32> -> vector<8x8xf32>
    %cst_63 = arith.constant 0.176776692 : f32
    %162 = vector.broadcast %cst_63 : f32 to vector<8x8xf32>
    %163 = arith.mulf %161, %162 : vector<8x8xf32>
    %cst_64 = arith.constant dense<0xFF800000> : vector<8xf32>
    %164 = vector.multi_reduction <maximumf>, %163, %cst_64 [1] : vector<8x8xf32> to vector<8xf32>
    %165 = vector.shape_cast %164 : vector<8xf32> to vector<8x1xf32>
    %166 = vector.broadcast %165 : vector<8x1xf32> to vector<8x8xf32>
    %167 = arith.subf %163, %166 : vector<8x8xf32>
    %168 = math.exp %167 : vector<8x8xf32>
    %cst_65 = arith.constant dense<0.000000e+00> : vector<8xf32>
    %169 = vector.multi_reduction <add>, %168, %cst_65 [1] : vector<8x8xf32> to vector<8xf32>
    %170 = vector.shape_cast %169 : vector<8xf32> to vector<8x1xf32>
    %171 = tpu.reciprocal %170 {approx = true} : vector<8x1xf32> -> vector<8x1xf32>
    %172 = vector.broadcast %171 : vector<8x1xf32> to vector<8x8xf32>
    %173 = arith.mulf %168, %172 : vector<8x8xf32>
    %174 = arith.truncf %173 : vector<8x8xf32> to vector<8x8xbf16>
    %175 = vector.extract_strided_slice %156 {offsets = [0, 0], sizes = [8, 32], strides = [1, 1]} : vector<8x128xbf16> to vector<8x32xbf16>
    %cst_66 = arith.constant dense<0.000000e+00> : vector<8x32xf32>
    %176 = tpu.matmul %174, %175, %cst_66 {dimension_numbers = #tpu.dot_dimension_numbers<[1], [0], [0], [1], [0, 0, 1, 1], [], []>} : vector<8x8xbf16>, vector<8x32xbf16>, vector<8x32xf32> -> vector<8x32xf32>
    %177 = arith.truncf %176 : vector<8x32xf32> to vector<8x32xbf16>
    %178 = vector.extract_strided_slice %157 {offsets = [0, 0], sizes = [32, 128], strides = [1, 1]} : vector<128x128xbf16> to vector<32x128xbf16>
    %cst_67 = arith.constant dense<0.000000e+00> : vector<8x128xf32>
    %179 = tpu.matmul %177, %178, %cst_67 {dimension_numbers = #tpu.dot_dimension_numbers<[1], [0], [0], [1], [0, 0, 1, 1], [], []>} : vector<8x32xbf16>, vector<32x128xbf16>, vector<8x128xf32> -> vector<8x128xf32>
    %180 = arith.addf %158, %179 : vector<8x128xf32>
    %181 = vector.extract_strided_slice %148 {offsets = [0, 32], sizes = [8, 32], strides = [1, 1]} : vector<8x128xbf16> to vector<8x32xbf16>
    %182 = vector.extract_strided_slice %155 {offsets = [0, 32], sizes = [8, 32], strides = [1, 1]} : vector<8x128xbf16> to vector<8x32xbf16>
    %cst_68 = arith.constant dense<0.000000e+00> : vector<8x8xf32>
    %183 = tpu.matmul %181, %182, %cst_68 {dimension_numbers = #tpu.dot_dimension_numbers<[1], [1], [0], [0], [0, 0, 1, 0], [], []>} : vector<8x32xbf16>, vector<8x32xbf16>, vector<8x8xf32> -> vector<8x8xf32>
    %cst_69 = arith.constant 0.176776692 : f32
    %184 = vector.broadcast %cst_69 : f32 to vector<8x8xf32>
    %185 = arith.mulf %183, %184 : vector<8x8xf32>
    %cst_70 = arith.constant dense<0xFF800000> : vector<8xf32>
    %186 = vector.multi_reduction <maximumf>, %185, %cst_70 [1] : vector<8x8xf32> to vector<8xf32>
    %187 = vector.shape_cast %186 : vector<8xf32> to vector<8x1xf32>
    %188 = vector.broadcast %187 : vector<8x1xf32> to vector<8x8xf32>
    %189 = arith.subf %185, %188 : vector<8x8xf32>
    %190 = math.exp %189 : vector<8x8xf32>
    %cst_71 = arith.constant dense<0.000000e+00> : vector<8xf32>
    %191 = vector.multi_reduction <add>, %190, %cst_71 [1] : vector<8x8xf32> to vector<8xf32>
    %192 = vector.shape_cast %191 : vector<8xf32> to vector<8x1xf32>
    %193 = tpu.reciprocal %192 {approx = true} : vector<8x1xf32> -> vector<8x1xf32>
    %194 = vector.broadcast %193 : vector<8x1xf32> to vector<8x8xf32>
    %195 = arith.mulf %190, %194 : vector<8x8xf32>
    %196 = arith.truncf %195 : vector<8x8xf32> to vector<8x8xbf16>
    %197 = vector.extract_strided_slice %156 {offsets = [0, 32], sizes = [8, 32], strides = [1, 1]} : vector<8x128xbf16> to vector<8x32xbf16>
    %cst_72 = arith.constant dense<0.000000e+00> : vector<8x32xf32>
    %198 = tpu.matmul %196, %197, %cst_72 {dimension_numbers = #tpu.dot_dimension_numbers<[1], [0], [0], [1], [0, 0, 1, 1], [], []>} : vector<8x8xbf16>, vector<8x32xbf16>, vector<8x32xf32> -> vector<8x32xf32>
    %199 = arith.truncf %198 : vector<8x32xf32> to vector<8x32xbf16>
    %200 = vector.extract_strided_slice %157 {offsets = [32, 0], sizes = [32, 128], strides = [1, 1]} : vector<128x128xbf16> to vector<32x128xbf16>
    %cst_73 = arith.constant dense<0.000000e+00> : vector<8x128xf32>
    %201 = tpu.matmul %199, %200, %cst_73 {dimension_numbers = #tpu.dot_dimension_numbers<[1], [0], [0], [1], [0, 0, 1, 1], [], []>} : vector<8x32xbf16>, vector<32x128xbf16>, vector<8x128xf32> -> vector<8x128xf32>
    %202 = arith.addf %180, %201 : vector<8x128xf32>
    %203 = vector.extract_strided_slice %148 {offsets = [0, 64], sizes = [8, 32], strides = [1, 1]} : vector<8x128xbf16> to vector<8x32xbf16>
    %204 = vector.extract_strided_slice %155 {offsets = [0, 64], sizes = [8, 32], strides = [1, 1]} : vector<8x128xbf16> to vector<8x32xbf16>
    %cst_74 = arith.constant dense<0.000000e+00> : vector<8x8xf32>
    %205 = tpu.matmul %203, %204, %cst_74 {dimension_numbers = #tpu.dot_dimension_numbers<[1], [1], [0], [0], [0, 0, 1, 0], [], []>} : vector<8x32xbf16>, vector<8x32xbf16>, vector<8x8xf32> -> vector<8x8xf32>
    %cst_75 = arith.constant 0.176776692 : f32
    %206 = vector.broadcast %cst_75 : f32 to vector<8x8xf32>
    %207 = arith.mulf %205, %206 : vector<8x8xf32>
    %cst_76 = arith.constant dense<0xFF800000> : vector<8xf32>
    %208 = vector.multi_reduction <maximumf>, %207, %cst_76 [1] : vector<8x8xf32> to vector<8xf32>
    %209 = vector.shape_cast %208 : vector<8xf32> to vector<8x1xf32>
    %210 = vector.broadcast %209 : vector<8x1xf32> to vector<8x8xf32>
    %211 = arith.subf %207, %210 : vector<8x8xf32>
    %212 = math.exp %211 : vector<8x8xf32>
    %cst_77 = arith.constant dense<0.000000e+00> : vector<8xf32>
    %213 = vector.multi_reduction <add>, %212, %cst_77 [1] : vector<8x8xf32> to vector<8xf32>
    %214 = vector.shape_cast %213 : vector<8xf32> to vector<8x1xf32>
    %215 = tpu.reciprocal %214 {approx = true} : vector<8x1xf32> -> vector<8x1xf32>
    %216 = vector.broadcast %215 : vector<8x1xf32> to vector<8x8xf32>
    %217 = arith.mulf %212, %216 : vector<8x8xf32>
    %218 = arith.truncf %217 : vector<8x8xf32> to vector<8x8xbf16>
    %219 = vector.extract_strided_slice %156 {offsets = [0, 64], sizes = [8, 32], strides = [1, 1]} : vector<8x128xbf16> to vector<8x32xbf16>
    %cst_78 = arith.constant dense<0.000000e+00> : vector<8x32xf32>
    %220 = tpu.matmul %218, %219, %cst_78 {dimension_numbers = #tpu.dot_dimension_numbers<[1], [0], [0], [1], [0, 0, 1, 1], [], []>} : vector<8x8xbf16>, vector<8x32xbf16>, vector<8x32xf32> -> vector<8x32xf32>
    %221 = arith.truncf %220 : vector<8x32xf32> to vector<8x32xbf16>
    %222 = vector.extract_strided_slice %157 {offsets = [64, 0], sizes = [32, 128], strides = [1, 1]} : vector<128x128xbf16> to vector<32x128xbf16>
    %cst_79 = arith.constant dense<0.000000e+00> : vector<8x128xf32>
    %223 = tpu.matmul %221, %222, %cst_79 {dimension_numbers = #tpu.dot_dimension_numbers<[1], [0], [0], [1], [0, 0, 1, 1], [], []>} : vector<8x32xbf16>, vector<32x128xbf16>, vector<8x128xf32> -> vector<8x128xf32>
    %224 = arith.addf %202, %223 : vector<8x128xf32>
    %225 = vector.extract_strided_slice %148 {offsets = [0, 96], sizes = [8, 32], strides = [1, 1]} : vector<8x128xbf16> to vector<8x32xbf16>
    %226 = vector.extract_strided_slice %155 {offsets = [0, 96], sizes = [8, 32], strides = [1, 1]} : vector<8x128xbf16> to vector<8x32xbf16>
    %cst_80 = arith.constant dense<0.000000e+00> : vector<8x8xf32>
    %227 = tpu.matmul %225, %226, %cst_80 {dimension_numbers = #tpu.dot_dimension_numbers<[1], [1], [0], [0], [0, 0, 1, 0], [], []>} : vector<8x32xbf16>, vector<8x32xbf16>, vector<8x8xf32> -> vector<8x8xf32>
    %cst_81 = arith.constant 0.176776692 : f32
    %228 = vector.broadcast %cst_81 : f32 to vector<8x8xf32>
    %229 = arith.mulf %227, %228 : vector<8x8xf32>
    %cst_82 = arith.constant dense<0xFF800000> : vector<8xf32>
    %230 = vector.multi_reduction <maximumf>, %229, %cst_82 [1] : vector<8x8xf32> to vector<8xf32>
    %231 = vector.shape_cast %230 : vector<8xf32> to vector<8x1xf32>
    %232 = vector.broadcast %231 : vector<8x1xf32> to vector<8x8xf32>
    %233 = arith.subf %229, %232 : vector<8x8xf32>
    %234 = math.exp %233 : vector<8x8xf32>
    %cst_83 = arith.constant dense<0.000000e+00> : vector<8xf32>
    %235 = vector.multi_reduction <add>, %234, %cst_83 [1] : vector<8x8xf32> to vector<8xf32>
    %236 = vector.shape_cast %235 : vector<8xf32> to vector<8x1xf32>
    %237 = tpu.reciprocal %236 {approx = true} : vector<8x1xf32> -> vector<8x1xf32>
    %238 = vector.broadcast %237 : vector<8x1xf32> to vector<8x8xf32>
    %239 = arith.mulf %234, %238 : vector<8x8xf32>
    %240 = arith.truncf %239 : vector<8x8xf32> to vector<8x8xbf16>
    %241 = vector.extract_strided_slice %156 {offsets = [0, 96], sizes = [8, 32], strides = [1, 1]} : vector<8x128xbf16> to vector<8x32xbf16>
    %cst_84 = arith.constant dense<0.000000e+00> : vector<8x32xf32>
    %242 = tpu.matmul %240, %241, %cst_84 {dimension_numbers = #tpu.dot_dimension_numbers<[1], [0], [0], [1], [0, 0, 1, 1], [], []>} : vector<8x8xbf16>, vector<8x32xbf16>, vector<8x32xf32> -> vector<8x32xf32>
    %243 = arith.truncf %242 : vector<8x32xf32> to vector<8x32xbf16>
    %244 = vector.extract_strided_slice %157 {offsets = [96, 0], sizes = [32, 128], strides = [1, 1]} : vector<128x128xbf16> to vector<32x128xbf16>
    %cst_85 = arith.constant dense<0.000000e+00> : vector<8x128xf32>
    %245 = tpu.matmul %243, %244, %cst_85 {dimension_numbers = #tpu.dot_dimension_numbers<[1], [0], [0], [1], [0, 0, 1, 1], [], []>} : vector<8x32xbf16>, vector<32x128xbf16>, vector<8x128xf32> -> vector<8x128xf32>
    %246 = arith.addf %224, %245 : vector<8x128xf32>
    %c0_86 = arith.constant 0 : index
    %c0_87 = arith.constant 0 : index
    %247 = vector.load %arg14[%c0_86, %c0_87] : memref<1x128xf32, #tpu.memory_space<vmem>>, vector<1x128xf32>
    %248 = vector.broadcast %247 : vector<1x128xf32> to vector<8x128xf32>
    %249 = arith.addf %246, %248 : vector<8x128xf32>
    %c0_88 = arith.constant 0 : index
    %c0_89 = arith.constant 0 : index
    %250 = vector.load %arg15[%c0_88, %c0_89] : memref<1x128xf32, #tpu.memory_space<vmem>>, vector<1x128xf32>
    %c0_90 = arith.constant 0 : index
    %c0_91 = arith.constant 0 : index
    %251 = vector.load %arg16[%c0_90, %c0_91] : memref<1x128xf32, #tpu.memory_space<vmem>>, vector<1x128xf32>
    %252 = arith.addf %141, %249 : vector<8x128xf32>
    %cst_92 = arith.constant dense<0.000000e+00> : vector<8xf32>
    %253 = vector.multi_reduction <add>, %252, %cst_92 [1] : vector<8x128xf32> to vector<8xf32>
    %254 = vector.shape_cast %253 : vector<8xf32> to vector<8x1xf32>
    %cst_93 = arith.constant 1.280000e+02 : f32
    %255 = vector.broadcast %cst_93 : f32 to vector<8x1xf32>
    %256 = arith.divf %254, %255 : vector<8x1xf32>
    %257 = vector.broadcast %256 : vector<8x1xf32> to vector<8x128xf32>
    %258 = arith.subf %252, %257 : vector<8x128xf32>
    %259 = arith.mulf %258, %258 : vector<8x128xf32>
    %cst_94 = arith.constant dense<0.000000e+00> : vector<8xf32>
    %260 = vector.multi_reduction <add>, %259, %cst_94 [1] : vector<8x128xf32> to vector<8xf32>
    %261 = vector.shape_cast %260 : vector<8xf32> to vector<8x1xf32>
    %cst_95 = arith.constant 1.280000e+02 : f32
    %262 = vector.broadcast %cst_95 : f32 to vector<8x1xf32>
    %263 = arith.divf %261, %262 : vector<8x1xf32>
    %264 = vector.broadcast %256 : vector<8x1xf32> to vector<8x128xf32>
    %265 = arith.subf %252, %264 : vector<8x128xf32>
    %cst_96 = arith.constant 9.99999974E-6 : f32
    %266 = vector.broadcast %cst_96 : f32 to vector<8x1xf32>
    %267 = arith.addf %263, %266 : vector<8x1xf32>
    %268 = math.rsqrt %267 : vector<8x1xf32>
    %269 = vector.broadcast %268 : vector<8x1xf32> to vector<8x128xf32>
    %270 = arith.mulf %265, %269 : vector<8x128xf32>
    %271 = vector.broadcast %250 : vector<1x128xf32> to vector<8x128xf32>
    %272 = arith.mulf %270, %271 : vector<8x128xf32>
    %273 = vector.broadcast %251 : vector<1x128xf32> to vector<8x128xf32>
    %274 = arith.addf %272, %273 : vector<8x128xf32>
    %275 = arith.truncf %274 : vector<8x128xf32> to vector<8x128xbf16>
    %c0_97 = arith.constant 0 : index
    %c0_98 = arith.constant 0 : index
    %276 = vector.load %arg17[%c0_97, %c0_98] : memref<128x256xbf16, #tpu.memory_space<vmem>>, vector<128x256xbf16>
    %c0_99 = arith.constant 0 : index
    %c0_100 = arith.constant 0 : index
    %277 = vector.load %arg18[%c0_99, %c0_100] : memref<1x256xf32, #tpu.memory_space<vmem>>, vector<1x256xf32>
    %c0_101 = arith.constant 0 : index
    %c0_102 = arith.constant 0 : index
    %278 = vector.load %arg19[%c0_101, %c0_102] : memref<256x128xbf16, #tpu.memory_space<vmem>>, vector<256x128xbf16>
    %c0_103 = arith.constant 0 : index
    %c0_104 = arith.constant 0 : index
    %279 = vector.load %arg20[%c0_103, %c0_104] : memref<1x128xf32, #tpu.memory_space<vmem>>, vector<1x128xf32>
    %cst_105 = arith.constant dense<0.000000e+00> : vector<8x256xf32>
    %280 = tpu.matmul %275, %276, %cst_105 {dimension_numbers = #tpu.dot_dimension_numbers<[1], [0], [0], [1], [0, 0, 1, 1], [], []>} : vector<8x128xbf16>, vector<128x256xbf16>, vector<8x256xf32> -> vector<8x256xf32>
    %281 = vector.broadcast %277 : vector<1x256xf32> to vector<8x256xf32>
    %282 = arith.addf %280, %281 : vector<8x256xf32>
    %cst_106 = arith.constant 0.000000e+00 : f32
    %283 = vector.broadcast %cst_106 : f32 to vector<8x256xf32>
    %284 = arith.maximumf %282, %283 : vector<8x256xf32>
    %285 = arith.truncf %284 : vector<8x256xf32> to vector<8x256xbf16>
    %cst_107 = arith.constant dense<0.000000e+00> : vector<8x128xf32>
    %286 = tpu.matmul %285, %278, %cst_107 {dimension_numbers = #tpu.dot_dimension_numbers<[1], [0], [0], [1], [0, 0, 1, 1], [], []>} : vector<8x256xbf16>, vector<256x128xbf16>, vector<8x128xf32> -> vector<8x128xf32>
    %287 = vector.broadcast %279 : vector<1x128xf32> to vector<8x128xf32>
    %288 = arith.addf %286, %287 : vector<8x128xf32>
    %c0_108 = arith.constant 0 : index
    %c0_109 = arith.constant 0 : index
    %289 = vector.load %arg21[%c0_108, %c0_109] : memref<1x128xf32, #tpu.memory_space<vmem>>, vector<1x128xf32>
    %c0_110 = arith.constant 0 : index
    %c0_111 = arith.constant 0 : index
    %290 = vector.load %arg22[%c0_110, %c0_111] : memref<1x128xf32, #tpu.memory_space<vmem>>, vector<1x128xf32>
    %291 = arith.addf %274, %288 : vector<8x128xf32>
    %cst_112 = arith.constant dense<0.000000e+00> : vector<8xf32>
    %292 = vector.multi_reduction <add>, %291, %cst_112 [1] : vector<8x128xf32> to vector<8xf32>
    %293 = vector.shape_cast %292 : vector<8xf32> to vector<8x1xf32>
    %cst_113 = arith.constant 1.280000e+02 : f32
    %294 = vector.broadcast %cst_113 : f32 to vector<8x1xf32>
    %295 = arith.divf %293, %294 : vector<8x1xf32>
    %296 = vector.broadcast %295 : vector<8x1xf32> to vector<8x128xf32>
    %297 = arith.subf %291, %296 : vector<8x128xf32>
    %298 = arith.mulf %297, %297 : vector<8x128xf32>
    %cst_114 = arith.constant dense<0.000000e+00> : vector<8xf32>
    %299 = vector.multi_reduction <add>, %298, %cst_114 [1] : vector<8x128xf32> to vector<8xf32>
    %300 = vector.shape_cast %299 : vector<8xf32> to vector<8x1xf32>
    %cst_115 = arith.constant 1.280000e+02 : f32
    %301 = vector.broadcast %cst_115 : f32 to vector<8x1xf32>
    %302 = arith.divf %300, %301 : vector<8x1xf32>
    %303 = vector.broadcast %295 : vector<8x1xf32> to vector<8x128xf32>
    %304 = arith.subf %291, %303 : vector<8x128xf32>
    %cst_116 = arith.constant 9.99999974E-6 : f32
    %305 = vector.broadcast %cst_116 : f32 to vector<8x1xf32>
    %306 = arith.addf %302, %305 : vector<8x1xf32>
    %307 = math.rsqrt %306 : vector<8x1xf32>
    %308 = vector.broadcast %307 : vector<8x1xf32> to vector<8x128xf32>
    %309 = arith.mulf %304, %308 : vector<8x128xf32>
    %310 = vector.broadcast %289 : vector<1x128xf32> to vector<8x128xf32>
    %311 = arith.mulf %309, %310 : vector<8x128xf32>
    %312 = vector.broadcast %290 : vector<1x128xf32> to vector<8x128xf32>
    %313 = arith.addf %311, %312 : vector<8x128xf32>
    %314 = arith.truncf %313 : vector<8x128xf32> to vector<8x128xbf16>
    %c0_117 = arith.constant 0 : index
    %c0_118 = arith.constant 0 : index
    %c0_119 = arith.constant 0 : index
    %315 = vector.load %arg23[%c0_117, %c0_118, %c0_119] : memref<1x8x128xbf16, #tpu.memory_space<vmem>>, vector<1x8x128xbf16>
    %316 = vector.shape_cast %315 : vector<1x8x128xbf16> to vector<8x128xbf16>
    %317 = vector.shape_cast %314 : vector<8x128xbf16> to vector<1x8x128xbf16>
    tpu.vector_store %arg23[%c0_117, %c0_118, %c0_119], %317 {strides = array<i32>} : memref<1x8x128xbf16, #tpu.memory_space<vmem>>, vector<1x8x128xbf16>,
    return
  }
  func.func @transform_0(%arg0: i32) -> (i32, i32, i32) {
    %c0_i32 = arith.constant 0 : i32
    %c0_i32_0 = arith.constant 0 : i32
    %c0_i32_1 = arith.constant 0 : i32
    return %arg0, %c0_i32, %c0_i32_0 : i32, i32, i32
  }
  func.func @transform_1(%arg0: i32) -> (i32, i32, i32) {
    %c0_i32 = arith.constant 0 : i32
    %c0_i32_0 = arith.constant 0 : i32
    %c0_i32_1 = arith.constant 0 : i32
    return %arg0, %c0_i32, %c0_i32_0 : i32, i32, i32
  }
  func.func @transform_2(%arg0: i32) -> (i32, i32) {
    %c0_i32 = arith.constant 0 : i32
    %c0_i32_0 = arith.constant 0 : i32
    %c0_i32_1 = arith.constant 0 : i32
    return %c0_i32, %c0_i32_0 : i32, i32
  }
  func.func @transform_3(%arg0: i32) -> (i32, i32) {
    %c0_i32 = arith.constant 0 : i32
    %c0_i32_0 = arith.constant 0 : i32
    %c0_i32_1 = arith.constant 0 : i32
    return %c0_i32, %c0_i32_0 : i32, i32
  }
  func.func @transform_4(%arg0: i32) -> (i32, i32) {
    %c0_i32 = arith.constant 0 : i32
    %c0_i32_0 = arith.constant 0 : i32
    %c0_i32_1 = arith.constant 0 : i32
    return %c0_i32, %c0_i32_0 : i32, i32
  }
  func.func @transform_5(%arg0: i32) -> (i32, i32) {
    %c0_i32 = arith.constant 0 : i32
    %c0_i32_0 = arith.constant 0 : i32
    %c0_i32_1 = arith.constant 0 : i32
    return %c0_i32, %c0_i32_0 : i32, i32
  }
  func.func @transform_6(%arg0: i32) -> (i32, i32) {
    %c0_i32 = arith.constant 0 : i32
    %c0_i32_0 = arith.constant 0 : i32
    %c0_i32_1 = arith.constant 0 : i32
    return %c0_i32, %c0_i32_0 : i32, i32
  }
  func.func @transform_7(%arg0: i32) -> (i32, i32) {
    %c0_i32 = arith.constant 0 : i32
    %c0_i32_0 = arith.constant 0 : i32
    %c0_i32_1 = arith.constant 0 : i32
    return %c0_i32, %c0_i32_0 : i32, i32
  }
  func.func @transform_8(%arg0: i32) -> (i32, i32) {
    %c0_i32 = arith.constant 0 : i32
    %c0_i32_0 = arith.constant 0 : i32
    %c0_i32_1 = arith.constant 0 : i32
    return %c0_i32, %c0_i32_0 : i32, i32
  }
  func.func @transform_9(%arg0: i32) -> (i32, i32) {
    %c0_i32 = arith.constant 0 : i32
    %c0_i32_0 = arith.constant 0 : i32
    %c0_i32_1 = arith.constant 0 : i32
    return %c0_i32, %c0_i32_0 : i32, i32
  }
  func.func @transform_10(%arg0: i32) -> (i32, i32) {
    %c0_i32 = arith.constant 0 : i32
    %c0_i32_0 = arith.constant 0 : i32
    %c0_i32_1 = arith.constant 0 : i32
    return %c0_i32, %c0_i32_0 : i32, i32
  }
  func.func @transform_11(%arg0: i32) -> (i32, i32) {
    %c0_i32 = arith.constant 0 : i32
    %c0_i32_0 = arith.constant 0 : i32
    %c0_i32_1 = arith.constant 0 : i32
    return %c0_i32, %c0_i32_0 : i32, i32
  }
  func.func @transform_12(%arg0: i32) -> (i32, i32) {
    %c0_i32 = arith.constant 0 : i32
    %c0_i32_0 = arith.constant 0 : i32
    %c0_i32_1 = arith.constant 0 : i32
    return %c0_i32, %c0_i32_0 : i32, i32
  }
  func.func @transform_13(%arg0: i32) -> (i32, i32) {
    %c0_i32 = arith.constant 0 : i32
    %c0_i32_0 = arith.constant 0 : i32
    %c0_i32_1 = arith.constant 0 : i32
    return %c0_i32, %c0_i32_0 : i32, i32
  }
  func.func @transform_14(%arg0: i32) -> (i32, i32) {
    %c0_i32 = arith.constant 0 : i32
    %c0_i32_0 = arith.constant 0 : i32
    %c0_i32_1 = arith.constant 0 : i32
    return %c0_i32, %c0_i32_0 : i32, i32
  }
  func.func @transform_15(%arg0: i32) -> (i32, i32) {
    %c0_i32 = arith.constant 0 : i32
    %c0_i32_0 = arith.constant 0 : i32
    %c0_i32_1 = arith.constant 0 : i32
    return %c0_i32, %c0_i32_0 : i32, i32
  }
  func.func @transform_16(%arg0: i32) -> (i32, i32) {
    %c0_i32 = arith.constant 0 : i32
    %c0_i32_0 = arith.constant 0 : i32
    %c0_i32_1 = arith.constant 0 : i32
    return %c0_i32, %c0_i32_0 : i32, i32
  }
  func.func @transform_17(%arg0: i32) -> (i32, i32) {
    %c0_i32 = arith.constant 0 : i32
    %c0_i32_0 = arith.constant 0 : i32
    %c0_i32_1 = arith.constant 0 : i32
    return %c0_i32, %c0_i32_0 : i32, i32
  }
  func.func @transform_18(%arg0: i32) -> (i32, i32) {
    %c0_i32 = arith.constant 0 : i32
    %c0_i32_0 = arith.constant 0 : i32
    %c0_i32_1 = arith.constant 0 : i32
    return %c0_i32, %c0_i32_0 : i32, i32
  }
  func.func @transform_19(%arg0: i32) -> (i32, i32) {
    %c0_i32 = arith.constant 0 : i32
    %c0_i32_0 = arith.constant 0 : i32
    %c0_i32_1 = arith.constant 0 : i32
    return %c0_i32, %c0_i32_0 : i32, i32
  }
  func.func @transform_20(%arg0: i32) -> (i32, i32) {
    %c0_i32 = arith.constant 0 : i32
    %c0_i32_0 = arith.constant 0 : i32
    %c0_i32_1 = arith.constant 0 : i32
    return %c0_i32, %c0_i32_0 : i32, i32
  }
  func.func @transform_21(%arg0: i32) -> (i32, i32) {
    %c0_i32 = arith.constant 0 : i32
    %c0_i32_0 = arith.constant 0 : i32
    %c0_i32_1 = arith.constant 0 : i32
    return %c0_i32, %c0_i32_0 : i32, i32
  }
  func.func @transform_22(%arg0: i32) -> (i32, i32, i32) {
    %c0_i32 = arith.constant 0 : i32
    %c0_i32_0 = arith.constant 0 : i32
    %c0_i32_1 = arith.constant 0 : i32
    return %arg0, %c0_i32, %c0_i32_0 : i32, i32, i32
  }
}

module attributes {stable_mosaic.version = 11 : i64} {
  func.func @_decoder_layer_kernel(%arg0: i32, %arg1: memref<1x8x128xbf16, #tpu.memory_space<vmem>>, %arg2: memref<1x8x128xbf16, #tpu.memory_space<vmem>>, %arg3: memref<128x384xbf16, #tpu.memory_space<vmem>>, %arg4: memref<1x384xf32, #tpu.memory_space<vmem>>, %arg5: memref<128x128xbf16, #tpu.memory_space<vmem>>, %arg6: memref<1x128xf32, #tpu.memory_space<vmem>>, %arg7: memref<1x128xf32, #tpu.memory_space<vmem>>, %arg8: memref<1x128xf32, #tpu.memory_space<vmem>>, %arg9: memref<128x128xbf16, #tpu.memory_space<vmem>>, %arg10: memref<1x128xf32, #tpu.memory_space<vmem>>, %arg11: memref<128x256xbf16, #tpu.memory_space<vmem>>, %arg12: memref<1x256xf32, #tpu.memory_space<vmem>>, %arg13: memref<128x128xbf16, #tpu.memory_space<vmem>>, %arg14: memref<1x128xf32, #tpu.memory_space<vmem>>, %arg15: memref<1x128xf32, #tpu.memory_space<vmem>>, %arg16: memref<1x128xf32, #tpu.memory_space<vmem>>, %arg17: memref<128x256xbf16, #tpu.memory_space<vmem>>, %arg18: memref<1x256xf32, #tpu.memory_space<vmem>>, %arg19: memref<256x128xbf16, #tpu.memory_space<vmem>>, %arg20: memref<1x128xf32, #tpu.memory_space<vmem>>, %arg21: memref<1x128xf32, #tpu.memory_space<vmem>>, %arg22: memref<1x128xf32, #tpu.memory_space<vmem>>, %arg23: memref<1x8x128xbf16, #tpu.memory_space<vmem>>) attributes {dimension_semantics = [#tpu.dimension_semantics<parallel>], iteration_bounds = array<i64: 2>, scalar_prefetch = 0 : i64, scratch_operands = 0 : i64, tpu.core_type = #tpu.core_type<tc>, window_params = [{transform_indices = @transform_0, window_bounds = array<i64: 1, 8, 128>}, {transform_indices = @transform_1, window_bounds = array<i64: 1, 8, 128>}, {pipeline_mode = #tpu.pipeline_mode<synchronous>, transform_indices = @transform_2, window_bounds = array<i64: 128, 384>}, {pipeline_mode = #tpu.pipeline_mode<synchronous>, transform_indices = @transform_3, window_bounds = array<i64: 1, 384>}, {pipeline_mode = #tpu.pipeline_mode<synchronous>, transform_indices = @transform_4, window_bounds = array<i64: 128, 128>}, {pipeline_mode = #tpu.pipeline_mode<synchronous>, transform_indices = @transform_5, window_bounds = array<i64: 1, 128>}, {pipeline_mode = #tpu.pipeline_mode<synchronous>, transform_indices = @transform_6, window_bounds = array<i64: 1, 128>}, {pipeline_mode = #tpu.pipeline_mode<synchronous>, transform_indices = @transform_7, window_bounds = array<i64: 1, 128>}, {pipeline_mode = #tpu.pipeline_mode<synchronous>, transform_indices = @transform_8, window_bounds = array<i64: 128, 128>}, {pipeline_mode = #tpu.pipeline_mode<synchronous>, transform_indices = @transform_9, window_bounds = array<i64: 1, 128>}, {pipeline_mode = #tpu.pipeline_mode<synchronous>, transform_indices = @transform_10, window_bounds = array<i64: 128, 256>}, {pipeline_mode = #tpu.pipeline_mode<synchronous>, transform_indices = @transform_11, window_bounds = array<i64: 1, 256>}, {pipeline_mode = #tpu.pipeline_mode<synchronous>, transform_indices = @transform_12, window_bounds = array<i64: 128, 128>}, {pipeline_mode = #tpu.pipeline_mode<synchronous>, transform_indices = @transform_13, window_bounds = array<i64: 1, 128>}, {pipeline_mode = #tpu.pipeline_mode<synchronous>, transform_indices = @transform_14, window_bounds = array<i64: 1, 128>}, {pipeline_mode = #tpu.pipeline_mode<synchronous>, transform_indices = @transform_15, window_bounds = array<i64: 1, 128>}, {pipeline_mode = #tpu.pipeline_mode<synchronous>, transform_indices = @transform_16, window_bounds = array<i64: 128, 256>}, {pipeline_mode = #tpu.pipeline_mode<synchronous>, transform_indices = @transform_17, window_bounds = array<i64: 1, 256>}, {pipeline_mode = #tpu.pipeline_mode<synchronous>, transform_indices = @transform_18, window_bounds = array<i64: 256, 128>}, {pipeline_mode = #tpu.pipeline_mode<synchronous>, transform_indices = @transform_19, window_bounds = array<i64: 1, 128>}, {pipeline_mode = #tpu.pipeline_mode<synchronous>, transform_indices = @transform_20, window_bounds = array<i64: 1, 128>}, {pipeline_mode = #tpu.pipeline_mode<synchronous>, transform_indices = @transform_21, window_bounds = array<i64: 1, 128>}, {transform_indices = @transform_22, window_bounds = array<i64: 1, 8, 128>}]} {
    %c0 = arith.constant 0 : index
    %c0_0 = arith.constant 0 : index
    %c0_1 = arith.constant 0 : index
    %0 = vector.load %arg1[%c0, %c0_0, %c0_1] : memref<1x8x128xbf16, #tpu.memory_space<vmem>>, vector<1x8x128xbf16>
    %1 = vector.shape_cast %0 : vector<1x8x128xbf16> to vector<8x128xbf16>
    %c0_2 = arith.constant 0 : index
    %c0_3 = arith.constant 0 : index
    %c0_4 = arith.constant 0 : index
    %2 = vector.load %arg2[%c0_2, %c0_3, %c0_4] : memref<1x8x128xbf16, #tpu.memory_space<vmem>>, vector<1x8x128xbf16>
    %3 = vector.shape_cast %2 : vector<1x8x128xbf16> to vector<8x128xbf16>
    %c0_5 = arith.constant 0 : index
    %c0_6 = arith.constant 0 : index
    %4 = vector.load %arg3[%c0_5, %c0_6] : memref<128x384xbf16, #tpu.memory_space<vmem>>, vector<128x384xbf16>
    %cst = arith.constant dense<0.000000e+00> : vector<8x384xf32>
    %5 = tpu.matmul %1, %4, %cst {dimension_numbers = #tpu.dot_dimension_numbers<[1], [0], [0], [1], [0, 0, 1, 1], [], []>} : vector<8x128xbf16>, vector<128x384xbf16>, vector<8x384xf32> -> vector<8x384xf32>
    %c0_7 = arith.constant 0 : index
    %c0_8 = arith.constant 0 : index
    %6 = vector.load %arg4[%c0_7, %c0_8] : memref<1x384xf32, #tpu.memory_space<vmem>>, vector<1x384xf32>
    %7 = vector.broadcast %6 : vector<1x384xf32> to vector<8x384xf32>
    %8 = arith.addf %5, %7 : vector<8x384xf32>
    %9 = arith.truncf %8 : vector<8x384xf32> to vector<8x384xbf16>
    %10 = vector.extract_strided_slice %9 {offsets = [0, 0], sizes = [8, 128], strides = [1, 1]} : vector<8x384xbf16> to vector<8x128xbf16>
    %11 = vector.extract_strided_slice %9 {offsets = [0, 128], sizes = [8, 128], strides = [1, 1]} : vector<8x384xbf16> to vector<8x128xbf16>
    %12 = vector.extract_strided_slice %9 {offsets = [0, 256], sizes = [8, 128], strides = [1, 1]} : vector<8x384xbf16> to vector<8x128xbf16>
    %c0_9 = arith.constant 0 : index
    %c0_10 = arith.constant 0 : index
    %13 = vector.load %arg5[%c0_9, %c0_10] : memref<128x128xbf16, #tpu.memory_space<vmem>>, vector<128x128xbf16>
    %14 = tpu.iota {dimensions = array<i32: 0>} : vector<8x8xi32>
    %15 = tpu.iota {dimensions = array<i32: 1>} : vector<8x8xi32>
    %16 = arith.cmpi sgt, %15, %14 : vector<8x8xi32>
    %cst_11 = arith.constant -1.000000e+09 : f32
    %cst_12 = arith.constant 0.000000e+00 : f32
    %17 = vector.broadcast %cst_11 : f32 to vector<8x8xf32>
    %18 = vector.broadcast %cst_12 : f32 to vector<8x8xf32>
    %19 = arith.select %16, %17, %18 : vector<8x8xi1>, vector<8x8xf32>
    %cst_13 = arith.constant 0.000000e+00 : f32
    %20 = vector.broadcast %cst_13 : f32 to vector<8x128xf32>
    %21 = vector.extract_strided_slice %10 {offsets = [0, 0], sizes = [8, 32], strides = [1, 1]} : vector<8x128xbf16> to vector<8x32xbf16>
    %22 = vector.extract_strided_slice %11 {offsets = [0, 0], sizes = [8, 32], strides = [1, 1]} : vector<8x128xbf16> to vector<8x32xbf16>
    %cst_14 = arith.constant dense<0.000000e+00> : vector<8x8xf32>
    %23 = tpu.matmul %21, %22, %cst_14 {dimension_numbers = #tpu.dot_dimension_numbers<[1], [1], [0], [0], [0, 0, 1, 0], [], []>} : vector<8x32xbf16>, vector<8x32xbf16>, vector<8x8xf32> -> vector<8x8xf32>
    %cst_15 = arith.constant 0.176776692 : f32
    %24 = vector.broadcast %cst_15 : f32 to vector<8x8xf32>
    %25 = arith.mulf %23, %24 : vector<8x8xf32>
    %26 = arith.addf %25, %19 : vector<8x8xf32>
    %cst_16 = arith.constant dense<0xFF800000> : vector<8xf32>
    %27 = vector.multi_reduction <maximumf>, %26, %cst_16 [1] : vector<8x8xf32> to vector<8xf32>
    %28 = vector.shape_cast %27 : vector<8xf32> to vector<8x1xf32>
    %29 = vector.broadcast %28 : vector<8x1xf32> to vector<8x8xf32>
    %30 = arith.subf %26, %29 : vector<8x8xf32>
    %31 = math.exp %30 : vector<8x8xf32>
    %cst_17 = arith.constant dense<0.000000e+00> : vector<8xf32>
    %32 = vector.multi_reduction <add>, %31, %cst_17 [1] : vector<8x8xf32> to vector<8xf32>
    %33 = vector.shape_cast %32 : vector<8xf32> to vector<8x1xf32>
    %34 = tpu.reciprocal %33 {approx = true} : vector<8x1xf32> -> vector<8x1xf32>
    %35 = vector.broadcast %34 : vector<8x1xf32> to vector<8x8xf32>
    %36 = arith.mulf %31, %35 : vector<8x8xf32>
    %37 = arith.truncf %36 : vector<8x8xf32> to vector<8x8xbf16>
    %38 = vector.extract_strided_slice %12 {offsets = [0, 0], sizes = [8, 32], strides = [1, 1]} : vector<8x128xbf16> to vector<8x32xbf16>
    %cst_18 = arith.constant dense<0.000000e+00> : vector<8x32xf32>
    %39 = tpu.matmul %37, %38, %cst_18 {dimension_numbers = #tpu.dot_dimension_numbers<[1], [0], [0], [1], [0, 0, 1, 1], [], []>} : vector<8x8xbf16>, vector<8x32xbf16>, vector<8x32xf32> -> vector<8x32xf32>
    %40 = arith.truncf %39 : vector<8x32xf32> to vector<8x32xbf16>
    %41 = vector.extract_strided_slice %13 {offsets = [0, 0], sizes = [32, 128], strides = [1, 1]} : vector<128x128xbf16> to vector<32x128xbf16>
    %cst_19 = arith.constant dense<0.000000e+00> : vector<8x128xf32>
    %42 = tpu.matmul %40, %41, %cst_19 {dimension_numbers = #tpu.dot_dimension_numbers<[1], [0], [0], [1], [0, 0, 1, 1], [], []>} : vector<8x32xbf16>, vector<32x128xbf16>, vector<8x128xf32> -> vector<8x128xf32>
    %43 = arith.addf %20, %42 : vector<8x128xf32>
    %44 = vector.extract_strided_slice %10 {offsets = [0, 32], sizes = [8, 32], strides = [1, 1]} : vector<8x128xbf16> to vector<8x32xbf16>
    %45 = vector.extract_strided_slice %11 {offsets = [0, 32], sizes = [8, 32], strides = [1, 1]} : vector<8x128xbf16> to vector<8x32xbf16>
    %cst_20 = arith.constant dense<0.000000e+00> : vector<8x8xf32>
    %46 = tpu.matmul %44, %45, %cst_20 {dimension_numbers = #tpu.dot_dimension_numbers<[1], [1], [0], [0], [0, 0, 1, 0], [], []>} : vector<8x32xbf16>, vector<8x32xbf16>, vector<8x8xf32> -> vector<8x8xf32>
    %cst_21 = arith.constant 0.176776692 : f32
    %47 = vector.broadcast %cst_21 : f32 to vector<8x8xf32>
    %48 = arith.mulf %46, %47 : vector<8x8xf32>
    %49 = arith.addf %48, %19 : vector<8x8xf32>
    %cst_22 = arith.constant dense<0xFF800000> : vector<8xf32>
    %50 = vector.multi_reduction <maximumf>, %49, %cst_22 [1] : vector<8x8xf32> to vector<8xf32>
    %51 = vector.shape_cast %50 : vector<8xf32> to vector<8x1xf32>
    %52 = vector.broadcast %51 : vector<8x1xf32> to vector<8x8xf32>
    %53 = arith.subf %49, %52 : vector<8x8xf32>
    %54 = math.exp %53 : vector<8x8xf32>
    %cst_23 = arith.constant dense<0.000000e+00> : vector<8xf32>
    %55 = vector.multi_reduction <add>, %54, %cst_23 [1] : vector<8x8xf32> to vector<8xf32>
    %56 = vector.shape_cast %55 : vector<8xf32> to vector<8x1xf32>
    %57 = tpu.reciprocal %56 {approx = true} : vector<8x1xf32> -> vector<8x1xf32>
    %58 = vector.broadcast %57 : vector<8x1xf32> to vector<8x8xf32>
    %59 = arith.mulf %54, %58 : vector<8x8xf32>
    %60 = arith.truncf %59 : vector<8x8xf32> to vector<8x8xbf16>
    %61 = vector.extract_strided_slice %12 {offsets = [0, 32], sizes = [8, 32], strides = [1, 1]} : vector<8x128xbf16> to vector<8x32xbf16>
    %cst_24 = arith.constant dense<0.000000e+00> : vector<8x32xf32>
    %62 = tpu.matmul %60, %61, %cst_24 {dimension_numbers = #tpu.dot_dimension_numbers<[1], [0], [0], [1], [0, 0, 1, 1], [], []>} : vector<8x8xbf16>, vector<8x32xbf16>, vector<8x32xf32> -> vector<8x32xf32>
    %63 = arith.truncf %62 : vector<8x32xf32> to vector<8x32xbf16>
    %64 = vector.extract_strided_slice %13 {offsets = [32, 0], sizes = [32, 128], strides = [1, 1]} : vector<128x128xbf16> to vector<32x128xbf16>
    %cst_25 = arith.constant dense<0.000000e+00> : vector<8x128xf32>
    %65 = tpu.matmul %63, %64, %cst_25 {dimension_numbers = #tpu.dot_dimension_numbers<[1], [0], [0], [1], [0, 0, 1, 1], [], []>} : vector<8x32xbf16>, vector<32x128xbf16>, vector<8x128xf32> -> vector<8x128xf32>
    %66 = arith.addf %43, %65 : vector<8x128xf32>
    %67 = vector.extract_strided_slice %10 {offsets = [0, 64], sizes = [8, 32], strides = [1, 1]} : vector<8x128xbf16> to vector<8x32xbf16>
    %68 = vector.extract_strided_slice %11 {offsets = [0, 64], sizes = [8, 32], strides = [1, 1]} : vector<8x128xbf16> to vector<8x32xbf16>
    %cst_26 = arith.constant dense<0.000000e+00> : vector<8x8xf32>
    %69 = tpu.matmul %67, %68, %cst_26 {dimension_numbers = #tpu.dot_dimension_numbers<[1], [1], [0], [0], [0, 0, 1, 0], [], []>} : vector<8x32xbf16>, vector<8x32xbf16>, vector<8x8xf32> -> vector<8x8xf32>
    %cst_27 = arith.constant 0.176776692 : f32
    %70 = vector.broadcast %cst_27 : f32 to vector<8x8xf32>
    %71 = arith.mulf %69, %70 : vector<8x8xf32>
    %72 = arith.addf %71, %19 : vector<8x8xf32>
    %cst_28 = arith.constant dense<0xFF800000> : vector<8xf32>
    %73 = vector.multi_reduction <maximumf>, %72, %cst_28 [1] : vector<8x8xf32> to vector<8xf32>
    %74 = vector.shape_cast %73 : vector<8xf32> to vector<8x1xf32>
    %75 = vector.broadcast %74 : vector<8x1xf32> to vector<8x8xf32>
    %76 = arith.subf %72, %75 : vector<8x8xf32>
    %77 = math.exp %76 : vector<8x8xf32>
    %cst_29 = arith.constant dense<0.000000e+00> : vector<8xf32>
    %78 = vector.multi_reduction <add>, %77, %cst_29 [1] : vector<8x8xf32> to vector<8xf32>
    %79 = vector.shape_cast %78 : vector<8xf32> to vector<8x1xf32>
    %80 = tpu.reciprocal %79 {approx = true} : vector<8x1xf32> -> vector<8x1xf32>
    %81 = vector.broadcast %80 : vector<8x1xf32> to vector<8x8xf32>
    %82 = arith.mulf %77, %81 : vector<8x8xf32>
    %83 = arith.truncf %82 : vector<8x8xf32> to vector<8x8xbf16>
    %84 = vector.extract_strided_slice %12 {offsets = [0, 64], sizes = [8, 32], strides = [1, 1]} : vector<8x128xbf16> to vector<8x32xbf16>
    %cst_30 = arith.constant dense<0.000000e+00> : vector<8x32xf32>
    %85 = tpu.matmul %83, %84, %cst_30 {dimension_numbers = #tpu.dot_dimension_numbers<[1], [0], [0], [1], [0, 0, 1, 1], [], []>} : vector<8x8xbf16>, vector<8x32xbf16>, vector<8x32xf32> -> vector<8x32xf32>
    %86 = arith.truncf %85 : vector<8x32xf32> to vector<8x32xbf16>
    %87 = vector.extract_strided_slice %13 {offsets = [64, 0], sizes = [32, 128], strides = [1, 1]} : vector<128x128xbf16> to vector<32x128xbf16>
    %cst_31 = arith.constant dense<0.000000e+00> : vector<8x128xf32>
    %88 = tpu.matmul %86, %87, %cst_31 {dimension_numbers = #tpu.dot_dimension_numbers<[1], [0], [0], [1], [0, 0, 1, 1], [], []>} : vector<8x32xbf16>, vector<32x128xbf16>, vector<8x128xf32> -> vector<8x128xf32>
    %89 = arith.addf %66, %88 : vector<8x128xf32>
    %90 = vector.extract_strided_slice %10 {offsets = [0, 96], sizes = [8, 32], strides = [1, 1]} : vector<8x128xbf16> to vector<8x32xbf16>
    %91 = vector.extract_strided_slice %11 {offsets = [0, 96], sizes = [8, 32], strides = [1, 1]} : vector<8x128xbf16> to vector<8x32xbf16>
    %cst_32 = arith.constant dense<0.000000e+00> : vector<8x8xf32>
    %92 = tpu.matmul %90, %91, %cst_32 {dimension_numbers = #tpu.dot_dimension_numbers<[1], [1], [0], [0], [0, 0, 1, 0], [], []>} : vector<8x32xbf16>, vector<8x32xbf16>, vector<8x8xf32> -> vector<8x8xf32>
    %cst_33 = arith.constant 0.176776692 : f32
    %93 = vector.broadcast %cst_33 : f32 to vector<8x8xf32>
    %94 = arith.mulf %92, %93 : vector<8x8xf32>
    %95 = arith.addf %94, %19 : vector<8x8xf32>
    %cst_34 = arith.constant dense<0xFF800000> : vector<8xf32>
    %96 = vector.multi_reduction <maximumf>, %95, %cst_34 [1] : vector<8x8xf32> to vector<8xf32>
    %97 = vector.shape_cast %96 : vector<8xf32> to vector<8x1xf32>
    %98 = vector.broadcast %97 : vector<8x1xf32> to vector<8x8xf32>
    %99 = arith.subf %95, %98 : vector<8x8xf32>
    %100 = math.exp %99 : vector<8x8xf32>
    %cst_35 = arith.constant dense<0.000000e+00> : vector<8xf32>
    %101 = vector.multi_reduction <add>, %100, %cst_35 [1] : vector<8x8xf32> to vector<8xf32>
    %102 = vector.shape_cast %101 : vector<8xf32> to vector<8x1xf32>
    %103 = tpu.reciprocal %102 {approx = true} : vector<8x1xf32> -> vector<8x1xf32>
    %104 = vector.broadcast %103 : vector<8x1xf32> to vector<8x8xf32>
    %105 = arith.mulf %100, %104 : vector<8x8xf32>
    %106 = arith.truncf %105 : vector<8x8xf32> to vector<8x8xbf16>
    %107 = vector.extract_strided_slice %12 {offsets = [0, 96], sizes = [8, 32], strides = [1, 1]} : vector<8x128xbf16> to vector<8x32xbf16>
    %cst_36 = arith.constant dense<0.000000e+00> : vector<8x32xf32>
    %108 = tpu.matmul %106, %107, %cst_36 {dimension_numbers = #tpu.dot_dimension_numbers<[1], [0], [0], [1], [0, 0, 1, 1], [], []>} : vector<8x8xbf16>, vector<8x32xbf16>, vector<8x32xf32> -> vector<8x32xf32>
    %109 = arith.truncf %108 : vector<8x32xf32> to vector<8x32xbf16>
    %110 = vector.extract_strided_slice %13 {offsets = [96, 0], sizes = [32, 128], strides = [1, 1]} : vector<128x128xbf16> to vector<32x128xbf16>
    %cst_37 = arith.constant dense<0.000000e+00> : vector<8x128xf32>
    %111 = tpu.matmul %109, %110, %cst_37 {dimension_numbers = #tpu.dot_dimension_numbers<[1], [0], [0], [1], [0, 0, 1, 1], [], []>} : vector<8x32xbf16>, vector<32x128xbf16>, vector<8x128xf32> -> vector<8x128xf32>
    %112 = arith.addf %89, %111 : vector<8x128xf32>
    %c0_38 = arith.constant 0 : index
    %c0_39 = arith.constant 0 : index
    %113 = vector.load %arg6[%c0_38, %c0_39] : memref<1x128xf32, #tpu.memory_space<vmem>>, vector<1x128xf32>
    %114 = vector.broadcast %113 : vector<1x128xf32> to vector<8x128xf32>
    %115 = arith.addf %112, %114 : vector<8x128xf32>
    %116 = arith.extf %1 : vector<8x128xbf16> to vector<8x128xf32>
    %c0_40 = arith.constant 0 : index
    %c0_41 = arith.constant 0 : index
    %117 = vector.load %arg7[%c0_40, %c0_41] : memref<1x128xf32, #tpu.memory_space<vmem>>, vector<1x128xf32>
    %c0_42 = arith.constant 0 : index
    %c0_43 = arith.constant 0 : index
    %118 = vector.load %arg8[%c0_42, %c0_43] : memref<1x128xf32, #tpu.memory_space<vmem>>, vector<1x128xf32>
    %119 = arith.addf %116, %115 : vector<8x128xf32>
    %cst_44 = arith.constant dense<0.000000e+00> : vector<8xf32>
    %120 = vector.multi_reduction <add>, %119, %cst_44 [1] : vector<8x128xf32> to vector<8xf32>
    %121 = vector.shape_cast %120 : vector<8xf32> to vector<8x1xf32>
    %cst_45 = arith.constant 1.280000e+02 : f32
    %122 = vector.broadcast %cst_45 : f32 to vector<8x1xf32>
    %123 = arith.divf %121, %122 : vector<8x1xf32>
    %124 = vector.broadcast %123 : vector<8x1xf32> to vector<8x128xf32>
    %125 = arith.subf %119, %124 : vector<8x128xf32>
    %126 = arith.mulf %125, %125 : vector<8x128xf32>
    %cst_46 = arith.constant dense<0.000000e+00> : vector<8xf32>
    %127 = vector.multi_reduction <add>, %126, %cst_46 [1] : vector<8x128xf32> to vector<8xf32>
    %128 = vector.shape_cast %127 : vector<8xf32> to vector<8x1xf32>
    %cst_47 = arith.constant 1.280000e+02 : f32
    %129 = vector.broadcast %cst_47 : f32 to vector<8x1xf32>
    %130 = arith.divf %128, %129 : vector<8x1xf32>
    %131 = vector.broadcast %123 : vector<8x1xf32> to vector<8x128xf32>
    %132 = arith.subf %119, %131 : vector<8x128xf32>
    %cst_48 = arith.constant 9.99999974E-6 : f32
    %133 = vector.broadcast %cst_48 : f32 to vector<8x1xf32>
    %134 = arith.addf %130, %133 : vector<8x1xf32>
    %135 = math.rsqrt %134 : vector<8x1xf32>
    %136 = vector.broadcast %135 : vector<8x1xf32> to vector<8x128xf32>
    %137 = arith.mulf %132, %136 : vector<8x128xf32>
    %138 = vector.broadcast %117 : vector<1x128xf32> to vector<8x128xf32>
    %139 = arith.mulf %137, %138 : vector<8x128xf32>
    %140 = vector.broadcast %118 : vector<1x128xf32> to vector<8x128xf32>
    %141 = arith.addf %139, %140 : vector<8x128xf32>
    %142 = arith.truncf %141 : vector<8x128xf32> to vector<8x128xbf16>
    %c0_49 = arith.constant 0 : index
    %c0_50 = arith.constant 0 : index
    %143 = vector.load %arg9[%c0_49, %c0_50] : memref<128x128xbf16, #tpu.memory_space<vmem>>, vector<128x128xbf16>
    %cst_51 = arith.constant dense<0.000000e+00> : vector<8x128xf32>
    %144 = tpu.matmul %142, %143, %cst_51 {dimension_numbers = #tpu.dot_dimension_numbers<[1], [0], [0], [1], [0, 0, 1, 1], [], []>} : vector<8x128xbf16>, vector<128x128xbf16>, vector<8x128xf32> -> vector<8x128xf32>
    %c0_52 = arith.constant 0 : index
    %c0_53 = arith.constant 0 : index
    %145 = vector.load %arg10[%c0_52, %c0_53] : memref<1x128xf32, #tpu.memory_space<vmem>>, vector<1x128xf32>
    %146 = vector.broadcast %145 : vector<1x128xf32> to vector<8x128xf32>
    %147 = arith.addf %144, %146 : vector<8x128xf32>
    %148 = arith.truncf %147 : vector<8x128xf32> to vector<8x128xbf16>
    %c0_54 = arith.constant 0 : index
    %c0_55 = arith.constant 0 : index
    %149 = vector.load %arg11[%c0_54, %c0_55] : memref<128x256xbf16, #tpu.memory_space<vmem>>, vector<128x256xbf16>
    %cst_56 = arith.constant dense<0.000000e+00> : vector<8x256xf32>
    %150 = tpu.matmul %3, %149, %cst_56 {dimension_numbers = #tpu.dot_dimension_numbers<[1], [0], [0], [1], [0, 0, 1, 1], [], []>} : vector<8x128xbf16>, vector<128x256xbf16>, vector<8x256xf32> -> vector<8x256xf32>
    %c0_57 = arith.constant 0 : index
    %c0_58 = arith.constant 0 : index
    %151 = vector.load %arg12[%c0_57, %c0_58] : memref<1x256xf32, #tpu.memory_space<vmem>>, vector<1x256xf32>
    %152 = vector.broadcast %151 : vector<1x256xf32> to vector<8x256xf32>
    %153 = arith.addf %150, %152 : vector<8x256xf32>
    %154 = arith.truncf %153 : vector<8x256xf32> to vector<8x256xbf16>
    %155 = vector.extract_strided_slice %154 {offsets = [0, 0], sizes = [8, 128], strides = [1, 1]} : vector<8x256xbf16> to vector<8x128xbf16>
    %156 = vector.extract_strided_slice %154 {offsets = [0, 128], sizes = [8, 128], strides = [1, 1]} : vector<8x256xbf16> to vector<8x128xbf16>
    %c0_59 = arith.constant 0 : index
    %c0_60 = arith.constant 0 : index
    %157 = vector.load %arg13[%c0_59, %c0_60] : memref<128x128xbf16, #tpu.memory_space<vmem>>, vector<128x128xbf16>
    %cst_61 = arith.constant 0.000000e+00 : f32
    %158 = vector.broadcast %cst_61 : f32 to vector<8x128xf32>
    %159 = vector.extract_strided_slice %148 {offsets = [0, 0], sizes = [8, 32], strides = [1, 1]} : vector<8x128xbf16> to vector<8x32xbf16>
    %160 = vector.extract_strided_slice %155 {offsets = [0, 0], sizes = [8, 32], strides = [1, 1]} : vector<8x128xbf16> to vector<8x32xbf16>
    %cst_62 = arith.constant dense<0.000000e+00> : vector<8x8xf32>
    %161 = tpu.matmul %159, %160, %cst_62 {dimension_numbers = #tpu.dot_dimension_numbers<[1], [1], [0], [0], [0, 0, 1, 0], [], []>} : vector<8x32xbf16>, vector<8x32xbf16>, vector<8x8xf32> -> vector<8x8xf32>
    %cst_63 = arith.constant 0.176776692 : f32
    %162 = vector.broadcast %cst_63 : f32 to vector<8x8xf32>
    %163 = arith.mulf %161, %162 : vector<8x8xf32>
    %cst_64 = arith.constant dense<0xFF800000> : vector<8xf32>
    %164 = vector.multi_reduction <maximumf>, %163, %cst_64 [1] : vector<8x8xf32> to vector<8xf32>
    %165 = vector.shape_cast %164 : vector<8xf32> to vector<8x1xf32>
    %166 = vector.broadcast %165 : vector<8x1xf32> to vector<8x8xf32>
    %167 = arith.subf %163, %166 : vector<8x8xf32>
    %168 = math.exp %167 : vector<8x8xf32>
    %cst_65 = arith.constant dense<0.000000e+00> : vector<8xf32>
    %169 = vector.multi_reduction <add>, %168, %cst_65 [1] : vector<8x8xf32> to vector<8xf32>
    %170 = vector.shape_cast %169 : vector<8xf32> to vector<8x1xf32>
    %171 = tpu.reciprocal %170 {approx = true} : vector<8x1xf32> -> vector<8x1xf32>
    %172 = vector.broadcast %171 : vector<8x1xf32> to vector<8x8xf32>
    %173 = arith.mulf %168, %172 : vector<8x8xf32>
    %174 = arith.truncf %173 : vector<8x8xf32> to vector<8x8xbf16>
    %175 = vector.extract_strided_slice %156 {offsets = [0, 0], sizes = [8, 32], strides = [1, 1]} : vector<8x128xbf16> to vector<8x32xbf16>
    %cst_66 = arith.constant dense<0.000000e+00> : vector<8x32xf32>
    %176 = tpu.matmul %174, %175, %cst_66 {dimension_numbers = #tpu.dot_dimension_numbers<[1], [0], [0], [1], [0, 0, 1, 1], [], []>} : vector<8x8xbf16>, vector<8x32xbf16>, vector<8x32xf32> -> vector<8x32xf32>
    %177 = arith.truncf %176 : vector<8x32xf32> to vector<8x32xbf16>
    %178 = vector.extract_strided_slice %157 {offsets = [0, 0], sizes = [32, 128], strides = [1, 1]} : vector<128x128xbf16> to vector<32x128xbf16>
    %cst_67 = arith.constant dense<0.000000e+00> : vector<8x128xf32>
    %179 = tpu.matmul %177, %178, %cst_67 {dimension_numbers = #tpu.dot_dimension_numbers<[1], [0], [0], [1], [0, 0, 1, 1], [], []>} : vector<8x32xbf16>, vector<32x128xbf16>, vector<8x128xf32> -> vector<8x128xf32>
    %180 = arith.addf %158, %179 : vector<8x128xf32>
    %181 = vector.extract_strided_slice %148 {offsets = [0, 32], sizes = [8, 32], strides = [1, 1]} : vector<8x128xbf16> to vector<8x32xbf16>
    %182 = vector.extract_strided_slice %155 {offsets = [0, 32], sizes = [8, 32], strides = [1, 1]} : vector<8x128xbf16> to vector<8x32xbf16>
    %cst_68 = arith.constant dense<0.000000e+00> : vector<8x8xf32>
    %183 = tpu.matmul %181, %182, %cst_68 {dimension_numbers = #tpu.dot_dimension_numbers<[1], [1], [0], [0], [0, 0, 1, 0], [], []>} : vector<8x32xbf16>, vector<8x32xbf16>, vector<8x8xf32> -> vector<8x8xf32>
    %cst_69 = arith.constant 0.176776692 : f32
    %184 = vector.broadcast %cst_69 : f32 to vector<8x8xf32>
    %185 = arith.mulf %183, %184 : vector<8x8xf32>
    %cst_70 = arith.constant dense<0xFF800000> : vector<8xf32>
    %186 = vector.multi_reduction <maximumf>, %185, %cst_70 [1] : vector<8x8xf32> to vector<8xf32>
    %187 = vector.shape_cast %186 : vector<8xf32> to vector<8x1xf32>
    %188 = vector.broadcast %187 : vector<8x1xf32> to vector<8x8xf32>
    %189 = arith.subf %185, %188 : vector<8x8xf32>
    %190 = math.exp %189 : vector<8x8xf32>
    %cst_71 = arith.constant dense<0.000000e+00> : vector<8xf32>
    %191 = vector.multi_reduction <add>, %190, %cst_71 [1] : vector<8x8xf32> to vector<8xf32>
    %192 = vector.shape_cast %191 : vector<8xf32> to vector<8x1xf32>
    %193 = tpu.reciprocal %192 {approx = true} : vector<8x1xf32> -> vector<8x1xf32>
    %194 = vector.broadcast %193 : vector<8x1xf32> to vector<8x8xf32>
    %195 = arith.mulf %190, %194 : vector<8x8xf32>
    %196 = arith.truncf %195 : vector<8x8xf32> to vector<8x8xbf16>
    %197 = vector.extract_strided_slice %156 {offsets = [0, 32], sizes = [8, 32], strides = [1, 1]} : vector<8x128xbf16> to vector<8x32xbf16>
    %cst_72 = arith.constant dense<0.000000e+00> : vector<8x32xf32>
    %198 = tpu.matmul %196, %197, %cst_72 {dimension_numbers = #tpu.dot_dimension_numbers<[1], [0], [0], [1], [0, 0, 1, 1], [], []>} : vector<8x8xbf16>, vector<8x32xbf16>, vector<8x32xf32> -> vector<8x32xf32>
    %199 = arith.truncf %198 : vector<8x32xf32> to vector<8x32xbf16>
    %200 = vector.extract_strided_slice %157 {offsets = [32, 0], sizes = [32, 128], strides = [1, 1]} : vector<128x128xbf16> to vector<32x128xbf16>
    %cst_73 = arith.constant dense<0.000000e+00> : vector<8x128xf32>
    %201 = tpu.matmul %199, %200, %cst_73 {dimension_numbers = #tpu.dot_dimension_numbers<[1], [0], [0], [1], [0, 0, 1, 1], [], []>} : vector<8x32xbf16>, vector<32x128xbf16>, vector<8x128xf32> -> vector<8x128xf32>
    %202 = arith.addf %180, %201 : vector<8x128xf32>
    %203 = vector.extract_strided_slice %148 {offsets = [0, 64], sizes = [8, 32], strides = [1, 1]} : vector<8x128xbf16> to vector<8x32xbf16>
    %204 = vector.extract_strided_slice %155 {offsets = [0, 64], sizes = [8, 32], strides = [1, 1]} : vector<8x128xbf16> to vector<8x32xbf16>
    %cst_74 = arith.constant dense<0.000000e+00> : vector<8x8xf32>
    %205 = tpu.matmul %203, %204, %cst_74 {dimension_numbers = #tpu.dot_dimension_numbers<[1], [1], [0], [0], [0, 0, 1, 0], [], []>} : vector<8x32xbf16>, vector<8x32xbf16>, vector<8x8xf32> -> vector<8x8xf32>
    %cst_75 = arith.constant 0.176776692 : f32
    %206 = vector.broadcast %cst_75 : f32 to vector<8x8xf32>
    %207 = arith.mulf %205, %206 : vector<8x8xf32>
    %cst_76 = arith.constant dense<0xFF800000> : vector<8xf32>
    %208 = vector.multi_reduction <maximumf>, %207, %cst_76 [1] : vector<8x8xf32> to vector<8xf32>
    %209 = vector.shape_cast %208 : vector<8xf32> to vector<8x1xf32>
    %210 = vector.broadcast %209 : vector<8x1xf32> to vector<8x8xf32>
    %211 = arith.subf %207, %210 : vector<8x8xf32>
    %212 = math.exp %211 : vector<8x8xf32>
    %cst_77 = arith.constant dense<0.000000e+00> : vector<8xf32>
    %213 = vector.multi_reduction <add>, %212, %cst_77 [1] : vector<8x8xf32> to vector<8xf32>
    %214 = vector.shape_cast %213 : vector<8xf32> to vector<8x1xf32>
    %215 = tpu.reciprocal %214 {approx = true} : vector<8x1xf32> -> vector<8x1xf32>
    %216 = vector.broadcast %215 : vector<8x1xf32> to vector<8x8xf32>
    %217 = arith.mulf %212, %216 : vector<8x8xf32>
    %218 = arith.truncf %217 : vector<8x8xf32> to vector<8x8xbf16>
    %219 = vector.extract_strided_slice %156 {offsets = [0, 64], sizes = [8, 32], strides = [1, 1]} : vector<8x128xbf16> to vector<8x32xbf16>
    %cst_78 = arith.constant dense<0.000000e+00> : vector<8x32xf32>
    %220 = tpu.matmul %218, %219, %cst_78 {dimension_numbers = #tpu.dot_dimension_numbers<[1], [0], [0], [1], [0, 0, 1, 1], [], []>} : vector<8x8xbf16>, vector<8x32xbf16>, vector<8x32xf32> -> vector<8x32xf32>
    %221 = arith.truncf %220 : vector<8x32xf32> to vector<8x32xbf16>
    %222 = vector.extract_strided_slice %157 {offsets = [64, 0], sizes = [32, 128], strides = [1, 1]} : vector<128x128xbf16> to vector<32x128xbf16>
    %cst_79 = arith.constant dense<0.000000e+00> : vector<8x128xf32>
    %223 = tpu.matmul %221, %222, %cst_79 {dimension_numbers = #tpu.dot_dimension_numbers<[1], [0], [0], [1], [0, 0, 1, 1], [], []>} : vector<8x32xbf16>, vector<32x128xbf16>, vector<8x128xf32> -> vector<8x128xf32>
    %224 = arith.addf %202, %223 : vector<8x128xf32>
    %225 = vector.extract_strided_slice %148 {offsets = [0, 96], sizes = [8, 32], strides = [1, 1]} : vector<8x128xbf16> to vector<8x32xbf16>
    %226 = vector.extract_strided_slice %155 {offsets = [0, 96], sizes = [8, 32], strides = [1, 1]} : vector<8x128xbf16> to vector<8x32xbf16>
    %cst_80 = arith.constant dense<0.000000e+00> : vector<8x8xf32>
    %227 = tpu.matmul %225, %226, %cst_80 {dimension_numbers = #tpu.dot_dimension_numbers<[1], [1], [0], [0], [0, 0, 1, 0], [], []>} : vector<8x32xbf16>, vector<8x32xbf16>, vector<8x8xf32> -> vector<8x8xf32>
    %cst_81 = arith.constant 0.176776692 : f32
    %228 = vector.broadcast %cst_81 : f32 to vector<8x8xf32>
    %229 = arith.mulf %227, %228 : vector<8x8xf32>
    %cst_82 = arith.constant dense<0xFF800000> : vector<8xf32>
    %230 = vector.multi_reduction <maximumf>, %229, %cst_82 [1] : vector<8x8xf32> to vector<8xf32>
    %231 = vector.shape_cast %230 : vector<8xf32> to vector<8x1xf32>
    %232 = vector.broadcast %231 : vector<8x1xf32> to vector<8x8xf32>
    %233 = arith.subf %229, %232 : vector<8x8xf32>
    %234 = math.exp %233 : vector<8x8xf32>
    %cst_83 = arith.constant dense<0.000000e+00> : vector<8xf32>
    %235 = vector.multi_reduction <add>, %234, %cst_83 [1] : vector<8x8xf32> to vector<8xf32>
    %236 = vector.shape_cast %235 : vector<8xf32> to vector<8x1xf32>
    %237 = tpu.reciprocal %236 {approx = true} : vector<8x1xf32> -> vector<8x1xf32>
    %238 = vector.broadcast %237 : vector<8x1xf32> to vector<8x8xf32>
    %239 = arith.mulf %234, %238 : vector<8x8xf32>
    %240 = arith.truncf %239 : vector<8x8xf32> to vector<8x8xbf16>
    %241 = vector.extract_strided_slice %156 {offsets = [0, 96], sizes = [8, 32], strides = [1, 1]} : vector<8x128xbf16> to vector<8x32xbf16>
    %cst_84 = arith.constant dense<0.000000e+00> : vector<8x32xf32>
    %242 = tpu.matmul %240, %241, %cst_84 {dimension_numbers = #tpu.dot_dimension_numbers<[1], [0], [0], [1], [0, 0, 1, 1], [], []>} : vector<8x8xbf16>, vector<8x32xbf16>, vector<8x32xf32> -> vector<8x32xf32>
    %243 = arith.truncf %242 : vector<8x32xf32> to vector<8x32xbf16>
    %244 = vector.extract_strided_slice %157 {offsets = [96, 0], sizes = [32, 128], strides = [1, 1]} : vector<128x128xbf16> to vector<32x128xbf16>
    %cst_85 = arith.constant dense<0.000000e+00> : vector<8x128xf32>
    %245 = tpu.matmul %243, %244, %cst_85 {dimension_numbers = #tpu.dot_dimension_numbers<[1], [0], [0], [1], [0, 0, 1, 1], [], []>} : vector<8x32xbf16>, vector<32x128xbf16>, vector<8x128xf32> -> vector<8x128xf32>
    %246 = arith.addf %224, %245 : vector<8x128xf32>
    %c0_86 = arith.constant 0 : index
    %c0_87 = arith.constant 0 : index
    %247 = vector.load %arg14[%c0_86, %c0_87] : memref<1x128xf32, #tpu.memory_space<vmem>>, vector<1x128xf32>
    %248 = vector.broadcast %247 : vector<1x128xf32> to vector<8x128xf32>
    %249 = arith.addf %246, %248 : vector<8x128xf32>
    %c0_88 = arith.constant 0 : index
    %c0_89 = arith.constant 0 : index
    %250 = vector.load %arg15[%c0_88, %c0_89] : memref<1x128xf32, #tpu.memory_space<vmem>>, vector<1x128xf32>
    %c0_90 = arith.constant 0 : index
    %c0_91 = arith.constant 0 : index
    %251 = vector.load %arg16[%c0_90, %c0_91] : memref<1x128xf32, #tpu.memory_space<vmem>>, vector<1x128xf32>
    %252 = arith.addf %141, %249 : vector<8x128xf32>
    %cst_92 = arith.constant dense<0.000000e+00> : vector<8xf32>
    %253 = vector.multi_reduction <add>, %252, %cst_92 [1] : vector<8x128xf32> to vector<8xf32>
    %254 = vector.shape_cast %253 : vector<8xf32> to vector<8x1xf32>
    %cst_93 = arith.constant 1.280000e+02 : f32
    %255 = vector.broadcast %cst_93 : f32 to vector<8x1xf32>
    %256 = arith.divf %254, %255 : vector<8x1xf32>
    %257 = vector.broadcast %256 : vector<8x1xf32> to vector<8x128xf32>
    %258 = arith.subf %252, %257 : vector<8x128xf32>
    %259 = arith.mulf %258, %258 : vector<8x128xf32>
    %cst_94 = arith.constant dense<0.000000e+00> : vector<8xf32>
    %260 = vector.multi_reduction <add>, %259, %cst_94 [1] : vector<8x128xf32> to vector<8xf32>
    %261 = vector.shape_cast %260 : vector<8xf32> to vector<8x1xf32>
    %cst_95 = arith.constant 1.280000e+02 : f32
    %262 = vector.broadcast %cst_95 : f32 to vector<8x1xf32>
    %263 = arith.divf %261, %262 : vector<8x1xf32>
    %264 = vector.broadcast %256 : vector<8x1xf32> to vector<8x128xf32>
    %265 = arith.subf %252, %264 : vector<8x128xf32>
    %cst_96 = arith.constant 9.99999974E-6 : f32
    %266 = vector.broadcast %cst_96 : f32 to vector<8x1xf32>
    %267 = arith.addf %263, %266 : vector<8x1xf32>
    %268 = math.rsqrt %267 : vector<8x1xf32>
    %269 = vector.broadcast %268 : vector<8x1xf32> to vector<8x128xf32>
    %270 = arith.mulf %265, %269 : vector<8x128xf32>
    %271 = vector.broadcast %250 : vector<1x128xf32> to vector<8x128xf32>
    %272 = arith.mulf %270, %271 : vector<8x128xf32>
    %273 = vector.broadcast %251 : vector<1x128xf32> to vector<8x128xf32>
    %274 = arith.addf %272, %273 : vector<8x128xf32>
    %275 = arith.truncf %274 : vector<8x128xf32> to vector<8x128xbf16>
    %c0_97 = arith.constant 0 : index
    %c0_98 = arith.constant 0 : index
    %276 = vector.load %arg17[%c0_97, %c0_98] : memref<128x256xbf16, #tpu.memory_space<vmem>>, vector<128x256xbf16>
    %c0_99 = arith.constant 0 : index
    %c0_100 = arith.constant 0 : index
    %277 = vector.load %arg18[%c0_99, %c0_100] : memref<1x256xf32, #tpu.memory_space<vmem>>, vector<1x256xf32>
    %c0_101 = arith.constant 0 : index
    %c0_102 = arith.constant 0 : index
    %278 = vector.load %arg19[%c0_101, %c0_102] : memref<256x128xbf16, #tpu.memory_space<vmem>>, vector<256x128xbf16>
    %c0_103 = arith.constant 0 : index
    %c0_104 = arith.constant 0 : index
    %279 = vector.load %arg20[%c0_103, %c0_104] : memref<1x128xf32, #tpu.memory_space<vmem>>, vector<1x128xf32>
    %cst_105 = arith.constant dense<0.000000e+00> : vector<8x256xf32>
    %280 = tpu.matmul %275, %276, %cst_105 {dimension_numbers = #tpu.dot_dimension_numbers<[1], [0], [0], [1], [0, 0, 1, 1], [], []>} : vector<8x128xbf16>, vector<128x256xbf16>, vector<8x256xf32> -> vector<8x256xf32>
    %281 = vector.broadcast %277 : vector<1x256xf32> to vector<8x256xf32>
    %282 = arith.addf %280, %281 : vector<8x256xf32>
    %cst_106 = arith.constant 0.000000e+00 : f32
    %283 = vector.broadcast %cst_106 : f32 to vector<8x256xf32>
    %284 = arith.maximumf %282, %283 : vector<8x256xf32>
    %285 = arith.truncf %284 : vector<8x256xf32> to vector<8x256xbf16>
    %cst_107 = arith.constant dense<0.000000e+00> : vector<8x128xf32>
    %286 = tpu.matmul %285, %278, %cst_107 {dimension_numbers = #tpu.dot_dimension_numbers<[1], [0], [0], [1], [0, 0, 1, 1], [], []>} : vector<8x256xbf16>, vector<256x128xbf16>, vector<8x128xf32> -> vector<8x128xf32>
    %287 = vector.broadcast %279 : vector<1x128xf32> to vector<8x128xf32>
    %288 = arith.addf %286, %287 : vector<8x128xf32>
    %c0_108 = arith.constant 0 : index
    %c0_109 = arith.constant 0 : index
    %289 = vector.load %arg21[%c0_108, %c0_109] : memref<1x128xf32, #tpu.memory_space<vmem>>, vector<1x128xf32>
    %c0_110 = arith.constant 0 : index
    %c0_111 = arith.constant 0 : index
    %290 = vector.load %arg22[%c0_110, %c0_111] : memref<1x128xf32, #tpu.memory_space<vmem>>, vector<1x128xf32>
    %291 = arith.addf %274, %288 : vector<8x128xf32>
    %cst_112 = arith.constant dense<0.000000e+00> : vector<8xf32>
    %292 = vector.multi_reduction <add>, %291, %cst_112 [1] : vector<8x128xf32> to vector<8xf32>
    %293 = vector.shape_cast %292 : vector<8xf32> to vector<8x1xf32>
    %cst_113 = arith.constant 1.280000e+02 : f32
    %294 = vector.broadcast %cst_113 : f32 to vector<8x1xf32>
    %295 = arith.divf %293, %294 : vector<8x1xf32>
    %296 = vector.broadcast %295 : vector<8x1xf32> to vector<8x128xf32>
    %297 = arith.subf %291, %296 : vector<8x128xf32>
    %298 = arith.mulf %297, %297 : vector<8x128xf32>
    %cst_114 = arith.constant dense<0.000000e+00> : vector<8xf32>
    %299 = vector.multi_reduction <add>, %298, %cst_114 [1] : vector<8x128xf32> to vector<8xf32>
    %300 = vector.shape_cast %299 : vector<8xf32> to vector<8x1xf32>
    %cst_115 = arith.constant 1.280000e+02 : f32
    %301 = vector.broadcast %cst_115 : f32 to vector<8x1xf32>
    %302 = arith.divf %300, %301 : vector<8x1xf32>
    %303 = vector.broadcast %295 : vector<8x1xf32> to vector<8x128xf32>
    %304 = arith.subf %291, %303 : vector<8x128xf32>
    %cst_116 = arith.constant 9.99999974E-6 : f32
    %305 = vector.broadcast %cst_116 : f32 to vector<8x1xf32>
    %306 = arith.addf %302, %305 : vector<8x1xf32>
    %307 = math.rsqrt %306 : vector<8x1xf32>
    %308 = vector.broadcast %307 : vector<8x1xf32> to vector<8x128xf32>
    %309 = arith.mulf %304, %308 : vector<8x128xf32>
    %310 = vector.broadcast %289 : vector<1x128xf32> to vector<8x128xf32>
    %311 = arith.mulf %309, %310 : vector<8x128xf32>
    %312 = vector.broadcast %290 : vector<1x128xf32> to vector<8x128xf32>
    %313 = arith.addf %311, %312 : vector<8x128xf32>
    %314 = arith.truncf %313 : vector<8x128xf32> to vector<8x128xbf16>
    %c0_117 = arith.constant 0 : index
    %c0_118 = arith.constant 0 : index
    %c0_119 = arith.constant 0 : index
    %315 = vector.load %arg23[%c0_117, %c0_118, %c0_119] : memref<1x8x128xbf16, #tpu.memory_space<vmem>>, vector<1x8x128xbf16>
    %316 = vector.shape_cast %315 : vector<1x8x128xbf16> to vector<8x128xbf16>
    %317 = vector.shape_cast %314 : vector<8x128xbf16> to vector<1x8x128xbf16>
    tpu.vector_store %arg23[%c0_117, %c0_118, %c0_119], %317 {strides = array<i32>} : memref<1x8x128xbf16, #tpu.memory_space<vmem>>, vector<1x8x128xbf16>,
    return
  }
  func.func @transform_0(%arg0: i32) -> (i32, i32, i32) {
    %c0_i32 = arith.constant 0 : i32
    %c0_i32_0 = arith.constant 0 : i32
    %c0_i32_1 = arith.constant 0 : i32
    return %arg0, %c0_i32, %c0_i32_0 : i32, i32, i32
  }
  func.func @transform_1(%arg0: i32) -> (i32, i32, i32) {
    %c0_i32 = arith.constant 0 : i32
    %c0_i32_0 = arith.constant 0 : i32
    %c0_i32_1 = arith.constant 0 : i32
    return %arg0, %c0_i32, %c0_i32_0 : i32, i32, i32
  }
  func.func @transform_2(%arg0: i32) -> (i32, i32) {
    %c0_i32 = arith.constant 0 : i32
    %c0_i32_0 = arith.constant 0 : i32
    %c0_i32_1 = arith.constant 0 : i32
    return %c0_i32, %c0_i32_0 : i32, i32
  }
  func.func @transform_3(%arg0: i32) -> (i32, i32) {
    %c0_i32 = arith.constant 0 : i32
    %c0_i32_0 = arith.constant 0 : i32
    %c0_i32_1 = arith.constant 0 : i32
    return %c0_i32, %c0_i32_0 : i32, i32
  }
  func.func @transform_4(%arg0: i32) -> (i32, i32) {
    %c0_i32 = arith.constant 0 : i32
    %c0_i32_0 = arith.constant 0 : i32
    %c0_i32_1 = arith.constant 0 : i32
    return %c0_i32, %c0_i32_0 : i32, i32
  }
  func.func @transform_5(%arg0: i32) -> (i32, i32) {
    %c0_i32 = arith.constant 0 : i32
    %c0_i32_0 = arith.constant 0 : i32
    %c0_i32_1 = arith.constant 0 : i32
    return %c0_i32, %c0_i32_0 : i32, i32
  }
  func.func @transform_6(%arg0: i32) -> (i32, i32) {
    %c0_i32 = arith.constant 0 : i32
    %c0_i32_0 = arith.constant 0 : i32
    %c0_i32_1 = arith.constant 0 : i32
    return %c0_i32, %c0_i32_0 : i32, i32
  }
  func.func @transform_7(%arg0: i32) -> (i32, i32) {
    %c0_i32 = arith.constant 0 : i32
    %c0_i32_0 = arith.constant 0 : i32
    %c0_i32_1 = arith.constant 0 : i32
    return %c0_i32, %c0_i32_0 : i32, i32
  }
  func.func @transform_8(%arg0: i32) -> (i32, i32) {
    %c0_i32 = arith.constant 0 : i32
    %c0_i32_0 = arith.constant 0 : i32
    %c0_i32_1 = arith.constant 0 : i32
    return %c0_i32, %c0_i32_0 : i32, i32
  }
  func.func @transform_9(%arg0: i32) -> (i32, i32) {
    %c0_i32 = arith.constant 0 : i32
    %c0_i32_0 = arith.constant 0 : i32
    %c0_i32_1 = arith.constant 0 : i32
    return %c0_i32, %c0_i32_0 : i32, i32
  }
  func.func @transform_10(%arg0: i32) -> (i32, i32) {
    %c0_i32 = arith.constant 0 : i32
    %c0_i32_0 = arith.constant 0 : i32
    %c0_i32_1 = arith.constant 0 : i32
    return %c0_i32, %c0_i32_0 : i32, i32
  }
  func.func @transform_11(%arg0: i32) -> (i32, i32) {
    %c0_i32 = arith.constant 0 : i32
    %c0_i32_0 = arith.constant 0 : i32
    %c0_i32_1 = arith.constant 0 : i32
    return %c0_i32, %c0_i32_0 : i32, i32
  }
  func.func @transform_12(%arg0: i32) -> (i32, i32) {
    %c0_i32 = arith.constant 0 : i32
    %c0_i32_0 = arith.constant 0 : i32
    %c0_i32_1 = arith.constant 0 : i32
    return %c0_i32, %c0_i32_0 : i32, i32
  }
  func.func @transform_13(%arg0: i32) -> (i32, i32) {
    %c0_i32 = arith.constant 0 : i32
    %c0_i32_0 = arith.constant 0 : i32
    %c0_i32_1 = arith.constant 0 : i32
    return %c0_i32, %c0_i32_0 : i32, i32
  }
  func.func @transform_14(%arg0: i32) -> (i32, i32) {
    %c0_i32 = arith.constant 0 : i32
    %c0_i32_0 = arith.constant 0 : i32
    %c0_i32_1 = arith.constant 0 : i32
    return %c0_i32, %c0_i32_0 : i32, i32
  }
  func.func @transform_15(%arg0: i32) -> (i32, i32) {
    %c0_i32 = arith.constant 0 : i32
    %c0_i32_0 = arith.constant 0 : i32
    %c0_i32_1 = arith.constant 0 : i32
    return %c0_i32, %c0_i32_0 : i32, i32
  }
  func.func @transform_16(%arg0: i32) -> (i32, i32) {
    %c0_i32 = arith.constant 0 : i32
    %c0_i32_0 = arith.constant 0 : i32
    %c0_i32_1 = arith.constant 0 : i32
    return %c0_i32, %c0_i32_0 : i32, i32
  }
  func.func @transform_17(%arg0: i32) -> (i32, i32) {
    %c0_i32 = arith.constant 0 : i32
    %c0_i32_0 = arith.constant 0 : i32
    %c0_i32_1 = arith.constant 0 : i32
    return %c0_i32, %c0_i32_0 : i32, i32
  }
  func.func @transform_18(%arg0: i32) -> (i32, i32) {
    %c0_i32 = arith.constant 0 : i32
    %c0_i32_0 = arith.constant 0 : i32
    %c0_i32_1 = arith.constant 0 : i32
    return %c0_i32, %c0_i32_0 : i32, i32
  }
  func.func @transform_19(%arg0: i32) -> (i32, i32) {
    %c0_i32 = arith.constant 0 : i32
    %c0_i32_0 = arith.constant 0 : i32
    %c0_i32_1 = arith.constant 0 : i32
    return %c0_i32, %c0_i32_0 : i32, i32
  }
  func.func @transform_20(%arg0: i32) -> (i32, i32) {
    %c0_i32 = arith.constant 0 : i32
    %c0_i32_0 = arith.constant 0 : i32
    %c0_i32_1 = arith.constant 0 : i32
    return %c0_i32, %c0_i32_0 : i32, i32
  }
  func.func @transform_21(%arg0: i32) -> (i32, i32) {
    %c0_i32 = arith.constant 0 : i32
    %c0_i32_0 = arith.constant 0 : i32
    %c0_i32_1 = arith.constant 0 : i32
    return %c0_i32, %c0_i32_0 : i32, i32
  }
  func.func @transform_22(%arg0: i32) -> (i32, i32, i32) {
    %c0_i32 = arith.constant 0 : i32
    %c0_i32_0 = arith.constant 0 : i32
    %c0_i32_1 = arith.constant 0 : i32
    return %arg0, %c0_i32, %c0_i32_0 : i32, i32, i32
  }
}

module attributes {stable_mosaic.version = 11 : i64} {
  func.func @_wordprob_kernel(%arg0: i32, %arg1: memref<8x128xbf16, #tpu.memory_space<vmem>>, %arg2: memref<128x256xbf16, #tpu.memory_space<vmem>>, %arg3: memref<1x256xf32, #tpu.memory_space<vmem>>, %arg4: memref<8x256xf32, #tpu.memory_space<vmem>>) attributes {dimension_semantics = [#tpu.dimension_semantics<parallel>], iteration_bounds = array<i64: 2>, scalar_prefetch = 0 : i64, scratch_operands = 0 : i64, tpu.core_type = #tpu.core_type<tc>, window_params = [{transform_indices = @transform_0, window_bounds = array<i64: 8, 128>}, {pipeline_mode = #tpu.pipeline_mode<synchronous>, transform_indices = @transform_1, window_bounds = array<i64: 128, 256>}, {pipeline_mode = #tpu.pipeline_mode<synchronous>, transform_indices = @transform_2, window_bounds = array<i64: 1, 256>}, {transform_indices = @transform_3, window_bounds = array<i64: 8, 256>}]} {
    %c0 = arith.constant 0 : index
    %c0_0 = arith.constant 0 : index
    %0 = vector.load %arg1[%c0, %c0_0] : memref<8x128xbf16, #tpu.memory_space<vmem>>, vector<8x128xbf16>
    %c0_1 = arith.constant 0 : index
    %c0_2 = arith.constant 0 : index
    %1 = vector.load %arg2[%c0_1, %c0_2] : memref<128x256xbf16, #tpu.memory_space<vmem>>, vector<128x256xbf16>
    %cst = arith.constant dense<0.000000e+00> : vector<8x256xf32>
    %2 = tpu.matmul %0, %1, %cst {dimension_numbers = #tpu.dot_dimension_numbers<[1], [0], [0], [1], [0, 0, 1, 1], [], []>} : vector<8x128xbf16>, vector<128x256xbf16>, vector<8x256xf32> -> vector<8x256xf32>
    %c0_3 = arith.constant 0 : index
    %c0_4 = arith.constant 0 : index
    %3 = vector.load %arg3[%c0_3, %c0_4] : memref<1x256xf32, #tpu.memory_space<vmem>>, vector<1x256xf32>
    %4 = vector.broadcast %3 : vector<1x256xf32> to vector<8x256xf32>
    %5 = arith.addf %2, %4 : vector<8x256xf32>
    %cst_5 = arith.constant dense<0xFF800000> : vector<8xf32>
    %6 = vector.multi_reduction <maximumf>, %5, %cst_5 [1] : vector<8x256xf32> to vector<8xf32>
    %7 = vector.shape_cast %6 : vector<8xf32> to vector<8x1xf32>
    %8 = vector.broadcast %7 : vector<8x1xf32> to vector<8x256xf32>
    %9 = arith.subf %5, %8 : vector<8x256xf32>
    %10 = math.exp %9 : vector<8x256xf32>
    %cst_6 = arith.constant dense<0.000000e+00> : vector<8xf32>
    %11 = vector.multi_reduction <add>, %10, %cst_6 [1] : vector<8x256xf32> to vector<8xf32>
    %12 = vector.shape_cast %11 : vector<8xf32> to vector<8x1xf32>
    %13 = math.log %12 : vector<8x1xf32>
    %14 = vector.broadcast %13 : vector<8x1xf32> to vector<8x256xf32>
    %15 = arith.subf %9, %14 : vector<8x256xf32>
    %c0_7 = arith.constant 0 : index
    %c0_8 = arith.constant 0 : index
    %16 = vector.load %arg4[%c0_7, %c0_8] : memref<8x256xf32, #tpu.memory_space<vmem>>, vector<8x256xf32>
    tpu.vector_store %arg4[%c0_7, %c0_8], %15 {strides = array<i32>} : memref<8x256xf32, #tpu.memory_space<vmem>>, vector<8x256xf32>,
    return
  }
  func.func @transform_0(%arg0: i32) -> (i32, i32) {
    %c0_i32 = arith.constant 0 : i32
    %c0_i32_0 = arith.constant 0 : i32
    return %arg0, %c0_i32 : i32, i32
  }
  func.func @transform_1(%arg0: i32) -> (i32, i32) {
    %c0_i32 = arith.constant 0 : i32
    %c0_i32_0 = arith.constant 0 : i32
    %c0_i32_1 = arith.constant 0 : i32
    return %c0_i32, %c0_i32_0 : i32, i32
  }
  func.func @transform_2(%arg0: i32) -> (i32, i32) {
    %c0_i32 = arith.constant 0 : i32
    %c0_i32_0 = arith.constant 0 : i32
    %c0_i32_1 = arith.constant 0 : i32
    return %c0_i32, %c0_i32_0 : i32, i32
  }
  func.func @transform_3(%arg0: i32) -> (i32, i32) {
    %c0_i32 = arith.constant 0 : i32
    %c0_i32_0 = arith.constant 0 : i32
    return %arg0, %c0_i32 : i32, i32
  }
}

</mosaic_0001>

<bundles_post_ra>
// kernel: forward.7
= control target key start
LH: loop header
LB: loop body
LE: loop exit
PB: predicated region body
PF: predicated region fallthrough
CT: control target
= control target key end

     0   :  { %s416_s15 = smov 0   ;;  %s451_s0 = inlined_call_operand.vmem [shape: bf16[2,8,64], index: 0, kind: input, shape index: {}]   ;;  %s452_s1 = inlined_call_operand.vmem [shape: bf16[64,128], index: 1, kind: input, shape index: {}]   ;;  %s453_s2 = inlined_call_operand.vmem [shape: f32[1,128], index: 2, kind: input, shape index: {}]   ;;  %s454_s3 = inlined_call_operand.vmem [shape: f32[8,128], index: 3, kind: input, shape index: {}]   ;;  %s455_s4 = inlined_call_operand.vmem [shape: bf16[2,8,128], index: 4, kind: output, shape index: {}]  }
   0x1 LB: > { %s335_s16 = sadd.s32 4294967295, %s387_s15   ;;  %p339_p0 = scmp.ge.s32.totalorder %s387_s15, 1  ;;  %s387_s15 = sphi %s416_s15, %s14_s15  }
   0x2   : > { %p161_p1 = scmp.lt.s32.totalorder %s387_s15, 3 }
   0x4   : > { %p162_p2 = pnand %p339_p0, %p161_p1 }
   0x5   : > { %v377_v0 = vld [vmem:[%s452_s1] sm:$0xff] (!%p162_p2)   ;;  %v389_v1 = vmov (!%p162_p2), 0.0   ;;  %v378_v2 = vld [vmem:[%s452_s1 + $0x8] sm:$0xff] (!%p162_p2)   ;;  %vm390_vm0 = vmmov (!%p162_p2), 0   ;;  %p185_p3 = scmp.lt.s32.totalorder (!%p162_p2), %s335_s16, 1  ;;  %v379_v3 = vld [vmem:[%s452_s1 + $0x10] sm:$0xff] (!%p162_p2)  }
   0x6   : > { %165 = sbr.rel (%p162_p2) target bundleno = 241 (0xf1), region = 36  ;;  %355 = vmatprep.subr.bf16.mxu0 (!%p162_p2), %v389_v1  ;;  %363 = vmatprep.mubr.msk.bf16.mxu0 (!%p162_p2), %vm390_vm0, %v389_v1  ;;  %v380_v4 = vld [vmem:[%s452_s1 + $0x18] sm:$0xff] (!%p162_p2)   ;;  %vm234_vm1 = vcmask (!%p162_p2), 523264   ;;  %v342_v6 = vld [vmem:[%s453_s2] ss:$0 sm:$0xff] (!%p162_p2) }
   0x7   : > { %356 = vmatpush3.bf16.msra.mxu0 (!%p162_p2), %v377_v0  ;;  %v278_v8 = vld [vmem:[%s454_s3] sm:$0xff] (!%p162_p2) }
   0x8   : > { %357 = vmatprep.subr.bf16.mxu0 (!%p162_p2), %v389_v1 }
   0xb   : > { %358 = vmatpush3.bf16.msra.mxu0 (!%p162_p2), %v378_v2 }
   0xc   : > { %359 = vmatprep.subr.bf16.mxu0 (!%p162_p2), %v389_v1 }
   0xd   : > { %s457_s16 = smov (!%p185_p3, %s335_s16), 1 }
   0xe   : > { %s340_s23 = sshll.u32 %s457_s16, 2 }
   0xf   : > { %360 = vmatpush3.bf16.msra.mxu0 %v379_v3  ;;  %s188_s28 = scalar_lea.vmem %s451_s0, %s340_s23  ;;  %s192_s9 = scalar_lea.vmem %s455_s4, %s340_s23 }
  0x10   : > { %361 = vmatprep.subr.bf16.mxu0 %v389_v1  ;;  %v194_v5 = vld [vmem:[%s188_s28] sm:$0xf] }
  0x13   : > { %362 = vmatpush3.bf16.msra.mxu0 %v380_v4 }
  0x16   : > { %364 = vmatmul.mubr.msk.bf16.vlgmr.msra.gmra.mrb[0].mxu0 %vm234_vm1, %v194_v5 }
  0xe9   : > { %v272_v7 = vpop.f32.mrb[0].mxu0 }
  0xea   : > { %v273_v9 = vadd.f32 %v342_v6, %v272_v7  ;;  %v365_v10 = vpop.f32.mrb[1].mxu0 }
  0xeb   : > { %v275_v11 = vpop.f32.mrb[2].mxu0 }
  0xec   : > { %v279_v12 = vadd.f32 %v278_v8, %v273_v9  ;;  %v366_v13 = vpop.f32.mrb[3].mxu0 }
  0xee   : > { %v280_v14 = vpack.c.bf16 %v279_v12, %v279_v12 }
  0xf0   : > { %281 = vst [vmem:[%s192_s9] sm:$0xf] %v280_v14 }
  0xf1 PF: > { %s14_s15 = sadd.s32 1, %s387_s15  }
  0xf2   : > { %p11_p4 = scmp.ge.s32.totalorder %s14_s15, 4  }
  0xf4   :  { %13 = sbr.rel (!%p11_p4) target bundleno = 1 (0x1), region = 66 }

// kernel: forward.10
= control target key start
LH: loop header
LB: loop body
LE: loop exit
PB: predicated region body
PF: predicated region fallthrough
CT: control target
= control target key end

     0   :  { %18 = vsyncpa [#allocation3], 0  ;;  %s3291_s0 = inlined_call_operand.vmem [shape: bf16[2,8,128], index: 0, kind: input, shape index: {}]   ;;  %s3292_s1 = inlined_call_operand.vmem [shape: bf16[128,384], index: 1, kind: input, shape index: {}]   ;;  %s3293_s2 = inlined_call_operand.vmem [shape: f32[1,384], index: 2, kind: input, shape index: {}]   ;;  %s3294_s3 = inlined_call_operand.vmem [shape: bf16[128,128], index: 3, kind: input, shape index: {}]   ;;  %s3295_s4 = inlined_call_operand.hbm [shape: f32[1,128], index: 4, kind: input, shape index: {}]   ;;  %s3296_s5 = inlined_call_operand.hbm [shape: f32[1,128], index: 5, kind: input, shape index: {}]   ;;  %s3297_s6 = inlined_call_operand.hbm [shape: f32[1,128], index: 6, kind: input, shape index: {}]   ;;  %s3298_s7 = inlined_call_operand.vmem [shape: bf16[128,256], index: 7, kind: input, shape index: {}]   ;;  %s3299_s8 = inlined_call_operand.hbm [shape: f32[1,256], index: 8, kind: input, shape index: {}]   ;;  %s3300_s9 = inlined_call_operand.vmem [shape: bf16[256,128], index: 9, kind: input, shape index: {}]   ;;  %s3301_s10 = inlined_call_operand.hbm [shape: f32[1,128], index: 10, kind: input, shape index: {}]   ;;  %s3302_s11 = inlined_call_operand.hbm [shape: f32[1,128], index: 11, kind: input, shape index: {}]   ;;  %s3303_s12 = inlined_call_operand.hbm [shape: f32[1,128], index: 12, kind: input, shape index: {}]   ;;  %s3304_s13 = inlined_call_operand.vmem [shape: bf16[2,8,128], index: 13, kind: output, shape index: {}]  }
   0x1   :  { %19 = vsyncpa [#allocation5], 0 }
   0x2   :  { %20 = vsyncpa [#allocation8], 0 }
   0x3   :  { %21 = vsyncpa [#allocation11], 0  ;;  %s2744_s25 = smov 0  }
   0x4 LB: > { %3308 = sst [smem:[#allocation17_spill]] %s2659_s25  ;;  %s2661_s26 = smov [#allocation4]   ;;  %s2659_s25 = sphi %s2744_s25, %s27_s25  }
   0x5   : > { %s369_s27 = sshll.u32 %s2661_s26, 4  ;;  %s2750_s28 = sadd.s32 4294967295, %s2659_s25   ;;  %s2755_s27 = int_to_ptr.vmem [resolvable:$true] %s369_s27 }
   0x6   : > { %p1994_p0 = scmp.ge.s32.totalorder %s2659_s25, 1  ;;  %p336_p1 = scmp.lt.s32.totalorder %s2659_s25, 3 }
   0x7   : > { %p3306_p2 = scmp.eq.s32.totalorder %s2750_s28, 0  ;;  %s2662_s30 = smov [#allocation7]  }
   0x8   : > { %p2757_p3 = pnand %p1994_p0, %p336_p1  ;;  %s394_s14 = sshll.u32 %s2662_s30, 4  ;;  %s2763_s14 = int_to_ptr.vmem [resolvable:$true] %s394_s14 }
   0x9   : > { %s2663_s15 = smov [#allocation10]   ;;  %s2664_s18 = smov [#allocation2]  }
   0xa   : > { %s3309_s29 = scalar_select %p2757_p3, 1, 0 }
   0xb   : > { %p2284_p4 = pneg %p2757_p3  ;;  %s419_s16 = sshll.u32 %s2663_s15, 4  ;;  %s2771_s16 = int_to_ptr.vmem [resolvable:$true] %s419_s16 }
   0xc   : > { %s358_s19 = sshll.u32 %s2664_s18, 4  ;;  %s2441_s22 = scalar_lea.hbm %s3296_s5, 16  ;;  %s2773_s19 = int_to_ptr.vmem [resolvable:$true] %s358_s19 }
   0xd   : > { %p2767_p5 = pnand %p3306_p2, %p2284_p4  ;;  %p2442_p6 = scmp.ne.s32.totalorder %s3296_s5, %s2441_s22 }
   0xe   : > { %p2448_p10 = scmp.lt.u32.totalorder %s2441_s22, %s3296_s5 }
   0xf   : > { %p2783_p7 = pneg %p2767_p5 }
  0x11   : > { %p2444_p8 = pnand %p2783_p7, %p2442_p6 }
  0x13   : > { %p2445_p9 = pneg %p2444_p8 }
  0x15   : > { %p2450_p11 = pnand %p2448_p10, %p2445_p9 }
  0x17   : > { %2453 = shalt.err (!%p2450_p11)
}
  0x18   : > { %s2454_s18 = scalar_lea.vmem %s2755_s27, 16  ;;  %s2461_s20 = scalar_lea.vmem %s2755_s27, 32 }
  0x19   : > { %p2455_p12 = scmp.ne.s32.totalorder %s2755_s27, %s2454_s18  ;;  %p2462_p1 = scmp.lt.s32.totalorder %s2755_s27, %s2755_s27 }
  0x1a   : > { %p2463_p4 = scmp.lt.s32.totalorder %s2461_s20, %s2454_s18 }
  0x1b   : > { %p2457_p13 = pnand %p2455_p12, %p2783_p7 }
  0x1c   : > { %p2464_p6 = por %p2463_p4, %p2462_p1 }
  0x1d   : > { %p2458_p0 = pneg %p2457_p13 }
  0x1f   : > { %p2465_p8 = pnand %p2464_p6, %p2458_p0 }
  0x21   : > { %2468 = shalt.err (!%p2465_p8)
}
  0x22   : > { %2290 = dma.hbm_to_vmem [thread:$0]  (!%p2767_p5), %s3296_s5, 16, %s2755_s27, [#allocation5]  }
  0x23   : > { %s2469_s30 = scalar_lea.hbm %s3299_s8, 32 }
  0x24   : > { %p2470_p9 = scmp.ne.s32.totalorder %s3299_s8, %s2469_s30  ;;  %p2476_p12 = scmp.lt.u32.totalorder %s2469_s30, %s3299_s8 }
  0x26   : > { %p2472_p10 = pnand %p2470_p9, %p2783_p7 }
  0x28   : > { %p2473_p11 = pneg %p2472_p10 }
  0x2a   : > { %p2478_p13 = pnand %p2476_p12, %p2473_p11 }
  0x2c   : > { %2481 = shalt.err (!%p2478_p13)
}
  0x2d   : > { %s2482_s27 = scalar_lea.vmem %s2763_s14, 32  ;;  %p2490_p6 = scmp.lt.s32.totalorder %s2763_s14, %s2763_s14 }
  0x2e   : > { %p2483_p0 = scmp.ne.s32.totalorder %s2763_s14, %s2482_s27  ;;  %p2491_p8 = scmp.lt.s32.totalorder %s2482_s27, %s2482_s27 }
  0x30   : > { %p2485_p1 = pnand %p2483_p0, %p2783_p7  ;;  %p2492_p9 = por %p2491_p8, %p2490_p6 }
  0x32   : > { %p2486_p4 = pneg %p2485_p1 }
  0x34   : > { %p2493_p10 = pnand %p2492_p9, %p2486_p4 }
  0x36   : > { %2496 = shalt.err (!%p2493_p10)
}
  0x37   : > { %2296 = dma.hbm_to_vmem [thread:$0]  (!%p2767_p5), %s3299_s8, 32, %s2763_s14, [#allocation8]  }
  0x38   : > { %s2497_s24 = scalar_lea.hbm %s3302_s11, 16 }
  0x39   : > { %p2498_p11 = scmp.ne.s32.totalorder %s3302_s11, %s2497_s24  ;;  %p2504_p0 = scmp.lt.u32.totalorder %s2497_s24, %s3302_s11 }
  0x3b   : > { %p2500_p12 = pnand %p2498_p11, %p2783_p7 }
  0x3d   : > { %p2501_p13 = pneg %p2500_p12 }
  0x3f   : > { %p2506_p1 = pnand %p2504_p0, %p2501_p13 }
  0x41   : > { %2509 = shalt.err (!%p2506_p1)
}
  0x42   : > { %s2510_s14 = scalar_lea.vmem %s2771_s16, 16  ;;  %s2517_s27 = scalar_lea.vmem %s2771_s16, 32 }
  0x43   : > { %p2511_p4 = scmp.ne.s32.totalorder %s2771_s16, %s2510_s14  ;;  %p2518_p9 = scmp.lt.s32.totalorder %s2771_s16, %s2771_s16 }
  0x44   : > { %p2519_p10 = scmp.lt.s32.totalorder %s2517_s27, %s2510_s14 }
  0x45   : > { %p2513_p6 = pnand %p2511_p4, %p2783_p7 }
  0x46   : > { %p2520_p11 = por %p2519_p10, %p2518_p9 }
  0x47   : > { %p2514_p8 = pneg %p2513_p6 }
  0x49   : > { %p2521_p12 = pnand %p2520_p11, %p2514_p8 }
  0x4b   : > { %2524 = shalt.err (!%p2521_p12)
}
  0x4c   : > { %2302 = dma.hbm_to_vmem [thread:$0]  (!%p2767_p5), %s3302_s11, 16, %s2771_s16, [#allocation11]  }
  0x4d   : > { %s2525_s24 = scalar_lea.hbm %s3295_s4, 16 }
  0x4e   : > { %p2526_p13 = scmp.ne.s32.totalorder %s3295_s4, %s2525_s24  ;;  %p2532_p4 = scmp.lt.u32.totalorder %s2525_s24, %s3295_s4 }
  0x50   : > { %p2528_p0 = pnand %p2526_p13, %p2783_p7 }
  0x52   : > { %p2529_p1 = pneg %p2528_p0 }
  0x54   : > { %p2534_p6 = pnand %p2532_p4, %p2529_p1 }
  0x56   : > { %2537 = shalt.err (!%p2534_p6)
}
  0x57   : > { %s2538_s16 = scalar_lea.vmem %s2773_s19, 16  ;;  %s2545_s14 = scalar_lea.vmem %s2773_s19, 32 }
  0x58   : > { %p2539_p8 = scmp.ne.s32.totalorder %s2773_s19, %s2538_s16  ;;  %p2546_p11 = scmp.lt.s32.totalorder %s2773_s19, %s2773_s19 }
  0x59   : > { %p2547_p12 = scmp.lt.s32.totalorder %s2545_s14, %s2538_s16 }
  0x5a   : > { %p2541_p9 = pnand %p2539_p8, %p2783_p7 }
  0x5b   : > { %p2548_p13 = por %p2547_p12, %p2546_p11 }
  0x5c   : > { %p2542_p10 = pneg %p2541_p9 }
  0x5e   : > { %p2549_p0 = pnand %p2548_p13, %p2542_p10 }
  0x60   : > { %2552 = shalt.err (!%p2549_p0)
}
  0x61   : > { %2287 = dma.hbm_to_vmem [thread:$0]  (!%p2767_p5), %s3295_s4, 16, %s2773_s19, [#allocation3]  }
  0x62   : > { %s2665_s21 = smov [#allocation6]   ;;  %s2666_s23 = smov [#allocation9]  }
  0x63   : > { %s380_s22 = sshll.u32 %s2665_s21, 4  ;;  %s408_s24 = sshll.u32 %s2666_s23, 4  ;;  %s381_s22 = int_to_ptr.vmem [resolvable:$true] %s380_s22  ;;  %s409_s24 = int_to_ptr.vmem [resolvable:$true] %s408_s24 }
  0x64   : > { %s2553_s18 = scalar_lea.hbm %s3297_s6, 16 }
  0x65   : > { %p2554_p1 = scmp.ne.s32.totalorder %s3297_s6, %s2553_s18  ;;  %p2560_p8 = scmp.lt.u32.totalorder %s2553_s18, %s3297_s6 }
  0x67   : > { %p2556_p4 = pnand %p2554_p1, %p2783_p7 }
  0x69   : > { %p2557_p6 = pneg %p2556_p4 }
  0x6b   : > { %p2562_p9 = pnand %p2560_p8, %p2557_p6 }
  0x6d   : > { %2565 = shalt.err (!%p2562_p9)
}
  0x6e   : > { %s2566_s19 = scalar_lea.vmem %s381_s22, 16  ;;  %s2573_s25 = scalar_lea.vmem %s381_s22, 32 }
  0x6f   : > { %p2567_p10 = scmp.ne.s32.totalorder %s381_s22, %s2566_s19  ;;  %p2574_p13 = scmp.lt.s32.totalorder %s381_s22, %s381_s22 }
  0x70   : > { %p2575_p0 = scmp.lt.s32.totalorder %s2573_s25, %s2566_s19 }
  0x71   : > { %p2569_p11 = pnand %p2567_p10, %p2783_p7 }
  0x72   : > { %p2576_p2 = por %p2575_p0, %p2574_p13 }
  0x73   : > { %p2570_p12 = pneg %p2569_p11 }
  0x75   : > { %p2577_p3 = pnand %p2576_p2, %p2570_p12 }
  0x77   : > { %2580 = shalt.err (!%p2577_p3)
}
  0x78   : > { %2293 = dma.hbm_to_vmem [thread:$0]  (!%p2767_p5), %s3297_s6, 16, %s381_s22, [#allocation5]  }
  0x79   : > { %s2581_s18 = scalar_lea.hbm %s3301_s10, 16 }
  0x7a   : > { %p2582_p1 = scmp.ne.s32.totalorder %s3301_s10, %s2581_s18  ;;  %p2588_p3 = scmp.lt.u32.totalorder %s2581_s18, %s3301_s10 }
  0x7c   : > { %p2584_p4 = pnand %p2582_p1, %p2783_p7 }
  0x7e   : > { %p2585_p2 = pneg %p2584_p4 }
  0x80   : > { %p2590_p6 = pnand %p2588_p3, %p2585_p2 }
  0x82   : > { %2593 = shalt.err (!%p2590_p6)
}
  0x83   : > { %s2594_s19 = scalar_lea.vmem %s409_s24, 16  ;;  %s2601_s22 = scalar_lea.vmem %s409_s24, 32 }
  0x84   : > { %p2595_p8 = scmp.ne.s32.totalorder %s409_s24, %s2594_s19  ;;  %p2602_p11 = scmp.lt.s32.totalorder %s409_s24, %s409_s24 }
  0x85   : > { %p2603_p12 = scmp.lt.s32.totalorder %s2601_s22, %s2594_s19 }
  0x86   : > { %p2597_p9 = pnand %p2595_p8, %p2783_p7 }
  0x87   : > { %p2604_p13 = por %p2603_p12, %p2602_p11 }
  0x88   : > { %p2598_p10 = pneg %p2597_p9 }
  0x8a   : > { %p2605_p0 = pnand %p2604_p13, %p2598_p10 }
  0x8c   : > { %2608 = shalt.err (!%p2605_p0)
}
  0x8d   : > { %2299 = dma.hbm_to_vmem [thread:$0]  (!%p2767_p5), %s3301_s10, 16, %s409_s24, [#allocation8]  }
  0x8e   : > { %s2667_s23 = smov [#allocation12]   ;;  %s2609_s20 = scalar_lea.hbm %s3303_s12, 16 }
  0x8f   : > { %s430_s30 = sshll.u32 %s2667_s23, 4  ;;  %p2610_p1 = scmp.ne.s32.totalorder %s3303_s12, %s2609_s20  ;;  %s431_s30 = int_to_ptr.vmem [resolvable:$true] %s430_s30 }
  0x90   : > { %p2616_p3 = scmp.lt.u32.totalorder %s2609_s20, %s3303_s12 }
  0x91   : > { %p2612_p4 = pnand %p2610_p1, %p2783_p7 }
  0x93   : > { %p2613_p2 = pneg %p2612_p4 }
  0x95   : > { %p2618_p6 = pnand %p2616_p3, %p2613_p2 }
  0x97   : > { %2621 = shalt.err (!%p2618_p6)
}
  0x98   : > { %s2622_s24 = scalar_lea.vmem %s431_s30, 16  ;;  %s2629_s22 = scalar_lea.vmem %s431_s30, 32 }
  0x99   : > { %p2623_p8 = scmp.ne.s32.totalorder %s431_s30, %s2622_s24  ;;  %p2630_p11 = scmp.lt.s32.totalorder %s431_s30, %s431_s30 }
  0x9a   : > { %p2631_p12 = scmp.lt.s32.totalorder %s2629_s22, %s2622_s24 }
  0x9b   : > { %p2625_p9 = pnand %p2623_p8, %p2783_p7 }
  0x9c   : > { %p2632_p13 = por %p2631_p12, %p2630_p11 }
  0x9d   : > { %p2626_p10 = pneg %p2625_p9 }
  0x9f   : > { %p2633_p0 = pnand %p2632_p13, %p2626_p10 }
  0xa1   : > { %2636 = shalt.err (!%p2633_p0)
}
  0xa2   : > { %2305 = dma.hbm_to_vmem [thread:$0]  (!%p2767_p5), %s3303_s12, 16, %s431_s30, [#allocation11]  }
  0xa3   : > { %p3312_p1 = scmp.ne.s32.totalorder %s3309_s29, 0 }
  0xa4   : > { %p3313_p4 = scmp.eq.s32.totalorder (!%p3312_p1), %s2750_s28, 0 }
  0xa5   : > { %450 = sbr.rel (%p3312_p1) target bundleno = 3873 (0xf21), region = 72 }
  0xac   : > { %2642 = dma.done.wait (%p3313_p4), [#allocation3], 16   ;;  %p3314_p7 = pmov %p3313_p4 }
  0xad   : > { %p3315_p2 = pmov %p3313_p4 }
  0xae   : > { %2644 = vsyncadd (%p3314_p7), [#allocation3], 4294967280 }
  0xaf   : > { %2646 = dma.done.wait (%p3315_p2), [#allocation5], 32   ;;  %p3316_p3 = pmov %p3315_p2 }
  0xb0   : > { %p3317_p6 = pmov %p3315_p2 }
  0xb1   : > { %2648 = vsyncadd (%p3316_p3), [#allocation5], 4294967264 }
  0xb2   : > { %2650 = dma.done.wait (%p3317_p6), [#allocation8], 48   ;;  %p3318_p5 = pmov %p3315_p2 }
  0xb3   : > { %p3319_p8 = pmov %p3315_p2 }
  0xb4   : > { %2652 = vsyncadd (%p3318_p5), [#allocation8], 4294967248 }
  0xb5   : > { %2654 = dma.done.wait (%p3319_p8), [#allocation11], 32   ;;  %p3320_p9 = pmov %p3315_p2 }
  0xb6   : > { %v2668_v0 = vmov 0   ;;  %v2341_v1 = vld [vmem:[%s3292_s1 + $0x4] ss:$12 sps:$4 sm:$0xff]   ;;  %v2343_v2 = vld [vmem:[%s3292_s1] ss:$12 sps:$4 sm:$0xff]   ;;  %p516_p10 = scmp.lt.s32.totalorder %s2750_s28, 1  ;;  %v560_v19 = vlaneseq }
  0xb7   : > { %2656 = vsyncadd (%p3320_p9), [#allocation11], 4294967264  ;;  %735 = vmatprep.mubr.bf16.mxu0 %v2668_v0  ;;  %703 = vmatprep.subr.bf16.mxu0 %v2341_v1  ;;  %v2344_v3 = vld [vmem:[%s3292_s1 + $0x1c] ss:$12 sps:$4 sm:$0xff]   ;;  %v2346_v4 = vld [vmem:[%s3292_s1 + $0x18] ss:$12 sps:$4 sm:$0xff]  }
  0xb8   : > { %704 = vmatpush1.bf16.msra.mxu0 %v2343_v2  ;;  %v2347_v5 = vld [vmem:[%s3292_s1 + $0x34] ss:$12 sps:$4 sm:$0xff]   ;;  %v2349_v6 = vld [vmem:[%s3292_s1 + $0x30] ss:$12 sps:$4 sm:$0xff]   ;;  %v2350_v7 = vld [vmem:[%s3292_s1 + $0x4c] ss:$12 sps:$4 sm:$0xff]  }
  0xb9   : > { %705 = vmatprep.subr.bf16.mxu0 %v2344_v3  ;;  %v2352_v8 = vld [vmem:[%s3292_s1 + $0x48] ss:$12 sps:$4 sm:$0xff]   ;;  %s3323_s28 = smov (!%p516_p10, %s2750_s28), 1  ;;  %v2353_v9 = vld [vmem:[%s3292_s1 + $0x64] ss:$12 sps:$4 sm:$0xff]   ;;  %v2669_v18 = vmov 0.0  }
  0xba   : > { %v2355_v10 = vld [vmem:[%s3292_s1 + $0x60] ss:$12 sps:$4 sm:$0xff]   ;;  %v2356_v11 = vld [vmem:[%s3292_s1 + $0x7c] ss:$12 sps:$4 sm:$0xff]   ;;  %v2358_v12 = vld [vmem:[%s3292_s1 + $0x78] ss:$12 sps:$4 sm:$0xff]   ;;  %2156 = vmatprep.subr.bf16.mxu1 %v2669_v18 }
  0xbb   : > { %v2359_v13 = vld [vmem:[%s3292_s1 + $0x94] ss:$12 sps:$4 sm:$0xff]   ;;  %v2361_v14 = vld [vmem:[%s3292_s1 + $0x90] ss:$12 sps:$4 sm:$0xff]   ;;  %v2362_v15 = vld [vmem:[%s3292_s1 + $0xac] ss:$12 sps:$4 sm:$0xff]  }
  0xbc   : > { %706 = vmatpush1.bf16.msra.mxu0 %v2346_v4  ;;  %s2011_s25 = sshll.u32 %s3323_s28, 2  ;;  %v2364_v16 = vld [vmem:[%s3292_s1 + $0xa8] ss:$12 sps:$4 sm:$0xff]   ;;  %vm2670_vm0 = vmmov 0   ;;  %v3016_v20 = vshrl.u32 %v560_v19, 7  ;;  %vm803_vm1 = vcmask 261120  }
  0xbd   : > { %707 = vmatprep.subr.bf16.mxu0 %v2347_v5  ;;  %s519_s23 = scalar_lea.vmem %s3291_s0, %s2011_s25  ;;  %2172 = vmatprep.mubr.msk.bf16.mxu1 %vm2670_vm0, %v2669_v18  ;;  %v3022_v22 = vld [vmem:[%s3293_s2] sm:$0x7]  ;;  %s2671_s18 = smov 96   ;;  %v2365_v35 = vld [vmem:[%s3292_s1 + $0x8] ss:$12 sps:$4 sm:$0xff]   ;;  %vm851_vm2 = vcmask 64512  }
  0xbe   : > { %v3007_v17 = vld [vmem:[%s519_s23] sm:$0xf]  ;;  %v566_v21 = vsub.s32 1, %v3016_v20  ;;  %v562_v23 = vsub.s32 0, %v3016_v20  ;;  %2157 = vmatpush3.bf16.msra.mxu1 %v2365_v35  ;;  %v2367_v37 = vld [vmem:[%s3292_s1 + $0x38] ss:$12 sps:$4 sm:$0xff]  }
  0xbf   : > { %v2366_v36 = vld [vmem:[%s3292_s1 + $0x20] ss:$12 sps:$4 sm:$0xff]   ;;  %2158 = vmatprep.subr.bf16.mxu1 %v2669_v18  ;;  %v2368_v38 = vld [vmem:[%s3292_s1 + $0x50] ss:$12 sps:$4 sm:$0xff]   ;;  %v2369_v39 = vld [vmem:[%s3292_s1 + $0x68] ss:$12 sps:$4 sm:$0xff]  }
  0xc0   : > { %708 = vmatpush1.bf16.msra.mxu0 %v2349_v6  ;;  %v567_v24 = vrot.slane %v3022_v22, %v566_v21  ;;  %v563_v25 = vrot.slane %v3022_v22, %v562_v23  ;;  %v2370_v40 = vld [vmem:[%s3292_s1 + $0x80] ss:$12 sps:$4 sm:$0xff]   ;;  %v2371_v43 = vld [vmem:[%s3292_s1 + $0x98] ss:$12 sps:$4 sm:$0xff]   ;;  %v2372_v44 = vld [vmem:[%s3292_s1 + $0xb0] ss:$12 sps:$4 sm:$0xff]  }
  0xc1   : > { %709 = vmatprep.subr.bf16.mxu0 %v2350_v7  ;;  %v570_v4 = vsub.s32 2, %v3016_v20  ;;  %s2672_s14 = smov 64   ;;  %vm867_vm3 = vcmask 1043456   ;;  %s2673_s26 = smov 32  }
  0xc2   : > { %2159 = vmatpush3.bf16.msra.mxu1 %v2366_v36 }
  0xc3   : > { %2160 = vmatprep.subr.bf16.mxu1 %v2669_v18  ;;  %v571_v5 = vrot.slane %v3022_v22, %v570_v4  ;;  %v2375_v22 = vld [vmem:[%s3294_s3 + $0x10] sm:$0xff]  }
  0xc4   : > { %710 = vmatpush1.bf16.msra.mxu0 %v2352_v8 }
  0xc5   : > { %711 = vmatprep.subr.bf16.mxu0 %v2353_v9 }
  0xc6   : > { %2161 = vmatpush3.bf16.msra.mxu1 %v2367_v37 }
  0xc7   : > { %2162 = vmatprep.subr.bf16.mxu1 %v2669_v18 }
  0xc8   : > { %712 = vmatpush1.bf16.msra.mxu0 %v2355_v10 }
  0xc9   : > { %713 = vmatprep.subr.bf16.mxu0 %v2356_v11 }
  0xca   : > { %2163 = vmatpush3.bf16.msra.mxu1 %v2368_v38 }
  0xcb   : > { %2164 = vmatprep.subr.bf16.mxu1 %v2669_v18 }
  0xcc   : > { %714 = vmatpush1.bf16.msra.mxu0 %v2358_v12 }
  0xcd   : > { %715 = vmatprep.subr.bf16.mxu0 %v2359_v13 }
  0xce   : > { %2165 = vmatpush3.bf16.msra.mxu1 %v2369_v39 }
  0xcf   : > { %2166 = vmatprep.subr.bf16.mxu1 %v2669_v18 }
  0xd0   : > { %716 = vmatpush1.bf16.msra.mxu0 %v2361_v14 }
  0xd1   : > { %717 = vmatprep.subr.bf16.mxu0 %v2362_v15 }
  0xd2   : > { %2167 = vmatpush3.bf16.msra.mxu1 %v2370_v40 }
  0xd3   : > { %2168 = vmatprep.subr.bf16.mxu1 %v2669_v18 }
  0xd4   : > { %718 = vmatpush1.bf16.msra.mxu0 %v2364_v16 }
  0xd5   : > { %2176 = vmatprep.subr.bf16.mxu0 %v2669_v18 }
  0xd6   : > { %2169 = vmatpush3.bf16.msra.mxu1 %v2371_v43 }
  0xd7   : > { %736 = vmatmul.mubr.bf16.vlgmr.msra.gmra.mrb[0].mxu0 %v3007_v17  ;;  %2170 = vmatprep.subr.bf16.mxu1 %v2669_v18 }
  0xd8   : > { %2178 = vmatprep.mubr.msk.bf16.mxu0 %vm2670_vm0, %v2669_v18 }
  0xda   : > { %2171 = vmatpush3.bf16.msra.mxu1 %v2372_v44 }
  0xdb   : > { %2182 = vmatprep.subr.bf16.mxu1 %v2669_v18 }
  0xdd   : > { %2173 = vmatmul.mubr.bf16.vlgmr.msra.gmra.mrb[0].mxu1 %v3007_v17 }
  0xde   : > { %2184 = vmatprep.mubr.msk.bf16.mxu1 %vm2670_vm0, %v2669_v18 }
 0x1aa   : > { %v737_v26 = vpop.f32.mrb[0].mxu0 }
 0x1ab   : > { %v739_v27 = vpop.f32.mrb[1].mxu0  ;;  %v738_v31 = vadd.f32 %v737_v26, %v563_v25 }
 0x1ac   : > { %v740_v28 = vadd.f32 %v739_v27, %v567_v24  ;;  %v741_v29 = vpop.f32.mrb[2].mxu0  ;;  %v2376_v24 = vld [vmem:[%s3294_s3 + $0x18] sm:$0xff]  }
 0x1ad   : > { %v742_v30 = vpop.f32.mrb[3].mxu0  ;;  %v3037_v34 = vpack.c.bf16 %v738_v31, %v738_v31 }
 0x1ae   : > { %v3031_v32 = vpack.c.bf16 %v740_v28, %v740_v28  ;;  %v2373_v30 = vld [vmem:[%s3294_s3] sm:$0xff]  }
 0x1b0   : > { %916 = vrot.lane.b32.xlu0 %v3031_v32, %s2671_s18  ;;  %v808_v33 = vsel %vm803_vm1, %v3031_v32, 0  ;;  %v778_v61 = vpop.f32.mrb[0].mxu1 }
 0x1b1   : > { %2177 = vmatpush3.bf16.xpose.msra.mxu0 %v808_v33  ;;  %v2174_v62 = vpop.f32.mrb[1].mxu1  ;;  %v779_v6 = vadd.f32 %v778_v61, %v571_v5  ;;  %v2374_v33 = vld [vmem:[%s3294_s3 + $0x8] sm:$0xff]  }
 0x1b2   : > { %2188 = vmatprep.subr.bf16.mxu0 %v2669_v18  ;;  %v781_v63 = vpop.f32.mrb[2].mxu1 }
 0x1b3   : > { %v2175_v1 = vpop.f32.mrb[3].mxu1  ;;  %v3091_v7 = vpack.c.bf16 %v779_v6, %v779_v6 }
 0x1b4   : > { %913 = vrot.lane.b32.xlu0 %v3037_v34, %s2671_s18 }
 0x1b5   : > { %v869_v8 = vsel %vm867_vm3, %v3091_v7, 0 }
 0x1b6   : > { %2183 = vmatpush3.bf16.msra.mxu1 %v869_v8  ;;  %v2377_v8 = vld [vmem:[%s3294_s3 + $0x20] sm:$0xff]  }
 0x1b7   : > { %2194 = vmatprep.subr.bf16.mxu1 %v2669_v18 }
 0x1b8   : > { %2179 = vmatmul.mubr.msk.bf16.vlgmr.msra.gmra.mrb[4].mxu0 %vm803_vm1, %v3037_v34 }
 0x1b9   : > { %2190 = vmatprep.mubr.msk.bf16.mxu0 %vm2670_vm0, %v2669_v18 }
 0x222   : > { %v917_v41 = vpop.permute.xlu0 %916 }
 0x223   : > { %v922_v42 = vsel %vm803_vm1, %v917_v41, 0 }
 0x224   : > { %2189 = vmatpush3.bf16.xpose.msra.mxu0 %v922_v42 }
 0x225   : > { %2200 = vmatprep.subr.bf16.mxu0 %v2669_v18 }
 0x226   : > { %v914_v45 = vpop.permute.xlu0 %913 }
 0x22b   : > { %2191 = vmatmul.mubr.msk.bf16.vlgmr.msra.gmra.mrb[8].mxu0 %vm803_vm1, %v914_v45 }
 0x22c   : > { %2204 = vmatprep.mubr.msk.bf16.mxu0 %vm2670_vm0, %v2669_v18  ;;  %2201 = vmatpush3.bf16.msra.mxu0 %v2375_v22 }
 0x22d   : > { %2202 = vmatprep.subr.bf16.mxu0 %v2669_v18 }
 0x230   : > { %2203 = vmatpush3.bf16.msra.mxu0 %v2376_v24 }
 0x231   : > { %2216 = vmatprep.subr.bf16.mxu0 %v2669_v18 }
 0x28b   : > { %v844_v46 = vpop.f32.mrb[4].mxu0 }
 0x28c   : > { %v850_v47 = vmul.f32 0.17677669, %v844_v46  ;;  %v2180_v48 = vpop.f32.mrb[5].mxu0 }
 0x28d   : > { %v847_v49 = vpop.f32.mrb[6].mxu0 }
 0x28e   : > { %v2181_v50 = vpop.f32.mrb[7].mxu0  ;;  %v852_v51 = vsel %vm851_vm2, %v850_v47, -inf }
 0x28f   : > { %853 = vmax.xlane.f32.xlu1 %v852_v51 }
 0x2fe   : > { %v958_v52 = vpop.f32.mrb[8].mxu0 }
 0x2ff   : > { %v964_v53 = vmul.f32 0.17677669, %v958_v52  ;;  %v2192_v54 = vpop.f32.mrb[9].mxu0 }
 0x300   : > { %v961_v55 = vpop.f32.mrb[10].mxu0 }
 0x301   : > { %v2193_v56 = vpop.f32.mrb[11].mxu0  ;;  %v965_v57 = vsel %vm851_vm2, %v964_v53, -inf }
 0x302   : > { %966 = vmax.xlane.f32.xlu1 %v965_v57 }
 0x31c   : > { %v854_v58 = vpop.xlane.xlu1 %853 }
 0x31d   : > { %v855_v59 = vsub.f32 %v850_v47, %v854_v58 }
 0x31f   : > { %v856_v60 = vmul.f32 1.442695, %v855_v59 }
 0x321   : > { %2421 = vpow2.f32 %v856_v60 }
 0x32b   : > { %v2422_v2 = vpop.eup %2421 }
 0x32c   : > { %v858_v3 = vsel %vm851_vm2, %v2422_v2, 0.0 }
 0x32d   : > { %859 = vadd.xlane.f32.xlu0 %v858_v3 }
 0x343   : > { %1200 = vrot.lane.b32.xlu0 %v3091_v7, %s2672_s14 }
 0x38f   : > { %v967_v9 = vpop.xlane.xlu1 %966 }
 0x390   : > { %v968_v10 = vsub.f32 %v964_v53, %v967_v9 }
 0x392   : > { %v969_v11 = vmul.f32 1.442695, %v968_v10 }
 0x394   : > { %2423 = vpow2.f32 %v969_v11 }
 0x39e   : > { %v2424_v12 = vpop.eup %2423 }
 0x39f   : > { %v971_v13 = vsel %vm851_vm2, %v2424_v12, 0.0 }
 0x3a0   : > { %972 = vadd.xlane.f32.xlu1 %v971_v13 }
 0x3b1   : > { %978 = vrot.lane.b32.xlu1 %v3091_v7, %s2671_s18 }
 0x3b5   : > { %1139 = vrot.lane.b32.xlu1 %v3031_v32, %s2672_s14 }
 0x3b9   : > { %1137 = vrot.lane.b32.xlu1 %v3037_v34, %s2672_s14 }
 0x3ba   : > { %v860_v14 = vpop.xlane.xlu0 %859 }
 0x3bb   : > { %2425 = vrcp.f32 %v860_v14 }
 0x3be   : > { %v1201_v35 = vpop.permute.xlu0 %1200 }
 0x3bf   : > { %v1206_v40 = vsel %vm867_vm3, %v1201_v35, 0 }
 0x3c5   : > { %v2426_v15 = vpop.eup %2425 }
 0x3c6   : > { %v862_v16 = vmul.f32 %v2426_v15, %v2422_v2 }
 0x3c8   : > { %v863_v19 = vpack.c.bf16 %v862_v16, %v862_v16 }
 0x3ca   : > { %2185 = vmatmul.mubr.msk.bf16.vlgmr.msra.gmra.mrb[4].mxu1 %vm851_vm2, %v863_v19 }
 0x3cb   : > { %2196 = vmatprep.mubr.msk.bf16.mxu1 %vm2670_vm0, %v2669_v18 }
 0x42d   : > { %v973_v25 = vpop.xlane.xlu1 %972 }
 0x42e   : > { %2427 = vrcp.f32 %v973_v25 }
 0x431   : > { %v979_v26 = vpop.permute.xlu1 %978 }
 0x432   : > { %v984_v27 = vsel %vm867_vm3, %v979_v26, 0 }
 0x433   : > { %2195 = vmatpush3.bf16.msra.mxu1 %v984_v27 }
 0x434   : > { %2208 = vmatprep.subr.bf16.mxu1 %v2669_v18 }
 0x435   : > { %v1140_v42 = vpop.permute.xlu1 %1139 }
 0x436   : > { %v1145_v47 = vsel %vm803_vm1, %v1140_v42, 0 }
 0x438   : > { %v2428_v28 = vpop.eup %2427 }
 0x439   : > { %v975_v29 = vmul.f32 %v2428_v28, %v2424_v12  ;;  %v1138_v49 = vpop.permute.xlu1 %1137 }
 0x43b   : > { %v976_v31 = vpack.c.bf16 %v975_v29, %v975_v29 }
 0x43d   : > { %2197 = vmatmul.mubr.msk.bf16.vlgmr.msra.gmra.mrb[8].mxu1 %vm851_vm2, %v976_v31 }
 0x43e   : > { %2209 = vmatpush3.bf16.msra.mxu1 %v2373_v30  ;;  %2212 = vmatprep.mubr.msk.bf16.mxu1 %vm2670_vm0, %v2669_v18 }
 0x43f   : > { %2210 = vmatprep.subr.bf16.mxu1 %v2669_v18 }
 0x442   : > { %2211 = vmatpush3.bf16.msra.mxu1 %v2374_v33 }
 0x443   : > { %2222 = vmatprep.subr.bf16.mxu1 %v2669_v18 }
 0x49d   : > { %v905_v36 = vpop.f32.mrb[4].mxu1 }
 0x49e   : > { %v911_v37 = vpack.c.bf16 %v905_v36, %v905_v36  ;;  %v2186_v38 = vpop.f32.mrb[5].mxu1 }
 0x49f   : > { %v908_v39 = vpop.f32.mrb[6].mxu1  ;;  %v2379_v38 = vld [vmem:[%s3294_s3 + $0x30] sm:$0xff]  }
 0x4a0   : > { %v2187_v41 = vpop.f32.mrb[7].mxu1  ;;  %2213 = vmatmul.mubr.msk.bf16.vlgmr.msra.gmra.mrb[12].mxu1 %vm803_vm1, %v911_v37 }
 0x4a1   : > { %2223 = vmatpush3.bf16.msra.mxu1 %v1206_v40  ;;  %2224 = vmatprep.mubr.msk.bf16.mxu1 %vm2670_vm0, %v2669_v18 }
 0x4a2   : > { %2236 = vmatprep.subr.bf16.mxu1 %v2669_v18 }
 0x510   : > { %v1020_v43 = vpop.f32.mrb[8].mxu1 }
 0x511   : > { %v1026_v44 = vpack.c.bf16 %v1020_v43, %v1020_v43  ;;  %v2198_v45 = vpop.f32.mrb[9].mxu1 }
 0x512   : > { %v1023_v46 = vpop.f32.mrb[10].mxu1 }
 0x513   : > { %v2199_v48 = vpop.f32.mrb[11].mxu1  ;;  %2205 = vmatmul.mubr.msk.bf16.vlgmr.msra.gmra.mrb[12].mxu0 %vm803_vm1, %v1026_v44 }
 0x514   : > { %2217 = vmatpush3.bf16.xpose.msra.mxu0 %v1145_v47  ;;  %2218 = vmatprep.mubr.msk.bf16.mxu0 %vm2670_vm0, %v2669_v18 }
 0x515   : > { %2228 = vmatprep.subr.bf16.mxu0 %v2669_v18 }
 0x51b   : > { %2219 = vmatmul.mubr.msk.bf16.vlgmr.msra.gmra.mrb[16].mxu0 %vm803_vm1, %v1138_v49 }
 0x51c   : > { %2232 = vmatprep.mubr.msk.bf16.mxu0 %vm2670_vm0, %v2669_v18  ;;  %2229 = vmatpush3.bf16.msra.mxu0 %v2377_v8 }
 0x51d   : > { %2230 = vmatprep.subr.bf16.mxu0 %v2669_v18 }
 0x573   : > { %v1131_v50 = vpop.f32.mrb[12].mxu1 }
 0x574   : > { %v2214_v51 = vpop.f32.mrb[13].mxu1 }
 0x575   : > { %v1134_v52 = vpop.f32.mrb[14].mxu1 }
 0x576   : > { %v2215_v53 = vpop.f32.mrb[15].mxu1 }
 0x5e6   : > { %v1076_v54 = vpop.f32.mrb[12].mxu0 }
 0x5e7   : > { %v3139_v55 = vadd.f32 %v1131_v50, %v1076_v54  ;;  %v2206_v56 = vpop.f32.mrb[13].mxu0 }
 0x5e8   : > { %v1079_v57 = vpop.f32.mrb[14].mxu0 }
 0x5e9   : > { %v2207_v58 = vpop.f32.mrb[15].mxu0 }
 0x5ea   : > { %v1481_v58 = vunpack.c.l.bf16 %v3007_v17  ;;  %v2384_v17 = vld [vmem:[%s3298_s7 + $0x10] ss:$8 sps:$4 sm:$0xff]  }
 0x5ee   : > { %v1181_v59 = vpop.f32.mrb[16].mxu0 }
 0x5ef   : > { %v1187_v60 = vmul.f32 0.17677669, %v1181_v59  ;;  %v2220_v61 = vpop.f32.mrb[17].mxu0 }
 0x5f0   : > { %v1184_v62 = vpop.f32.mrb[18].mxu0 }
 0x5f1   : > { %v2221_v63 = vpop.f32.mrb[19].mxu0  ;;  %v1188_v1 = vsel %vm851_vm2, %v1187_v60, -inf  ;;  %v2381_v62 = vld [vmem:[%s3298_s7] ss:$8 sps:$4 sm:$0xff]  }
 0x5f2   : > { %1189 = vmax.xlane.f32.xlu1 %v1188_v1  ;;  %v2383_v63 = vld [vmem:[%s3298_s7 + $0x4] ss:$8 sps:$4 sm:$0xff]   ;;  %v2386_v1 = vld [vmem:[%s3298_s7 + $0x14] ss:$8 sps:$4 sm:$0xff]  }
 0x67f   : > { %v1190_v2 = vpop.xlane.xlu1 %1189 }
 0x680   : > { %v1191_v3 = vsub.f32 %v1187_v60, %v1190_v2  ;;  %v2389_v2 = vld [vmem:[%s3298_s7 + $0x24] ss:$8 sps:$4 sm:$0xff]  }
 0x682   : > { %v1192_v4 = vmul.f32 1.442695, %v1191_v3  ;;  %v2387_v3 = vld [vmem:[%s3298_s7 + $0x20] ss:$8 sps:$4 sm:$0xff]  }
 0x684   : > { %2429 = vpow2.f32 %v1192_v4 }
 0x68e   : > { %v2430_v5 = vpop.eup %2429 }
 0x68f   : > { %v1194_v6 = vsel %vm851_vm2, %v2430_v5, 0.0 }
 0x690   : > { %1195 = vadd.xlane.f32.xlu0 %v1194_v6 }
 0x6a6   : > { %1307 = vrot.lane.b32.xlu0 %v3031_v32, %s2673_s26 }
 0x6aa   : > { %1305 = vrot.lane.b32.xlu0 %v3037_v34, %s2673_s26  ;;  %v2378_v34 = vld [vmem:[%s3294_s3 + $0x28] sm:$0xff]  }
 0x6ab   : > { %2231 = vmatpush3.bf16.msra.mxu0 %v2378_v34  ;;  %v2399_v34 = vld [vmem:[%s3298_s7 + $0x60] ss:$8 sps:$4 sm:$0xff]  }
 0x6ac   : > { %2242 = vmatprep.subr.bf16.mxu0 %v2669_v18 }
 0x71d   : > { %v1196_v9 = vpop.xlane.xlu0 %1195 }
 0x71e   : > { %2431 = vrcp.f32 %v1196_v9  ;;  %v2392_v9 = vld [vmem:[%s3298_s7 + $0x34] ss:$8 sps:$4 sm:$0xff]  }
 0x721   : > { %v1308_v12 = vpop.permute.xlu0 %1307 }
 0x722   : > { %v1313_v14 = vsel %vm803_vm1, %v1308_v12, 0  ;;  %v2393_v12 = vld [vmem:[%s3298_s7 + $0x40] ss:$8 sps:$4 sm:$0xff]  }
 0x725   : > { %v1306_v32 = vpop.permute.xlu0 %1305 }
 0x728   : > { %v2432_v10 = vpop.eup %2431 }
 0x729   : > { %v1198_v11 = vmul.f32 %v2432_v10, %v2430_v5  ;;  %v2390_v10 = vld [vmem:[%s3298_s7 + $0x30] ss:$8 sps:$4 sm:$0xff]  }
 0x72b   : > { %v1199_v13 = vpack.c.bf16 %v1198_v11, %v1198_v11  ;;  %v2395_v11 = vld [vmem:[%s3298_s7 + $0x44] ss:$8 sps:$4 sm:$0xff]  }
 0x72d   : > { %2225 = vmatmul.mubr.msk.bf16.vlgmr.msra.gmra.mrb[16].mxu1 %vm851_vm2, %v1199_v13  ;;  %v2398_v13 = vld [vmem:[%s3298_s7 + $0x54] ss:$8 sps:$4 sm:$0xff]  }
 0x72e   : > { %2237 = vmatpush3.bf16.xpose.msra.mxu1 %v1313_v14  ;;  %2238 = vmatprep.mubr.msk.bf16.mxu1 %vm2670_vm0, %v2669_v18  ;;  %v2396_v14 = vld [vmem:[%s3298_s7 + $0x50] ss:$8 sps:$4 sm:$0xff]  }
 0x72f   : > { %2248 = vmatprep.subr.bf16.mxu1 %v2669_v18 }
 0x735   : > { %2239 = vmatmul.mubr.msk.bf16.vlgmr.msra.gmra.mrb[20].mxu1 %vm803_vm1, %v1306_v32  ;;  %v2401_v32 = vld [vmem:[%s3298_s7 + $0x64] ss:$8 sps:$4 sm:$0xff]  }
 0x736   : > { %2252 = vmatprep.mubr.msk.bf16.mxu1 %vm2670_vm0, %v2669_v18  ;;  %2249 = vmatpush3.bf16.msra.mxu1 %v2379_v38 }
 0x737   : > { %2250 = vmatprep.subr.bf16.mxu1 %v2669_v18 }
 0x800   : > { %v1242_v15 = vpop.f32.mrb[16].mxu1 }
 0x801   : > { %v1248_v16 = vpack.c.bf16 %v1242_v15, %v1242_v15  ;;  %v2226_v19 = vpop.f32.mrb[17].mxu1  ;;  %v2404_v15 = vld [vmem:[%s3298_s7 + $0x74] ss:$8 sps:$4 sm:$0xff]  }
 0x802   : > { %v1245_v22 = vpop.f32.mrb[18].mxu1  ;;  %v2405_v19 = vld [vmem:[%s3300_s9 + $0x40] sm:$0xff]  }
 0x803   : > { %v2227_v24 = vpop.f32.mrb[19].mxu1  ;;  %2233 = vmatmul.mubr.msk.bf16.vlgmr.msra.gmra.mrb[20].mxu0 %vm803_vm1, %v1248_v16  ;;  %v2402_v16 = vld [vmem:[%s3298_s7 + $0x70] ss:$8 sps:$4 sm:$0xff]   ;;  %v2406_v22 = vld [vmem:[%s3300_s9] sm:$0xff]  }
 0x804   : > { %2244 = vmatprep.mubr.msk.bf16.mxu0 %vm2670_vm0, %v2669_v18  ;;  %v2380_v18 = vld [vmem:[%s3294_s3 + $0x38] sm:$0xff]   ;;  %v2407_v24 = vld [vmem:[%s3300_s9 + $0x48] sm:$0xff]  }
 0x805   : > { %2251 = vmatpush3.bf16.msra.mxu1 %v2380_v18  ;;  %v1528_v18 = vld [vmem:[#allocation7] sm:$0x3] }
 0x806   : > { %2134 = vmatprep.subr.bf16.mxu1 %v2405_v19 }
 0x808   : > { %v1349_v25 = vpop.f32.mrb[20].mxu1 }
 0x809   : > { %v1355_v26 = vmul.f32 0.17677669, %v1349_v25  ;;  %v2240_v27 = vpop.f32.mrb[21].mxu1  ;;  %v2408_v25 = vld [vmem:[%s3300_s9 + $0x8] sm:$0xff]  }
 0x80a   : > { %v1352_v28 = vpop.f32.mrb[22].mxu1  ;;  %v2410_v27 = vld [vmem:[%s3300_s9 + $0x10] sm:$0xff]  }
 0x80b   : > { %v2241_v29 = vpop.f32.mrb[23].mxu1  ;;  %v1356_v30 = vsel %vm851_vm2, %v1355_v26, -inf  ;;  %v2411_v28 = vld [vmem:[%s3300_s9 + $0x58] sm:$0xff]  }
 0x80c   : > { %1357 = vmax.xlane.f32.xlu0 %v1356_v30  ;;  %v2412_v29 = vld [vmem:[%s3300_s9 + $0x18] sm:$0xff]   ;;  %v2413_v30 = vld [vmem:[%s3300_s9 + $0x60] sm:$0xff]  }
 0x899   : > { %v1358_v31 = vpop.xlane.xlu0 %1357 }
 0x89a   : > { %v1359_v33 = vsub.f32 %v1355_v26, %v1358_v31  ;;  %v2409_v26 = vld [vmem:[%s3300_s9 + $0x50] sm:$0xff]   ;;  %v2414_v31 = vld [vmem:[%s3300_s9 + $0x20] sm:$0xff]  }
 0x89c   : > { %v1360_v35 = vmul.f32 1.442695, %v1359_v33  ;;  %v2415_v33 = vld [vmem:[%s3300_s9 + $0x68] sm:$0xff]  }
 0x89e   : > { %2433 = vpow2.f32 %v1360_v35  ;;  %v2416_v35 = vld [vmem:[%s3300_s9 + $0x28] sm:$0xff]  }
 0x8a8   : > { %v2434_v36 = vpop.eup %2433 }
 0x8a9   : > { %v1362_v37 = vsel %vm851_vm2, %v2434_v36, 0.0 }
 0x8aa   : > { %1363 = vadd.xlane.f32.xlu1 %v1362_v37 }
 0x8bb   : > { %1368 = vrot.lane.b32.xlu1 %v3091_v7, %s2673_s26  ;;  %s523_s26 = scalar_lea.vmem %s3304_s13, %s2011_s25 }
 0x8d6   : > { %v1298_v39 = vpop.f32.mrb[20].mxu0 }
 0x8d7   : > { %v1304_v40 = vadd.f32 %v1298_v39, %v3139_v55  ;;  %v2234_v41 = vpop.f32.mrb[21].mxu0  ;;  %v2057_v55 = vld [vmem:[#allocation2] ss:$0 sm:$0xff] }
 0x8d8   : > { %v1301_v42 = vpop.f32.mrb[22].mxu0 }
 0x8d9   : > { %v2235_v43 = vpop.f32.mrb[23].mxu0  ;;  %v2059_v42 = vld [vmem:[#allocation6] ss:$0 sm:$0xff] }
 0x937   : > { %v1364_v44 = vpop.xlane.xlu1 %1363 }
 0x938   : > { %2435 = vrcp.f32 %v1364_v44 }
 0x93b   : > { %v1369_v45 = vpop.permute.xlu1 %1368 }
 0x93c   : > { %v1374_v46 = vsel %vm867_vm3, %v1369_v45, 0 }
 0x93d   : > { %2243 = vmatpush3.bf16.msra.mxu0 %v1374_v46  ;;  %v2417_v46 = vld [vmem:[%s3300_s9 + $0x70] sm:$0xff]  }
 0x93e   : > { %1653 = vmatprep.subr.bf16.mxu0 %v2383_v63 }
 0x942   : > { %v2436_v7 = vpop.eup %2435 }
 0x943   : > { %v1366_v47 = vmul.f32 %v2436_v7, %v2434_v36  ;;  %v2418_v7 = vld [vmem:[%s3300_s9 + $0x30] sm:$0xff]  }
 0x945   : > { %v1367_v48 = vpack.c.bf16 %v1366_v47, %v1366_v47  ;;  %v2419_v47 = vld [vmem:[%s3300_s9 + $0x78] sm:$0xff]  }
 0x947   : > { %2245 = vmatmul.mubr.msk.bf16.vlgmr.msra.gmra.mrb[24].mxu0 %vm851_vm2, %v1367_v48  ;;  %v2420_v48 = vld [vmem:[%s3300_s9 + $0x38] sm:$0xff]  }
 0x948   : > { %1685 = vmatprep.mubr.bf16.mxu0 %v2668_v0  ;;  %1654 = vmatpush1.bf16.msra.mxu0 %v2381_v62 }
 0x949   : > { %1655 = vmatprep.subr.bf16.mxu0 %v2386_v1 }
 0x94c   : > { %1656 = vmatpush1.bf16.msra.mxu0 %v2384_v17 }
 0x94d   : > { %1657 = vmatprep.subr.bf16.mxu0 %v2389_v2 }
 0x950   : > { %1658 = vmatpush1.bf16.msra.mxu0 %v2387_v3 }
 0x951   : > { %1659 = vmatprep.subr.bf16.mxu0 %v2392_v9 }
 0x954   : > { %1660 = vmatpush1.bf16.msra.mxu0 %v2390_v10  ;;  %v2093_v10 = vld [vmem:[#allocation10] ss:$0 sm:$0xff] }
 0x955   : > { %1661 = vmatprep.subr.bf16.mxu0 %v2395_v11 }
 0x958   : > { %1662 = vmatpush1.bf16.msra.mxu0 %v2393_v12  ;;  %v2094_v12 = vld [vmem:[#allocation12] ss:$0 sm:$0xff] }
 0x959   : > { %1663 = vmatprep.subr.bf16.mxu0 %v2398_v13 }
 0x95c   : > { %1664 = vmatpush1.bf16.msra.mxu0 %v2396_v14 }
 0x95d   : > { %1665 = vmatprep.subr.bf16.mxu0 %v2401_v32 }
 0x960   : > { %1666 = vmatpush1.bf16.msra.mxu0 %v2399_v34 }
 0x961   : > { %1667 = vmatprep.subr.bf16.mxu0 %v2404_v15 }
 0x964   : > { %1668 = vmatpush1.bf16.msra.mxu0 %v2402_v16 }
 0xa1a   : > { %v1410_v49 = vpop.f32.mrb[24].mxu0 }
 0xa1b   : > { %v1416_v50 = vpack.c.bf16 %v1410_v49, %v1410_v49  ;;  %v2246_v51 = vpop.f32.mrb[25].mxu0  ;;  %v1566_v49 = vrot.slane %v1528_v18, %v562_v23 }
 0xa1c   : > { %v1413_v52 = vpop.f32.mrb[26].mxu0 }
 0xa1d   : > { %v2247_v53 = vpop.f32.mrb[27].mxu0  ;;  %2253 = vmatmul.mubr.msk.bf16.vlgmr.msra.gmra.mrb[24].mxu1 %vm803_vm1, %v1416_v50  ;;  %v1570_v50 = vrot.slane %v1528_v18, %v566_v21 }
 0xa1e   : > { %2135 = vmatpush3.bf16.msra.mxu1 %v2406_v22 }
 0xa1f   : > { %2136 = vmatprep.subr.bf16.mxu1 %v2407_v24 }
 0xa22   : > { %2137 = vmatpush3.bf16.msra.mxu1 %v2408_v25 }
 0xa23   : > { %2138 = vmatprep.subr.bf16.mxu1 %v2409_v26 }
 0xa26   : > { %2139 = vmatpush3.bf16.msra.mxu1 %v2410_v27 }
 0xa27   : > { %2140 = vmatprep.subr.bf16.mxu1 %v2411_v28 }
 0xa2a   : > { %2141 = vmatpush3.bf16.msra.mxu1 %v2412_v29 }
 0xa2b   : > { %2142 = vmatprep.subr.bf16.mxu1 %v2413_v30 }
 0xa2e   : > { %2143 = vmatpush3.bf16.msra.mxu1 %v2414_v31 }
 0xa2f   : > { %2144 = vmatprep.subr.bf16.mxu1 %v2415_v33 }
 0xa32   : > { %2145 = vmatpush3.bf16.msra.mxu1 %v2416_v35 }
 0xa33   : > { %2146 = vmatprep.subr.bf16.mxu1 %v2417_v46 }
 0xa36   : > { %2147 = vmatpush3.bf16.msra.mxu1 %v2418_v7 }
 0xa37   : > { %2148 = vmatprep.subr.bf16.mxu1 %v2419_v47 }
 0xa3a   : > { %2149 = vmatpush3.bf16.msra.mxu1 %v2420_v48 }
 0xaf0   : > { %v1466_v54 = vpop.f32.mrb[24].mxu1 }
 0xaf1   : > { %v1472_v56 = vadd.f32 %v1466_v54, %v1304_v40  ;;  %v2254_v57 = vpop.f32.mrb[25].mxu1  ;;  %v2058_v40 = vld [vmem:[#allocation4] ss:$0 sm:$0xff] }
 0xaf2   : > { %v1469_v59 = vpop.f32.mrb[26].mxu1 }
 0xaf3   : > { %v1480_v0 = vadd.f32 %v2057_v55, %v1472_v56  ;;  %v2255_v60 = vpop.f32.mrb[27].mxu1 }
 0xaf5   : > { %v1484_v61 = vadd.f32 %v1481_v58, %v1480_v0 }
 0xaf7   : > { %1485 = vadd.xlane.f32.xlu1 %v1484_v61 }
 0xb84   : > { %v1486_v4 = vpop.xlane.xlu1 %1485 }
 0xb85   : > { %v1488_v5 = vmul.f32 0.0078125, %v1486_v4 }
 0xb87   : > { %v1489_v6 = vsub.f32 %v1484_v61, %v1488_v5  ;;  %v2076_v61 = vld [vmem:[#allocation9] ss:$0 sm:$0xff] }
 0xb89   : > { %v1490_v8 = vmul.f32 %v1489_v6, %v1489_v6 }
 0xb8b   : > { %1491 = vadd.xlane.f32.xlu0 %v1490_v8 }
 0xc18   : > { %v1492_v36 = vpop.xlane.xlu0 %1491 }
 0xc19   : > { %v1493_v37 = vmul.f32 0.0078125, %v1492_v36 }
 0xc1b   : > { %v1494_v38 = vadd.f32 1e-05, %v1493_v37 }
 0xc1d   : > { %2437 = vrsqrt.f32 %v1494_v38 }
 0xc27   : > { %v2438_v39 = vpop.eup %2437 }
 0xc28   : > { %v1496_v41 = vmul.f32 %v2438_v39, %v1489_v6 }
 0xc2a   : > { %v1503_v43 = vmul.f32 %v2058_v40, %v1496_v41 }
 0xc2c   : > { %v1510_v44 = vadd.f32 %v2059_v42, %v1503_v43 }
 0xc2e   : > { %v1511_v45 = vpack.c.bf16 %v1510_v44, %v1510_v44 }
 0xc30   : > { %1686 = vmatmul.mubr.bf16.vlgmr.msra.gmra.mrb[28].mxu0 %v1511_v45 }
 0xd03   : > { %v1687_v51 = vpop.f32.mrb[28].mxu0 }
 0xd04   : > { %v1688_v52 = vadd.f32 %v1687_v51, %v1566_v49  ;;  %v1689_v53 = vpop.f32.mrb[29].mxu0 }
 0xd05   : > { %v1690_v54 = vadd.f32 %v1689_v53, %v1570_v50  ;;  %v1691_v55 = vpop.f32.mrb[30].mxu0 }
 0xd06   : > { %v1694_v56 = vmax.f32 %v1688_v52, 0.0  ;;  %v1692_v57 = vpop.f32.mrb[31].mxu0 }
 0xd07   : > { %v1695_v58 = vmax.f32 %v1690_v54, 0.0 }
 0xd08   : > { %v1696_v0 = vpack.c.bf16 %v1694_v56, %v1694_v56 }
 0xd09   : > { %v1697_v59 = vpack.c.bf16 %v1695_v58, %v1695_v58 }
 0xd0b   : > { %1832 = vmatprep.mubr.bf16.mxu1 %v1697_v59 }
 0xd0c   : > { %1833 = vmatmul.mubr.bf16.vlgmr.msra.gmra.mrb[28].mxu1 %v1696_v0 }
 0xddf   : > { %v2150_v60 = vpop.f32.mrb[28].mxu1 }
 0xde0   : > { %v2151_v62 = vpop.f32.mrb[29].mxu1 }
 0xde1   : > { %v2152_v63 = vadd.f32 %v2151_v62, %v2150_v60  ;;  %v2153_v23 = vpop.f32.mrb[30].mxu1 }
 0xde2   : > { %v2154_v1 = vpop.f32.mrb[31].mxu1 }
 0xde3   : > { %v1835_v20 = vadd.f32 %v2152_v63, %v2076_v61 }
 0xde5   : > { %v1842_v21 = vadd.f32 %v1835_v20, %v1510_v44 }
 0xde7   : > { %1843 = vadd.xlane.f32.xlu0 %v1842_v21 }
 0xe74   : > { %v1844_v17 = vpop.xlane.xlu0 %1843 }
 0xe75   : > { %v1845_v2 = vmul.f32 0.0078125, %v1844_v17 }
 0xe77   : > { %v1846_v3 = vsub.f32 %v1842_v21, %v1845_v2 }
 0xe79   : > { %v1847_v4 = vmul.f32 %v1846_v3, %v1846_v3 }
 0xe7b   : > { %1848 = vadd.xlane.f32.xlu0 %v1847_v4 }
 0xf08   : > { %v1849_v5 = vpop.xlane.xlu0 %1848 }
 0xf09   : > { %v1850_v6 = vmul.f32 0.0078125, %v1849_v5 }
 0xf0b   : > { %v1851_v8 = vadd.f32 1e-05, %v1850_v6 }
 0xf0d   : > { %2439 = vrsqrt.f32 %v1851_v8 }
 0xf17   : > { %v2440_v9 = vpop.eup %2439 }
 0xf18   : > { %v1853_v11 = vmul.f32 %v2440_v9, %v1846_v3 }
 0xf1a   : > { %v1860_v13 = vmul.f32 %v2093_v10, %v1853_v11 }
 0xf1c   : > { %v1867_v14 = vadd.f32 %v2094_v12, %v1860_v13 }
 0xf1e   : > { %v1868_v32 = vpack.c.bf16 %v1867_v14, %v1867_v14 }
 0xf20   : > { %1869 = vst [vmem:[%s523_s26] sm:$0xf] %v1868_v32 }
 0xf21 PF: > { %s3321_s23 = sld [smem:[#allocation17_spill]] }
 0xf27   : > { %s27_s25 = sadd.s32 1, %s3321_s23  }
 0xf28   : > { %p24_p11 = scmp.ge.s32.totalorder %s27_s25, 4  }
 0xf2a   :  { %26 = sbr.rel (!%p24_p11) target bundleno = 4 (0x4), region = 131 }
 0xf31   :  { %1889 = vsyncpa [#allocation3], 1 }
 0xf32   :  { %1891 = vsyncpa [#allocation3 + $0x1], 1 }
 0xf33   :  { %1892 = vsyncpa [#allocation5], 1 }
 0xf34   :  { %1893 = vsyncpa [#allocation8], 1 }
 0xf35   :  { %1894 = vsyncpa [#allocation11], 1 }

// kernel: forward.9
= control target key start
LH: loop header
LB: loop body
LE: loop exit
PB: predicated region body
PF: predicated region fallthrough
CT: control target
= control target key end

     0   :  { %s3275_s0 = inlined_call_operand.vmem [shape: bf16[2,8,128], index: 0, kind: input, shape index: {}]   ;;  %s3276_s1 = inlined_call_operand.vmem [shape: bf16[128,384], index: 1, kind: input, shape index: {}]   ;;  %s3277_s2 = inlined_call_operand.vmem [shape: f32[1,384], index: 2, kind: input, shape index: {}]   ;;  %s3278_s3 = inlined_call_operand.hbm [shape: bf16[128,128], index: 3, kind: input, shape index: {}]   ;;  %s3279_s4 = inlined_call_operand.vmem [shape: f32[1,128], index: 4, kind: input, shape index: {}]   ;;  %s3280_s5 = inlined_call_operand.hbm [shape: f32[1,128], index: 5, kind: input, shape index: {}]   ;;  %s3281_s6 = inlined_call_operand.hbm [shape: f32[1,128], index: 6, kind: input, shape index: {}]   ;;  %s3282_s7 = inlined_call_operand.vmem [shape: bf16[128,256], index: 7, kind: input, shape index: {}]   ;;  %s3283_s8 = inlined_call_operand.hbm [shape: f32[1,256], index: 8, kind: input, shape index: {}]   ;;  %s3284_s9 = inlined_call_operand.vmem [shape: bf16[256,128], index: 9, kind: input, shape index: {}]   ;;  %s3285_s10 = inlined_call_operand.hbm [shape: f32[1,128], index: 10, kind: input, shape index: {}]   ;;  %s3286_s11 = inlined_call_operand.hbm [shape: f32[1,128], index: 11, kind: input, shape index: {}]   ;;  %s3287_s12 = inlined_call_operand.hbm [shape: f32[1,128], index: 12, kind: input, shape index: {}]   ;;  %s3288_s13 = inlined_call_operand.vmem [shape: bf16[2,8,128], index: 13, kind: output, shape index: {}]  }
   0x1   :  { %3292 = sst [smem:[#allocation18_spill]] %s3280_s5 }
   0x2   :  { %3293 = sst [smem:[#allocation19_spill]] %s3283_s8 }
   0x3   :  { %3294 = sst [smem:[#allocation20_spill]] %s3286_s11 }
   0x4   :  { %18 = vsyncpa [#allocation3], 0 }
   0x5   :  { %19 = vsyncpa [#allocation5], 0 }
   0x6   :  { %20 = vsyncpa [#allocation8], 0 }
   0x7   :  { %21 = vsyncpa [#allocation11], 0  ;;  %s2750_s25 = smov 0  }
   0x8 LB: > { %3295 = sst [smem:[#allocation17_spill]] %s2663_s25  ;;  %s2665_s26 = smov [#allocation4]   ;;  %s2663_s25 = sphi %s2750_s25, %s27_s25  }
   0x9   : > { %s371_s27 = sshll.u32 %s2665_s26, 4  ;;  %s2756_s28 = sadd.s32 4294967295, %s2663_s25   ;;  %s2761_s27 = int_to_ptr.vmem [resolvable:$true] %s371_s27 }
   0xa   : > { %p1996_p0 = scmp.ge.s32.totalorder %s2663_s25, 1  ;;  %p336_p1 = scmp.lt.s32.totalorder %s2663_s25, 3 }
   0xb   : > { %p3290_p2 = scmp.eq.s32.totalorder %s2756_s28, 0  ;;  %s2666_s30 = smov [#allocation7]  }
   0xc   : > { %p2763_p3 = pnand %p1996_p0, %p336_p1  ;;  %s396_s14 = sshll.u32 %s2666_s30, 4  ;;  %s2769_s14 = int_to_ptr.vmem [resolvable:$true] %s396_s14 }
   0xd   : > { %s2667_s15 = smov [#allocation10]   ;;  %s2668_s18 = smov [#allocation2]  }
   0xe   : > { %s3296_s29 = scalar_select %p2763_p3, 1, 0 }
   0xf   : > { %p2286_p4 = pneg %p2763_p3  ;;  %s421_s16 = sshll.u32 %s2667_s15, 4  ;;  %s2777_s16 = int_to_ptr.vmem [resolvable:$true] %s421_s16 }
  0x10   : > { %s354_s19 = sshll.u32 %s2668_s18, 4  ;;  %s3298_s5 = sld [smem:[#allocation18_spill]]  ;;  %s2779_s19 = int_to_ptr.vmem [resolvable:$true] %s354_s19 }
  0x11   : > { %p2773_p5 = pnand %p3290_p2, %p2286_p4 }
  0x13   : > { %p2789_p7 = pneg %p2773_p5 }
  0x16   : > { %s2445_s22 = scalar_lea.hbm %s3298_s5, 16 }
  0x17   : > { %p2446_p6 = scmp.ne.s32.totalorder %s3298_s5, %s2445_s22  ;;  %p2452_p10 = scmp.lt.u32.totalorder %s2445_s22, %s3298_s5 }
  0x19   : > { %p2448_p8 = pnand %p2789_p7, %p2446_p6 }
  0x1b   : > { %p2449_p9 = pneg %p2448_p8 }
  0x1d   : > { %p2454_p11 = pnand %p2452_p10, %p2449_p9 }
  0x1f   : > { %2457 = shalt.err (!%p2454_p11)
}
  0x20   : > { %s2458_s18 = scalar_lea.vmem %s2761_s27, 16  ;;  %s2465_s20 = scalar_lea.vmem %s2761_s27, 32 }
  0x21   : > { %p2459_p12 = scmp.ne.s32.totalorder %s2761_s27, %s2458_s18  ;;  %p2466_p1 = scmp.lt.s32.totalorder %s2761_s27, %s2761_s27 }
  0x22   : > { %p2467_p4 = scmp.lt.s32.totalorder %s2465_s20, %s2458_s18 }
  0x23   : > { %p2461_p13 = pnand %p2459_p12, %p2789_p7 }
  0x24   : > { %p2468_p6 = por %p2467_p4, %p2466_p1 }
  0x25   : > { %p2462_p0 = pneg %p2461_p13 }
  0x27   : > { %p2469_p8 = pnand %p2468_p6, %p2462_p0 }
  0x29   : > { %2472 = shalt.err (!%p2469_p8)
}
  0x2a   : > { %2292 = dma.hbm_to_vmem [thread:$0]  (!%p2773_p5), %s3298_s5, 16, %s2761_s27, [#allocation5]  }
  0x2b   : > { %s3300_s8 = sld [smem:[#allocation19_spill]] }
  0x31   : > { %s2473_s30 = scalar_lea.hbm %s3300_s8, 32 }
  0x32   : > { %p2474_p9 = scmp.ne.s32.totalorder %s3300_s8, %s2473_s30  ;;  %p2480_p12 = scmp.lt.u32.totalorder %s2473_s30, %s3300_s8 }
  0x34   : > { %p2476_p10 = pnand %p2474_p9, %p2789_p7 }
  0x36   : > { %p2477_p11 = pneg %p2476_p10 }
  0x38   : > { %p2482_p13 = pnand %p2480_p12, %p2477_p11 }
  0x3a   : > { %2485 = shalt.err (!%p2482_p13)
}
  0x3b   : > { %s2486_s27 = scalar_lea.vmem %s2769_s14, 32  ;;  %p2494_p6 = scmp.lt.s32.totalorder %s2769_s14, %s2769_s14 }
  0x3c   : > { %p2487_p0 = scmp.ne.s32.totalorder %s2769_s14, %s2486_s27  ;;  %p2495_p8 = scmp.lt.s32.totalorder %s2486_s27, %s2486_s27 }
  0x3e   : > { %p2489_p1 = pnand %p2487_p0, %p2789_p7  ;;  %p2496_p9 = por %p2495_p8, %p2494_p6 }
  0x40   : > { %p2490_p4 = pneg %p2489_p1 }
  0x42   : > { %p2497_p10 = pnand %p2496_p9, %p2490_p4 }
  0x44   : > { %2500 = shalt.err (!%p2497_p10)
}
  0x45   : > { %2298 = dma.hbm_to_vmem [thread:$0]  (!%p2773_p5), %s3300_s8, 32, %s2769_s14, [#allocation8]  }
  0x46   : > { %s3301_s11 = sld [smem:[#allocation20_spill]] }
  0x4c   : > { %s2501_s24 = scalar_lea.hbm %s3301_s11, 16 }
  0x4d   : > { %p2502_p11 = scmp.ne.s32.totalorder %s3301_s11, %s2501_s24  ;;  %p2508_p0 = scmp.lt.u32.totalorder %s2501_s24, %s3301_s11 }
  0x4f   : > { %p2504_p12 = pnand %p2502_p11, %p2789_p7 }
  0x51   : > { %p2505_p13 = pneg %p2504_p12 }
  0x53   : > { %p2510_p1 = pnand %p2508_p0, %p2505_p13 }
  0x55   : > { %2513 = shalt.err (!%p2510_p1)
}
  0x56   : > { %s2514_s14 = scalar_lea.vmem %s2777_s16, 16  ;;  %s2521_s27 = scalar_lea.vmem %s2777_s16, 32 }
  0x57   : > { %p2515_p4 = scmp.ne.s32.totalorder %s2777_s16, %s2514_s14  ;;  %p2522_p9 = scmp.lt.s32.totalorder %s2777_s16, %s2777_s16 }
  0x58   : > { %p2523_p10 = scmp.lt.s32.totalorder %s2521_s27, %s2514_s14 }
  0x59   : > { %p2517_p6 = pnand %p2515_p4, %p2789_p7 }
  0x5a   : > { %p2524_p11 = por %p2523_p10, %p2522_p9 }
  0x5b   : > { %p2518_p8 = pneg %p2517_p6 }
  0x5d   : > { %p2525_p12 = pnand %p2524_p11, %p2518_p8 }
  0x5f   : > { %2528 = shalt.err (!%p2525_p12)
}
  0x60   : > { %2304 = dma.hbm_to_vmem [thread:$0]  (!%p2773_p5), %s3301_s11, 16, %s2777_s16, [#allocation11]  }
  0x61   : > { %s2529_s24 = scalar_lea.hbm %s3278_s3, 1024 }
  0x62   : > { %p2530_p13 = scmp.ne.s32.totalorder %s3278_s3, %s2529_s24  ;;  %p2536_p4 = scmp.lt.u32.totalorder %s2529_s24, %s3278_s3 }
  0x64   : > { %p2532_p0 = pnand %p2530_p13, %p2789_p7 }
  0x66   : > { %p2533_p1 = pneg %p2532_p0 }
  0x68   : > { %p2538_p6 = pnand %p2536_p4, %p2533_p1 }
  0x6a   : > { %2541 = shalt.err (!%p2538_p6)
}
  0x6b   : > { %s2542_s16 = scalar_lea.vmem %s2779_s19, 1024  ;;  %p2550_p11 = scmp.lt.s32.totalorder %s2779_s19, %s2779_s19 }
  0x6c   : > { %p2543_p8 = scmp.ne.s32.totalorder %s2779_s19, %s2542_s16  ;;  %p2551_p12 = scmp.lt.s32.totalorder %s2542_s16, %s2542_s16 }
  0x6e   : > { %p2545_p9 = pnand %p2543_p8, %p2789_p7  ;;  %p2552_p13 = por %p2551_p12, %p2550_p11 }
  0x70   : > { %p2546_p10 = pneg %p2545_p9 }
  0x72   : > { %p2553_p0 = pnand %p2552_p13, %p2546_p10 }
  0x74   : > { %2556 = shalt.err (!%p2553_p0)
}
  0x75   : > { %s2669_s14 = smov 64   ;;  %s2670_s27 = smov 4  }
  0x76   : > { %2289 = dma.hbm_to_vmem [thread:$0]  (!%p2773_p5), %s3278_s3, 1024, %s2779_s19, [#allocation3], %s2669_s14, %s2669_s14, %s2670_s27  }
  0x77   : > { %s2671_s22 = smov [#allocation6]   ;;  %s2672_s24 = smov [#allocation9]  }
  0x78   : > { %s382_s23 = sshll.u32 %s2671_s22, 4  ;;  %s410_s30 = sshll.u32 %s2672_s24, 4  ;;  %s383_s23 = int_to_ptr.vmem [resolvable:$true] %s382_s23  ;;  %s411_s30 = int_to_ptr.vmem [resolvable:$true] %s410_s30 }
  0x79   : > { %s2557_s20 = scalar_lea.hbm %s3281_s6, 16 }
  0x7a   : > { %p2558_p1 = scmp.ne.s32.totalorder %s3281_s6, %s2557_s20  ;;  %p2564_p8 = scmp.lt.u32.totalorder %s2557_s20, %s3281_s6 }
  0x7c   : > { %p2560_p4 = pnand %p2558_p1, %p2789_p7 }
  0x7e   : > { %p2561_p6 = pneg %p2560_p4 }
  0x80   : > { %p2566_p9 = pnand %p2564_p8, %p2561_p6 }
  0x82   : > { %2569 = shalt.err (!%p2566_p9)
}
  0x83   : > { %s2570_s19 = scalar_lea.vmem %s383_s23, 16  ;;  %s2577_s14 = scalar_lea.vmem %s383_s23, 32 }
  0x84   : > { %p2571_p10 = scmp.ne.s32.totalorder %s383_s23, %s2570_s19  ;;  %p2578_p13 = scmp.lt.s32.totalorder %s383_s23, %s383_s23 }
  0x85   : > { %p2579_p0 = scmp.lt.s32.totalorder %s2577_s14, %s2570_s19 }
  0x86   : > { %p2573_p11 = pnand %p2571_p10, %p2789_p7 }
  0x87   : > { %p2580_p2 = por %p2579_p0, %p2578_p13 }
  0x88   : > { %p2574_p12 = pneg %p2573_p11 }
  0x8a   : > { %p2581_p3 = pnand %p2580_p2, %p2574_p12 }
  0x8c   : > { %2584 = shalt.err (!%p2581_p3)
}
  0x8d   : > { %2295 = dma.hbm_to_vmem [thread:$0]  (!%p2773_p5), %s3281_s6, 16, %s383_s23, [#allocation5]  }
  0x8e   : > { %s2585_s25 = scalar_lea.hbm %s3285_s10, 16 }
  0x8f   : > { %p2586_p1 = scmp.ne.s32.totalorder %s3285_s10, %s2585_s25  ;;  %p2592_p3 = scmp.lt.u32.totalorder %s2585_s25, %s3285_s10 }
  0x91   : > { %p2588_p4 = pnand %p2586_p1, %p2789_p7 }
  0x93   : > { %p2589_p2 = pneg %p2588_p4 }
  0x95   : > { %p2594_p6 = pnand %p2592_p3, %p2589_p2 }
  0x97   : > { %2597 = shalt.err (!%p2594_p6)
}
  0x98   : > { %s2598_s18 = scalar_lea.vmem %s411_s30, 16  ;;  %s2605_s23 = scalar_lea.vmem %s411_s30, 32 }
  0x99   : > { %p2599_p8 = scmp.ne.s32.totalorder %s411_s30, %s2598_s18  ;;  %p2606_p11 = scmp.lt.s32.totalorder %s411_s30, %s411_s30 }
  0x9a   : > { %p2607_p12 = scmp.lt.s32.totalorder %s2605_s23, %s2598_s18 }
  0x9b   : > { %p2601_p9 = pnand %p2599_p8, %p2789_p7 }
  0x9c   : > { %p2608_p13 = por %p2607_p12, %p2606_p11 }
  0x9d   : > { %p2602_p10 = pneg %p2601_p9 }
  0x9f   : > { %p2609_p0 = pnand %p2608_p13, %p2602_p10 }
  0xa1   : > { %2612 = shalt.err (!%p2609_p0)
}
  0xa2   : > { %2301 = dma.hbm_to_vmem [thread:$0]  (!%p2773_p5), %s3285_s10, 16, %s411_s30, [#allocation8]  }
  0xa3   : > { %s2673_s19 = smov [#allocation12]   ;;  %s2613_s8 = scalar_lea.hbm %s3287_s12, 16 }
  0xa4   : > { %s432_s14 = sshll.u32 %s2673_s19, 4  ;;  %p2614_p1 = scmp.ne.s32.totalorder %s3287_s12, %s2613_s8  ;;  %s433_s14 = int_to_ptr.vmem [resolvable:$true] %s432_s14 }
  0xa5   : > { %p2620_p3 = scmp.lt.u32.totalorder %s2613_s8, %s3287_s12 }
  0xa6   : > { %p2616_p4 = pnand %p2614_p1, %p2789_p7 }
  0xa8   : > { %p2617_p2 = pneg %p2616_p4 }
  0xaa   : > { %p2622_p6 = pnand %p2620_p3, %p2617_p2 }
  0xac   : > { %2625 = shalt.err (!%p2622_p6)
}
  0xad   : > { %s2626_s30 = scalar_lea.vmem %s433_s14, 16  ;;  %s2633_s24 = scalar_lea.vmem %s433_s14, 32 }
  0xae   : > { %p2627_p8 = scmp.ne.s32.totalorder %s433_s14, %s2626_s30  ;;  %p2634_p11 = scmp.lt.s32.totalorder %s433_s14, %s433_s14 }
  0xaf   : > { %p2635_p12 = scmp.lt.s32.totalorder %s2633_s24, %s2626_s30 }
  0xb0   : > { %p2629_p9 = pnand %p2627_p8, %p2789_p7 }
  0xb1   : > { %p2636_p13 = por %p2635_p12, %p2634_p11 }
  0xb2   : > { %p2630_p10 = pneg %p2629_p9 }
  0xb4   : > { %p2637_p0 = pnand %p2636_p13, %p2630_p10 }
  0xb6   : > { %2640 = shalt.err (!%p2637_p0)
}
  0xb7   : > { %2307 = dma.hbm_to_vmem [thread:$0]  (!%p2773_p5), %s3287_s12, 16, %s433_s14, [#allocation11]  }
  0xb8   : > { %p3302_p1 = scmp.ne.s32.totalorder %s3296_s29, 0 }
  0xb9   : > { %p3303_p4 = scmp.eq.s32.totalorder (!%p3302_p1), %s2756_s28, 0 }
  0xba   : > { %452 = sbr.rel (%p3302_p1) target bundleno = 3894 (0xf36), region = 72 }
  0xc1   : > { %2646 = dma.done.wait (%p3303_p4), [#allocation3], 1024   ;;  %p3304_p7 = pmov %p3303_p4 }
  0xc2   : > { %p3305_p2 = pmov %p3303_p4 }
  0xc3   : > { %2648 = vsyncadd (%p3304_p7), [#allocation3], 4294966272 }
  0xc4   : > { %2650 = dma.done.wait (%p3305_p2), [#allocation5], 32   ;;  %p3306_p3 = pmov %p3305_p2 }
  0xc5   : > { %p3307_p6 = pmov %p3305_p2 }
  0xc6   : > { %2652 = vsyncadd (%p3306_p3), [#allocation5], 4294967264 }
  0xc7   : > { %2654 = dma.done.wait (%p3307_p6), [#allocation8], 48   ;;  %p3308_p5 = pmov %p3305_p2 }
  0xc8   : > { %p3309_p8 = pmov %p3305_p2 }
  0xc9   : > { %2656 = vsyncadd (%p3308_p5), [#allocation8], 4294967248 }
  0xca   : > { %2658 = dma.done.wait (%p3309_p8), [#allocation11], 32   ;;  %p3310_p9 = pmov %p3305_p2 }
  0xcb   : > { %v2674_v0 = vmov 0   ;;  %v2345_v1 = vld [vmem:[%s3276_s1 + $0x4] ss:$12 sps:$4 sm:$0xff]   ;;  %v2347_v2 = vld [vmem:[%s3276_s1] ss:$12 sps:$4 sm:$0xff]   ;;  %p518_p10 = scmp.lt.s32.totalorder %s2756_s28, 1  ;;  %v562_v19 = vlaneseq }
  0xcc   : > { %2660 = vsyncadd (%p3310_p9), [#allocation11], 4294967264  ;;  %737 = vmatprep.mubr.bf16.mxu0 %v2674_v0  ;;  %705 = vmatprep.subr.bf16.mxu0 %v2345_v1  ;;  %v2348_v3 = vld [vmem:[%s3276_s1 + $0x1c] ss:$12 sps:$4 sm:$0xff]   ;;  %v2350_v4 = vld [vmem:[%s3276_s1 + $0x18] ss:$12 sps:$4 sm:$0xff]  }
  0xcd   : > { %706 = vmatpush1.bf16.msra.mxu0 %v2347_v2  ;;  %v2351_v5 = vld [vmem:[%s3276_s1 + $0x34] ss:$12 sps:$4 sm:$0xff]   ;;  %v2353_v6 = vld [vmem:[%s3276_s1 + $0x30] ss:$12 sps:$4 sm:$0xff]   ;;  %v2354_v7 = vld [vmem:[%s3276_s1 + $0x4c] ss:$12 sps:$4 sm:$0xff]  }
  0xce   : > { %707 = vmatprep.subr.bf16.mxu0 %v2348_v3  ;;  %v2356_v8 = vld [vmem:[%s3276_s1 + $0x48] ss:$12 sps:$4 sm:$0xff]   ;;  %s3313_s28 = smov (!%p518_p10, %s2756_s28), 1  ;;  %v2357_v9 = vld [vmem:[%s3276_s1 + $0x64] ss:$12 sps:$4 sm:$0xff]   ;;  %v2675_v18 = vmov 0.0  }
  0xcf   : > { %v2359_v10 = vld [vmem:[%s3276_s1 + $0x60] ss:$12 sps:$4 sm:$0xff]   ;;  %v2360_v11 = vld [vmem:[%s3276_s1 + $0x7c] ss:$12 sps:$4 sm:$0xff]   ;;  %v2362_v12 = vld [vmem:[%s3276_s1 + $0x78] ss:$12 sps:$4 sm:$0xff]   ;;  %2158 = vmatprep.subr.bf16.mxu1 %v2675_v18 }
  0xd0   : > { %v2363_v13 = vld [vmem:[%s3276_s1 + $0x94] ss:$12 sps:$4 sm:$0xff]   ;;  %v2365_v14 = vld [vmem:[%s3276_s1 + $0x90] ss:$12 sps:$4 sm:$0xff]   ;;  %v2366_v15 = vld [vmem:[%s3276_s1 + $0xac] ss:$12 sps:$4 sm:$0xff]  }
  0xd1   : > { %708 = vmatpush1.bf16.msra.mxu0 %v2350_v4  ;;  %s2013_s11 = sshll.u32 %s3313_s28, 2  ;;  %v2368_v16 = vld [vmem:[%s3276_s1 + $0xa8] ss:$12 sps:$4 sm:$0xff]   ;;  %vm2676_vm0 = vmmov 0   ;;  %v3021_v20 = vshrl.u32 %v562_v19, 7  ;;  %vm805_vm1 = vcmask 261120  }
  0xd2   : > { %709 = vmatprep.subr.bf16.mxu0 %v2351_v5  ;;  %s521_s24 = scalar_lea.vmem %s3275_s0, %s2013_s11  ;;  %2174 = vmatprep.mubr.msk.bf16.mxu1 %vm2676_vm0, %v2675_v18  ;;  %v3027_v22 = vld [vmem:[%s3277_s2] sm:$0x7]  ;;  %s2677_s29 = smov 96   ;;  %v2369_v35 = vld [vmem:[%s3276_s1 + $0x8] ss:$12 sps:$4 sm:$0xff]   ;;  %vm853_vm2 = vcmask 64512  }
  0xd3   : > { %v3012_v17 = vld [vmem:[%s521_s24] sm:$0xf]  ;;  %v568_v21 = vsub.s32 1, %v3021_v20  ;;  %v564_v23 = vsub.s32 0, %v3021_v20  ;;  %2159 = vmatpush3.bf16.msra.mxu1 %v2369_v35  ;;  %v2371_v37 = vld [vmem:[%s3276_s1 + $0x38] ss:$12 sps:$4 sm:$0xff]   ;;  %s525_s24 = scalar_lea.vmem %s3288_s13, %s2013_s11 }
  0xd4   : > { %v2370_v36 = vld [vmem:[%s3276_s1 + $0x20] ss:$12 sps:$4 sm:$0xff]   ;;  %2160 = vmatprep.subr.bf16.mxu1 %v2675_v18  ;;  %v2372_v38 = vld [vmem:[%s3276_s1 + $0x50] ss:$12 sps:$4 sm:$0xff]   ;;  %v2373_v39 = vld [vmem:[%s3276_s1 + $0x68] ss:$12 sps:$4 sm:$0xff]  }
  0xd5   : > { %710 = vmatpush1.bf16.msra.mxu0 %v2353_v6  ;;  %v569_v24 = vrot.slane %v3027_v22, %v568_v21  ;;  %v565_v25 = vrot.slane %v3027_v22, %v564_v23  ;;  %v2374_v40 = vld [vmem:[%s3276_s1 + $0x80] ss:$12 sps:$4 sm:$0xff]   ;;  %v2375_v43 = vld [vmem:[%s3276_s1 + $0x98] ss:$12 sps:$4 sm:$0xff]   ;;  %v2376_v44 = vld [vmem:[%s3276_s1 + $0xb0] ss:$12 sps:$4 sm:$0xff]  }
  0xd6   : > { %711 = vmatprep.subr.bf16.mxu0 %v2354_v7  ;;  %v572_v4 = vsub.s32 2, %v3021_v20  ;;  %s2678_s18 = smov 64   ;;  %vm869_vm3 = vcmask 1043456  }
  0xd7   : > { %2161 = vmatpush3.bf16.msra.mxu1 %v2370_v36 }
  0xd8   : > { %2162 = vmatprep.subr.bf16.mxu1 %v2675_v18  ;;  %v573_v5 = vrot.slane %v3027_v22, %v572_v4  ;;  %v2379_v22 = vld [vmem:[#allocation2 + $0x10] sm:$0xff]  }
  0xd9   : > { %712 = vmatpush1.bf16.msra.mxu0 %v2356_v8 }
  0xda   : > { %713 = vmatprep.subr.bf16.mxu0 %v2357_v9 }
  0xdb   : > { %2163 = vmatpush3.bf16.msra.mxu1 %v2371_v37 }
  0xdc   : > { %2164 = vmatprep.subr.bf16.mxu1 %v2675_v18 }
  0xdd   : > { %714 = vmatpush1.bf16.msra.mxu0 %v2359_v10 }
  0xde   : > { %715 = vmatprep.subr.bf16.mxu0 %v2360_v11 }
  0xdf   : > { %2165 = vmatpush3.bf16.msra.mxu1 %v2372_v38 }
  0xe0   : > { %2166 = vmatprep.subr.bf16.mxu1 %v2675_v18 }
  0xe1   : > { %716 = vmatpush1.bf16.msra.mxu0 %v2362_v12 }
  0xe2   : > { %717 = vmatprep.subr.bf16.mxu0 %v2363_v13 }
  0xe3   : > { %2167 = vmatpush3.bf16.msra.mxu1 %v2373_v39 }
  0xe4   : > { %2168 = vmatprep.subr.bf16.mxu1 %v2675_v18 }
  0xe5   : > { %718 = vmatpush1.bf16.msra.mxu0 %v2365_v14 }
  0xe6   : > { %719 = vmatprep.subr.bf16.mxu0 %v2366_v15 }
  0xe7   : > { %2169 = vmatpush3.bf16.msra.mxu1 %v2374_v40 }
  0xe8   : > { %2170 = vmatprep.subr.bf16.mxu1 %v2675_v18 }
  0xe9   : > { %720 = vmatpush1.bf16.msra.mxu0 %v2368_v16 }
  0xea   : > { %2178 = vmatprep.subr.bf16.mxu0 %v2675_v18 }
  0xeb   : > { %2171 = vmatpush3.bf16.msra.mxu1 %v2375_v43 }
  0xec   : > { %738 = vmatmul.mubr.bf16.vlgmr.msra.gmra.mrb[0].mxu0 %v3012_v17  ;;  %2172 = vmatprep.subr.bf16.mxu1 %v2675_v18 }
  0xed   : > { %2180 = vmatprep.mubr.msk.bf16.mxu0 %vm2676_vm0, %v2675_v18 }
  0xef   : > { %2173 = vmatpush3.bf16.msra.mxu1 %v2376_v44 }
  0xf0   : > { %2184 = vmatprep.subr.bf16.mxu1 %v2675_v18 }
  0xf2   : > { %2175 = vmatmul.mubr.bf16.vlgmr.msra.gmra.mrb[0].mxu1 %v3012_v17 }
  0xf3   : > { %2186 = vmatprep.mubr.msk.bf16.mxu1 %vm2676_vm0, %v2675_v18 }
 0x1bf   : > { %v739_v26 = vpop.f32.mrb[0].mxu0 }
 0x1c0   : > { %v741_v27 = vpop.f32.mrb[1].mxu0  ;;  %v740_v31 = vadd.f32 %v739_v26, %v565_v25 }
 0x1c1   : > { %v742_v28 = vadd.f32 %v741_v27, %v569_v24  ;;  %v743_v29 = vpop.f32.mrb[2].mxu0  ;;  %v2380_v24 = vld [vmem:[#allocation2 + $0x18] sm:$0xff]  }
 0x1c2   : > { %v744_v30 = vpop.f32.mrb[3].mxu0  ;;  %v3042_v34 = vpack.c.bf16 %v740_v31, %v740_v31 }
 0x1c3   : > { %v3036_v32 = vpack.c.bf16 %v742_v28, %v742_v28  ;;  %v2377_v30 = vld [vmem:[#allocation2] sm:$0xff]  }
 0x1c5   : > { %918 = vrot.lane.b32.xlu0 %v3036_v32, %s2677_s29  ;;  %v810_v33 = vsel %vm805_vm1, %v3036_v32, 0  ;;  %v780_v61 = vpop.f32.mrb[0].mxu1 }
 0x1c6   : > { %2179 = vmatpush3.bf16.xpose.msra.mxu0 %v810_v33  ;;  %v2176_v62 = vpop.f32.mrb[1].mxu1  ;;  %v781_v6 = vadd.f32 %v780_v61, %v573_v5  ;;  %v2378_v33 = vld [vmem:[#allocation2 + $0x8] sm:$0xff]  }
 0x1c7   : > { %2190 = vmatprep.subr.bf16.mxu0 %v2675_v18  ;;  %v783_v63 = vpop.f32.mrb[2].mxu1 }
 0x1c8   : > { %v2177_v1 = vpop.f32.mrb[3].mxu1  ;;  %v3096_v7 = vpack.c.bf16 %v781_v6, %v781_v6 }
 0x1c9   : > { %915 = vrot.lane.b32.xlu0 %v3042_v34, %s2677_s29 }
 0x1ca   : > { %v871_v8 = vsel %vm869_vm3, %v3096_v7, 0 }
 0x1cb   : > { %2185 = vmatpush3.bf16.msra.mxu1 %v871_v8  ;;  %v2381_v8 = vld [vmem:[#allocation2 + $0x20] sm:$0xff]  }
 0x1cc   : > { %2196 = vmatprep.subr.bf16.mxu1 %v2675_v18 }
 0x1cd   : > { %2181 = vmatmul.mubr.msk.bf16.vlgmr.msra.gmra.mrb[4].mxu0 %vm805_vm1, %v3042_v34 }
 0x1ce   : > { %2192 = vmatprep.mubr.msk.bf16.mxu0 %vm2676_vm0, %v2675_v18 }
 0x237   : > { %v919_v41 = vpop.permute.xlu0 %918 }
 0x238   : > { %v924_v42 = vsel %vm805_vm1, %v919_v41, 0 }
 0x239   : > { %2191 = vmatpush3.bf16.xpose.msra.mxu0 %v924_v42 }
 0x23a   : > { %2202 = vmatprep.subr.bf16.mxu0 %v2675_v18 }
 0x23b   : > { %v916_v45 = vpop.permute.xlu0 %915 }
 0x240   : > { %2193 = vmatmul.mubr.msk.bf16.vlgmr.msra.gmra.mrb[8].mxu0 %vm805_vm1, %v916_v45 }
 0x241   : > { %2206 = vmatprep.mubr.msk.bf16.mxu0 %vm2676_vm0, %v2675_v18  ;;  %2203 = vmatpush3.bf16.msra.mxu0 %v2379_v22 }
 0x242   : > { %2204 = vmatprep.subr.bf16.mxu0 %v2675_v18 }
 0x245   : > { %2205 = vmatpush3.bf16.msra.mxu0 %v2380_v24 }
 0x246   : > { %2218 = vmatprep.subr.bf16.mxu0 %v2675_v18 }
 0x2a0   : > { %v846_v46 = vpop.f32.mrb[4].mxu0 }
 0x2a1   : > { %v852_v47 = vmul.f32 0.17677669, %v846_v46  ;;  %v2182_v48 = vpop.f32.mrb[5].mxu0 }
 0x2a2   : > { %v849_v49 = vpop.f32.mrb[6].mxu0 }
 0x2a3   : > { %v2183_v50 = vpop.f32.mrb[7].mxu0  ;;  %v854_v51 = vsel %vm853_vm2, %v852_v47, -inf }
 0x2a4   : > { %855 = vmax.xlane.f32.xlu1 %v854_v51 }
 0x313   : > { %v960_v52 = vpop.f32.mrb[8].mxu0 }
 0x314   : > { %v966_v53 = vmul.f32 0.17677669, %v960_v52  ;;  %v2194_v54 = vpop.f32.mrb[9].mxu0 }
 0x315   : > { %v963_v55 = vpop.f32.mrb[10].mxu0 }
 0x316   : > { %v2195_v56 = vpop.f32.mrb[11].mxu0  ;;  %v967_v57 = vsel %vm853_vm2, %v966_v53, -inf }
 0x317   : > { %968 = vmax.xlane.f32.xlu1 %v967_v57 }
 0x331   : > { %v856_v58 = vpop.xlane.xlu1 %855 }
 0x332   : > { %v857_v59 = vsub.f32 %v852_v47, %v856_v58 }
 0x334   : > { %v858_v60 = vmul.f32 1.442695, %v857_v59 }
 0x336   : > { %2425 = vpow2.f32 %v858_v60 }
 0x340   : > { %v2426_v2 = vpop.eup %2425 }
 0x341   : > { %v860_v3 = vsel %vm853_vm2, %v2426_v2, 0.0 }
 0x342   : > { %861 = vadd.xlane.f32.xlu0 %v860_v3 }
 0x358   : > { %1202 = vrot.lane.b32.xlu0 %v3096_v7, %s2678_s18 }
 0x3a4   : > { %v969_v9 = vpop.xlane.xlu1 %968 }
 0x3a5   : > { %v970_v10 = vsub.f32 %v966_v53, %v969_v9 }
 0x3a7   : > { %v971_v11 = vmul.f32 1.442695, %v970_v10 }
 0x3a9   : > { %2427 = vpow2.f32 %v971_v11 }
 0x3b3   : > { %v2428_v12 = vpop.eup %2427 }
 0x3b4   : > { %v973_v13 = vsel %vm853_vm2, %v2428_v12, 0.0 }
 0x3b5   : > { %974 = vadd.xlane.f32.xlu1 %v973_v13 }
 0x3c6   : > { %980 = vrot.lane.b32.xlu1 %v3096_v7, %s2677_s29  ;;  %s2679_s29 = smov 32  }
 0x3ca   : > { %1141 = vrot.lane.b32.xlu1 %v3036_v32, %s2678_s18 }
 0x3ce   : > { %1139 = vrot.lane.b32.xlu1 %v3042_v34, %s2678_s18 }
 0x3cf   : > { %v862_v14 = vpop.xlane.xlu0 %861 }
 0x3d0   : > { %2429 = vrcp.f32 %v862_v14 }
 0x3d3   : > { %v1203_v35 = vpop.permute.xlu0 %1202 }
 0x3d4   : > { %v1208_v40 = vsel %vm869_vm3, %v1203_v35, 0 }
 0x3da   : > { %v2430_v15 = vpop.eup %2429 }
 0x3db   : > { %v864_v16 = vmul.f32 %v2430_v15, %v2426_v2 }
 0x3dd   : > { %v865_v19 = vpack.c.bf16 %v864_v16, %v864_v16 }
 0x3df   : > { %2187 = vmatmul.mubr.msk.bf16.vlgmr.msra.gmra.mrb[4].mxu1 %vm853_vm2, %v865_v19 }
 0x3e0   : > { %2198 = vmatprep.mubr.msk.bf16.mxu1 %vm2676_vm0, %v2675_v18 }
 0x442   : > { %v975_v25 = vpop.xlane.xlu1 %974 }
 0x443   : > { %2431 = vrcp.f32 %v975_v25 }
 0x446   : > { %v981_v26 = vpop.permute.xlu1 %980 }
 0x447   : > { %v986_v27 = vsel %vm869_vm3, %v981_v26, 0 }
 0x448   : > { %2197 = vmatpush3.bf16.msra.mxu1 %v986_v27 }
 0x449   : > { %2210 = vmatprep.subr.bf16.mxu1 %v2675_v18 }
 0x44a   : > { %v1142_v42 = vpop.permute.xlu1 %1141 }
 0x44b   : > { %v1147_v47 = vsel %vm805_vm1, %v1142_v42, 0 }
 0x44d   : > { %v2432_v28 = vpop.eup %2431 }
 0x44e   : > { %v977_v29 = vmul.f32 %v2432_v28, %v2428_v12  ;;  %v1140_v49 = vpop.permute.xlu1 %1139 }
 0x450   : > { %v978_v31 = vpack.c.bf16 %v977_v29, %v977_v29 }
 0x452   : > { %2199 = vmatmul.mubr.msk.bf16.vlgmr.msra.gmra.mrb[8].mxu1 %vm853_vm2, %v978_v31 }
 0x453   : > { %2211 = vmatpush3.bf16.msra.mxu1 %v2377_v30  ;;  %2214 = vmatprep.mubr.msk.bf16.mxu1 %vm2676_vm0, %v2675_v18 }
 0x454   : > { %2212 = vmatprep.subr.bf16.mxu1 %v2675_v18 }
 0x457   : > { %2213 = vmatpush3.bf16.msra.mxu1 %v2378_v33 }
 0x458   : > { %2224 = vmatprep.subr.bf16.mxu1 %v2675_v18 }
 0x4b2   : > { %v907_v36 = vpop.f32.mrb[4].mxu1 }
 0x4b3   : > { %v913_v37 = vpack.c.bf16 %v907_v36, %v907_v36  ;;  %v2188_v38 = vpop.f32.mrb[5].mxu1 }
 0x4b4   : > { %v910_v39 = vpop.f32.mrb[6].mxu1  ;;  %v2383_v38 = vld [vmem:[#allocation2 + $0x30] sm:$0xff]  }
 0x4b5   : > { %v2189_v41 = vpop.f32.mrb[7].mxu1  ;;  %2215 = vmatmul.mubr.msk.bf16.vlgmr.msra.gmra.mrb[12].mxu1 %vm805_vm1, %v913_v37 }
 0x4b6   : > { %2225 = vmatpush3.bf16.msra.mxu1 %v1208_v40  ;;  %2226 = vmatprep.mubr.msk.bf16.mxu1 %vm2676_vm0, %v2675_v18 }
 0x4b7   : > { %2238 = vmatprep.subr.bf16.mxu1 %v2675_v18 }
 0x525   : > { %v1022_v43 = vpop.f32.mrb[8].mxu1 }
 0x526   : > { %v1028_v44 = vpack.c.bf16 %v1022_v43, %v1022_v43  ;;  %v2200_v45 = vpop.f32.mrb[9].mxu1 }
 0x527   : > { %v1025_v46 = vpop.f32.mrb[10].mxu1 }
 0x528   : > { %v2201_v48 = vpop.f32.mrb[11].mxu1  ;;  %2207 = vmatmul.mubr.msk.bf16.vlgmr.msra.gmra.mrb[12].mxu0 %vm805_vm1, %v1028_v44 }
 0x529   : > { %2219 = vmatpush3.bf16.xpose.msra.mxu0 %v1147_v47  ;;  %2220 = vmatprep.mubr.msk.bf16.mxu0 %vm2676_vm0, %v2675_v18 }
 0x52a   : > { %2230 = vmatprep.subr.bf16.mxu0 %v2675_v18 }
 0x530   : > { %2221 = vmatmul.mubr.msk.bf16.vlgmr.msra.gmra.mrb[16].mxu0 %vm805_vm1, %v1140_v49 }
 0x531   : > { %2234 = vmatprep.mubr.msk.bf16.mxu0 %vm2676_vm0, %v2675_v18  ;;  %2231 = vmatpush3.bf16.msra.mxu0 %v2381_v8 }
 0x532   : > { %2232 = vmatprep.subr.bf16.mxu0 %v2675_v18 }
 0x588   : > { %v1133_v50 = vpop.f32.mrb[12].mxu1 }
 0x589   : > { %v2216_v51 = vpop.f32.mrb[13].mxu1 }
 0x58a   : > { %v1136_v52 = vpop.f32.mrb[14].mxu1 }
 0x58b   : > { %v2217_v53 = vpop.f32.mrb[15].mxu1 }
 0x5fb   : > { %v1078_v54 = vpop.f32.mrb[12].mxu0 }
 0x5fc   : > { %v3132_v55 = vadd.f32 %v1133_v50, %v1078_v54  ;;  %v2208_v56 = vpop.f32.mrb[13].mxu0 }
 0x5fd   : > { %v1081_v57 = vpop.f32.mrb[14].mxu0 }
 0x5fe   : > { %v2209_v58 = vpop.f32.mrb[15].mxu0 }
 0x5ff   : > { %v1483_v58 = vunpack.c.l.bf16 %v3012_v17  ;;  %v2388_v17 = vld [vmem:[%s3282_s7 + $0x10] ss:$8 sps:$4 sm:$0xff]  }
 0x603   : > { %v1183_v59 = vpop.f32.mrb[16].mxu0 }
 0x604   : > { %v1189_v60 = vmul.f32 0.17677669, %v1183_v59  ;;  %v2222_v61 = vpop.f32.mrb[17].mxu0 }
 0x605   : > { %v1186_v62 = vpop.f32.mrb[18].mxu0 }
 0x606   : > { %v2223_v63 = vpop.f32.mrb[19].mxu0  ;;  %v1190_v1 = vsel %vm853_vm2, %v1189_v60, -inf  ;;  %v2385_v62 = vld [vmem:[%s3282_s7] ss:$8 sps:$4 sm:$0xff]  }
 0x607   : > { %1191 = vmax.xlane.f32.xlu1 %v1190_v1  ;;  %v2387_v63 = vld [vmem:[%s3282_s7 + $0x4] ss:$8 sps:$4 sm:$0xff]   ;;  %v2390_v1 = vld [vmem:[%s3282_s7 + $0x14] ss:$8 sps:$4 sm:$0xff]  }
 0x694   : > { %v1192_v2 = vpop.xlane.xlu1 %1191 }
 0x695   : > { %v1193_v3 = vsub.f32 %v1189_v60, %v1192_v2  ;;  %v2393_v2 = vld [vmem:[%s3282_s7 + $0x24] ss:$8 sps:$4 sm:$0xff]  }
 0x697   : > { %v1194_v4 = vmul.f32 1.442695, %v1193_v3  ;;  %v2391_v3 = vld [vmem:[%s3282_s7 + $0x20] ss:$8 sps:$4 sm:$0xff]  }
 0x699   : > { %2433 = vpow2.f32 %v1194_v4 }
 0x6a3   : > { %v2434_v5 = vpop.eup %2433 }
 0x6a4   : > { %v1196_v6 = vsel %vm853_vm2, %v2434_v5, 0.0 }
 0x6a5   : > { %1197 = vadd.xlane.f32.xlu0 %v1196_v6 }
 0x6bb   : > { %1309 = vrot.lane.b32.xlu0 %v3036_v32, %s2679_s29 }
 0x6bf   : > { %1307 = vrot.lane.b32.xlu0 %v3042_v34, %s2679_s29  ;;  %v2382_v34 = vld [vmem:[#allocation2 + $0x28] sm:$0xff]  }
 0x6c0   : > { %2233 = vmatpush3.bf16.msra.mxu0 %v2382_v34  ;;  %v2403_v34 = vld [vmem:[%s3282_s7 + $0x60] ss:$8 sps:$4 sm:$0xff]  }
 0x6c1   : > { %2244 = vmatprep.subr.bf16.mxu0 %v2675_v18 }
 0x732   : > { %v1198_v9 = vpop.xlane.xlu0 %1197 }
 0x733   : > { %2435 = vrcp.f32 %v1198_v9  ;;  %v2396_v9 = vld [vmem:[%s3282_s7 + $0x34] ss:$8 sps:$4 sm:$0xff]  }
 0x736   : > { %v1310_v12 = vpop.permute.xlu0 %1309 }
 0x737   : > { %v1315_v14 = vsel %vm805_vm1, %v1310_v12, 0  ;;  %v2397_v12 = vld [vmem:[%s3282_s7 + $0x40] ss:$8 sps:$4 sm:$0xff]  }
 0x73a   : > { %v1308_v32 = vpop.permute.xlu0 %1307 }
 0x73d   : > { %v2436_v10 = vpop.eup %2435 }
 0x73e   : > { %v1200_v11 = vmul.f32 %v2436_v10, %v2434_v5  ;;  %v2394_v10 = vld [vmem:[%s3282_s7 + $0x30] ss:$8 sps:$4 sm:$0xff]  }
 0x740   : > { %v1201_v13 = vpack.c.bf16 %v1200_v11, %v1200_v11  ;;  %v2399_v11 = vld [vmem:[%s3282_s7 + $0x44] ss:$8 sps:$4 sm:$0xff]  }
 0x742   : > { %2227 = vmatmul.mubr.msk.bf16.vlgmr.msra.gmra.mrb[16].mxu1 %vm853_vm2, %v1201_v13  ;;  %v2402_v13 = vld [vmem:[%s3282_s7 + $0x54] ss:$8 sps:$4 sm:$0xff]  }
 0x743   : > { %2239 = vmatpush3.bf16.xpose.msra.mxu1 %v1315_v14  ;;  %2240 = vmatprep.mubr.msk.bf16.mxu1 %vm2676_vm0, %v2675_v18  ;;  %v2400_v14 = vld [vmem:[%s3282_s7 + $0x50] ss:$8 sps:$4 sm:$0xff]  }
 0x744   : > { %2250 = vmatprep.subr.bf16.mxu1 %v2675_v18 }
 0x74a   : > { %2241 = vmatmul.mubr.msk.bf16.vlgmr.msra.gmra.mrb[20].mxu1 %vm805_vm1, %v1308_v32  ;;  %v2405_v32 = vld [vmem:[%s3282_s7 + $0x64] ss:$8 sps:$4 sm:$0xff]  }
 0x74b   : > { %2254 = vmatprep.mubr.msk.bf16.mxu1 %vm2676_vm0, %v2675_v18  ;;  %2251 = vmatpush3.bf16.msra.mxu1 %v2383_v38 }
 0x74c   : > { %2252 = vmatprep.subr.bf16.mxu1 %v2675_v18 }
 0x815   : > { %v1244_v15 = vpop.f32.mrb[16].mxu1 }
 0x816   : > { %v1250_v16 = vpack.c.bf16 %v1244_v15, %v1244_v15  ;;  %v2228_v19 = vpop.f32.mrb[17].mxu1  ;;  %v2408_v15 = vld [vmem:[%s3282_s7 + $0x74] ss:$8 sps:$4 sm:$0xff]  }
 0x817   : > { %v1247_v22 = vpop.f32.mrb[18].mxu1  ;;  %v2409_v19 = vld [vmem:[%s3284_s9 + $0x40] sm:$0xff]  }
 0x818   : > { %v2229_v24 = vpop.f32.mrb[19].mxu1  ;;  %2235 = vmatmul.mubr.msk.bf16.vlgmr.msra.gmra.mrb[20].mxu0 %vm805_vm1, %v1250_v16  ;;  %v2406_v16 = vld [vmem:[%s3282_s7 + $0x70] ss:$8 sps:$4 sm:$0xff]   ;;  %v2410_v22 = vld [vmem:[%s3284_s9] sm:$0xff]  }
 0x819   : > { %2246 = vmatprep.mubr.msk.bf16.mxu0 %vm2676_vm0, %v2675_v18  ;;  %v2384_v18 = vld [vmem:[#allocation2 + $0x38] sm:$0xff]   ;;  %v2411_v24 = vld [vmem:[%s3284_s9 + $0x48] sm:$0xff]  }
 0x81a   : > { %2253 = vmatpush3.bf16.msra.mxu1 %v2384_v18  ;;  %v1530_v18 = vld [vmem:[#allocation7] sm:$0x3] }
 0x81b   : > { %2136 = vmatprep.subr.bf16.mxu1 %v2409_v19 }
 0x81d   : > { %v1351_v25 = vpop.f32.mrb[20].mxu1 }
 0x81e   : > { %v1357_v26 = vmul.f32 0.17677669, %v1351_v25  ;;  %v2242_v27 = vpop.f32.mrb[21].mxu1  ;;  %v2412_v25 = vld [vmem:[%s3284_s9 + $0x8] sm:$0xff]  }
 0x81f   : > { %v1354_v28 = vpop.f32.mrb[22].mxu1  ;;  %v2414_v27 = vld [vmem:[%s3284_s9 + $0x10] sm:$0xff]  }
 0x820   : > { %v2243_v29 = vpop.f32.mrb[23].mxu1  ;;  %v1358_v30 = vsel %vm853_vm2, %v1357_v26, -inf  ;;  %v2415_v28 = vld [vmem:[%s3284_s9 + $0x58] sm:$0xff]  }
 0x821   : > { %1359 = vmax.xlane.f32.xlu0 %v1358_v30  ;;  %v2416_v29 = vld [vmem:[%s3284_s9 + $0x18] sm:$0xff]   ;;  %v2417_v30 = vld [vmem:[%s3284_s9 + $0x60] sm:$0xff]  }
 0x8ae   : > { %v1360_v31 = vpop.xlane.xlu0 %1359 }
 0x8af   : > { %v1361_v33 = vsub.f32 %v1357_v26, %v1360_v31  ;;  %v2413_v26 = vld [vmem:[%s3284_s9 + $0x50] sm:$0xff]   ;;  %v2418_v31 = vld [vmem:[%s3284_s9 + $0x20] sm:$0xff]  }
 0x8b1   : > { %v1362_v35 = vmul.f32 1.442695, %v1361_v33  ;;  %v2419_v33 = vld [vmem:[%s3284_s9 + $0x68] sm:$0xff]  }
 0x8b3   : > { %2437 = vpow2.f32 %v1362_v35  ;;  %v2420_v35 = vld [vmem:[%s3284_s9 + $0x28] sm:$0xff]  }
 0x8bd   : > { %v2438_v36 = vpop.eup %2437 }
 0x8be   : > { %v1364_v37 = vsel %vm853_vm2, %v2438_v36, 0.0 }
 0x8bf   : > { %1365 = vadd.xlane.f32.xlu1 %v1364_v37 }
 0x8d0   : > { %1370 = vrot.lane.b32.xlu1 %v3096_v7, %s2679_s29 }
 0x8eb   : > { %v1300_v39 = vpop.f32.mrb[20].mxu0 }
 0x8ec   : > { %v1306_v40 = vadd.f32 %v1300_v39, %v3132_v55  ;;  %v2236_v41 = vpop.f32.mrb[21].mxu0  ;;  %v2059_v55 = vld [vmem:[%s3279_s4] ss:$0 sm:$0xff] }
 0x8ed   : > { %v1303_v42 = vpop.f32.mrb[22].mxu0 }
 0x8ee   : > { %v2237_v43 = vpop.f32.mrb[23].mxu0  ;;  %v2061_v42 = vld [vmem:[#allocation6] ss:$0 sm:$0xff] }
 0x94c   : > { %v1366_v44 = vpop.xlane.xlu1 %1365 }
 0x94d   : > { %2439 = vrcp.f32 %v1366_v44 }
 0x950   : > { %v1371_v45 = vpop.permute.xlu1 %1370 }
 0x951   : > { %v1376_v46 = vsel %vm869_vm3, %v1371_v45, 0 }
 0x952   : > { %2245 = vmatpush3.bf16.msra.mxu0 %v1376_v46  ;;  %v2421_v46 = vld [vmem:[%s3284_s9 + $0x70] sm:$0xff]  }
 0x953   : > { %1655 = vmatprep.subr.bf16.mxu0 %v2387_v63 }
 0x957   : > { %v2440_v47 = vpop.eup %2439 }
 0x958   : > { %v1368_v48 = vmul.f32 %v2440_v47, %v2438_v36  ;;  %v2422_v47 = vld [vmem:[%s3284_s9 + $0x30] sm:$0xff]  }
 0x95a   : > { %v1369_v49 = vpack.c.bf16 %v1368_v48, %v1368_v48  ;;  %v2423_v48 = vld [vmem:[%s3284_s9 + $0x78] sm:$0xff]  }
 0x95c   : > { %2247 = vmatmul.mubr.msk.bf16.vlgmr.msra.gmra.mrb[24].mxu0 %vm853_vm2, %v1369_v49  ;;  %v2424_v49 = vld [vmem:[%s3284_s9 + $0x38] sm:$0xff]  }
 0x95d   : > { %1687 = vmatprep.mubr.bf16.mxu0 %v2674_v0  ;;  %1656 = vmatpush1.bf16.msra.mxu0 %v2385_v62 }
 0x95e   : > { %1657 = vmatprep.subr.bf16.mxu0 %v2390_v1 }
 0x961   : > { %1658 = vmatpush1.bf16.msra.mxu0 %v2388_v17 }
 0x962   : > { %1659 = vmatprep.subr.bf16.mxu0 %v2393_v2 }
 0x965   : > { %1660 = vmatpush1.bf16.msra.mxu0 %v2391_v3 }
 0x966   : > { %1661 = vmatprep.subr.bf16.mxu0 %v2396_v9 }
 0x969   : > { %1662 = vmatpush1.bf16.msra.mxu0 %v2394_v10  ;;  %v2095_v10 = vld [vmem:[#allocation10] ss:$0 sm:$0xff] }
 0x96a   : > { %1663 = vmatprep.subr.bf16.mxu0 %v2399_v11 }
 0x96d   : > { %1664 = vmatpush1.bf16.msra.mxu0 %v2397_v12  ;;  %v2096_v12 = vld [vmem:[#allocation12] ss:$0 sm:$0xff] }
 0x96e   : > { %1665 = vmatprep.subr.bf16.mxu0 %v2402_v13 }
 0x971   : > { %1666 = vmatpush1.bf16.msra.mxu0 %v2400_v14 }
 0x972   : > { %1667 = vmatprep.subr.bf16.mxu0 %v2405_v32 }
 0x975   : > { %1668 = vmatpush1.bf16.msra.mxu0 %v2403_v34 }
 0x976   : > { %1669 = vmatprep.subr.bf16.mxu0 %v2408_v15 }
 0x979   : > { %1670 = vmatpush1.bf16.msra.mxu0 %v2406_v16 }
 0xa2f   : > { %v1412_v7 = vpop.f32.mrb[24].mxu0 }
 0xa30   : > { %v1418_v50 = vpack.c.bf16 %v1412_v7, %v1412_v7  ;;  %v2248_v51 = vpop.f32.mrb[25].mxu0  ;;  %v1568_v7 = vrot.slane %v1530_v18, %v564_v23 }
 0xa31   : > { %v1415_v52 = vpop.f32.mrb[26].mxu0 }
 0xa32   : > { %v2249_v53 = vpop.f32.mrb[27].mxu0  ;;  %2255 = vmatmul.mubr.msk.bf16.vlgmr.msra.gmra.mrb[24].mxu1 %vm805_vm1, %v1418_v50  ;;  %v1572_v50 = vrot.slane %v1530_v18, %v568_v21 }
 0xa33   : > { %2137 = vmatpush3.bf16.msra.mxu1 %v2410_v22 }
 0xa34   : > { %2138 = vmatprep.subr.bf16.mxu1 %v2411_v24 }
 0xa37   : > { %2139 = vmatpush3.bf16.msra.mxu1 %v2412_v25 }
 0xa38   : > { %2140 = vmatprep.subr.bf16.mxu1 %v2413_v26 }
 0xa3b   : > { %2141 = vmatpush3.bf16.msra.mxu1 %v2414_v27 }
 0xa3c   : > { %2142 = vmatprep.subr.bf16.mxu1 %v2415_v28 }
 0xa3f   : > { %2143 = vmatpush3.bf16.msra.mxu1 %v2416_v29 }
 0xa40   : > { %2144 = vmatprep.subr.bf16.mxu1 %v2417_v30 }
 0xa43   : > { %2145 = vmatpush3.bf16.msra.mxu1 %v2418_v31 }
 0xa44   : > { %2146 = vmatprep.subr.bf16.mxu1 %v2419_v33 }
 0xa47   : > { %2147 = vmatpush3.bf16.msra.mxu1 %v2420_v35 }
 0xa48   : > { %2148 = vmatprep.subr.bf16.mxu1 %v2421_v46 }
 0xa4b   : > { %2149 = vmatpush3.bf16.msra.mxu1 %v2422_v47 }
 0xa4c   : > { %2150 = vmatprep.subr.bf16.mxu1 %v2423_v48 }
 0xa4f   : > { %2151 = vmatpush3.bf16.msra.mxu1 %v2424_v49 }
 0xb05   : > { %v1468_v54 = vpop.f32.mrb[24].mxu1 }
 0xb06   : > { %v1474_v56 = vadd.f32 %v1468_v54, %v1306_v40  ;;  %v2256_v57 = vpop.f32.mrb[25].mxu1  ;;  %v2060_v40 = vld [vmem:[#allocation4] ss:$0 sm:$0xff] }
 0xb07   : > { %v1471_v59 = vpop.f32.mrb[26].mxu1 }
 0xb08   : > { %v1482_v0 = vadd.f32 %v2059_v55, %v1474_v56  ;;  %v2257_v60 = vpop.f32.mrb[27].mxu1 }
 0xb0a   : > { %v1486_v61 = vadd.f32 %v1483_v58, %v1482_v0 }
 0xb0c   : > { %1487 = vadd.xlane.f32.xlu1 %v1486_v61 }
 0xb99   : > { %v1488_v4 = vpop.xlane.xlu1 %1487 }
 0xb9a   : > { %v1490_v5 = vmul.f32 0.0078125, %v1488_v4 }
 0xb9c   : > { %v1491_v6 = vsub.f32 %v1486_v61, %v1490_v5  ;;  %v2078_v61 = vld [vmem:[#allocation9] ss:$0 sm:$0xff] }
 0xb9e   : > { %v1492_v8 = vmul.f32 %v1491_v6, %v1491_v6 }
 0xba0   : > { %1493 = vadd.xlane.f32.xlu0 %v1492_v8 }
 0xc2d   : > { %v1494_v36 = vpop.xlane.xlu0 %1493 }
 0xc2e   : > { %v1495_v37 = vmul.f32 0.0078125, %v1494_v36 }
 0xc30   : > { %v1496_v38 = vadd.f32 1e-05, %v1495_v37 }
 0xc32   : > { %2441 = vrsqrt.f32 %v1496_v38 }
 0xc3c   : > { %v2442_v39 = vpop.eup %2441 }
 0xc3d   : > { %v1498_v41 = vmul.f32 %v2442_v39, %v1491_v6 }
 0xc3f   : > { %v1505_v43 = vmul.f32 %v2060_v40, %v1498_v41 }
 0xc41   : > { %v1512_v44 = vadd.f32 %v2061_v42, %v1505_v43 }
 0xc43   : > { %v1513_v45 = vpack.c.bf16 %v1512_v44, %v1512_v44 }
 0xc45   : > { %1688 = vmatmul.mubr.bf16.vlgmr.msra.gmra.mrb[28].mxu0 %v1513_v45 }
 0xd18   : > { %v1689_v51 = vpop.f32.mrb[28].mxu0 }
 0xd19   : > { %v1690_v52 = vadd.f32 %v1689_v51, %v1568_v7  ;;  %v1691_v53 = vpop.f32.mrb[29].mxu0 }
 0xd1a   : > { %v1692_v54 = vadd.f32 %v1691_v53, %v1572_v50  ;;  %v1693_v55 = vpop.f32.mrb[30].mxu0 }
 0xd1b   : > { %v1696_v56 = vmax.f32 %v1690_v52, 0.0  ;;  %v1694_v57 = vpop.f32.mrb[31].mxu0 }
 0xd1c   : > { %v1697_v58 = vmax.f32 %v1692_v54, 0.0 }
 0xd1d   : > { %v1698_v0 = vpack.c.bf16 %v1696_v56, %v1696_v56 }
 0xd1e   : > { %v1699_v59 = vpack.c.bf16 %v1697_v58, %v1697_v58 }
 0xd20   : > { %1834 = vmatprep.mubr.bf16.mxu1 %v1699_v59 }
 0xd21   : > { %1835 = vmatmul.mubr.bf16.vlgmr.msra.gmra.mrb[28].mxu1 %v1698_v0 }
 0xdf4   : > { %v2152_v60 = vpop.f32.mrb[28].mxu1 }
 0xdf5   : > { %v2153_v62 = vpop.f32.mrb[29].mxu1 }
 0xdf6   : > { %v2154_v63 = vadd.f32 %v2153_v62, %v2152_v60  ;;  %v2155_v23 = vpop.f32.mrb[30].mxu1 }
 0xdf7   : > { %v2156_v1 = vpop.f32.mrb[31].mxu1 }
 0xdf8   : > { %v1837_v20 = vadd.f32 %v2154_v63, %v2078_v61 }
 0xdfa   : > { %v1844_v21 = vadd.f32 %v1837_v20, %v1512_v44 }
 0xdfc   : > { %1845 = vadd.xlane.f32.xlu0 %v1844_v21 }
 0xe89   : > { %v1846_v17 = vpop.xlane.xlu0 %1845 }
 0xe8a   : > { %v1847_v2 = vmul.f32 0.0078125, %v1846_v17 }
 0xe8c   : > { %v1848_v3 = vsub.f32 %v1844_v21, %v1847_v2 }
 0xe8e   : > { %v1849_v4 = vmul.f32 %v1848_v3, %v1848_v3 }
 0xe90   : > { %1850 = vadd.xlane.f32.xlu0 %v1849_v4 }
 0xf1d   : > { %v1851_v5 = vpop.xlane.xlu0 %1850 }
 0xf1e   : > { %v1852_v6 = vmul.f32 0.0078125, %v1851_v5 }
 0xf20   : > { %v1853_v8 = vadd.f32 1e-05, %v1852_v6 }
 0xf22   : > { %2443 = vrsqrt.f32 %v1853_v8 }
 0xf2c   : > { %v2444_v9 = vpop.eup %2443 }
 0xf2d   : > { %v1855_v11 = vmul.f32 %v2444_v9, %v1848_v3 }
 0xf2f   : > { %v1862_v13 = vmul.f32 %v2095_v10, %v1855_v11 }
 0xf31   : > { %v1869_v14 = vadd.f32 %v2096_v12, %v1862_v13 }
 0xf33   : > { %v1870_v32 = vpack.c.bf16 %v1869_v14, %v1869_v14 }
 0xf35   : > { %1871 = vst [vmem:[%s525_s24] sm:$0xf] %v1870_v32 }
 0xf36 PF: > { %s3311_s15 = sld [smem:[#allocation17_spill]] }
 0xf3c   : > { %s27_s25 = sadd.s32 1, %s3311_s15  }
 0xf3d   : > { %p24_p11 = scmp.ge.s32.totalorder %s27_s25, 4  }
 0xf3f   :  { %26 = sbr.rel (!%p24_p11) target bundleno = 8 (0x8), region = 131 }
 0xf46   :  { %1891 = vsyncpa [#allocation3], 1 }
 0xf47   :  { %1893 = vsyncpa [#allocation3 + $0x1], 1 }
 0xf48   :  { %1894 = vsyncpa [#allocation5], 1 }
 0xf49   :  { %1895 = vsyncpa [#allocation8], 1 }
 0xf4a   :  { %1896 = vsyncpa [#allocation11], 1 }

// kernel: forward.13
= control target key start
LH: loop header
LB: loop body
LE: loop exit
PB: predicated region body
PF: predicated region fallthrough
CT: control target
= control target key end

     0   :  { %s487_s12 = smov 0   ;;  %s563_s0 = inlined_call_operand.vmem [shape: bf16[16,128], index: 0, kind: input, shape index: {}]   ;;  %s564_s1 = inlined_call_operand.vmem [shape: bf16[128,256], index: 1, kind: input, shape index: {}]   ;;  %s565_s2 = inlined_call_operand.vmem [shape: f32[1,256], index: 2, kind: input, shape index: {}]   ;;  %s566_s3 = inlined_call_operand.vmem [shape: f32[16,256], index: 3, kind: output, shape index: {}]  }
   0x1 LB: > { %s392_s13 = sadd.s32 4294967295, %s464_s12   ;;  %p396_p0 = scmp.ge.s32.totalorder %s464_s12, 1  ;;  %s464_s12 = sphi %s487_s12, %s13_s12  }
   0x2   : > { %p136_p1 = scmp.lt.s32.totalorder %s464_s12, 3 }
   0x4   : > { %p137_p2 = pnand %p396_p0, %p136_p1 }
   0x5   : > { %v428_v0 = vld [vmem:[%s564_s1 + $0x4] ss:$8 sps:$4 sm:$0xff] (!%p137_p2)   ;;  %v430_v1 = vld [vmem:[%s564_s1] ss:$8 sps:$4 sm:$0xff] (!%p137_p2)   ;;  %v466_v2 = vmov (!%p137_p2), 0   ;;  %p159_p3 = scmp.lt.s32.totalorder (!%p137_p2), %s392_s13, 1  ;;  %v188_v18 = vlaneseq (!%p137_p2) }
   0x6   : > { %140 = sbr.rel (%p137_p2) target bundleno = 573 (0x23d), region = 32  ;;  %310 = vmatprep.mubr.bf16.mxu0 (!%p137_p2), %v466_v2  ;;  %278 = vmatprep.subr.bf16.mxu0 (!%p137_p2), %v428_v0  ;;  %v431_v3 = vld [vmem:[%s564_s1 + $0x14] ss:$8 sps:$4 sm:$0xff] (!%p137_p2)   ;;  %v433_v4 = vld [vmem:[%s564_s1 + $0x10] ss:$8 sps:$4 sm:$0xff] (!%p137_p2)  }
   0x7   : > { %279 = vmatpush1.bf16.msra.mxu0 (!%p137_p2), %v430_v1  ;;  %v434_v5 = vld [vmem:[%s564_s1 + $0x24] ss:$8 sps:$4 sm:$0xff] (!%p137_p2)   ;;  %v436_v6 = vld [vmem:[%s564_s1 + $0x20] ss:$8 sps:$4 sm:$0xff] (!%p137_p2)   ;;  %v437_v7 = vld [vmem:[%s564_s1 + $0x34] ss:$8 sps:$4 sm:$0xff] (!%p137_p2)  }
   0x8   : > { %280 = vmatprep.subr.bf16.mxu0 (!%p137_p2), %v431_v3  ;;  %v439_v8 = vld [vmem:[%s564_s1 + $0x30] ss:$8 sps:$4 sm:$0xff] (!%p137_p2)   ;;  %v440_v9 = vld [vmem:[%s564_s1 + $0x44] ss:$8 sps:$4 sm:$0xff] (!%p137_p2)   ;;  %v442_v10 = vld [vmem:[%s564_s1 + $0x40] ss:$8 sps:$4 sm:$0xff] (!%p137_p2)  }
   0x9   : > { %v443_v11 = vld [vmem:[%s564_s1 + $0x54] ss:$8 sps:$4 sm:$0xff] (!%p137_p2)   ;;  %v445_v12 = vld [vmem:[%s564_s1 + $0x50] ss:$8 sps:$4 sm:$0xff] (!%p137_p2)   ;;  %v446_v13 = vld [vmem:[%s564_s1 + $0x64] ss:$8 sps:$4 sm:$0xff] (!%p137_p2)  }
   0xa   : > { %v448_v14 = vld [vmem:[%s564_s1 + $0x60] ss:$8 sps:$4 sm:$0xff] (!%p137_p2)   ;;  %v449_v15 = vld [vmem:[%s564_s1 + $0x74] ss:$8 sps:$4 sm:$0xff] (!%p137_p2)   ;;  %v451_v16 = vld [vmem:[%s564_s1 + $0x70] ss:$8 sps:$4 sm:$0xff] (!%p137_p2)  }
   0xb   : > { %281 = vmatpush1.bf16.msra.mxu0 (!%p137_p2), %v433_v4  ;;  %v189_v19 = vshrl.u32 (!%p137_p2), %v188_v18, 7  ;;  %v186_v21 = vld [vmem:[%s565_s2] sm:$0x3] (!%p137_p2) }
   0xc   : > { %282 = vmatprep.subr.bf16.mxu0 (!%p137_p2), %v434_v5 }
   0xd   : > { %s568_s13 = smov (!%p159_p3, %s392_s13), 1  ;;  %v190_v20 = vsub.s32 0, %v189_v19  ;;  %v194_v22 = vsub.s32 1, %v189_v19 }
   0xe   : > { %s397_s19 = sshll.u32 %s568_s13, 2  ;;  %s418_s27 = sshll.u32 %s568_s13, 4 }
   0xf   : > { %283 = vmatpush1.bf16.msra.mxu0 %v436_v6  ;;  %s162_s24 = scalar_lea.vmem %s563_s0, %s397_s19  ;;  %v191_v23 = vrot.slane %v186_v21, %v190_v20  ;;  %v195_v24 = vrot.slane %v186_v21, %v194_v22  ;;  %s167_s30 = scalar_lea.vmem %s566_s3, %s418_s27 }
  0x10   : > { %284 = vmatprep.subr.bf16.mxu0 %v437_v7  ;;  %v169_v17 = vld [vmem:[%s162_s24] sm:$0xf] }
  0x13   : > { %285 = vmatpush1.bf16.msra.mxu0 %v439_v8 }
  0x14   : > { %286 = vmatprep.subr.bf16.mxu0 %v440_v9 }
  0x17   : > { %287 = vmatpush1.bf16.msra.mxu0 %v442_v10 }
  0x18   : > { %288 = vmatprep.subr.bf16.mxu0 %v443_v11 }
  0x1b   : > { %289 = vmatpush1.bf16.msra.mxu0 %v445_v12 }
  0x1c   : > { %290 = vmatprep.subr.bf16.mxu0 %v446_v13 }
  0x1f   : > { %291 = vmatpush1.bf16.msra.mxu0 %v448_v14 }
  0x20   : > { %292 = vmatprep.subr.bf16.mxu0 %v449_v15 }
  0x23   : > { %293 = vmatpush1.bf16.msra.mxu0 %v451_v16 }
  0x26   : > { %311 = vmatmul.mubr.bf16.vlgmr.msra.gmra.mrb[0].mxu0 %v169_v17 }
  0xf9   : > { %v312_v25 = vpop.f32.mrb[0].mxu0 }
  0xfa   : > { %v313_v26 = vadd.f32 %v312_v25, %v191_v23  ;;  %v314_v27 = vpop.f32.mrb[1].mxu0 }
  0xfb   : > { %v315_v28 = vadd.f32 %v314_v27, %v195_v24  ;;  %v316_v29 = vpop.f32.mrb[2].mxu0 }
  0xfc   : > { %v317_v30 = vpop.f32.mrb[3].mxu0 }
  0xfd   : > { %v319_v31 = vmax.f32 %v313_v26, %v315_v28 }
  0xff   : > { %320 = vmax.xlane.f32.xlu0 %v319_v31 }
 0x18c   : > { %v321_v32 = vpop.xlane.xlu0 %320 }
 0x18d   : > { %v322_v33 = vsub.f32 %v313_v26, %v321_v32  ;;  %v323_v34 = vsub.f32 %v315_v28, %v321_v32 }
 0x18f   : > { %v324_v35 = vmul.f32 1.442695, %v322_v33  ;;  %v326_v36 = vmul.f32 1.442695, %v323_v34 }
 0x191   : > { %452 = vpow2.f32 %v324_v35 }
 0x192   : > { %454 = vpow2.f32 %v326_v36 }
 0x19b   : > { %v453_v37 = vpop.eup %452 }
 0x19c   : > { %v455_v38 = vpop.eup %454 }
 0x19d   : > { %v328_v39 = vadd.f32 %v455_v38, %v453_v37 }
 0x19f   : > { %329 = vadd.xlane.f32.xlu0 %v328_v39 }
 0x22c   : > { %v330_v40 = vpop.xlane.xlu0 %329 }
 0x22d   : > { %456 = vlog2.f32 %v330_v40 }
 0x237   : > { %v457_v41 = vpop.eup %456 }
 0x238   : > { %v332_v42 = vmul.f32 0.6931472, %v457_v41 }
 0x23a   : > { %v333_v43 = vsub.f32 %v322_v33, %v332_v42  ;;  %v334_v44 = vsub.f32 %v323_v34, %v332_v42 }
 0x23c   : > { %335 = vst [vmem:[%s167_s30] sm:$0xff] %v333_v43  ;;  %336 = vst [vmem:[%s167_s30 + $0x8] sm:$0xff] %v334_v44 }
 0x23d PF: > { %s13_s12 = sadd.s32 1, %s464_s12  }
 0x23e   : > { %p10_p4 = scmp.ge.s32.totalorder %s13_s12, 4  }
 0x240   :  { %12 = sbr.rel (!%p10_p4) target bundleno = 1 (0x1), region = 62 }

// kernel: forward.11
= control target key start
LH: loop header
LB: loop body
LE: loop exit
PB: predicated region body
PF: predicated region fallthrough
CT: control target
= control target key end

     0   :  { %s5577_s0 = inlined_call_operand.vmem [shape: bf16[2,8,128], index: 0, kind: input, shape index: {}]   ;;  %s5578_s1 = inlined_call_operand.vmem [shape: bf16[2,8,128], index: 1, kind: input, shape index: {}]   ;;  %s5579_s2 = inlined_call_operand.vmem [shape: bf16[128,384], index: 2, kind: input, shape index: {}]   ;;  %s5580_s3 = inlined_call_operand.hbm [shape: f32[1,384], index: 3, kind: input, shape index: {}]   ;;  %s5581_s4 = inlined_call_operand.vmem [shape: bf16[128,128], index: 4, kind: input, shape index: {}]   ;;  %s5582_s5 = inlined_call_operand.hbm [shape: f32[1,128], index: 5, kind: input, shape index: {}]   ;;  %s5583_s6 = inlined_call_operand.hbm [shape: f32[1,128], index: 6, kind: input, shape index: {}]   ;;  %s5584_s7 = inlined_call_operand.hbm [shape: f32[1,128], index: 7, kind: input, shape index: {}]   ;;  %s5585_s8 = inlined_call_operand.vmem [shape: bf16[128,128], index: 8, kind: input, shape index: {}]   ;;  %s5586_s9 = inlined_call_operand.hbm [shape: f32[1,128], index: 9, kind: input, shape index: {}]   ;;  %s5587_s10 = inlined_call_operand.vmem [shape: bf16[128,256], index: 10, kind: input, shape index: {}]   ;;  %s5588_s11 = inlined_call_operand.hbm [shape: f32[1,256], index: 11, kind: input, shape index: {}]   ;;  %s5589_s12 = inlined_call_operand.vmem [shape: bf16[128,128], index: 12, kind: input, shape index: {}]   ;;  %s5590_s13 = inlined_call_operand.hbm [shape: f32[1,128], index: 13, kind: input, shape index: {}]   ;;  %s5591_s14 = inlined_call_operand.hbm [shape: f32[1,128], index: 14, kind: input, shape index: {}]   ;;  %s5592_s15 = inlined_call_operand.hbm [shape: f32[1,128], index: 15, kind: input, shape index: {}]   ;;  %s5593_s16 = inlined_call_operand.vmem [shape: bf16[128,256], index: 16, kind: input, shape index: {}]   ;;  %s5594_s17 = inlined_call_operand.hbm [shape: f32[1,256], index: 17, kind: input, shape index: {}]   ;;  %s5595_s18 = inlined_call_operand.vmem [shape: bf16[256,128], index: 18, kind: input, shape index: {}]   ;;  %s5596_s19 = inlined_call_operand.hbm [shape: f32[1,128], index: 19, kind: input, shape index: {}]   ;;  %s5597_s20 = inlined_call_operand.hbm [shape: f32[1,128], index: 20, kind: input, shape index: {}]   ;;  %s5598_s21 = inlined_call_operand.hbm [shape: f32[1,128], index: 21, kind: input, shape index: {}]   ;;  %s5599_s22 = inlined_call_operand.vmem [shape: bf16[2,8,128], index: 22, kind: output, shape index: {}]  }
   0x1   :  { %5611 = sst [smem:[#allocation30_spill]] %s5577_s0 }
   0x2   :  { %5612 = sst [smem:[#allocation31_spill]] %s5578_s1 }
   0x3   :  { %5613 = sst [smem:[#allocation32_spill]] %s5579_s2 }
   0x4   :  { %5614 = sst [smem:[#allocation33_spill]] %s5580_s3 }
   0x5   :  { %5615 = sst [smem:[#allocation34_spill]] %s5581_s4 }
   0x6   :  { %5616 = sst [smem:[#allocation35_spill]] %s5582_s5 }
   0x7   :  { %5617 = sst [smem:[#allocation36_spill]] %s5583_s6 }
   0x8   :  { %5618 = sst [smem:[#allocation37_spill]] %s5584_s7 }
   0x9   :  { %5619 = sst [smem:[#allocation38_spill]] %s5593_s16 }
   0xa   :  { %5620 = sst [smem:[#allocation39_spill]] %s5595_s18 }
   0xb   :  { %5621 = sst [smem:[#allocation40_spill]] %s5599_s22 }
   0xc   :  { %27 = vsyncpa [#allocation3], 0 }
   0xd   :  { %28 = vsyncpa [#allocation5], 0 }
   0xe   :  { %29 = vsyncpa [#allocation8], 0 }
   0xf   :  { %30 = vsyncpa [#allocation11], 0 }
  0x10   :  { %31 = vsyncpa [#allocation14], 0 }
  0x11   :  { %32 = vsyncpa [#allocation17], 0 }
  0x12   :  { %33 = vsyncpa [#allocation20], 0  ;;  %s4689_s3 = smov 0  }
  0x13 LB: > { %5622 = sst [smem:[#allocation29_spill]] %s4553_s3  ;;  %s4555_s28 = smov [#allocation4]   ;;  %s4553_s3 = sphi %s4689_s3, %s39_s3  }
  0x14   : > { %s572_s29 = sshll.u32 %s4555_s28, 4  ;;  %s4695_s30 = sadd.s32 4294967295, %s4553_s3   ;;  %s4700_s29 = int_to_ptr.vmem [resolvable:$true] %s572_s29 }
  0x15   : > { %p3392_p0 = scmp.ge.s32.totalorder %s4553_s3, 1  ;;  %p542_p1 = scmp.lt.s32.totalorder %s4553_s3, 3 }
  0x16   : > { %p5608_p2 = scmp.eq.s32.totalorder %s4695_s30, 0  ;;  %s4556_s0 = smov [#allocation7]  }
  0x17   : > { %p4702_p3 = pnand %p3392_p0, %p542_p1  ;;  %s594_s23 = sshll.u32 %s4556_s0, 4  ;;  %s4708_s23 = int_to_ptr.vmem [resolvable:$true] %s594_s23 }
  0x18   : > { %s4557_s1 = smov [#allocation10]   ;;  %s4558_s6 = smov [#allocation13]  }
  0x19   : > { %s5623_s4 = scalar_select %p4702_p3, 1, 0 }
  0x1a   : > { %p3904_p4 = pneg %p4702_p3  ;;  %s622_s5 = sshll.u32 %s4557_s1, 4  ;;  %s4716_s5 = int_to_ptr.vmem [resolvable:$true] %s622_s5 }
  0x1b   : > { %s647_s25 = sshll.u32 %s4558_s6, 4  ;;  %s5625_s27 = sld [smem:[#allocation35_spill]]  ;;  %s4718_s25 = int_to_ptr.vmem [resolvable:$true] %s647_s25 }
  0x1c   : > { %p4712_p5 = pnand %p5608_p2, %p3904_p4 }
  0x1e   : > { %p4728_p7 = pneg %p4712_p5 }
  0x21   : > { %s4155_s28 = scalar_lea.hbm %s5625_s27, 16 }
  0x22   : > { %p4156_p6 = scmp.ne.s32.totalorder %s5625_s27, %s4155_s28  ;;  %p4162_p10 = scmp.lt.u32.totalorder %s4155_s28, %s5625_s27 }
  0x24   : > { %p4158_p8 = pnand %p4728_p7, %p4156_p6 }
  0x26   : > { %p4159_p9 = pneg %p4158_p8 }
  0x28   : > { %p4164_p11 = pnand %p4162_p10, %p4159_p9 }
  0x2a   : > { %4167 = shalt.err (!%p4164_p11)
}
  0x2b   : > { %s4168_s3 = scalar_lea.vmem %s4700_s29, 16  ;;  %s4175_s26 = scalar_lea.vmem %s4700_s29, 32 }
  0x2c   : > { %p4169_p12 = scmp.ne.s32.totalorder %s4700_s29, %s4168_s3  ;;  %p4176_p1 = scmp.lt.s32.totalorder %s4700_s29, %s4700_s29 }
  0x2d   : > { %p4177_p4 = scmp.lt.s32.totalorder %s4175_s26, %s4168_s3 }
  0x2e   : > { %p4171_p13 = pnand %p4169_p12, %p4728_p7 }
  0x2f   : > { %p4178_p6 = por %p4177_p4, %p4176_p1 }
  0x30   : > { %p4172_p0 = pneg %p4171_p13 }
  0x32   : > { %p4179_p8 = pnand %p4178_p6, %p4172_p0 }
  0x34   : > { %4182 = shalt.err (!%p4179_p8)
}
  0x35   : > { %3910 = dma.hbm_to_vmem [thread:$0]  (!%p4712_p5), %s5625_s27, 16, %s4700_s29, [#allocation5]  }
  0x36   : > { %s5627_s7 = sld [smem:[#allocation37_spill]] }
  0x3c   : > { %s4183_s6 = scalar_lea.hbm %s5627_s7, 16 }
  0x3d   : > { %p4184_p9 = scmp.ne.s32.totalorder %s5627_s7, %s4183_s6  ;;  %p4190_p12 = scmp.lt.u32.totalorder %s4183_s6, %s5627_s7 }
  0x3f   : > { %p4186_p10 = pnand %p4184_p9, %p4728_p7 }
  0x41   : > { %p4187_p11 = pneg %p4186_p10 }
  0x43   : > { %p4192_p13 = pnand %p4190_p12, %p4187_p11 }
  0x45   : > { %4195 = shalt.err (!%p4192_p13)
}
  0x46   : > { %s4196_s29 = scalar_lea.vmem %s4708_s23, 16  ;;  %s4203_s16 = scalar_lea.vmem %s4708_s23, 32 }
  0x47   : > { %p4197_p0 = scmp.ne.s32.totalorder %s4708_s23, %s4196_s29  ;;  %p4204_p6 = scmp.lt.s32.totalorder %s4708_s23, %s4708_s23 }
  0x48   : > { %p4205_p8 = scmp.lt.s32.totalorder %s4203_s16, %s4196_s29 }
  0x49   : > { %p4199_p1 = pnand %p4197_p0, %p4728_p7 }
  0x4a   : > { %p4206_p9 = por %p4205_p8, %p4204_p6 }
  0x4b   : > { %p4200_p4 = pneg %p4199_p1 }
  0x4d   : > { %p4207_p10 = pnand %p4206_p9, %p4200_p4 }
  0x4f   : > { %4210 = shalt.err (!%p4207_p10)
}
  0x50   : > { %3916 = dma.hbm_to_vmem [thread:$0]  (!%p4712_p5), %s5627_s7, 16, %s4708_s23, [#allocation8]  }
  0x51   : > { %s4211_s0 = scalar_lea.hbm %s5588_s11, 32 }
  0x52   : > { %p4212_p11 = scmp.ne.s32.totalorder %s5588_s11, %s4211_s0  ;;  %p4218_p0 = scmp.lt.u32.totalorder %s4211_s0, %s5588_s11 }
  0x54   : > { %p4214_p12 = pnand %p4212_p11, %p4728_p7 }
  0x56   : > { %p4215_p13 = pneg %p4214_p12 }
  0x58   : > { %p4220_p1 = pnand %p4218_p0, %p4215_p13 }
  0x5a   : > { %4223 = shalt.err (!%p4220_p1)
}
  0x5b   : > { %s4224_s23 = scalar_lea.vmem %s4716_s5, 32  ;;  %p4232_p9 = scmp.lt.s32.totalorder %s4716_s5, %s4716_s5 }
  0x5c   : > { %p4225_p4 = scmp.ne.s32.totalorder %s4716_s5, %s4224_s23  ;;  %p4233_p10 = scmp.lt.s32.totalorder %s4224_s23, %s4224_s23 }
  0x5e   : > { %p4227_p6 = pnand %p4225_p4, %p4728_p7  ;;  %p4234_p11 = por %p4233_p10, %p4232_p9 }
  0x60   : > { %p4228_p8 = pneg %p4227_p6 }
  0x62   : > { %p4235_p12 = pnand %p4234_p11, %p4228_p8 }
  0x64   : > { %4238 = shalt.err (!%p4235_p12)
}
  0x65   : > { %3922 = dma.hbm_to_vmem [thread:$0]  (!%p4712_p5), %s5588_s11, 32, %s4716_s5, [#allocation11]  }
  0x66   : > { %s4239_s28 = scalar_lea.hbm %s5591_s14, 16 }
  0x67   : > { %p4240_p13 = scmp.ne.s32.totalorder %s5591_s14, %s4239_s28  ;;  %p4246_p4 = scmp.lt.u32.totalorder %s4239_s28, %s5591_s14 }
  0x69   : > { %p4242_p0 = pnand %p4240_p13, %p4728_p7 }
  0x6b   : > { %p4243_p1 = pneg %p4242_p0 }
  0x6d   : > { %p4248_p6 = pnand %p4246_p4, %p4243_p1 }
  0x6f   : > { %4251 = shalt.err (!%p4248_p6)
}
  0x70   : > { %s4252_s5 = scalar_lea.vmem %s4718_s25, 16  ;;  %s4259_s29 = scalar_lea.vmem %s4718_s25, 32 }
  0x71   : > { %p4253_p8 = scmp.ne.s32.totalorder %s4718_s25, %s4252_s5  ;;  %p4260_p11 = scmp.lt.s32.totalorder %s4718_s25, %s4718_s25 }
  0x72   : > { %p4261_p12 = scmp.lt.s32.totalorder %s4259_s29, %s4252_s5 }
  0x73   : > { %p4255_p9 = pnand %p4253_p8, %p4728_p7 }
  0x74   : > { %p4262_p13 = por %p4261_p12, %p4260_p11 }
  0x75   : > { %p4256_p10 = pneg %p4255_p9 }
  0x77   : > { %p4263_p0 = pnand %p4262_p13, %p4256_p10 }
  0x79   : > { %4266 = shalt.err (!%p4263_p0)
}
  0x7a   : > { %3928 = dma.hbm_to_vmem [thread:$0]  (!%p4712_p5), %s5591_s14, 16, %s4718_s25, [#allocation14]  }
  0x7b   : > { %s4559_s18 = smov [#allocation16]   ;;  %s4560_s2 = smov [#allocation19]  }
  0x7c   : > { %s672_s22 = sshll.u32 %s4559_s18, 4  ;;  %s697_s28 = sshll.u32 %s4560_s2, 4  ;;  %s673_s22 = int_to_ptr.vmem [resolvable:$true] %s672_s22  ;;  %s698_s28 = int_to_ptr.vmem [resolvable:$true] %s697_s28 }
  0x7d   : > { %s4267_s3 = scalar_lea.hbm %s5594_s17, 32 }
  0x7e   : > { %p4268_p1 = scmp.ne.s32.totalorder %s5594_s17, %s4267_s3  ;;  %p4274_p8 = scmp.lt.u32.totalorder %s4267_s3, %s5594_s17 }
  0x80   : > { %p4270_p4 = pnand %p4268_p1, %p4728_p7 }
  0x82   : > { %p4271_p6 = pneg %p4270_p4 }
  0x84   : > { %p4276_p9 = pnand %p4274_p8, %p4271_p6 }
  0x86   : > { %4279 = shalt.err (!%p4276_p9)
}
  0x87   : > { %s4280_s25 = scalar_lea.vmem %s673_s22, 32  ;;  %p4288_p13 = scmp.lt.s32.totalorder %s673_s22, %s673_s22 }
  0x88   : > { %p4281_p10 = scmp.ne.s32.totalorder %s673_s22, %s4280_s25  ;;  %p4289_p0 = scmp.lt.s32.totalorder %s4280_s25, %s4280_s25 }
  0x8a   : > { %p4283_p11 = pnand %p4281_p10, %p4728_p7  ;;  %p4290_p2 = por %p4289_p0, %p4288_p13 }
  0x8c   : > { %p4284_p12 = pneg %p4283_p11 }
  0x8e   : > { %p4291_p3 = pnand %p4290_p2, %p4284_p12 }
  0x90   : > { %4294 = shalt.err (!%p4291_p3)
}
  0x91   : > { %3934 = dma.hbm_to_vmem [thread:$0]  (!%p4712_p5), %s5594_s17, 32, %s673_s22, [#allocation17]  }
  0x92   : > { %s4295_s6 = scalar_lea.hbm %s5597_s20, 16 }
  0x93   : > { %p4296_p1 = scmp.ne.s32.totalorder %s5597_s20, %s4295_s6  ;;  %p4302_p3 = scmp.lt.u32.totalorder %s4295_s6, %s5597_s20 }
  0x95   : > { %p4298_p4 = pnand %p4296_p1, %p4728_p7 }
  0x97   : > { %p4299_p2 = pneg %p4298_p4 }
  0x99   : > { %p4304_p6 = pnand %p4302_p3, %p4299_p2 }
  0x9b   : > { %4307 = shalt.err (!%p4304_p6)
}
  0x9c   : > { %s4308_s23 = scalar_lea.vmem %s698_s28, 16  ;;  %s4315_s22 = scalar_lea.vmem %s698_s28, 32 }
  0x9d   : > { %p4309_p8 = scmp.ne.s32.totalorder %s698_s28, %s4308_s23  ;;  %p4316_p11 = scmp.lt.s32.totalorder %s698_s28, %s698_s28 }
  0x9e   : > { %p4317_p12 = scmp.lt.s32.totalorder %s4315_s22, %s4308_s23 }
  0x9f   : > { %p4311_p9 = pnand %p4309_p8, %p4728_p7 }
  0xa0   : > { %p4318_p13 = por %p4317_p12, %p4316_p11 }
  0xa1   : > { %p4312_p10 = pneg %p4311_p9 }
  0xa3   : > { %p4319_p0 = pnand %p4318_p13, %p4312_p10 }
  0xa5   : > { %4322 = shalt.err (!%p4319_p0)
}
  0xa6   : > { %3940 = dma.hbm_to_vmem [thread:$0]  (!%p4712_p5), %s5597_s20, 16, %s698_s28, [#allocation20]  }
  0xa7   : > { %s4561_s18 = smov [#allocation2]   ;;  %s4562_s0 = smov [#allocation6]  }
  0xa8   : > { %s558_s2 = sshll.u32 %s4561_s18, 4  ;;  %s583_s6 = sshll.u32 %s4562_s0, 4  ;;  %s559_s2 = int_to_ptr.vmem [resolvable:$true] %s558_s2  ;;  %s584_s6 = int_to_ptr.vmem [resolvable:$true] %s583_s6 }
  0xa9   : > { %s5628_s5 = sld [smem:[#allocation33_spill]] }
  0xaf   : > { %s4323_s29 = scalar_lea.hbm %s5628_s5, 48 }
  0xb0   : > { %p4324_p1 = scmp.ne.s32.totalorder %s5628_s5, %s4323_s29  ;;  %p4330_p3 = scmp.lt.u32.totalorder %s4323_s29, %s5628_s5 }
  0xb2   : > { %p4326_p4 = pnand %p4324_p1, %p4728_p7 }
  0xb4   : > { %p4327_p2 = pneg %p4326_p4 }
  0xb6   : > { %p4332_p6 = pnand %p4330_p3, %p4327_p2 }
  0xb8   : > { %4335 = shalt.err (!%p4332_p6)
}
  0xb9   : > { %s4336_s28 = scalar_lea.vmem %s559_s2, 48  ;;  %s4343_s16 = scalar_lea.vmem %s559_s2, 64 }
  0xba   : > { %p4337_p8 = scmp.ne.s32.totalorder %s559_s2, %s4336_s28  ;;  %p4344_p11 = scmp.lt.s32.totalorder %s559_s2, %s559_s2 }
  0xbb   : > { %p4345_p12 = scmp.lt.s32.totalorder %s4343_s16, %s4336_s28 }
  0xbc   : > { %p4339_p9 = pnand %p4337_p8, %p4728_p7 }
  0xbd   : > { %p4346_p13 = por %p4345_p12, %p4344_p11 }
  0xbe   : > { %p4340_p10 = pneg %p4339_p9 }
  0xc0   : > { %p4347_p0 = pnand %p4346_p13, %p4340_p10 }
  0xc2   : > { %4350 = shalt.err (!%p4347_p0)
}
  0xc3   : > { %3907 = dma.hbm_to_vmem [thread:$0]  (!%p4712_p5), %s5628_s5, 48, %s559_s2, [#allocation3]  }
  0xc4   : > { %s5629_s26 = sld [smem:[#allocation36_spill]] }
  0xca   : > { %s4351_s29 = scalar_lea.hbm %s5629_s26, 16 }
  0xcb   : > { %p4352_p1 = scmp.ne.s32.totalorder %s5629_s26, %s4351_s29  ;;  %p4358_p3 = scmp.lt.u32.totalorder %s4351_s29, %s5629_s26 }
  0xcd   : > { %p4354_p4 = pnand %p4352_p1, %p4728_p7 }
  0xcf   : > { %p4355_p2 = pneg %p4354_p4 }
  0xd1   : > { %p4360_p6 = pnand %p4358_p3, %p4355_p2 }
  0xd3   : > { %4363 = shalt.err (!%p4360_p6)
}
  0xd4   : > { %s4364_s16 = scalar_lea.vmem %s584_s6, 16  ;;  %s4371_s2 = scalar_lea.vmem %s584_s6, 32 }
  0xd5   : > { %p4365_p8 = scmp.ne.s32.totalorder %s584_s6, %s4364_s16  ;;  %p4372_p11 = scmp.lt.s32.totalorder %s584_s6, %s584_s6 }
  0xd6   : > { %p4373_p12 = scmp.lt.s32.totalorder %s4371_s2, %s4364_s16 }
  0xd7   : > { %p4367_p9 = pnand %p4365_p8, %p4728_p7 }
  0xd8   : > { %p4374_p13 = por %p4373_p12, %p4372_p11 }
  0xd9   : > { %p4368_p10 = pneg %p4367_p9 }
  0xdb   : > { %p4375_p0 = pnand %p4374_p13, %p4368_p10 }
  0xdd   : > { %4378 = shalt.err (!%p4375_p0)
}
  0xde   : > { %3913 = dma.hbm_to_vmem [thread:$0]  (!%p4712_p5), %s5629_s26, 16, %s584_s6, [#allocation5]  }
  0xdf   : > { %s4563_s7 = smov [#allocation9]   ;;  %s4564_s29 = smov [#allocation12]  }
  0xe0   : > { %s608_s3 = sshll.u32 %s4563_s7, 4  ;;  %s636_s23 = sshll.u32 %s4564_s29, 4  ;;  %s609_s3 = int_to_ptr.vmem [resolvable:$true] %s608_s3  ;;  %s637_s23 = int_to_ptr.vmem [resolvable:$true] %s636_s23 }
  0xe1   : > { %s4379_s28 = scalar_lea.hbm %s5586_s9, 16 }
  0xe2   : > { %p4380_p1 = scmp.ne.s32.totalorder %s5586_s9, %s4379_s28  ;;  %p4386_p3 = scmp.lt.u32.totalorder %s4379_s28, %s5586_s9 }
  0xe4   : > { %p4382_p4 = pnand %p4380_p1, %p4728_p7 }
  0xe6   : > { %p4383_p2 = pneg %p4382_p4 }
  0xe8   : > { %p4388_p6 = pnand %p4386_p3, %p4383_p2 }
  0xea   : > { %4391 = shalt.err (!%p4388_p6)
}
  0xeb   : > { %s4392_s6 = scalar_lea.vmem %s609_s3, 16  ;;  %s4399_s0 = scalar_lea.vmem %s609_s3, 32 }
  0xec   : > { %p4393_p8 = scmp.ne.s32.totalorder %s609_s3, %s4392_s6  ;;  %p4400_p11 = scmp.lt.s32.totalorder %s609_s3, %s609_s3 }
  0xed   : > { %p4401_p12 = scmp.lt.s32.totalorder %s4399_s0, %s4392_s6 }
  0xee   : > { %p4395_p9 = pnand %p4393_p8, %p4728_p7 }
  0xef   : > { %p4402_p13 = por %p4401_p12, %p4400_p11 }
  0xf0   : > { %p4396_p10 = pneg %p4395_p9 }
  0xf2   : > { %p4403_p0 = pnand %p4402_p13, %p4396_p10 }
  0xf4   : > { %4406 = shalt.err (!%p4403_p0)
}
  0xf5   : > { %3919 = dma.hbm_to_vmem [thread:$0]  (!%p4712_p5), %s5586_s9, 16, %s609_s3, [#allocation8]  }
  0xf6   : > { %s4407_s25 = scalar_lea.hbm %s5590_s13, 16 }
  0xf7   : > { %p4408_p1 = scmp.ne.s32.totalorder %s5590_s13, %s4407_s25  ;;  %p4414_p3 = scmp.lt.u32.totalorder %s4407_s25, %s5590_s13 }
  0xf9   : > { %p4410_p4 = pnand %p4408_p1, %p4728_p7 }
  0xfb   : > { %p4411_p2 = pneg %p4410_p4 }
  0xfd   : > { %p4416_p6 = pnand %p4414_p3, %p4411_p2 }
  0xff   : > { %4419 = shalt.err (!%p4416_p6)
}
 0x100   : > { %s4420_s6 = scalar_lea.vmem %s637_s23, 16  ;;  %s4427_s3 = scalar_lea.vmem %s637_s23, 32 }
 0x101   : > { %p4421_p8 = scmp.ne.s32.totalorder %s637_s23, %s4420_s6  ;;  %p4428_p11 = scmp.lt.s32.totalorder %s637_s23, %s637_s23 }
 0x102   : > { %p4429_p12 = scmp.lt.s32.totalorder %s4427_s3, %s4420_s6 }
 0x103   : > { %p4423_p9 = pnand %p4421_p8, %p4728_p7 }
 0x104   : > { %p4430_p13 = por %p4429_p12, %p4428_p11 }
 0x105   : > { %p4424_p10 = pneg %p4423_p9 }
 0x107   : > { %p4431_p0 = pnand %p4430_p13, %p4424_p10 }
 0x109   : > { %4434 = shalt.err (!%p4431_p0)
}
 0x10a   : > { %3925 = dma.hbm_to_vmem [thread:$0]  (!%p4712_p5), %s5590_s13, 16, %s637_s23, [#allocation11]  }
 0x10b   : > { %s4565_s29 = smov [#allocation15]   ;;  %s4566_s22 = smov [#allocation18]  }
 0x10c   : > { %s658_s5 = sshll.u32 %s4565_s29, 4  ;;  %s686_s25 = sshll.u32 %s4566_s22, 4  ;;  %s659_s5 = int_to_ptr.vmem [resolvable:$true] %s658_s5  ;;  %s687_s25 = int_to_ptr.vmem [resolvable:$true] %s686_s25 }
 0x10d   : > { %s4435_s2 = scalar_lea.hbm %s5592_s15, 16 }
 0x10e   : > { %p4436_p1 = scmp.ne.s32.totalorder %s5592_s15, %s4435_s2  ;;  %p4442_p3 = scmp.lt.u32.totalorder %s4435_s2, %s5592_s15 }
 0x110   : > { %p4438_p4 = pnand %p4436_p1, %p4728_p7 }
 0x112   : > { %p4439_p2 = pneg %p4438_p4 }
 0x114   : > { %p4444_p6 = pnand %p4442_p3, %p4439_p2 }
 0x116   : > { %4447 = shalt.err (!%p4444_p6)
}
 0x117   : > { %s4448_s23 = scalar_lea.vmem %s659_s5, 16  ;;  %s4455_s7 = scalar_lea.vmem %s659_s5, 32 }
 0x118   : > { %p4449_p8 = scmp.ne.s32.totalorder %s659_s5, %s4448_s23  ;;  %p4456_p11 = scmp.lt.s32.totalorder %s659_s5, %s659_s5 }
 0x119   : > { %p4457_p12 = scmp.lt.s32.totalorder %s4455_s7, %s4448_s23 }
 0x11a   : > { %p4451_p9 = pnand %p4449_p8, %p4728_p7 }
 0x11b   : > { %p4458_p13 = por %p4457_p12, %p4456_p11 }
 0x11c   : > { %p4452_p10 = pneg %p4451_p9 }
 0x11e   : > { %p4459_p0 = pnand %p4458_p13, %p4452_p10 }
 0x120   : > { %4462 = shalt.err (!%p4459_p0)
}
 0x121   : > { %3931 = dma.hbm_to_vmem [thread:$0]  (!%p4712_p5), %s5592_s15, 16, %s659_s5, [#allocation14]  }
 0x122   : > { %s4463_s2 = scalar_lea.hbm %s5596_s19, 16 }
 0x123   : > { %p4464_p1 = scmp.ne.s32.totalorder %s5596_s19, %s4463_s2  ;;  %p4470_p3 = scmp.lt.u32.totalorder %s4463_s2, %s5596_s19 }
 0x125   : > { %p4466_p4 = pnand %p4464_p1, %p4728_p7 }
 0x127   : > { %p4467_p2 = pneg %p4466_p4 }
 0x129   : > { %p4472_p6 = pnand %p4470_p3, %p4467_p2 }
 0x12b   : > { %4475 = shalt.err (!%p4472_p6)
}
 0x12c   : > { %s4476_s23 = scalar_lea.vmem %s687_s25, 16  ;;  %s4483_s5 = scalar_lea.vmem %s687_s25, 32 }
 0x12d   : > { %p4477_p8 = scmp.ne.s32.totalorder %s687_s25, %s4476_s23  ;;  %p4484_p11 = scmp.lt.s32.totalorder %s687_s25, %s687_s25 }
 0x12e   : > { %p4485_p12 = scmp.lt.s32.totalorder %s4483_s5, %s4476_s23 }
 0x12f   : > { %p4479_p9 = pnand %p4477_p8, %p4728_p7 }
 0x130   : > { %p4486_p13 = por %p4485_p12, %p4484_p11 }
 0x131   : > { %p4480_p10 = pneg %p4479_p9 }
 0x133   : > { %p4487_p0 = pnand %p4486_p13, %p4480_p10 }
 0x135   : > { %4490 = shalt.err (!%p4487_p0)
}
 0x136   : > { %3937 = dma.hbm_to_vmem [thread:$0]  (!%p4712_p5), %s5596_s19, 16, %s687_s25, [#allocation17]  }
 0x137   : > { %s4567_s22 = smov [#allocation21]   ;;  %s4491_s18 = scalar_lea.hbm %s5598_s21, 16 }
 0x138   : > { %s708_s28 = sshll.u32 %s4567_s22, 4  ;;  %p4492_p1 = scmp.ne.s32.totalorder %s5598_s21, %s4491_s18  ;;  %s709_s28 = int_to_ptr.vmem [resolvable:$true] %s708_s28 }
 0x139   : > { %p4498_p3 = scmp.lt.u32.totalorder %s4491_s18, %s5598_s21 }
 0x13a   : > { %p4494_p4 = pnand %p4492_p1, %p4728_p7 }
 0x13c   : > { %p4495_p2 = pneg %p4494_p4 }
 0x13e   : > { %p4500_p6 = pnand %p4498_p3, %p4495_p2 }
 0x140   : > { %4503 = shalt.err (!%p4500_p6)
}
 0x141   : > { %s4504_s25 = scalar_lea.vmem %s709_s28, 16  ;;  %s4511_s5 = scalar_lea.vmem %s709_s28, 32 }
 0x142   : > { %p4505_p8 = scmp.ne.s32.totalorder %s709_s28, %s4504_s25  ;;  %p4512_p11 = scmp.lt.s32.totalorder %s709_s28, %s709_s28 }
 0x143   : > { %p4513_p12 = scmp.lt.s32.totalorder %s4511_s5, %s4504_s25 }
 0x144   : > { %p4507_p9 = pnand %p4505_p8, %p4728_p7 }
 0x145   : > { %p4514_p13 = por %p4513_p12, %p4512_p11 }
 0x146   : > { %p4508_p10 = pneg %p4507_p9 }
 0x148   : > { %p4515_p0 = pnand %p4514_p13, %p4508_p10 }
 0x14a   : > { %4518 = shalt.err (!%p4515_p0)
}
 0x14b   : > { %3943 = dma.hbm_to_vmem [thread:$0]  (!%p4712_p5), %s5598_s21, 16, %s709_s28, [#allocation20]  }
 0x14c   : > { %p5630_p1 = scmp.ne.s32.totalorder %s5623_s4, 0 }
 0x14d   : > { %p5631_p4 = scmp.eq.s32.totalorder (!%p5630_p1), %s4695_s30, 0 }
 0x14e   : > { %735 = sbr.rel (%p5630_p1) target bundleno = 6959 (0x1b2f), region = 108 }
 0x155   : > { %4524 = dma.done.wait (%p5631_p4), [#allocation3], 48   ;;  %p5632_p7 = pmov %p5631_p4 }
 0x156   : > { %p5633_p2 = pmov %p5631_p4 }
 0x157   : > { %4526 = vsyncadd (%p5632_p7), [#allocation3], 4294967248 }
 0x158   : > { %4528 = dma.done.wait (%p5633_p2), [#allocation5], 32   ;;  %p5634_p3 = pmov %p5633_p2 }
 0x159   : > { %p5635_p6 = pmov %p5633_p2 }
 0x15a   : > { %4530 = vsyncadd (%p5634_p3), [#allocation5], 4294967264 }
 0x15b   : > { %4532 = dma.done.wait (%p5635_p6), [#allocation8], 32   ;;  %p5636_p5 = pmov %p5633_p2 }
 0x15c   : > { %p5637_p8 = pmov %p5633_p2 }
 0x15d   : > { %4534 = vsyncadd (%p5636_p5), [#allocation8], 4294967264 }
 0x15e   : > { %4536 = dma.done.wait (%p5637_p8), [#allocation11], 48   ;;  %p5638_p9 = pmov %p5633_p2 }
 0x15f   : > { %p5639_p10 = pmov %p5633_p2 }
 0x160   : > { %4538 = vsyncadd (%p5638_p9), [#allocation11], 4294967248 }
 0x161   : > { %4540 = dma.done.wait (%p5639_p10), [#allocation14], 32   ;;  %p5640_p11 = pmov %p5633_p2 }
 0x162   : > { %p5641_p12 = pmov %p5633_p2 }
 0x163   : > { %4542 = vsyncadd (%p5640_p11), [#allocation14], 4294967264 }
 0x164   : > { %4544 = dma.done.wait (%p5641_p12), [#allocation17], 48   ;;  %p5642_p13 = pmov %p5633_p2 }
 0x165   : > { %p5643_p0 = pmov %p5633_p2 }
 0x166   : > { %4546 = vsyncadd (%p5642_p13), [#allocation17], 4294967248 }
 0x167   : > { %4548 = dma.done.wait (%p5643_p0), [#allocation20], 32   ;;  %p5644_p1 = pmov %p5643_p0 }
 0x168   : > { %v4568_v0 = vmov 0   ;;  %s5645_s1 = sld [smem:[#allocation32_spill]]  ;;  %p847_p4 = scmp.lt.s32.totalorder %s4695_s30, 1  ;;  %v4569_v18 = vmov 0.0   ;;  %vm4570_vm0 = vmmov 0   ;;  %v896_v19 = vlaneseq }
 0x169   : > { %4550 = vsyncadd (%p5644_p1), [#allocation20], 4294967264  ;;  %1071 = vmatprep.mubr.bf16.mxu0 %v4568_v0  ;;  %s5646_s2 = sld [smem:[#allocation30_spill]]  ;;  %3652 = vmatprep.subr.bf16.mxu1 %v4569_v18  ;;  %v5084_v22 = vld [vmem:[#allocation2] sm:$0x7]  ;;  %vm1145_vm1 = vcmask 261120  }
 0x16a   : > { %s5654_s30 = smov (!%p847_p4, %s4695_s30), 1  ;;  %3668 = vmatprep.mubr.msk.bf16.mxu1 %vm4570_vm0, %v4569_v18  ;;  %v5079_v20 = vshrl.u32 %v896_v19, 7  ;;  %v1142_v46 = vand.u32 127, %v896_v19  ;;  %vm1194_vm3 = vcmask 64512   ;;  %s4572_s0 = smov 64   ;;  %vm1210_vm4 = vcmask 1043456  }
 0x16b   : > { %s5061_s4 = sshll.u32 %s5654_s30, 2  ;;  %s4571_s30 = smov 96  }
 0x16c   : > { %v5082_v21 = vsub.s32 1, %v5079_v20  ;;  %v5087_v23 = vsub.s32 0, %v5079_v20  ;;  %vm1143_vm2 = vcmp.gt.s32.totalorder %v1142_v46, %v5079_v20  ;;  %s5647_s5 = sld [smem:[#allocation34_spill]]  ;;  %s5648_s16 = sld [smem:[#allocation31_spill]] }
 0x16d   : > { %v5150_v48 = vsel %vm1143_vm2, -1e+09, %v4569_v18  ;;  %s5649_s22 = sld [smem:[#allocation38_spill]]  ;;  %s5650_s23 = sld [smem:[#allocation39_spill]] }
 0x16e   : > { %v3997_v1 = vld [vmem:[%s5645_s1 + $0x4] ss:$12 sps:$4 sm:$0xff]   ;;  %v3999_v2 = vld [vmem:[%s5645_s1] ss:$12 sps:$4 sm:$0xff]   ;;  %v4000_v3 = vld [vmem:[%s5645_s1 + $0x1c] ss:$12 sps:$4 sm:$0xff]   ;;  %v903_v24 = vrot.slane %v5084_v22, %v5082_v21  ;;  %v899_v25 = vrot.slane %v5084_v22, %v5087_v23 }
 0x16f   : > { %1039 = vmatprep.subr.bf16.mxu0 %v3997_v1  ;;  %v4002_v4 = vld [vmem:[%s5645_s1 + $0x18] ss:$12 sps:$4 sm:$0xff]   ;;  %v4003_v5 = vld [vmem:[%s5645_s1 + $0x34] ss:$12 sps:$4 sm:$0xff]   ;;  %v4005_v6 = vld [vmem:[%s5645_s1 + $0x30] ss:$12 sps:$4 sm:$0xff]   ;;  %s850_s18 = scalar_lea.vmem %s5646_s2, %s5061_s4 }
 0x170   : > { %1040 = vmatpush1.bf16.msra.mxu0 %v3999_v2  ;;  %v4006_v7 = vld [vmem:[%s5645_s1 + $0x4c] ss:$12 sps:$4 sm:$0xff]   ;;  %v4008_v8 = vld [vmem:[%s5645_s1 + $0x48] ss:$12 sps:$4 sm:$0xff]   ;;  %v4009_v9 = vld [vmem:[%s5645_s1 + $0x64] ss:$12 sps:$4 sm:$0xff]  }
 0x171   : > { %1041 = vmatprep.subr.bf16.mxu0 %v4000_v3  ;;  %v4011_v10 = vld [vmem:[%s5645_s1 + $0x60] ss:$12 sps:$4 sm:$0xff]   ;;  %v4012_v11 = vld [vmem:[%s5645_s1 + $0x7c] ss:$12 sps:$4 sm:$0xff]   ;;  %v4014_v12 = vld [vmem:[%s5645_s1 + $0x78] ss:$12 sps:$4 sm:$0xff]  }
 0x172   : > { %v4015_v13 = vld [vmem:[%s5645_s1 + $0x94] ss:$12 sps:$4 sm:$0xff]   ;;  %v4017_v14 = vld [vmem:[%s5645_s1 + $0x90] ss:$12 sps:$4 sm:$0xff]   ;;  %v4018_v15 = vld [vmem:[%s5645_s1 + $0xac] ss:$12 sps:$4 sm:$0xff]  }
 0x173   : > { %v4020_v16 = vld [vmem:[%s5645_s1 + $0xa8] ss:$12 sps:$4 sm:$0xff]   ;;  %v5070_v17 = vld [vmem:[%s850_s18] sm:$0xf]  ;;  %v4023_v37 = vld [vmem:[%s5645_s1 + $0x38] ss:$12 sps:$4 sm:$0xff]   ;;  %s854_s18 = scalar_lea.vmem %s5648_s16, %s5061_s4 }
 0x174   : > { %1042 = vmatpush1.bf16.msra.mxu0 %v4002_v4  ;;  %v4021_v35 = vld [vmem:[%s5645_s1 + $0x8] ss:$12 sps:$4 sm:$0xff]   ;;  %v4022_v36 = vld [vmem:[%s5645_s1 + $0x20] ss:$12 sps:$4 sm:$0xff]   ;;  %v4024_v38 = vld [vmem:[%s5645_s1 + $0x50] ss:$12 sps:$4 sm:$0xff]  }
 0x175   : > { %1043 = vmatprep.subr.bf16.mxu0 %v4003_v5  ;;  %3653 = vmatpush3.bf16.msra.mxu1 %v4021_v35  ;;  %v4025_v39 = vld [vmem:[%s5645_s1 + $0x68] ss:$12 sps:$4 sm:$0xff]   ;;  %v4026_v42 = vld [vmem:[%s5645_s1 + $0x80] ss:$12 sps:$4 sm:$0xff]   ;;  %v4027_v43 = vld [vmem:[%s5645_s1 + $0x98] ss:$12 sps:$4 sm:$0xff]  }
 0x176   : > { %3654 = vmatprep.subr.bf16.mxu1 %v4569_v18  ;;  %v4028_v45 = vld [vmem:[%s5645_s1 + $0xb0] ss:$12 sps:$4 sm:$0xff]   ;;  %v4029_v35 = vld [vmem:[%s5647_s5] sm:$0xff]   ;;  %s4573_s2 = smov 32  }
 0x178   : > { %1044 = vmatpush1.bf16.msra.mxu0 %v4005_v6 }
 0x179   : > { %1045 = vmatprep.subr.bf16.mxu0 %v4006_v7  ;;  %3655 = vmatpush3.bf16.msra.mxu1 %v4022_v36 }
 0x17a   : > { %3656 = vmatprep.subr.bf16.mxu1 %v4569_v18 }
 0x17c   : > { %1046 = vmatpush1.bf16.msra.mxu0 %v4008_v8  ;;  %v906_v8 = vsub.s32 2, %v5079_v20 }
 0x17d   : > { %1047 = vmatprep.subr.bf16.mxu0 %v4009_v9  ;;  %3657 = vmatpush3.bf16.msra.mxu1 %v4023_v37  ;;  %v4030_v37 = vld [vmem:[%s5647_s5 + $0x8] sm:$0xff]  }
 0x17e   : > { %3658 = vmatprep.subr.bf16.mxu1 %v4569_v18  ;;  %v907_v9 = vrot.slane %v5084_v22, %v906_v8 }
 0x180   : > { %1048 = vmatpush1.bf16.msra.mxu0 %v4011_v10 }
 0x181   : > { %1049 = vmatprep.subr.bf16.mxu0 %v4012_v11  ;;  %3659 = vmatpush3.bf16.msra.mxu1 %v4024_v38 }
 0x182   : > { %3660 = vmatprep.subr.bf16.mxu1 %v4569_v18 }
 0x184   : > { %1050 = vmatpush1.bf16.msra.mxu0 %v4014_v12 }
 0x185   : > { %1051 = vmatprep.subr.bf16.mxu0 %v4015_v13  ;;  %3661 = vmatpush3.bf16.msra.mxu1 %v4025_v39 }
 0x186   : > { %3662 = vmatprep.subr.bf16.mxu1 %v4569_v18 }
 0x188   : > { %1052 = vmatpush1.bf16.msra.mxu0 %v4017_v14 }
 0x189   : > { %1053 = vmatprep.subr.bf16.mxu0 %v4018_v15  ;;  %3663 = vmatpush3.bf16.msra.mxu1 %v4026_v42 }
 0x18a   : > { %3664 = vmatprep.subr.bf16.mxu1 %v4569_v18 }
 0x18c   : > { %1054 = vmatpush1.bf16.msra.mxu0 %v4020_v16 }
 0x18d   : > { %3672 = vmatprep.subr.bf16.mxu0 %v4569_v18  ;;  %3665 = vmatpush3.bf16.msra.mxu1 %v4027_v43 }
 0x18e   : > { %3666 = vmatprep.subr.bf16.mxu1 %v4569_v18 }
 0x18f   : > { %1072 = vmatmul.mubr.bf16.vlgmr.msra.gmra.mrb[0].mxu0 %v5070_v17 }
 0x190   : > { %3674 = vmatprep.mubr.msk.bf16.mxu0 %vm4570_vm0, %v4569_v18 }
 0x191   : > { %3667 = vmatpush3.bf16.msra.mxu1 %v4028_v45 }
 0x192   : > { %3678 = vmatprep.subr.bf16.mxu1 %v4569_v18 }
 0x194   : > { %3669 = vmatmul.mubr.bf16.vlgmr.msra.gmra.mrb[0].mxu1 %v5070_v17 }
 0x195   : > { %3680 = vmatprep.mubr.msk.bf16.mxu1 %vm4570_vm0, %v4569_v18 }
 0x262   : > { %v1073_v26 = vpop.f32.mrb[0].mxu0 }
 0x263   : > { %v1075_v27 = vpop.f32.mrb[1].mxu0  ;;  %v1074_v31 = vadd.f32 %v1073_v26, %v899_v25  ;;  %v4031_v26 = vld [vmem:[%s5647_s5 + $0x10] sm:$0xff]  }
 0x264   : > { %v1076_v28 = vadd.f32 %v1075_v27, %v903_v24  ;;  %v1077_v29 = vpop.f32.mrb[2].mxu0  ;;  %v4032_v27 = vld [vmem:[%s5647_s5 + $0x18] sm:$0xff]  }
 0x265   : > { %v1078_v30 = vpop.f32.mrb[3].mxu0  ;;  %v5099_v34 = vpack.c.bf16 %v1074_v31, %v1074_v31 }
 0x266   : > { %v5093_v32 = vpack.c.bf16 %v1076_v28, %v1076_v28 }
 0x267   : > { %v1114_v2 = vpop.f32.mrb[0].mxu1 }
 0x268   : > { %1259 = vrot.lane.b32.xlu0 %v5093_v32, %s4571_s30  ;;  %v1150_v33 = vsel %vm1145_vm1, %v5093_v32, 0  ;;  %v3670_v3 = vpop.f32.mrb[1].mxu1  ;;  %v1115_v10 = vadd.f32 %v1114_v2, %v907_v9 }
 0x269   : > { %3673 = vmatpush3.bf16.xpose.msra.mxu0 %v1150_v33  ;;  %v1117_v4 = vpop.f32.mrb[2].mxu1 }
 0x26a   : > { %3684 = vmatprep.subr.bf16.mxu0 %v4569_v18  ;;  %v3671_v5 = vpop.f32.mrb[3].mxu1  ;;  %v5159_v11 = vpack.c.bf16 %v1115_v10, %v1115_v10 }
 0x26c   : > { %1256 = vrot.lane.b32.xlu0 %v5099_v34, %s4571_s30  ;;  %v1212_v12 = vsel %vm1210_vm4, %v5159_v11, 0 }
 0x26d   : > { %3679 = vmatpush3.bf16.msra.mxu1 %v1212_v12 }
 0x26e   : > { %3690 = vmatprep.subr.bf16.mxu1 %v4569_v18 }
 0x270   : > { %3675 = vmatmul.mubr.msk.bf16.vlgmr.msra.gmra.mrb[4].mxu0 %vm1145_vm1, %v5099_v34 }
 0x271   : > { %3686 = vmatprep.mubr.msk.bf16.mxu0 %vm4570_vm0, %v4569_v18 }
 0x2da   : > { %v1260_v40 = vpop.permute.xlu0 %1259 }
 0x2db   : > { %v1265_v41 = vsel %vm1145_vm1, %v1260_v40, 0 }
 0x2dc   : > { %3685 = vmatpush3.bf16.xpose.msra.mxu0 %v1265_v41 }
 0x2dd   : > { %3696 = vmatprep.subr.bf16.mxu0 %v4569_v18 }
 0x2de   : > { %v1257_v44 = vpop.permute.xlu0 %1256 }
 0x2e3   : > { %3687 = vmatmul.mubr.msk.bf16.vlgmr.msra.gmra.mrb[8].mxu0 %vm1145_vm1, %v1257_v44 }
 0x2e4   : > { %3700 = vmatprep.mubr.msk.bf16.mxu0 %vm4570_vm0, %v4569_v18  ;;  %3697 = vmatpush3.bf16.msra.mxu0 %v4031_v26 }
 0x2e5   : > { %3698 = vmatprep.subr.bf16.mxu0 %v4569_v18 }
 0x2e8   : > { %3699 = vmatpush3.bf16.msra.mxu0 %v4032_v27 }
 0x2e9   : > { %3712 = vmatprep.subr.bf16.mxu0 %v4569_v18 }
 0x343   : > { %v1186_v47 = vpop.f32.mrb[4].mxu0 }
 0x344   : > { %v1192_v49 = vmul.f32 0.17677669, %v1186_v47  ;;  %v3676_v50 = vpop.f32.mrb[5].mxu0 }
 0x345   : > { %v1189_v51 = vpop.f32.mrb[6].mxu0 }
 0x346   : > { %v3677_v52 = vpop.f32.mrb[7].mxu0  ;;  %v1193_v53 = vadd.f32 %v1192_v49, %v5150_v48 }
 0x348   : > { %v1195_v54 = vsel %vm1194_vm3, %v1193_v53, -inf }
 0x349   : > { %1196 = vmax.xlane.f32.xlu1 %v1195_v54 }
 0x3b6   : > { %v1301_v55 = vpop.f32.mrb[8].mxu0 }
 0x3b7   : > { %v1307_v56 = vmul.f32 0.17677669, %v1301_v55  ;;  %v3688_v57 = vpop.f32.mrb[9].mxu0 }
 0x3b8   : > { %v1304_v58 = vpop.f32.mrb[10].mxu0 }
 0x3b9   : > { %v3689_v59 = vpop.f32.mrb[11].mxu0  ;;  %v1308_v60 = vadd.f32 %v1307_v56, %v5150_v48 }
 0x3bb   : > { %v1309_v61 = vsel %vm1194_vm3, %v1308_v60, -inf }
 0x3bc   : > { %1310 = vmax.xlane.f32.xlu1 %v1309_v61 }
 0x3d6   : > { %v1197_v62 = vpop.xlane.xlu1 %1196 }
 0x3d7   : > { %v1198_v63 = vsub.f32 %v1193_v53, %v1197_v62 }
 0x3d9   : > { %v1199_v1 = vmul.f32 1.442695, %v1198_v63 }
 0x3db   : > { %4117 = vpow2.f32 %v1199_v1 }
 0x3e5   : > { %v4118_v6 = vpop.eup %4117 }
 0x3e6   : > { %v1201_v7 = vsel %vm1194_vm3, %v4118_v6, 0.0 }
 0x3e7   : > { %1202 = vadd.xlane.f32.xlu0 %v1201_v7 }
 0x3fd   : > { %1545 = vrot.lane.b32.xlu0 %v5159_v11, %s4572_s0 }
 0x449   : > { %v1311_v13 = vpop.xlane.xlu1 %1310 }
 0x44a   : > { %v1312_v14 = vsub.f32 %v1308_v60, %v1311_v13  ;;  %v4033_v13 = vld [vmem:[%s5647_s5 + $0x20] sm:$0xff]  }
 0x44c   : > { %v1313_v15 = vmul.f32 1.442695, %v1312_v14 }
 0x44e   : > { %4119 = vpow2.f32 %v1313_v15 }
 0x458   : > { %v4120_v16 = vpop.eup %4119 }
 0x459   : > { %v1315_v19 = vsel %vm1194_vm3, %v4120_v16, 0.0 }
 0x45a   : > { %1316 = vadd.xlane.f32.xlu1 %v1315_v19 }
 0x46b   : > { %1322 = vrot.lane.b32.xlu1 %v5159_v11, %s4571_s30 }
 0x46f   : > { %1483 = vrot.lane.b32.xlu1 %v5093_v32, %s4572_s0 }
 0x473   : > { %1481 = vrot.lane.b32.xlu1 %v5099_v34, %s4572_s0 }
 0x474   : > { %v1203_v20 = vpop.xlane.xlu0 %1202 }
 0x475   : > { %4121 = vrcp.f32 %v1203_v20 }
 0x478   : > { %v1546_v38 = vpop.permute.xlu0 %1545 }
 0x479   : > { %v1551_v43 = vsel %vm1210_vm4, %v1546_v38, 0 }
 0x47f   : > { %v4122_v22 = vpop.eup %4121 }
 0x480   : > { %v1205_v24 = vmul.f32 %v4122_v22, %v4118_v6 }
 0x482   : > { %v1206_v25 = vpack.c.bf16 %v1205_v24, %v1205_v24 }
 0x484   : > { %3681 = vmatmul.mubr.msk.bf16.vlgmr.msra.gmra.mrb[4].mxu1 %vm1194_vm3, %v1206_v25 }
 0x485   : > { %3692 = vmatprep.mubr.msk.bf16.mxu1 %vm4570_vm0, %v4569_v18 }
 0x4e7   : > { %v1317_v28 = vpop.xlane.xlu1 %1316 }
 0x4e8   : > { %4123 = vrcp.f32 %v1317_v28 }
 0x4eb   : > { %v1323_v29 = vpop.permute.xlu1 %1322 }
 0x4ec   : > { %v1328_v30 = vsel %vm1210_vm4, %v1323_v29, 0 }
 0x4ed   : > { %3691 = vmatpush3.bf16.msra.mxu1 %v1328_v30 }
 0x4ee   : > { %3704 = vmatprep.subr.bf16.mxu1 %v4569_v18 }
 0x4ef   : > { %v1484_v45 = vpop.permute.xlu1 %1483 }
 0x4f0   : > { %v1489_v51 = vsel %vm1145_vm1, %v1484_v45, 0 }
 0x4f2   : > { %v4124_v31 = vpop.eup %4123 }
 0x4f3   : > { %v1319_v33 = vmul.f32 %v4124_v31, %v4120_v16  ;;  %v1482_v53 = vpop.permute.xlu1 %1481 }
 0x4f5   : > { %v1320_v36 = vpack.c.bf16 %v1319_v33, %v1319_v33 }
 0x4f7   : > { %3693 = vmatmul.mubr.msk.bf16.vlgmr.msra.gmra.mrb[8].mxu1 %vm1194_vm3, %v1320_v36 }
 0x4f8   : > { %3705 = vmatpush3.bf16.msra.mxu1 %v4029_v35  ;;  %3708 = vmatprep.mubr.msk.bf16.mxu1 %vm4570_vm0, %v4569_v18 }
 0x4f9   : > { %3706 = vmatprep.subr.bf16.mxu1 %v4569_v18 }
 0x4fc   : > { %3707 = vmatpush3.bf16.msra.mxu1 %v4030_v37 }
 0x4fd   : > { %3718 = vmatprep.subr.bf16.mxu1 %v4569_v18 }
 0x557   : > { %v1248_v39 = vpop.f32.mrb[4].mxu1 }
 0x558   : > { %v1254_v40 = vpack.c.bf16 %v1248_v39, %v1248_v39  ;;  %v3682_v41 = vpop.f32.mrb[5].mxu1 }
 0x559   : > { %v1251_v42 = vpop.f32.mrb[6].mxu1 }
 0x55a   : > { %v3683_v44 = vpop.f32.mrb[7].mxu1  ;;  %3709 = vmatmul.mubr.msk.bf16.vlgmr.msra.gmra.mrb[12].mxu1 %vm1145_vm1, %v1254_v40 }
 0x55b   : > { %3719 = vmatpush3.bf16.msra.mxu1 %v1551_v43  ;;  %3720 = vmatprep.mubr.msk.bf16.mxu1 %vm4570_vm0, %v4569_v18  ;;  %v4035_v43 = vld [vmem:[%s5647_s5 + $0x30] sm:$0xff]  }
 0x55c   : > { %3732 = vmatprep.subr.bf16.mxu1 %v4569_v18 }
 0x5ca   : > { %v1364_v46 = vpop.f32.mrb[8].mxu1 }
 0x5cb   : > { %v1370_v47 = vpack.c.bf16 %v1364_v46, %v1364_v46  ;;  %v3694_v49 = vpop.f32.mrb[9].mxu1 }
 0x5cc   : > { %v1367_v50 = vpop.f32.mrb[10].mxu1 }
 0x5cd   : > { %v3695_v52 = vpop.f32.mrb[11].mxu1  ;;  %3701 = vmatmul.mubr.msk.bf16.vlgmr.msra.gmra.mrb[12].mxu0 %vm1145_vm1, %v1370_v47 }
 0x5ce   : > { %3713 = vmatpush3.bf16.xpose.msra.mxu0 %v1489_v51  ;;  %3714 = vmatprep.mubr.msk.bf16.mxu0 %vm4570_vm0, %v4569_v18 }
 0x5cf   : > { %3724 = vmatprep.subr.bf16.mxu0 %v4569_v18 }
 0x5d5   : > { %3715 = vmatmul.mubr.msk.bf16.vlgmr.msra.gmra.mrb[16].mxu0 %vm1145_vm1, %v1482_v53 }
 0x5d6   : > { %3728 = vmatprep.mubr.msk.bf16.mxu0 %vm4570_vm0, %v4569_v18  ;;  %3725 = vmatpush3.bf16.msra.mxu0 %v4033_v13  ;;  %v4043_v13 = vld [vmem:[%s5587_s10 + $0x20] ss:$8 sps:$4 sm:$0xff]  }
 0x5d7   : > { %3726 = vmatprep.subr.bf16.mxu0 %v4569_v18 }
 0x62d   : > { %v1475_v54 = vpop.f32.mrb[12].mxu1 }
 0x62e   : > { %v3710_v55 = vpop.f32.mrb[13].mxu1 }
 0x62f   : > { %v1478_v56 = vpop.f32.mrb[14].mxu1 }
 0x630   : > { %v3711_v57 = vpop.f32.mrb[15].mxu1 }
 0x6a0   : > { %v1420_v58 = vpop.f32.mrb[12].mxu0 }
 0x6a1   : > { %v5210_v59 = vadd.f32 %v1475_v54, %v1420_v58  ;;  %v3702_v60 = vpop.f32.mrb[13].mxu0  ;;  %v4036_v54 = vld [vmem:[%s5647_s5 + $0x38] sm:$0xff]  }
 0x6a2   : > { %v1423_v61 = vpop.f32.mrb[14].mxu0 }
 0x6a3   : > { %v3703_v62 = vpop.f32.mrb[15].mxu0  ;;  %v3468_v61 = vld [vmem:[#allocation4] ss:$0 sm:$0xff] }
 0x6a8   : > { %v1525_v63 = vpop.f32.mrb[16].mxu0 }
 0x6a9   : > { %v1531_v1 = vmul.f32 0.17677669, %v1525_v63  ;;  %v3716_v2 = vpop.f32.mrb[17].mxu0 }
 0x6aa   : > { %v1528_v3 = vpop.f32.mrb[18].mxu0 }
 0x6ab   : > { %v3717_v4 = vpop.f32.mrb[19].mxu0  ;;  %v1532_v5 = vadd.f32 %v1531_v1, %v5150_v48  ;;  %v1827_v1 = vunpack.c.l.bf16 %v5070_v17  ;;  %v4046_v17 = vld [vmem:[%s5585_s8] sm:$0xff]  }
 0x6ad   : > { %v1533_v6 = vsel %vm1194_vm3, %v1532_v5, -inf }
 0x6ae   : > { %1534 = vmax.xlane.f32.xlu1 %v1533_v6  ;;  %v4037_v6 = vld [vmem:[%s5587_s10] ss:$8 sps:$4 sm:$0xff]  }
 0x73b   : > { %v1535_v7 = vpop.xlane.xlu1 %1534 }
 0x73c   : > { %v1536_v8 = vsub.f32 %v1532_v5, %v1535_v7  ;;  %v4039_v7 = vld [vmem:[%s5587_s10 + $0x4] ss:$8 sps:$4 sm:$0xff]  }
 0x73e   : > { %v1537_v9 = vmul.f32 1.442695, %v1536_v8  ;;  %v4042_v8 = vld [vmem:[%s5587_s10 + $0x14] ss:$8 sps:$4 sm:$0xff]  }
 0x740   : > { %4125 = vpow2.f32 %v1537_v9  ;;  %v4040_v9 = vld [vmem:[%s5587_s10 + $0x10] ss:$8 sps:$4 sm:$0xff]  }
 0x74a   : > { %v4126_v10 = vpop.eup %4125 }
 0x74b   : > { %v1539_v12 = vsel %vm1194_vm3, %v4126_v10, 0.0 }
 0x74c   : > { %1540 = vadd.xlane.f32.xlu0 %v1539_v12  ;;  %v4050_v12 = vld [vmem:[%s5585_s8 + $0x8] sm:$0xff]  }
 0x762   : > { %1652 = vrot.lane.b32.xlu0 %v5093_v32, %s4573_s2 }
 0x766   : > { %1650 = vrot.lane.b32.xlu0 %v5099_v34, %s4573_s2  ;;  %v4034_v34 = vld [vmem:[%s5647_s5 + $0x28] sm:$0xff]  }
 0x767   : > { %3727 = vmatpush3.bf16.msra.mxu0 %v4034_v34 }
 0x768   : > { %3738 = vmatprep.subr.bf16.mxu0 %v4569_v18 }
 0x7d9   : > { %v1541_v14 = vpop.xlane.xlu0 %1540 }
 0x7da   : > { %4127 = vrcp.f32 %v1541_v14  ;;  %v4049_v14 = vld [vmem:[%s5587_s10 + $0x34] ss:$8 sps:$4 sm:$0xff]  }
 0x7dd   : > { %v1653_v19 = vpop.permute.xlu0 %1652 }
 0x7de   : > { %v1658_v22 = vsel %vm1145_vm1, %v1653_v19, 0  ;;  %v4051_v19 = vld [vmem:[%s5587_s10 + $0x40] ss:$8 sps:$4 sm:$0xff]  }
 0x7e1   : > { %v1651_v32 = vpop.permute.xlu0 %1650 }
 0x7e4   : > { %v4128_v15 = vpop.eup %4127 }
 0x7e5   : > { %v1543_v16 = vmul.f32 %v4128_v15, %v4126_v10  ;;  %v4045_v10 = vld [vmem:[%s5587_s10 + $0x24] ss:$8 sps:$4 sm:$0xff]   ;;  %v4047_v15 = vld [vmem:[%s5587_s10 + $0x30] ss:$8 sps:$4 sm:$0xff]  }
 0x7e7   : > { %v1544_v20 = vpack.c.bf16 %v1543_v16, %v1543_v16  ;;  %v4053_v16 = vld [vmem:[%s5587_s10 + $0x44] ss:$8 sps:$4 sm:$0xff]  }
 0x7e9   : > { %3721 = vmatmul.mubr.msk.bf16.vlgmr.msra.gmra.mrb[16].mxu1 %vm1194_vm3, %v1544_v20 }
 0x7ea   : > { %3733 = vmatpush3.bf16.xpose.msra.mxu1 %v1658_v22  ;;  %3734 = vmatprep.mubr.msk.bf16.mxu1 %vm4570_vm0, %v4569_v18 }
 0x7eb   : > { %3744 = vmatprep.subr.bf16.mxu1 %v4569_v18 }
 0x7f1   : > { %3735 = vmatmul.mubr.msk.bf16.vlgmr.msra.gmra.mrb[20].mxu1 %vm1145_vm1, %v1651_v32 }
 0x7f2   : > { %3748 = vmatprep.mubr.msk.bf16.mxu1 %vm4570_vm0, %v4569_v18  ;;  %3745 = vmatpush3.bf16.msra.mxu1 %v4035_v43  ;;  %v3469_v43 = vld [vmem:[#allocation6] ss:$0 sm:$0xff] }
 0x7f3   : > { %3746 = vmatprep.subr.bf16.mxu1 %v4569_v18 }
 0x7f6   : > { %3747 = vmatpush3.bf16.msra.mxu1 %v4036_v54 }
 0x7f7   : > { %2078 = vmatprep.subr.bf16.mxu1 %v4039_v7 }
 0x8bc   : > { %v1587_v24 = vpop.f32.mrb[16].mxu1 }
 0x8bd   : > { %v1593_v25 = vpack.c.bf16 %v1587_v24, %v1587_v24  ;;  %v3722_v26 = vpop.f32.mrb[17].mxu1  ;;  %v4054_v24 = vld [vmem:[%s5585_s8 + $0x10] sm:$0xff]  }
 0x8be   : > { %v1590_v27 = vpop.f32.mrb[18].mxu1  ;;  %v4055_v26 = vld [vmem:[%s5587_s10 + $0x50] ss:$8 sps:$4 sm:$0xff]  }
 0x8bf   : > { %v3723_v28 = vpop.f32.mrb[19].mxu1  ;;  %3729 = vmatmul.mubr.msk.bf16.vlgmr.msra.gmra.mrb[20].mxu0 %vm1145_vm1, %v1593_v25  ;;  %v4057_v25 = vld [vmem:[%s5587_s10 + $0x54] ss:$8 sps:$4 sm:$0xff]  }
 0x8c0   : > { %3740 = vmatprep.mubr.msk.bf16.mxu0 %vm4570_vm0, %v4569_v18  ;;  %v4058_v27 = vld [vmem:[%s5585_s8 + $0x18] sm:$0xff]   ;;  %v4061_v28 = vld [vmem:[%s5587_s10 + $0x64] ss:$8 sps:$4 sm:$0xff]  }
 0x8c4   : > { %v1694_v29 = vpop.f32.mrb[20].mxu1 }
 0x8c5   : > { %v1700_v30 = vmul.f32 0.17677669, %v1694_v29  ;;  %v3736_v31 = vpop.f32.mrb[21].mxu1  ;;  %v4059_v29 = vld [vmem:[%s5587_s10 + $0x60] ss:$8 sps:$4 sm:$0xff]  }
 0x8c6   : > { %v1697_v33 = vpop.f32.mrb[22].mxu1  ;;  %v4065_v31 = vld [vmem:[%s5587_s10 + $0x74] ss:$8 sps:$4 sm:$0xff]  }
 0x8c7   : > { %v3737_v35 = vpop.f32.mrb[23].mxu1  ;;  %v1701_v36 = vadd.f32 %v1700_v30, %v5150_v48  ;;  %v4062_v30 = vld [vmem:[%s5585_s8 + $0x20] sm:$0xff]   ;;  %v4063_v33 = vld [vmem:[%s5587_s10 + $0x70] ss:$8 sps:$4 sm:$0xff]  }
 0x8c8   : > { %v4066_v35 = vld [vmem:[%s5585_s8 + $0x28] sm:$0xff]  }
 0x8c9   : > { %v1702_v37 = vsel %vm1194_vm3, %v1701_v36, -inf }
 0x8ca   : > { %1703 = vmax.xlane.f32.xlu0 %v1702_v37  ;;  %v4067_v37 = vld [vmem:[%s5585_s8 + $0x30] sm:$0xff]  }
 0x957   : > { %v1704_v38 = vpop.xlane.xlu0 %1703 }
 0x958   : > { %v1705_v39 = vsub.f32 %v1701_v36, %v1704_v38  ;;  %v861_v36 = vld [vmem:[%s854_s18] sm:$0xf]  ;;  %v4068_v38 = vld [vmem:[%s5585_s8 + $0x38] sm:$0xff]   ;;  %s5651_s18 = sld [smem:[#allocation40_spill]] }
 0x95a   : > { %v1706_v40 = vmul.f32 1.442695, %v1705_v39 }
 0x95c   : > { %4129 = vpow2.f32 %v1706_v40 }
 0x966   : > { %v4130_v41 = vpop.eup %4129 }
 0x967   : > { %v1708_v42 = vsel %vm1194_vm3, %v4130_v41, 0.0 }
 0x968   : > { %1709 = vadd.xlane.f32.xlu1 %v1708_v42 }
 0x979   : > { %1714 = vrot.lane.b32.xlu1 %v5159_v11, %s4573_s2 }
 0x992   : > { %v1643_v48 = vpop.f32.mrb[20].mxu0 }
 0x993   : > { %v1649_v44 = vadd.f32 %v1643_v48, %v5210_v59  ;;  %v3730_v45 = vpop.f32.mrb[21].mxu0 }
 0x994   : > { %v1646_v46 = vpop.f32.mrb[22].mxu0 }
 0x995   : > { %v3731_v47 = vpop.f32.mrb[23].mxu0 }
 0x9f5   : > { %v1710_v49 = vpop.xlane.xlu1 %1709 }
 0x9f6   : > { %4131 = vrcp.f32 %v1710_v49  ;;  %v1986_v49 = vld [vmem:[#allocation10] sm:$0x3] }
 0x9f9   : > { %v1715_v50 = vpop.permute.xlu1 %1714 }
 0x9fa   : > { %v1720_v51 = vsel %vm1210_vm4, %v1715_v50, 0  ;;  %v1991_v50 = vrot.slane %v1986_v49, %v5087_v23 }
 0x9fb   : > { %3739 = vmatpush3.bf16.msra.mxu0 %v1720_v51  ;;  %v1995_v51 = vrot.slane %v1986_v49, %v5082_v21 }
 0x9fc   : > { %3752 = vmatprep.subr.bf16.mxu0 %v4569_v18 }
 0xa00   : > { %v4132_v11 = vpop.eup %4131 }
 0xa01   : > { %v1712_v52 = vmul.f32 %v4132_v11, %v4130_v41 }
 0xa03   : > { %v1713_v53 = vpack.c.bf16 %v1712_v52, %v1712_v52 }
 0xa05   : > { %3741 = vmatmul.mubr.msk.bf16.vlgmr.msra.gmra.mrb[24].mxu0 %vm1194_vm3, %v1713_v53 }
 0xa06   : > { %3768 = vmatprep.mubr.msk.bf16.mxu0 %vm4570_vm0, %v4569_v18  ;;  %3753 = vmatpush3.bf16.msra.mxu0 %v4046_v17 }
 0xa07   : > { %3754 = vmatprep.subr.bf16.mxu0 %v4569_v18 }
 0xa0a   : > { %3755 = vmatpush3.bf16.msra.mxu0 %v4050_v12 }
 0xa0b   : > { %3756 = vmatprep.subr.bf16.mxu0 %v4569_v18 }
 0xa0e   : > { %3757 = vmatpush3.bf16.msra.mxu0 %v4054_v24 }
 0xa0f   : > { %3758 = vmatprep.subr.bf16.mxu0 %v4569_v18 }
 0xa12   : > { %3759 = vmatpush3.bf16.msra.mxu0 %v4058_v27 }
 0xa13   : > { %3760 = vmatprep.subr.bf16.mxu0 %v4569_v18 }
 0xa16   : > { %3761 = vmatpush3.bf16.msra.mxu0 %v4062_v30 }
 0xa17   : > { %3762 = vmatprep.subr.bf16.mxu0 %v4569_v18 }
 0xa1a   : > { %3763 = vmatpush3.bf16.msra.mxu0 %v4066_v35 }
 0xa1b   : > { %3764 = vmatprep.subr.bf16.mxu0 %v4569_v18 }
 0xa1e   : > { %3765 = vmatpush3.bf16.msra.mxu0 %v4067_v37 }
 0xa1f   : > { %3766 = vmatprep.subr.bf16.mxu0 %v4569_v18 }
 0xa22   : > { %3767 = vmatpush3.bf16.msra.mxu0 %v4068_v38  ;;  %v4071_v38 = vld [vmem:[%s5589_s12 + $0x10] sm:$0xff]  }
 0xa23   : > { %3772 = vmatprep.subr.bf16.mxu0 %v4569_v18 }
 0xad8   : > { %v1756_v55 = vpop.f32.mrb[24].mxu0 }
 0xad9   : > { %v1762_v56 = vpack.c.bf16 %v1756_v55, %v1756_v55  ;;  %v3742_v57 = vpop.f32.mrb[25].mxu0 }
 0xada   : > { %v1759_v58 = vpop.f32.mrb[26].mxu0 }
 0xadb   : > { %v3743_v59 = vpop.f32.mrb[27].mxu0  ;;  %3749 = vmatmul.mubr.msk.bf16.vlgmr.msra.gmra.mrb[24].mxu1 %vm1145_vm1, %v1762_v56 }
 0xadc   : > { %2110 = vmatprep.mubr.bf16.mxu1 %v4568_v0  ;;  %2079 = vmatpush1.bf16.msra.mxu1 %v4037_v6 }
 0xadd   : > { %2080 = vmatprep.subr.bf16.mxu1 %v4042_v8 }
 0xae0   : > { %2081 = vmatpush1.bf16.msra.mxu1 %v4040_v9 }
 0xae1   : > { %2082 = vmatprep.subr.bf16.mxu1 %v4045_v10 }
 0xae4   : > { %2083 = vmatpush1.bf16.msra.mxu1 %v4043_v13 }
 0xae5   : > { %2084 = vmatprep.subr.bf16.mxu1 %v4049_v14 }
 0xae8   : > { %2085 = vmatpush1.bf16.msra.mxu1 %v4047_v15 }
 0xae9   : > { %2086 = vmatprep.subr.bf16.mxu1 %v4053_v16 }
 0xaec   : > { %2087 = vmatpush1.bf16.msra.mxu1 %v4051_v19 }
 0xaed   : > { %2088 = vmatprep.subr.bf16.mxu1 %v4057_v25 }
 0xaf0   : > { %2089 = vmatpush1.bf16.msra.mxu1 %v4055_v26 }
 0xaf1   : > { %2090 = vmatprep.subr.bf16.mxu1 %v4061_v28 }
 0xaf4   : > { %2091 = vmatpush1.bf16.msra.mxu1 %v4059_v29 }
 0xaf5   : > { %2092 = vmatprep.subr.bf16.mxu1 %v4065_v31 }
 0xaf8   : > { %2093 = vmatpush1.bf16.msra.mxu1 %v4063_v33 }
 0xaf9   : > { %3778 = vmatprep.subr.bf16.mxu1 %v4569_v18 }
 0xafb   : > { %2111 = vmatmul.mubr.bf16.vlgmr.msra.gmra.mrb[28].mxu1 %v861_v36 }
 0xafc   : > { %3780 = vmatprep.mubr.msk.bf16.mxu1 %vm4570_vm0, %v4569_v18 }
 0xbae   : > { %v1812_v60 = vpop.f32.mrb[24].mxu1 }
 0xbaf   : > { %v1818_v62 = vadd.f32 %v1812_v60, %v1649_v44  ;;  %v3750_v63 = vpop.f32.mrb[25].mxu1  ;;  %v3470_v44 = vld [vmem:[#allocation7] ss:$0 sm:$0xff] }
 0xbb0   : > { %v1815_v2 = vpop.f32.mrb[26].mxu1 }
 0xbb1   : > { %v1826_v3 = vadd.f32 %v3468_v61, %v1818_v62  ;;  %v3751_v4 = vpop.f32.mrb[27].mxu1  ;;  %v3471_v61 = vld [vmem:[#allocation9] ss:$0 sm:$0xff] }
 0xbb3   : > { %v1830_v5 = vadd.f32 %v1827_v1, %v1826_v3 }
 0xbb5   : > { %1831 = vadd.xlane.f32.xlu1 %v1830_v5 }
 0xbce   : > { %v2112_v11 = vpop.f32.mrb[28].mxu1 }
 0xbcf   : > { %v2113_v52 = vadd.f32 %v2112_v11, %v1991_v50  ;;  %v2114_v53 = vpop.f32.mrb[29].mxu1 }
 0xbd0   : > { %v2115_v54 = vadd.f32 %v2114_v53, %v1995_v51  ;;  %v2116_v55 = vpop.f32.mrb[30].mxu1 }
 0xbd1   : > { %v5354_v56 = vpack.c.bf16 %v2113_v52, %v2113_v52  ;;  %v2117_v57 = vpop.f32.mrb[31].mxu1 }
 0xbd2   : > { %v5356_v58 = vpack.c.bf16 %v2115_v54, %v2115_v54 }
 0xbd3   : > { %v2141_v59 = vsel %vm1145_vm1, %v5354_v56, 0 }
 0xbd4   : > { %v2200_v60 = vsel %vm1210_vm4, %v5356_v58, 0 }
 0xbd5   : > { %3779 = vmatpush3.bf16.msra.mxu1 %v2200_v60 }
 0xbd6   : > { %3790 = vmatprep.subr.bf16.mxu1 %v4569_v18 }
 0xc42   : > { %v1832_v20 = vpop.xlane.xlu1 %1831 }
 0xc43   : > { %v1834_v22 = vmul.f32 0.0078125, %v1832_v20 }
 0xc45   : > { %v1835_v32 = vsub.f32 %v1830_v5, %v1834_v22 }
 0xc47   : > { %v1836_v34 = vmul.f32 %v1835_v32, %v1835_v32 }
 0xc49   : > { %1837 = vadd.xlane.f32.xlu0 %v1836_v34 }
 0xc5f   : > { %2247 = vrot.lane.b32.xlu0 %v5354_v56, %s4571_s30 }
 0xcd6   : > { %v1838_v39 = vpop.xlane.xlu0 %1837 }
 0xcd7   : > { %v1839_v40 = vmul.f32 0.0078125, %v1838_v39  ;;  %v4072_v39 = vld [vmem:[%s5589_s12 + $0x18] sm:$0xff]  }
 0xcd9   : > { %v1840_v41 = vadd.f32 1e-05, %v1839_v40 }
 0xcda   : > { %v2248_v63 = vpop.permute.xlu0 %2247 }
 0xcdb   : > { %4133 = vrsqrt.f32 %v1840_v41  ;;  %v2253_v6 = vsel %vm1145_vm1, %v2248_v63, 0 }
 0xce5   : > { %v4134_v42 = vpop.eup %4133 }
 0xce6   : > { %v1842_v48 = vmul.f32 %v4134_v42, %v1835_v32 }
 0xce8   : > { %v1849_v45 = vmul.f32 %v3469_v43, %v1842_v48 }
 0xcea   : > { %v5346_v46 = vadd.f32 %v3470_v44, %v1849_v45  ;;  %v4069_v44 = vld [vmem:[%s5589_s12] sm:$0xff]  }
 0xcec   : > { %v1857_v47 = vpack.c.bf16 %v5346_v46, %v5346_v46 }
 0xcee   : > { %3769 = vmatmul.mubr.bf16.vlgmr.msra.gmra.mrb[28].mxu0 %v1857_v47  ;;  %v4070_v47 = vld [vmem:[%s5589_s12 + $0x8] sm:$0xff]  }
 0xcef   : > { %3774 = vmatprep.mubr.msk.bf16.mxu0 %vm4570_vm0, %v4569_v18  ;;  %3773 = vmatpush3.bf16.xpose.msra.mxu0 %v2141_v59 }
 0xcf0   : > { %3784 = vmatprep.subr.bf16.mxu0 %v4569_v18 }
 0xdc1   : > { %v1963_v62 = vpop.f32.mrb[28].mxu0 }
 0xdc2   : > { %v1964_v1 = vadd.f32 %v3471_v61, %v1963_v62  ;;  %v3770_v2 = vpop.f32.mrb[29].mxu0 }
 0xdc3   : > { %v1966_v3 = vpop.f32.mrb[30].mxu0 }
 0xdc4   : > { %v5366_v4 = vpack.c.bf16 %v1964_v1, %v1964_v1  ;;  %v3771_v5 = vpop.f32.mrb[31].mxu0 }
 0xdc6   : > { %2244 = vrot.lane.b32.xlu0 %v5366_v4, %s4571_s30  ;;  %3775 = vmatmul.mubr.msk.bf16.vlgmr.msra.gmra.mrb[32].mxu0 %vm1145_vm1, %v5366_v4 }
 0xdc7   : > { %3785 = vmatpush3.bf16.xpose.msra.mxu0 %v2253_v6  ;;  %3786 = vmatprep.mubr.msk.bf16.mxu0 %vm4570_vm0, %v4569_v18 }
 0xdc8   : > { %3796 = vmatprep.subr.bf16.mxu0 %v4569_v18 }
 0xe38   : > { %v2245_v7 = vpop.permute.xlu0 %2244 }
 0xe39   : > { %3787 = vmatmul.mubr.msk.bf16.vlgmr.msra.gmra.mrb[36].mxu0 %vm1145_vm1, %v2245_v7 }
 0xe3a   : > { %3800 = vmatprep.mubr.msk.bf16.mxu0 %vm4570_vm0, %v4569_v18  ;;  %3797 = vmatpush3.bf16.msra.mxu0 %v4071_v38 }
 0xe3b   : > { %3798 = vmatprep.subr.bf16.mxu0 %v4569_v18 }
 0xe3e   : > { %3799 = vmatpush3.bf16.msra.mxu0 %v4072_v39 }
 0xe3f   : > { %3812 = vmatprep.subr.bf16.mxu0 %v4569_v18 }
 0xe99   : > { %v2177_v8 = vpop.f32.mrb[32].mxu0 }
 0xe9a   : > { %v2183_v17 = vmul.f32 0.17677669, %v2177_v8  ;;  %v3776_v9 = vpop.f32.mrb[33].mxu0 }
 0xe9b   : > { %v2180_v10 = vpop.f32.mrb[34].mxu0 }
 0xe9c   : > { %v3777_v12 = vpop.f32.mrb[35].mxu0  ;;  %v2184_v13 = vsel %vm1194_vm3, %v2183_v17, -inf }
 0xe9d   : > { %2185 = vmax.xlane.f32.xlu1 %v2184_v13 }
 0xf0c   : > { %v2289_v14 = vpop.f32.mrb[36].mxu0 }
 0xf0d   : > { %v2295_v15 = vmul.f32 0.17677669, %v2289_v14  ;;  %v3788_v16 = vpop.f32.mrb[37].mxu0 }
 0xf0e   : > { %v2292_v19 = vpop.f32.mrb[38].mxu0 }
 0xf0f   : > { %v3789_v20 = vpop.f32.mrb[39].mxu0  ;;  %v2296_v22 = vsel %vm1194_vm3, %v2295_v15, -inf }
 0xf10   : > { %2297 = vmax.xlane.f32.xlu0 %v2296_v22 }
 0xf2a   : > { %v2186_v32 = vpop.xlane.xlu1 %2185 }
 0xf2b   : > { %v2187_v34 = vsub.f32 %v2183_v17, %v2186_v32 }
 0xf2d   : > { %v2188_v24 = vmul.f32 1.442695, %v2187_v34 }
 0xf2f   : > { %4135 = vpow2.f32 %v2188_v24 }
 0xf39   : > { %v4136_v25 = vpop.eup %4135 }
 0xf3a   : > { %v2190_v26 = vsel %vm1194_vm3, %v4136_v25, 0.0 }
 0xf3b   : > { %2191 = vadd.xlane.f32.xlu1 %v2190_v26 }
 0xf9d   : > { %v2298_v27 = vpop.xlane.xlu0 %2297 }
 0xf9e   : > { %v2299_v28 = vsub.f32 %v2295_v15, %v2298_v27 }
 0xfa0   : > { %v2300_v29 = vmul.f32 1.442695, %v2299_v28 }
 0xfa2   : > { %4137 = vpow2.f32 %v2300_v29 }
 0xfac   : > { %v4138_v30 = vpop.eup %4137 }
 0xfad   : > { %v2302_v31 = vsel %vm1194_vm3, %v4138_v30, 0.0 }
 0xfae   : > { %2303 = vadd.xlane.f32.xlu1 %v2302_v31  ;;  %v4074_v31 = vld [vmem:[%s5589_s12 + $0x28] sm:$0xff]  }
 0xfbf   : > { %2309 = vrot.lane.b32.xlu1 %v5356_v58, %s4571_s30 }
 0xfc3   : > { %2470 = vrot.lane.b32.xlu1 %v5354_v56, %s4572_s0 }
 0xfc7   : > { %2468 = vrot.lane.b32.xlu1 %v5366_v4, %s4572_s0 }
 0xfc8   : > { %v2192_v33 = vpop.xlane.xlu1 %2191 }
 0xfc9   : > { %4139 = vrcp.f32 %v2192_v33 }
 0xfd3   : > { %v4140_v35 = vpop.eup %4139 }
 0xfd4   : > { %v2194_v36 = vmul.f32 %v4140_v35, %v4136_v25 }
 0xfd6   : > { %v2195_v37 = vpack.c.bf16 %v2194_v36, %v2194_v36 }
 0xfd8   : > { %3781 = vmatmul.mubr.msk.bf16.vlgmr.msra.gmra.mrb[32].mxu1 %vm1194_vm3, %v2195_v37 }
 0xfd9   : > { %3792 = vmatprep.mubr.msk.bf16.mxu1 %vm4570_vm0, %v4569_v18 }
0x103b   : > { %v2304_v40 = vpop.xlane.xlu1 %2303 }
0x103c   : > { %4141 = vrcp.f32 %v2304_v40 }
0x103f   : > { %v2310_v41 = vpop.permute.xlu1 %2309 }
0x1040   : > { %v2315_v42 = vsel %vm1210_vm4, %v2310_v41, 0 }
0x1041   : > { %3791 = vmatpush3.bf16.msra.mxu1 %v2315_v42 }
0x1042   : > { %3804 = vmatprep.subr.bf16.mxu1 %v4569_v18 }
0x1043   : > { %v2471_v53 = vpop.permute.xlu1 %2470 }
0x1044   : > { %v2476_v60 = vsel %vm1145_vm1, %v2471_v53, 0 }
0x1046   : > { %v4142_v43 = vpop.eup %4141 }
0x1047   : > { %v2306_v48 = vmul.f32 %v4142_v43, %v4138_v30  ;;  %v2469_v62 = vpop.permute.xlu1 %2468 }
0x1049   : > { %v2307_v45 = vpack.c.bf16 %v2306_v48, %v2306_v48 }
0x104b   : > { %3793 = vmatmul.mubr.msk.bf16.vlgmr.msra.gmra.mrb[36].mxu1 %vm1194_vm3, %v2307_v45 }
0x104c   : > { %3805 = vmatpush3.bf16.msra.mxu1 %v4069_v44  ;;  %3808 = vmatprep.mubr.msk.bf16.mxu1 %vm4570_vm0, %v4569_v18 }
0x104d   : > { %3806 = vmatprep.subr.bf16.mxu1 %v4569_v18 }
0x1050   : > { %3807 = vmatpush3.bf16.msra.mxu1 %v4070_v47 }
0x1051   : > { %3818 = vmatprep.subr.bf16.mxu1 %v4569_v18 }
0x10ab   : > { %v2236_v49 = vpop.f32.mrb[32].mxu1 }
0x10ac   : > { %v2242_v50 = vpack.c.bf16 %v2236_v49, %v2236_v49  ;;  %v3782_v51 = vpop.f32.mrb[33].mxu1 }
0x10ad   : > { %v2239_v11 = vpop.f32.mrb[34].mxu1  ;;  %v4075_v51 = vld [vmem:[%s5589_s12 + $0x30] sm:$0xff]  }
0x10ae   : > { %v3783_v52 = vpop.f32.mrb[35].mxu1  ;;  %3809 = vmatmul.mubr.msk.bf16.vlgmr.msra.gmra.mrb[40].mxu1 %vm1145_vm1, %v2242_v50 }
0x10af   : > { %3820 = vmatprep.mubr.msk.bf16.mxu1 %vm4570_vm0, %v4569_v18 }
0x111e   : > { %v2351_v54 = vpop.f32.mrb[36].mxu1 }
0x111f   : > { %v2357_v55 = vpack.c.bf16 %v2351_v54, %v2351_v54  ;;  %v3794_v57 = vpop.f32.mrb[37].mxu1 }
0x1120   : > { %v2354_v59 = vpop.f32.mrb[38].mxu1 }
0x1121   : > { %v3795_v61 = vpop.f32.mrb[39].mxu1  ;;  %3801 = vmatmul.mubr.msk.bf16.vlgmr.msra.gmra.mrb[40].mxu0 %vm1145_vm1, %v2357_v55 }
0x1122   : > { %3813 = vmatpush3.bf16.xpose.msra.mxu0 %v2476_v60  ;;  %3814 = vmatprep.mubr.msk.bf16.mxu0 %vm4570_vm0, %v4569_v18 }
0x1123   : > { %3824 = vmatprep.subr.bf16.mxu0 %v4569_v18 }
0x1129   : > { %3815 = vmatmul.mubr.msk.bf16.vlgmr.msra.gmra.mrb[44].mxu0 %vm1145_vm1, %v2469_v62 }
0x112a   : > { %3828 = vmatprep.mubr.msk.bf16.mxu0 %vm4570_vm0, %v4569_v18 }
0x1181   : > { %v2462_v63 = vpop.f32.mrb[40].mxu1 }
0x1182   : > { %v3810_v1 = vpop.f32.mrb[41].mxu1 }
0x1183   : > { %v2465_v2 = vpop.f32.mrb[42].mxu1 }
0x1184   : > { %v3811_v3 = vpop.f32.mrb[43].mxu1 }
0x11f4   : > { %v2407_v5 = vpop.f32.mrb[40].mxu0 }
0x11f5   : > { %v5424_v6 = vadd.f32 %v2462_v63, %v2407_v5  ;;  %v3802_v7 = vpop.f32.mrb[41].mxu0 }
0x11f6   : > { %v2410_v8 = vpop.f32.mrb[42].mxu0  ;;  %v3516_v7 = vld [vmem:[#allocation12] ss:$0 sm:$0xff] }
0x11f7   : > { %v3803_v17 = vpop.f32.mrb[43].mxu0 }
0x11fc   : > { %v2512_v9 = vpop.f32.mrb[44].mxu0 }
0x11fd   : > { %v2518_v10 = vmul.f32 0.17677669, %v2512_v9  ;;  %v3816_v12 = vpop.f32.mrb[45].mxu0 }
0x11fe   : > { %v2515_v13 = vpop.f32.mrb[46].mxu0 }
0x11ff   : > { %v3817_v14 = vpop.f32.mrb[47].mxu0  ;;  %v2519_v15 = vsel %vm1194_vm3, %v2518_v10, -inf  ;;  %v4077_v13 = vld [vmem:[%s5649_s22] ss:$8 sps:$4 sm:$0xff]  }
0x1200   : > { %2520 = vmax.xlane.f32.xlu0 %v2519_v15  ;;  %v4079_v14 = vld [vmem:[%s5649_s22 + $0x4] ss:$8 sps:$4 sm:$0xff]   ;;  %v4082_v15 = vld [vmem:[%s5649_s22 + $0x14] ss:$8 sps:$4 sm:$0xff]  }
0x1216   : > { %2531 = vrot.lane.b32.xlu0 %v5356_v58, %s4572_s0  ;;  %s858_s0 = scalar_lea.vmem %s5651_s18, %s5061_s4 }
0x121a   : > { %2638 = vrot.lane.b32.xlu0 %v5354_v56, %s4573_s2  ;;  %v4073_v56 = vld [vmem:[%s5589_s12 + $0x20] sm:$0xff]  }
0x121b   : > { %3825 = vmatpush3.bf16.msra.mxu0 %v4073_v56  ;;  %v4086_v56 = vld [vmem:[%s5649_s22 + $0x30] ss:$8 sps:$4 sm:$0xff]  }
0x121c   : > { %3826 = vmatprep.subr.bf16.mxu0 %v4569_v18 }
0x121e   : > { %2636 = vrot.lane.b32.xlu0 %v5366_v4, %s4573_s2 }
0x121f   : > { %3827 = vmatpush3.bf16.msra.mxu0 %v4074_v31  ;;  %v4098_v31 = vld [vmem:[%s5649_s22 + $0x70] ss:$8 sps:$4 sm:$0xff]  }
0x1220   : > { %3838 = vmatprep.subr.bf16.mxu0 %v4569_v18 }
0x128d   : > { %v2521_v16 = vpop.xlane.xlu0 %2520 }
0x128e   : > { %v2522_v19 = vsub.f32 %v2518_v10, %v2521_v16  ;;  %v4080_v16 = vld [vmem:[%s5649_s22 + $0x10] ss:$8 sps:$4 sm:$0xff]  }
0x1290   : > { %v2523_v20 = vmul.f32 1.442695, %v2522_v19  ;;  %v4083_v19 = vld [vmem:[%s5649_s22 + $0x20] ss:$8 sps:$4 sm:$0xff]  }
0x1291   : > { %v2532_v22 = vpop.permute.xlu0 %2531 }
0x1292   : > { %4143 = vpow2.f32 %v2523_v20  ;;  %v2537_v32 = vsel %vm1210_vm4, %v2532_v22, 0 }
0x1293   : > { %3819 = vmatpush3.bf16.msra.mxu1 %v2537_v32 }
0x1294   : > { %3832 = vmatprep.subr.bf16.mxu1 %v4569_v18 }
0x1295   : > { %v2639_v27 = vpop.permute.xlu0 %2638 }
0x1296   : > { %v2644_v29 = vsel %vm1145_vm1, %v2639_v27, 0  ;;  %v4092_v27 = vld [vmem:[%s5649_s22 + $0x50] ss:$8 sps:$4 sm:$0xff]  }
0x1299   : > { %v2637_v30 = vpop.permute.xlu0 %2636 }
0x129c   : > { %v4144_v34 = vpop.eup %4143 }
0x129d   : > { %v2525_v24 = vsel %vm1194_vm3, %v4144_v34, 0.0 }
0x129e   : > { %2526 = vadd.xlane.f32.xlu1 %v2525_v24  ;;  %v4088_v24 = vld [vmem:[%s5649_s22 + $0x34] ss:$8 sps:$4 sm:$0xff]  }
0x132b   : > { %v2527_v4 = vpop.xlane.xlu1 %2526 }
0x132c   : > { %4145 = vrcp.f32 %v2527_v4  ;;  %v4091_v4 = vld [vmem:[%s5649_s22 + $0x44] ss:$8 sps:$4 sm:$0xff]  }
0x1336   : > { %v4146_v25 = vpop.eup %4145 }
0x1337   : > { %v2529_v26 = vmul.f32 %v4146_v25, %v4144_v34  ;;  %v4089_v25 = vld [vmem:[%s5649_s22 + $0x40] ss:$8 sps:$4 sm:$0xff]  }
0x1339   : > { %v2530_v28 = vpack.c.bf16 %v2529_v26, %v2529_v26  ;;  %v4094_v26 = vld [vmem:[%s5649_s22 + $0x54] ss:$8 sps:$4 sm:$0xff]  }
0x133b   : > { %3821 = vmatmul.mubr.msk.bf16.vlgmr.msra.gmra.mrb[44].mxu1 %vm1194_vm3, %v2530_v28  ;;  %v4097_v28 = vld [vmem:[%s5649_s22 + $0x64] ss:$8 sps:$4 sm:$0xff]  }
0x133c   : > { %3833 = vmatpush3.bf16.xpose.msra.mxu1 %v2644_v29  ;;  %3834 = vmatprep.mubr.msk.bf16.mxu1 %vm4570_vm0, %v4569_v18  ;;  %v4095_v29 = vld [vmem:[%s5649_s22 + $0x60] ss:$8 sps:$4 sm:$0xff]  }
0x133d   : > { %3844 = vmatprep.subr.bf16.mxu1 %v4569_v18 }
0x1343   : > { %3835 = vmatmul.mubr.msk.bf16.vlgmr.msra.gmra.mrb[48].mxu1 %vm1145_vm1, %v2637_v30  ;;  %v4100_v30 = vld [vmem:[%s5649_s22 + $0x74] ss:$8 sps:$4 sm:$0xff]  }
0x1344   : > { %3848 = vmatprep.mubr.msk.bf16.mxu1 %vm4570_vm0, %v4569_v18  ;;  %3845 = vmatpush3.bf16.msra.mxu1 %v4075_v51  ;;  %v3517_v51 = vld [vmem:[#allocation13] ss:$0 sm:$0xff] }
0x1345   : > { %3846 = vmatprep.subr.bf16.mxu1 %v4569_v18 }
0x140e   : > { %v2573_v33 = vpop.f32.mrb[44].mxu1 }
0x140f   : > { %v2579_v35 = vpack.c.bf16 %v2573_v33, %v2573_v33  ;;  %v3822_v36 = vpop.f32.mrb[45].mxu1  ;;  %v4101_v33 = vld [vmem:[%s5650_s23 + $0x40] sm:$0xff]  }
0x1410   : > { %v2576_v37 = vpop.f32.mrb[46].mxu1  ;;  %v4103_v36 = vld [vmem:[%s5650_s23 + $0x48] sm:$0xff]  }
0x1411   : > { %v3823_v38 = vpop.f32.mrb[47].mxu1  ;;  %3829 = vmatmul.mubr.msk.bf16.vlgmr.msra.gmra.mrb[48].mxu0 %vm1145_vm1, %v2579_v35  ;;  %v4102_v35 = vld [vmem:[%s5650_s23] sm:$0xff]   ;;  %v4104_v37 = vld [vmem:[%s5650_s23 + $0x8] sm:$0xff]  }
0x1412   : > { %3840 = vmatprep.mubr.msk.bf16.mxu0 %vm4570_vm0, %v4569_v18  ;;  %v4076_v18 = vld [vmem:[%s5589_s12 + $0x38] sm:$0xff]   ;;  %v4105_v38 = vld [vmem:[%s5650_s23 + $0x50] sm:$0xff]  }
0x1413   : > { %3847 = vmatpush3.bf16.msra.mxu1 %v4076_v18 }
0x1414   : > { %3630 = vmatprep.subr.bf16.mxu1 %v4101_v33 }
0x1416   : > { %v2680_v39 = vpop.f32.mrb[48].mxu1 }
0x1417   : > { %v2686_v40 = vmul.f32 0.17677669, %v2680_v39  ;;  %v3836_v41 = vpop.f32.mrb[49].mxu1  ;;  %v4106_v39 = vld [vmem:[%s5650_s23 + $0x10] sm:$0xff]  }
0x1418   : > { %v2683_v42 = vpop.f32.mrb[50].mxu1  ;;  %v4108_v41 = vld [vmem:[%s5650_s23 + $0x18] sm:$0xff]  }
0x1419   : > { %v3837_v43 = vpop.f32.mrb[51].mxu1  ;;  %v2687_v48 = vsel %vm1194_vm3, %v2686_v40, -inf  ;;  %v4109_v42 = vld [vmem:[%s5650_s23 + $0x60] sm:$0xff]  }
0x141a   : > { %2688 = vmax.xlane.f32.xlu0 %v2687_v48  ;;  %v4110_v43 = vld [vmem:[%s5650_s23 + $0x20] sm:$0xff]   ;;  %v4111_v48 = vld [vmem:[%s5650_s23 + $0x68] sm:$0xff]  }
0x14a7   : > { %v2689_v44 = vpop.xlane.xlu0 %2688 }
0x14a8   : > { %v2690_v45 = vsub.f32 %v2686_v40, %v2689_v44  ;;  %v4107_v40 = vld [vmem:[%s5650_s23 + $0x58] sm:$0xff]   ;;  %v4112_v44 = vld [vmem:[%s5650_s23 + $0x28] sm:$0xff]  }
0x14aa   : > { %v2691_v47 = vmul.f32 1.442695, %v2690_v45 }
0x14ac   : > { %4147 = vpow2.f32 %v2691_v47 }
0x14b6   : > { %v4148_v49 = vpop.eup %4147 }
0x14b7   : > { %v2693_v50 = vsel %vm1194_vm3, %v4148_v49, 0.0 }
0x14b8   : > { %2694 = vadd.xlane.f32.xlu1 %v2693_v50 }
0x14c9   : > { %2699 = vrot.lane.b32.xlu1 %v5356_v58, %s4573_s2 }
0x14e4   : > { %v2629_v11 = vpop.f32.mrb[48].mxu0 }
0x14e5   : > { %v2635_v52 = vadd.f32 %v2629_v11, %v5424_v6  ;;  %v3830_v53 = vpop.f32.mrb[49].mxu0 }
0x14e6   : > { %v2632_v54 = vpop.f32.mrb[50].mxu0 }
0x14e7   : > { %v3831_v55 = vpop.f32.mrb[51].mxu0 }
0x1545   : > { %v2695_v57 = vpop.xlane.xlu1 %2694 }
0x1546   : > { %4149 = vrcp.f32 %v2695_v57  ;;  %v4113_v57 = vld [vmem:[%s5650_s23 + $0x70] sm:$0xff]  }
0x1549   : > { %v2700_v59 = vpop.permute.xlu1 %2699 }
0x154a   : > { %v2705_v60 = vsel %vm1210_vm4, %v2700_v59, 0  ;;  %v4114_v59 = vld [vmem:[%s5650_s23 + $0x30] sm:$0xff]  }
0x154b   : > { %3839 = vmatpush3.bf16.msra.mxu0 %v2705_v60  ;;  %v4115_v60 = vld [vmem:[%s5650_s23 + $0x78] sm:$0xff]  }
0x154c   : > { %2982 = vmatprep.subr.bf16.mxu0 %v4079_v14 }
0x1550   : > { %v4150_v58 = vpop.eup %4149 }
0x1551   : > { %v2697_v61 = vmul.f32 %v4150_v58, %v4148_v49  ;;  %v4116_v58 = vld [vmem:[%s5650_s23 + $0x38] sm:$0xff]  }
0x1553   : > { %v2698_v62 = vpack.c.bf16 %v2697_v61, %v2697_v61  ;;  %v2857_v61 = vld [vmem:[#allocation16] sm:$0x3] }
0x1554   : > { %v2899_v18 = vrot.slane %v2857_v61, %v5082_v21 }
0x1555   : > { %3841 = vmatmul.mubr.msk.bf16.vlgmr.msra.gmra.mrb[52].mxu0 %vm1194_vm3, %v2698_v62  ;;  %v2895_v62 = vrot.slane %v2857_v61, %v5087_v23 }
0x1556   : > { %3014 = vmatprep.mubr.bf16.mxu0 %v4568_v0  ;;  %2983 = vmatpush1.bf16.msra.mxu0 %v4077_v13 }
0x1557   : > { %2984 = vmatprep.subr.bf16.mxu0 %v4082_v15 }
0x155a   : > { %2985 = vmatpush1.bf16.msra.mxu0 %v4080_v16 }
0x1628   : > { %v2741_v63 = vpop.f32.mrb[52].mxu0 }
0x1629   : > { %v2747_v1 = vpack.c.bf16 %v2741_v63, %v2741_v63  ;;  %v3842_v2 = vpop.f32.mrb[53].mxu0 }
0x162a   : > { %v2744_v3 = vpop.f32.mrb[54].mxu0 }
0x162b   : > { %v3843_v5 = vpop.f32.mrb[55].mxu0  ;;  %3849 = vmatmul.mubr.msk.bf16.vlgmr.msra.gmra.mrb[52].mxu1 %vm1145_vm1, %v2747_v1 }
0x162c   : > { %3631 = vmatpush3.bf16.msra.mxu1 %v4102_v35 }
0x162d   : > { %3632 = vmatprep.subr.bf16.mxu1 %v4103_v36 }
0x1630   : > { %3633 = vmatpush3.bf16.msra.mxu1 %v4104_v37 }
0x1631   : > { %3634 = vmatprep.subr.bf16.mxu1 %v4105_v38 }
0x1634   : > { %3635 = vmatpush3.bf16.msra.mxu1 %v4106_v39 }
0x1635   : > { %3636 = vmatprep.subr.bf16.mxu1 %v4107_v40 }
0x1638   : > { %3637 = vmatpush3.bf16.msra.mxu1 %v4108_v41 }
0x1639   : > { %3638 = vmatprep.subr.bf16.mxu1 %v4109_v42 }
0x163c   : > { %3639 = vmatpush3.bf16.msra.mxu1 %v4110_v43 }
0x163d   : > { %3640 = vmatprep.subr.bf16.mxu1 %v4111_v48 }
0x1640   : > { %3641 = vmatpush3.bf16.msra.mxu1 %v4112_v44 }
0x1641   : > { %3642 = vmatprep.subr.bf16.mxu1 %v4113_v57 }
0x1644   : > { %3643 = vmatpush3.bf16.msra.mxu1 %v4114_v59 }
0x1645   : > { %3644 = vmatprep.subr.bf16.mxu1 %v4115_v60 }
0x1648   : > { %3645 = vmatpush3.bf16.msra.mxu1 %v4116_v58 }
0x16fe   : > { %v2797_v6 = vpop.f32.mrb[52].mxu1 }
0x16ff   : > { %v2803_v8 = vadd.f32 %v2797_v6, %v2635_v52  ;;  %v3850_v17 = vpop.f32.mrb[53].mxu1  ;;  %v3518_v52 = vld [vmem:[#allocation15] ss:$0 sm:$0xff] }
0x1700   : > { %v2800_v9 = vpop.f32.mrb[54].mxu1 }
0x1701   : > { %v2811_v10 = vadd.f32 %v3516_v7, %v2803_v8  ;;  %v3851_v12 = vpop.f32.mrb[55].mxu1 }
0x1702   : > { %v3535_v12 = vld [vmem:[#allocation18] ss:$0 sm:$0xff] }
0x1703   : > { %v2814_v0 = vadd.f32 %v2811_v10, %v5346_v46  ;;  %v4085_v46 = vld [vmem:[%s5649_s22 + $0x24] ss:$8 sps:$4 sm:$0xff]  }
0x1704   : > { %2986 = vmatprep.subr.bf16.mxu0 %v4085_v46 }
0x1705   : > { %2815 = vadd.xlane.f32.xlu1 %v2814_v0  ;;  %2987 = vmatpush1.bf16.msra.mxu0 %v4083_v19 }
0x1706   : > { %2988 = vmatprep.subr.bf16.mxu0 %v4088_v24 }
0x1709   : > { %2989 = vmatpush1.bf16.msra.mxu0 %v4086_v56  ;;  %v3552_v56 = vld [vmem:[#allocation19] ss:$0 sm:$0xff] }
0x170a   : > { %2990 = vmatprep.subr.bf16.mxu0 %v4091_v4 }
0x170d   : > { %2991 = vmatpush1.bf16.msra.mxu0 %v4089_v25  ;;  %v3553_v25 = vld [vmem:[#allocation21] ss:$0 sm:$0xff] }
0x170e   : > { %2992 = vmatprep.subr.bf16.mxu0 %v4094_v26 }
0x1711   : > { %2993 = vmatpush1.bf16.msra.mxu0 %v4092_v27 }
0x1712   : > { %2994 = vmatprep.subr.bf16.mxu0 %v4097_v28 }
0x1715   : > { %2995 = vmatpush1.bf16.msra.mxu0 %v4095_v29 }
0x1716   : > { %2996 = vmatprep.subr.bf16.mxu0 %v4100_v30 }
0x1719   : > { %2997 = vmatpush1.bf16.msra.mxu0 %v4098_v31 }
0x1792   : > { %v2816_v20 = vpop.xlane.xlu1 %2815 }
0x1793   : > { %v2817_v22 = vmul.f32 0.0078125, %v2816_v20 }
0x1795   : > { %v2818_v32 = vsub.f32 %v2814_v0, %v2817_v22 }
0x1797   : > { %v2819_v34 = vmul.f32 %v2818_v32, %v2818_v32 }
0x1799   : > { %2820 = vadd.xlane.f32.xlu0 %v2819_v34 }
0x1826   : > { %v2821_v45 = vpop.xlane.xlu0 %2820 }
0x1827   : > { %v2822_v47 = vmul.f32 0.0078125, %v2821_v45 }
0x1829   : > { %v2823_v49 = vadd.f32 1e-05, %v2822_v47 }
0x182b   : > { %4151 = vrsqrt.f32 %v2823_v49 }
0x1835   : > { %v4152_v50 = vpop.eup %4151 }
0x1836   : > { %v2825_v11 = vmul.f32 %v4152_v50, %v2818_v32 }
0x1838   : > { %v2832_v53 = vmul.f32 %v3517_v51, %v2825_v11 }
0x183a   : > { %v2839_v54 = vadd.f32 %v3518_v52, %v2832_v53 }
0x183c   : > { %v2840_v55 = vpack.c.bf16 %v2839_v54, %v2839_v54 }
0x183e   : > { %3015 = vmatmul.mubr.bf16.vlgmr.msra.gmra.mrb[56].mxu0 %v2840_v55 }
0x1911   : > { %v3016_v63 = vpop.f32.mrb[56].mxu0 }
0x1912   : > { %v3017_v1 = vadd.f32 %v3016_v63, %v2895_v62  ;;  %v3018_v2 = vpop.f32.mrb[57].mxu0 }
0x1913   : > { %v3019_v3 = vadd.f32 %v3018_v2, %v2899_v18  ;;  %v3020_v5 = vpop.f32.mrb[58].mxu0 }
0x1914   : > { %v3023_v6 = vmax.f32 %v3017_v1, 0.0  ;;  %v3021_v7 = vpop.f32.mrb[59].mxu0 }
0x1915   : > { %v3024_v8 = vmax.f32 %v3019_v3, 0.0 }
0x1916   : > { %v3025_v9 = vpack.c.bf16 %v3023_v6, %v3023_v6 }
0x1917   : > { %v3026_v17 = vpack.c.bf16 %v3024_v8, %v3024_v8 }
0x1919   : > { %3161 = vmatprep.mubr.bf16.mxu1 %v3026_v17 }
0x191a   : > { %3162 = vmatmul.mubr.bf16.vlgmr.msra.gmra.mrb[56].mxu1 %v3025_v9 }
0x19ed   : > { %v3646_v10 = vpop.f32.mrb[56].mxu1 }
0x19ee   : > { %v3647_v0 = vpop.f32.mrb[57].mxu1 }
0x19ef   : > { %v3648_v13 = vadd.f32 %v3647_v0, %v3646_v10  ;;  %v3649_v14 = vpop.f32.mrb[58].mxu1 }
0x19f0   : > { %v3650_v23 = vpop.f32.mrb[59].mxu1 }
0x19f1   : > { %v3164_v15 = vadd.f32 %v3648_v13, %v3535_v12 }
0x19f3   : > { %v3171_v21 = vadd.f32 %v3164_v15, %v2839_v54 }
0x19f5   : > { %3172 = vadd.xlane.f32.xlu0 %v3171_v21 }
0x1a82   : > { %v3173_v16 = vpop.xlane.xlu0 %3172 }
0x1a83   : > { %v3174_v46 = vmul.f32 0.0078125, %v3173_v16 }
0x1a85   : > { %v3175_v19 = vsub.f32 %v3171_v21, %v3174_v46 }
0x1a87   : > { %v3176_v20 = vmul.f32 %v3175_v19, %v3175_v19 }
0x1a89   : > { %3177 = vadd.xlane.f32.xlu0 %v3176_v20 }
0x1b16   : > { %v3178_v22 = vpop.xlane.xlu0 %3177 }
0x1b17   : > { %v3179_v32 = vmul.f32 0.0078125, %v3178_v22 }
0x1b19   : > { %v3180_v34 = vadd.f32 1e-05, %v3179_v32 }
0x1b1b   : > { %4153 = vrsqrt.f32 %v3180_v34 }
0x1b25   : > { %v4154_v24 = vpop.eup %4153 }
0x1b26   : > { %v3182_v4 = vmul.f32 %v4154_v24, %v3175_v19 }
0x1b28   : > { %v3189_v26 = vmul.f32 %v3552_v56, %v3182_v4 }
0x1b2a   : > { %v3196_v27 = vadd.f32 %v3553_v25, %v3189_v26 }
0x1b2c   : > { %v3197_v28 = vpack.c.bf16 %v3196_v27, %v3196_v27 }
0x1b2e   : > { %3198 = vst [vmem:[%s858_s0] sm:$0xf] %v3197_v28 }
0x1b2f PF: > { %s5652_s6 = sld [smem:[#allocation29_spill]] }
0x1b35   : > { %s39_s3 = sadd.s32 1, %s5652_s6  }
0x1b36   : > { %p36_p7 = scmp.ge.s32.totalorder %s39_s3, 4  }
0x1b38   :  { %38 = sbr.rel (!%p36_p7) target bundleno = 19 (0x13), region = 194 }
0x1b3f   :  { %3218 = vsyncpa [#allocation3], 1 }
0x1b40   :  { %3220 = vsyncpa [#allocation3 + $0x1], 1 }
0x1b41   :  { %3221 = vsyncpa [#allocation5], 1 }
0x1b42   :  { %3222 = vsyncpa [#allocation8], 1 }
0x1b43   :  { %3223 = vsyncpa [#allocation11], 1 }
0x1b44   :  { %3224 = vsyncpa [#allocation14], 1 }
0x1b45   :  { %3225 = vsyncpa [#allocation17], 1 }
0x1b46   :  { %3226 = vsyncpa [#allocation20], 1 }

// kernel: forward.12
= control target key start
LH: loop header
LB: loop body
LE: loop exit
PB: predicated region body
PF: predicated region fallthrough
CT: control target
= control target key end

     0   :  { %s4447_s0 = inlined_call_operand.vmem [shape: bf16[2,8,128], index: 0, kind: input, shape index: {}]   ;;  %s4448_s1 = inlined_call_operand.vmem [shape: bf16[2,8,128], index: 1, kind: input, shape index: {}]   ;;  %s4449_s2 = inlined_call_operand.vmem [shape: bf16[128,384], index: 2, kind: input, shape index: {}]   ;;  %s4450_s3 = inlined_call_operand.vmem [shape: f32[1,384], index: 3, kind: input, shape index: {}]   ;;  %s4451_s4 = inlined_call_operand.vmem [shape: bf16[128,128], index: 4, kind: input, shape index: {}]   ;;  %s4452_s5 = inlined_call_operand.vmem [shape: f32[1,128], index: 5, kind: input, shape index: {}]   ;;  %s4453_s6 = inlined_call_operand.vmem [shape: f32[1,128], index: 6, kind: input, shape index: {}]   ;;  %s4454_s7 = inlined_call_operand.vmem [shape: f32[1,128], index: 7, kind: input, shape index: {}]   ;;  %s4455_s8 = inlined_call_operand.vmem [shape: bf16[128,128], index: 8, kind: input, shape index: {}]   ;;  %s4456_s9 = inlined_call_operand.vmem [shape: f32[1,128], index: 9, kind: input, shape index: {}]   ;;  %s4457_s10 = inlined_call_operand.vmem [shape: bf16[128,256], index: 10, kind: input, shape index: {}]   ;;  %s4458_s11 = inlined_call_operand.vmem [shape: f32[1,256], index: 11, kind: input, shape index: {}]   ;;  %s4459_s12 = inlined_call_operand.vmem [shape: bf16[128,128], index: 12, kind: input, shape index: {}]   ;;  %s4460_s13 = inlined_call_operand.vmem [shape: f32[1,128], index: 13, kind: input, shape index: {}]   ;;  %s4461_s14 = inlined_call_operand.vmem [shape: f32[1,128], index: 14, kind: input, shape index: {}]   ;;  %s4462_s15 = inlined_call_operand.vmem [shape: f32[1,128], index: 15, kind: input, shape index: {}]   ;;  %s4463_s16 = inlined_call_operand.vmem [shape: bf16[128,256], index: 16, kind: input, shape index: {}]   ;;  %s4464_s17 = inlined_call_operand.vmem [shape: f32[1,256], index: 17, kind: input, shape index: {}]   ;;  %s4465_s18 = inlined_call_operand.vmem [shape: bf16[256,128], index: 18, kind: input, shape index: {}]   ;;  %s4466_s19 = inlined_call_operand.vmem [shape: f32[1,128], index: 19, kind: input, shape index: {}]   ;;  %s4467_s20 = inlined_call_operand.vmem [shape: f32[1,128], index: 20, kind: input, shape index: {}]   ;;  %s4468_s21 = inlined_call_operand.vmem [shape: f32[1,128], index: 21, kind: input, shape index: {}]   ;;  %s4469_s22 = inlined_call_operand.vmem [shape: bf16[2,8,128], index: 22, kind: output, shape index: {}]  }
   0x1   :  { %4476 = sst [smem:[#allocation2_spill]] %s4447_s0 }
   0x2   :  { %4477 = sst [smem:[#allocation3_spill]] %s4448_s1 }
   0x3   :  { %4478 = sst [smem:[#allocation4_spill]] %s4449_s2 }
   0x4   :  { %4479 = sst [smem:[#allocation5_spill]] %s4450_s3  ;;  %s3838_s3 = smov 0  }
   0x5   :  { %4480 = sst [smem:[#allocation6_spill]] %s4451_s4 }
   0x6   :  { %4481 = sst [smem:[#allocation7_spill]] %s4452_s5 }
   0x7   :  { %4482 = sst [smem:[#allocation8_spill]] %s4453_s6 }
   0x8 LB: > { %s3101_s28 = sadd.s32 4294967295, %s3715_s3   ;;  %p3105_p0 = scmp.ge.s32.totalorder %s3715_s3, 1  ;;  %s3715_s3 = sphi %s3838_s3, %s32_s3  }
   0x9   : > { %p620_p1 = scmp.lt.s32.totalorder %s3715_s3, 3 }
   0xb   : > { %p621_p2 = pnand %p3105_p0, %p620_p1 }
   0xc   : > { %s4483_s4 = sld [smem:[#allocation4_spill]] (!%p621_p2)  ;;  %v3717_v2 = vmov (!%p621_p2), 0   ;;  %p684_p3 = scmp.lt.s32.totalorder (!%p621_p2), %s3101_s28, 1  ;;  %v3718_v18 = vmov (!%p621_p2), 0.0   ;;  %vm3719_vm0 = vmmov (!%p621_p2), 0   ;;  %v733_v19 = vlaneseq (!%p621_p2) }
   0xd   : > { %624 = sbr.rel (%p621_p2) target bundleno = 6611 (0x19d3), region = 108  ;;  %908 = vmatprep.mubr.bf16.mxu0 (!%p621_p2), %v3717_v2  ;;  %s4484_s27 = sld [smem:[#allocation2_spill]] (!%p621_p2)  ;;  %3337 = vmatprep.subr.bf16.mxu1 (!%p621_p2), %v3718_v18  ;;  %vm982_vm1 = vcmask (!%p621_p2), 261120   ;;  %vm1031_vm3 = vcmask (!%p621_p2), 64512   ;;  %vm1047_vm4 = vcmask (!%p621_p2), 1043456  }
   0xe   : > { %3353 = vmatprep.mubr.msk.bf16.mxu1 (!%p621_p2), %vm3719_vm0, %v3718_v18  ;;  %v3910_v20 = vshrl.u32 (!%p621_p2), %v733_v19, 7  ;;  %s4485_s0 = sld [smem:[#allocation5_spill]] (!%p621_p2)  ;;  %s3720_s23 = smov (!%p621_p2), 96   ;;  %v979_v46 = vand.u32 (!%p621_p2), 127, %v733_v19 }
   0xf   : > { %s4474_s2 = smov (!%p621_p2), 64   ;;  %s4472_s26 = smov (!%p621_p2), 32  }
  0x10   : > { %v3913_v21 = vsub.s32 (!%p621_p2), 1, %v3910_v20  ;;  %v3921_v23 = vsub.s32 (!%p621_p2), 0, %v3910_v20  ;;  %vm980_vm2 = vcmp.gt.s32.totalorder (!%p621_p2), %v979_v46, %v3910_v20  ;;  %s4487_s30 = sld [smem:[#allocation7_spill]] (!%p621_p2)  ;;  %s4489_s25 = sld [smem:[#allocation8_spill]] (!%p621_p2) }
  0x11   : > { %v3984_v48 = vsel (!%p621_p2), %vm980_vm2, -1e+09, %v3718_v18  ;;  %s4490_s1 = smov (!%p621_p2), 64  }
  0x12   : > { %v3551_v0 = vld [vmem:[%s4483_s4 + $0x4] ss:$12 sps:$4 sm:$0xff] (!%p621_p2)   ;;  %v3553_v1 = vld [vmem:[%s4483_s4] ss:$12 sps:$4 sm:$0xff] (!%p621_p2)   ;;  %v3554_v3 = vld [vmem:[%s4483_s4 + $0x1c] ss:$12 sps:$4 sm:$0xff] (!%p621_p2)  }
  0x13   : > { %876 = vmatprep.subr.bf16.mxu0 (!%p621_p2), %v3551_v0  ;;  %v3556_v4 = vld [vmem:[%s4483_s4 + $0x18] ss:$12 sps:$4 sm:$0xff] (!%p621_p2)   ;;  %v3557_v5 = vld [vmem:[%s4483_s4 + $0x34] ss:$12 sps:$4 sm:$0xff] (!%p621_p2)   ;;  %v3559_v6 = vld [vmem:[%s4483_s4 + $0x30] ss:$12 sps:$4 sm:$0xff] (!%p621_p2)  }
  0x14   : > { %877 = vmatpush1.bf16.msra.mxu0 %v3553_v1  ;;  %v3560_v7 = vld [vmem:[%s4483_s4 + $0x4c] ss:$12 sps:$4 sm:$0xff]   ;;  %v3562_v8 = vld [vmem:[%s4483_s4 + $0x48] ss:$12 sps:$4 sm:$0xff]   ;;  %s4493_s28 = smov (!%p684_p3, %s3101_s28), 1 }
  0x15   : > { %878 = vmatprep.subr.bf16.mxu0 %v3554_v3  ;;  %v3563_v9 = vld [vmem:[%s4483_s4 + $0x64] ss:$12 sps:$4 sm:$0xff]   ;;  %v3565_v10 = vld [vmem:[%s4483_s4 + $0x60] ss:$12 sps:$4 sm:$0xff]   ;;  %v3566_v11 = vld [vmem:[%s4483_s4 + $0x7c] ss:$12 sps:$4 sm:$0xff]  }
  0x16   : > { %v3568_v12 = vld [vmem:[%s4483_s4 + $0x78] ss:$12 sps:$4 sm:$0xff]   ;;  %v3569_v13 = vld [vmem:[%s4483_s4 + $0x94] ss:$12 sps:$4 sm:$0xff]   ;;  %v3571_v14 = vld [vmem:[%s4483_s4 + $0x90] ss:$12 sps:$4 sm:$0xff]  }
  0x17   : > { %v3572_v15 = vld [vmem:[%s4483_s4 + $0xac] ss:$12 sps:$4 sm:$0xff]   ;;  %s3892_s24 = sshll.u32 %s4493_s28, 2  ;;  %v3574_v16 = vld [vmem:[%s4483_s4 + $0xa8] ss:$12 sps:$4 sm:$0xff]   ;;  %s4486_s28 = sld [smem:[#allocation6_spill]] }
  0x18   : > { %879 = vmatpush1.bf16.msra.mxu0 %v3556_v4  ;;  %s687_s29 = scalar_lea.vmem %s4484_s27, %s3892_s24  ;;  %v3918_v22 = vld [vmem:[%s4485_s0] sm:$0x7]  ;;  %v3575_v35 = vld [vmem:[%s4483_s4 + $0x8] ss:$12 sps:$4 sm:$0xff]   ;;  %v3577_v37 = vld [vmem:[%s4483_s4 + $0x38] ss:$12 sps:$4 sm:$0xff]   ;;  %s695_s0 = scalar_lea.vmem %s4469_s22, %s3892_s24 }
  0x19   : > { %880 = vmatprep.subr.bf16.mxu0 %v3557_v5  ;;  %v3901_v17 = vld [vmem:[%s687_s29] sm:$0xf]  ;;  %v740_v24 = vrot.slane %v3918_v22, %v3913_v21  ;;  %v736_v25 = vrot.slane %v3918_v22, %v3921_v23  ;;  %3338 = vmatpush3.bf16.msra.mxu1 %v3575_v35  ;;  %v3578_v38 = vld [vmem:[%s4483_s4 + $0x50] ss:$12 sps:$4 sm:$0xff]   ;;  %v3579_v39 = vld [vmem:[%s4483_s4 + $0x68] ss:$12 sps:$4 sm:$0xff]  }
  0x1a   : > { %v3576_v36 = vld [vmem:[%s4483_s4 + $0x20] ss:$12 sps:$4 sm:$0xff]   ;;  %3339 = vmatprep.subr.bf16.mxu1 %v3718_v18  ;;  %v3581_v43 = vld [vmem:[%s4483_s4 + $0x98] ss:$12 sps:$4 sm:$0xff]   ;;  %v3582_v45 = vld [vmem:[%s4483_s4 + $0xb0] ss:$12 sps:$4 sm:$0xff]  }
  0x1b   : > { %v3580_v42 = vld [vmem:[%s4483_s4 + $0x80] ss:$12 sps:$4 sm:$0xff]  }
  0x1c   : > { %881 = vmatpush1.bf16.msra.mxu0 %v3559_v6 }
  0x1d   : > { %882 = vmatprep.subr.bf16.mxu0 %v3560_v7  ;;  %3340 = vmatpush3.bf16.msra.mxu1 %v3576_v36  ;;  %v3583_v35 = vld [vmem:[%s4486_s28] sm:$0xff]  }
  0x1e   : > { %3341 = vmatprep.subr.bf16.mxu1 %v3718_v18 }
  0x20   : > { %883 = vmatpush1.bf16.msra.mxu0 %v3562_v8  ;;  %v743_v8 = vsub.s32 2, %v3910_v20 }
  0x21   : > { %884 = vmatprep.subr.bf16.mxu0 %v3563_v9  ;;  %3342 = vmatpush3.bf16.msra.mxu1 %v3577_v37  ;;  %v3584_v37 = vld [vmem:[%s4486_s28 + $0x8] sm:$0xff]  }
  0x22   : > { %3343 = vmatprep.subr.bf16.mxu1 %v3718_v18  ;;  %v744_v9 = vrot.slane %v3918_v22, %v743_v8 }
  0x24   : > { %885 = vmatpush1.bf16.msra.mxu0 %v3565_v10 }
  0x25   : > { %886 = vmatprep.subr.bf16.mxu0 %v3566_v11  ;;  %3344 = vmatpush3.bf16.msra.mxu1 %v3578_v38 }
  0x26   : > { %3345 = vmatprep.subr.bf16.mxu1 %v3718_v18 }
  0x28   : > { %887 = vmatpush1.bf16.msra.mxu0 %v3568_v12 }
  0x29   : > { %888 = vmatprep.subr.bf16.mxu0 %v3569_v13  ;;  %3346 = vmatpush3.bf16.msra.mxu1 %v3579_v39 }
  0x2a   : > { %3347 = vmatprep.subr.bf16.mxu1 %v3718_v18 }
  0x2c   : > { %889 = vmatpush1.bf16.msra.mxu0 %v3571_v14 }
  0x2d   : > { %890 = vmatprep.subr.bf16.mxu0 %v3572_v15  ;;  %3348 = vmatpush3.bf16.msra.mxu1 %v3580_v42 }
  0x2e   : > { %3349 = vmatprep.subr.bf16.mxu1 %v3718_v18 }
  0x30   : > { %891 = vmatpush1.bf16.msra.mxu0 %v3574_v16 }
  0x31   : > { %3357 = vmatprep.subr.bf16.mxu0 %v3718_v18  ;;  %3350 = vmatpush3.bf16.msra.mxu1 %v3581_v43 }
  0x32   : > { %3351 = vmatprep.subr.bf16.mxu1 %v3718_v18 }
  0x33   : > { %909 = vmatmul.mubr.bf16.vlgmr.msra.gmra.mrb[0].mxu0 %v3901_v17 }
  0x34   : > { %3359 = vmatprep.mubr.msk.bf16.mxu0 %vm3719_vm0, %v3718_v18 }
  0x35   : > { %3352 = vmatpush3.bf16.msra.mxu1 %v3582_v45 }
  0x36   : > { %3363 = vmatprep.subr.bf16.mxu1 %v3718_v18 }
  0x38   : > { %3354 = vmatmul.mubr.bf16.vlgmr.msra.gmra.mrb[0].mxu1 %v3901_v17 }
  0x39   : > { %3365 = vmatprep.mubr.msk.bf16.mxu1 %vm3719_vm0, %v3718_v18 }
 0x106   : > { %v910_v26 = vpop.f32.mrb[0].mxu0 }
 0x107   : > { %v912_v27 = vpop.f32.mrb[1].mxu0  ;;  %v911_v31 = vadd.f32 %v910_v26, %v736_v25  ;;  %v3585_v26 = vld [vmem:[%s4486_s28 + $0x10] sm:$0xff]  }
 0x108   : > { %v913_v28 = vadd.f32 %v912_v27, %v740_v24  ;;  %v914_v29 = vpop.f32.mrb[2].mxu0  ;;  %v3586_v27 = vld [vmem:[%s4486_s28 + $0x18] sm:$0xff]  }
 0x109   : > { %v915_v30 = vpop.f32.mrb[3].mxu0  ;;  %v3933_v34 = vpack.c.bf16 %v911_v31, %v911_v31 }
 0x10a   : > { %v3927_v32 = vpack.c.bf16 %v913_v28, %v913_v28 }
 0x10b   : > { %v951_v1 = vpop.f32.mrb[0].mxu1 }
 0x10c   : > { %1096 = vrot.lane.b32.xlu0 %v3927_v32, %s3720_s23  ;;  %v987_v33 = vsel %vm982_vm1, %v3927_v32, 0  ;;  %v3355_v3 = vpop.f32.mrb[1].mxu1  ;;  %v952_v10 = vadd.f32 %v951_v1, %v744_v9 }
 0x10d   : > { %3358 = vmatpush3.bf16.xpose.msra.mxu0 %v987_v33  ;;  %v954_v4 = vpop.f32.mrb[2].mxu1 }
 0x10e   : > { %3369 = vmatprep.subr.bf16.mxu0 %v3718_v18  ;;  %v3356_v5 = vpop.f32.mrb[3].mxu1  ;;  %v3993_v11 = vpack.c.bf16 %v952_v10, %v952_v10 }
 0x110   : > { %1093 = vrot.lane.b32.xlu0 %v3933_v34, %s3720_s23  ;;  %v1049_v12 = vsel %vm1047_vm4, %v3993_v11, 0 }
 0x111   : > { %3364 = vmatpush3.bf16.msra.mxu1 %v1049_v12 }
 0x112   : > { %3375 = vmatprep.subr.bf16.mxu1 %v3718_v18 }
 0x114   : > { %3360 = vmatmul.mubr.msk.bf16.vlgmr.msra.gmra.mrb[4].mxu0 %vm982_vm1, %v3933_v34 }
 0x115   : > { %3371 = vmatprep.mubr.msk.bf16.mxu0 %vm3719_vm0, %v3718_v18 }
 0x17e   : > { %v1097_v40 = vpop.permute.xlu0 %1096 }
 0x17f   : > { %v1102_v41 = vsel %vm982_vm1, %v1097_v40, 0 }
 0x180   : > { %3370 = vmatpush3.bf16.xpose.msra.mxu0 %v1102_v41 }
 0x181   : > { %3381 = vmatprep.subr.bf16.mxu0 %v3718_v18 }
 0x182   : > { %v1094_v44 = vpop.permute.xlu0 %1093 }
 0x187   : > { %3372 = vmatmul.mubr.msk.bf16.vlgmr.msra.gmra.mrb[8].mxu0 %vm982_vm1, %v1094_v44 }
 0x188   : > { %3385 = vmatprep.mubr.msk.bf16.mxu0 %vm3719_vm0, %v3718_v18  ;;  %3382 = vmatpush3.bf16.msra.mxu0 %v3585_v26 }
 0x189   : > { %3383 = vmatprep.subr.bf16.mxu0 %v3718_v18 }
 0x18c   : > { %3384 = vmatpush3.bf16.msra.mxu0 %v3586_v27 }
 0x18d   : > { %3397 = vmatprep.subr.bf16.mxu0 %v3718_v18 }
 0x1e7   : > { %v1023_v47 = vpop.f32.mrb[4].mxu0 }
 0x1e8   : > { %v1029_v49 = vmul.f32 0.17677669, %v1023_v47  ;;  %v3361_v50 = vpop.f32.mrb[5].mxu0 }
 0x1e9   : > { %v1026_v51 = vpop.f32.mrb[6].mxu0 }
 0x1ea   : > { %v3362_v52 = vpop.f32.mrb[7].mxu0  ;;  %v1030_v53 = vadd.f32 %v1029_v49, %v3984_v48 }
 0x1ec   : > { %v1032_v54 = vsel %vm1031_vm3, %v1030_v53, -inf }
 0x1ed   : > { %1033 = vmax.xlane.f32.xlu1 %v1032_v54 }
 0x25a   : > { %v1138_v55 = vpop.f32.mrb[8].mxu0 }
 0x25b   : > { %v1144_v56 = vmul.f32 0.17677669, %v1138_v55  ;;  %v3373_v57 = vpop.f32.mrb[9].mxu0 }
 0x25c   : > { %v1141_v58 = vpop.f32.mrb[10].mxu0 }
 0x25d   : > { %v3374_v59 = vpop.f32.mrb[11].mxu0  ;;  %v1145_v60 = vadd.f32 %v1144_v56, %v3984_v48 }
 0x25f   : > { %v1146_v61 = vsel %vm1031_vm3, %v1145_v60, -inf }
 0x260   : > { %1147 = vmax.xlane.f32.xlu1 %v1146_v61 }
 0x27a   : > { %v1034_v62 = vpop.xlane.xlu1 %1033 }
 0x27b   : > { %v1035_v63 = vsub.f32 %v1030_v53, %v1034_v62 }
 0x27d   : > { %v1036_v0 = vmul.f32 1.442695, %v1035_v63 }
 0x27f   : > { %3671 = vpow2.f32 %v1036_v0 }
 0x289   : > { %v3672_v6 = vpop.eup %3671 }
 0x28a   : > { %v1038_v7 = vsel %vm1031_vm3, %v3672_v6, 0.0 }
 0x28b   : > { %1039 = vadd.xlane.f32.xlu0 %v1038_v7 }
 0x2a1   : > { %1382 = vrot.lane.b32.xlu0 %v3993_v11, %s4474_s2 }
 0x2ed   : > { %v1148_v13 = vpop.xlane.xlu1 %1147 }
 0x2ee   : > { %v1149_v14 = vsub.f32 %v1145_v60, %v1148_v13  ;;  %v3587_v13 = vld [vmem:[%s4486_s28 + $0x20] sm:$0xff]  }
 0x2f0   : > { %v1150_v15 = vmul.f32 1.442695, %v1149_v14 }
 0x2f2   : > { %3673 = vpow2.f32 %v1150_v15 }
 0x2fc   : > { %v3674_v16 = vpop.eup %3673 }
 0x2fd   : > { %v1152_v19 = vsel %vm1031_vm3, %v3674_v16, 0.0 }
 0x2fe   : > { %1153 = vadd.xlane.f32.xlu1 %v1152_v19 }
 0x30f   : > { %1159 = vrot.lane.b32.xlu1 %v3993_v11, %s3720_s23 }
 0x313   : > { %1320 = vrot.lane.b32.xlu1 %v3927_v32, %s4474_s2 }
 0x317   : > { %1318 = vrot.lane.b32.xlu1 %v3933_v34, %s4474_s2  ;;  %s4488_s2 = sld [smem:[#allocation3_spill]] }
 0x318   : > { %v1040_v20 = vpop.xlane.xlu0 %1039 }
 0x319   : > { %3675 = vrcp.f32 %v1040_v20 }
 0x31c   : > { %v1383_v38 = vpop.permute.xlu0 %1382 }
 0x31d   : > { %v1388_v43 = vsel %vm1047_vm4, %v1383_v38, 0 }
 0x323   : > { %v3676_v22 = vpop.eup %3675 }
 0x324   : > { %v1042_v24 = vmul.f32 %v3676_v22, %v3672_v6 }
 0x326   : > { %v1043_v25 = vpack.c.bf16 %v1042_v24, %v1042_v24 }
 0x328   : > { %3366 = vmatmul.mubr.msk.bf16.vlgmr.msra.gmra.mrb[4].mxu1 %vm1031_vm3, %v1043_v25 }
 0x329   : > { %3377 = vmatprep.mubr.msk.bf16.mxu1 %vm3719_vm0, %v3718_v18 }
 0x38b   : > { %v1154_v28 = vpop.xlane.xlu1 %1153 }
 0x38c   : > { %3677 = vrcp.f32 %v1154_v28 }
 0x38f   : > { %v1160_v29 = vpop.permute.xlu1 %1159 }
 0x390   : > { %v1165_v30 = vsel %vm1047_vm4, %v1160_v29, 0 }
 0x391   : > { %3376 = vmatpush3.bf16.msra.mxu1 %v1165_v30 }
 0x392   : > { %3389 = vmatprep.subr.bf16.mxu1 %v3718_v18 }
 0x393   : > { %v1321_v45 = vpop.permute.xlu1 %1320 }
 0x394   : > { %v1326_v51 = vsel %vm982_vm1, %v1321_v45, 0 }
 0x396   : > { %v3678_v31 = vpop.eup %3677 }
 0x397   : > { %v1156_v33 = vmul.f32 %v3678_v31, %v3674_v16  ;;  %v1319_v53 = vpop.permute.xlu1 %1318 }
 0x399   : > { %v1157_v36 = vpack.c.bf16 %v1156_v33, %v1156_v33 }
 0x39b   : > { %3378 = vmatmul.mubr.msk.bf16.vlgmr.msra.gmra.mrb[8].mxu1 %vm1031_vm3, %v1157_v36 }
 0x39c   : > { %3390 = vmatpush3.bf16.msra.mxu1 %v3583_v35  ;;  %3393 = vmatprep.mubr.msk.bf16.mxu1 %vm3719_vm0, %v3718_v18 }
 0x39d   : > { %3391 = vmatprep.subr.bf16.mxu1 %v3718_v18 }
 0x3a0   : > { %3392 = vmatpush3.bf16.msra.mxu1 %v3584_v37 }
 0x3a1   : > { %3403 = vmatprep.subr.bf16.mxu1 %v3718_v18 }
 0x3fb   : > { %v1085_v39 = vpop.f32.mrb[4].mxu1 }
 0x3fc   : > { %v1091_v40 = vpack.c.bf16 %v1085_v39, %v1085_v39  ;;  %v3367_v41 = vpop.f32.mrb[5].mxu1 }
 0x3fd   : > { %v1088_v42 = vpop.f32.mrb[6].mxu1 }
 0x3fe   : > { %v3368_v44 = vpop.f32.mrb[7].mxu1  ;;  %3394 = vmatmul.mubr.msk.bf16.vlgmr.msra.gmra.mrb[12].mxu1 %vm982_vm1, %v1091_v40 }
 0x3ff   : > { %3404 = vmatpush3.bf16.msra.mxu1 %v1388_v43  ;;  %3405 = vmatprep.mubr.msk.bf16.mxu1 %vm3719_vm0, %v3718_v18  ;;  %v3589_v43 = vld [vmem:[%s4486_s28 + $0x30] sm:$0xff]  }
 0x400   : > { %3417 = vmatprep.subr.bf16.mxu1 %v3718_v18 }
 0x46e   : > { %v1201_v46 = vpop.f32.mrb[8].mxu1 }
 0x46f   : > { %v1207_v47 = vpack.c.bf16 %v1201_v46, %v1201_v46  ;;  %v3379_v49 = vpop.f32.mrb[9].mxu1 }
 0x470   : > { %v1204_v50 = vpop.f32.mrb[10].mxu1 }
 0x471   : > { %v3380_v52 = vpop.f32.mrb[11].mxu1  ;;  %3386 = vmatmul.mubr.msk.bf16.vlgmr.msra.gmra.mrb[12].mxu0 %vm982_vm1, %v1207_v47 }
 0x472   : > { %3398 = vmatpush3.bf16.xpose.msra.mxu0 %v1326_v51  ;;  %3399 = vmatprep.mubr.msk.bf16.mxu0 %vm3719_vm0, %v3718_v18 }
 0x473   : > { %3409 = vmatprep.subr.bf16.mxu0 %v3718_v18 }
 0x479   : > { %3400 = vmatmul.mubr.msk.bf16.vlgmr.msra.gmra.mrb[16].mxu0 %vm982_vm1, %v1319_v53 }
 0x47a   : > { %3413 = vmatprep.mubr.msk.bf16.mxu0 %vm3719_vm0, %v3718_v18  ;;  %3410 = vmatpush3.bf16.msra.mxu0 %v3587_v13  ;;  %v3597_v13 = vld [vmem:[%s4457_s10 + $0x20] ss:$8 sps:$4 sm:$0xff]  }
 0x47b   : > { %3411 = vmatprep.subr.bf16.mxu0 %v3718_v18 }
 0x4d1   : > { %v1312_v54 = vpop.f32.mrb[12].mxu1 }
 0x4d2   : > { %v3395_v55 = vpop.f32.mrb[13].mxu1 }
 0x4d3   : > { %v1315_v56 = vpop.f32.mrb[14].mxu1 }
 0x4d4   : > { %v3396_v57 = vpop.f32.mrb[15].mxu1 }
 0x544   : > { %v1257_v58 = vpop.f32.mrb[12].mxu0 }
 0x545   : > { %v4044_v59 = vadd.f32 %v1312_v54, %v1257_v58  ;;  %v3387_v60 = vpop.f32.mrb[13].mxu0  ;;  %v3590_v54 = vld [vmem:[%s4486_s28 + $0x38] sm:$0xff]  }
 0x546   : > { %v1260_v61 = vpop.f32.mrb[14].mxu0 }
 0x547   : > { %v3388_v62 = vpop.f32.mrb[15].mxu0  ;;  %v3153_v61 = vld [vmem:[%s4487_s30] ss:$0 sm:$0xff]  ;;  %s4491_s30 = smov 32  }
 0x54c   : > { %v1362_v63 = vpop.f32.mrb[16].mxu0 }
 0x54d   : > { %v1368_v0 = vmul.f32 0.17677669, %v1362_v63  ;;  %v3401_v1 = vpop.f32.mrb[17].mxu0 }
 0x54e   : > { %v1365_v3 = vpop.f32.mrb[18].mxu0 }
 0x54f   : > { %v3402_v4 = vpop.f32.mrb[19].mxu0  ;;  %v1369_v5 = vadd.f32 %v1368_v0, %v3984_v48  ;;  %v1664_v0 = vunpack.c.l.bf16 %v3901_v17  ;;  %v3600_v17 = vld [vmem:[%s4455_s8] sm:$0xff]  }
 0x551   : > { %v1370_v6 = vsel %vm1031_vm3, %v1369_v5, -inf }
 0x552   : > { %1371 = vmax.xlane.f32.xlu1 %v1370_v6  ;;  %v3591_v6 = vld [vmem:[%s4457_s10] ss:$8 sps:$4 sm:$0xff]  }
 0x5df   : > { %v1372_v7 = vpop.xlane.xlu1 %1371 }
 0x5e0   : > { %v1373_v8 = vsub.f32 %v1369_v5, %v1372_v7  ;;  %v3593_v7 = vld [vmem:[%s4457_s10 + $0x4] ss:$8 sps:$4 sm:$0xff]  }
 0x5e2   : > { %v1374_v9 = vmul.f32 1.442695, %v1373_v8  ;;  %v3596_v8 = vld [vmem:[%s4457_s10 + $0x14] ss:$8 sps:$4 sm:$0xff]  }
 0x5e4   : > { %3679 = vpow2.f32 %v1374_v9  ;;  %v3594_v9 = vld [vmem:[%s4457_s10 + $0x10] ss:$8 sps:$4 sm:$0xff]  }
 0x5ee   : > { %v3680_v10 = vpop.eup %3679 }
 0x5ef   : > { %v1376_v12 = vsel %vm1031_vm3, %v3680_v10, 0.0 }
 0x5f0   : > { %1377 = vadd.xlane.f32.xlu0 %v1376_v12  ;;  %v3604_v12 = vld [vmem:[%s4455_s8 + $0x8] sm:$0xff]  }
 0x606   : > { %1489 = vrot.lane.b32.xlu0 %v3927_v32, %s4472_s26 }
 0x60a   : > { %1487 = vrot.lane.b32.xlu0 %v3933_v34, %s4472_s26  ;;  %v3588_v34 = vld [vmem:[%s4486_s28 + $0x28] sm:$0xff]  }
 0x60b   : > { %3412 = vmatpush3.bf16.msra.mxu0 %v3588_v34 }
 0x60c   : > { %3423 = vmatprep.subr.bf16.mxu0 %v3718_v18 }
 0x67d   : > { %v1378_v14 = vpop.xlane.xlu0 %1377 }
 0x67e   : > { %3681 = vrcp.f32 %v1378_v14  ;;  %v3603_v14 = vld [vmem:[%s4457_s10 + $0x34] ss:$8 sps:$4 sm:$0xff]  }
 0x681   : > { %v1490_v19 = vpop.permute.xlu0 %1489 }
 0x682   : > { %v1495_v22 = vsel %vm982_vm1, %v1490_v19, 0  ;;  %v3605_v19 = vld [vmem:[%s4457_s10 + $0x40] ss:$8 sps:$4 sm:$0xff]  }
 0x685   : > { %v1488_v32 = vpop.permute.xlu0 %1487 }
 0x688   : > { %v3682_v15 = vpop.eup %3681 }
 0x689   : > { %v1380_v16 = vmul.f32 %v3682_v15, %v3680_v10  ;;  %v3599_v10 = vld [vmem:[%s4457_s10 + $0x24] ss:$8 sps:$4 sm:$0xff]   ;;  %v3601_v15 = vld [vmem:[%s4457_s10 + $0x30] ss:$8 sps:$4 sm:$0xff]  }
 0x68b   : > { %v1381_v20 = vpack.c.bf16 %v1380_v16, %v1380_v16  ;;  %v3607_v16 = vld [vmem:[%s4457_s10 + $0x44] ss:$8 sps:$4 sm:$0xff]  }
 0x68d   : > { %3406 = vmatmul.mubr.msk.bf16.vlgmr.msra.gmra.mrb[16].mxu1 %vm1031_vm3, %v1381_v20 }
 0x68e   : > { %3418 = vmatpush3.bf16.xpose.msra.mxu1 %v1495_v22  ;;  %3419 = vmatprep.mubr.msk.bf16.mxu1 %vm3719_vm0, %v3718_v18 }
 0x68f   : > { %3429 = vmatprep.subr.bf16.mxu1 %v3718_v18 }
 0x695   : > { %3420 = vmatmul.mubr.msk.bf16.vlgmr.msra.gmra.mrb[20].mxu1 %vm982_vm1, %v1488_v32 }
 0x696   : > { %3433 = vmatprep.mubr.msk.bf16.mxu1 %vm3719_vm0, %v3718_v18  ;;  %3430 = vmatpush3.bf16.msra.mxu1 %v3589_v43  ;;  %v3154_v43 = vld [vmem:[%s4489_s25] ss:$0 sm:$0xff] }
 0x697   : > { %3431 = vmatprep.subr.bf16.mxu1 %v3718_v18 }
 0x69a   : > { %3432 = vmatpush3.bf16.msra.mxu1 %v3590_v54 }
 0x69b   : > { %1915 = vmatprep.subr.bf16.mxu1 %v3593_v7 }
 0x760   : > { %v1424_v24 = vpop.f32.mrb[16].mxu1 }
 0x761   : > { %v1430_v25 = vpack.c.bf16 %v1424_v24, %v1424_v24  ;;  %v3407_v26 = vpop.f32.mrb[17].mxu1  ;;  %v3608_v24 = vld [vmem:[%s4455_s8 + $0x10] sm:$0xff]  }
 0x762   : > { %v1427_v27 = vpop.f32.mrb[18].mxu1  ;;  %v3609_v26 = vld [vmem:[%s4457_s10 + $0x50] ss:$8 sps:$4 sm:$0xff]  }
 0x763   : > { %v3408_v28 = vpop.f32.mrb[19].mxu1  ;;  %3414 = vmatmul.mubr.msk.bf16.vlgmr.msra.gmra.mrb[20].mxu0 %vm982_vm1, %v1430_v25  ;;  %v3611_v25 = vld [vmem:[%s4457_s10 + $0x54] ss:$8 sps:$4 sm:$0xff]  }
 0x764   : > { %3425 = vmatprep.mubr.msk.bf16.mxu0 %vm3719_vm0, %v3718_v18  ;;  %v3612_v27 = vld [vmem:[%s4455_s8 + $0x18] sm:$0xff]   ;;  %v3615_v28 = vld [vmem:[%s4457_s10 + $0x64] ss:$8 sps:$4 sm:$0xff]  }
 0x768   : > { %v1531_v29 = vpop.f32.mrb[20].mxu1 }
 0x769   : > { %v1537_v30 = vmul.f32 0.17677669, %v1531_v29  ;;  %v3421_v31 = vpop.f32.mrb[21].mxu1  ;;  %v3613_v29 = vld [vmem:[%s4457_s10 + $0x60] ss:$8 sps:$4 sm:$0xff]  }
 0x76a   : > { %v1534_v33 = vpop.f32.mrb[22].mxu1  ;;  %v3619_v31 = vld [vmem:[%s4457_s10 + $0x74] ss:$8 sps:$4 sm:$0xff]  }
 0x76b   : > { %v3422_v35 = vpop.f32.mrb[23].mxu1  ;;  %v1538_v36 = vadd.f32 %v1537_v30, %v3984_v48  ;;  %v3616_v30 = vld [vmem:[%s4455_s8 + $0x20] sm:$0xff]   ;;  %v3617_v33 = vld [vmem:[%s4457_s10 + $0x70] ss:$8 sps:$4 sm:$0xff]  }
 0x76c   : > { %v3620_v35 = vld [vmem:[%s4455_s8 + $0x28] sm:$0xff]  }
 0x76d   : > { %v1539_v37 = vsel %vm1031_vm3, %v1538_v36, -inf }
 0x76e   : > { %1540 = vmax.xlane.f32.xlu0 %v1539_v37  ;;  %v3621_v37 = vld [vmem:[%s4455_s8 + $0x30] sm:$0xff]  }
 0x7fb   : > { %v1541_v38 = vpop.xlane.xlu0 %1540 }
 0x7fc   : > { %v1542_v39 = vsub.f32 %v1538_v36, %v1541_v38  ;;  %v3622_v38 = vld [vmem:[%s4455_s8 + $0x38] sm:$0xff]  }
 0x7fe   : > { %v1543_v40 = vmul.f32 1.442695, %v1542_v39 }
 0x800   : > { %3683 = vpow2.f32 %v1543_v40 }
 0x80a   : > { %v3684_v41 = vpop.eup %3683 }
 0x80b   : > { %v1545_v42 = vsel %vm1031_vm3, %v3684_v41, 0.0 }
 0x80c   : > { %1546 = vadd.xlane.f32.xlu1 %v1545_v42 }
 0x81d   : > { %1551 = vrot.lane.b32.xlu1 %v3993_v11, %s4472_s26  ;;  %s691_s26 = scalar_lea.vmem %s4488_s2, %s3892_s24 }
 0x81e   : > { %v698_v36 = vld [vmem:[%s691_s26] sm:$0xf] }
 0x836   : > { %v1480_v48 = vpop.f32.mrb[20].mxu0 }
 0x837   : > { %v1486_v44 = vadd.f32 %v1480_v48, %v4044_v59  ;;  %v3415_v45 = vpop.f32.mrb[21].mxu0 }
 0x838   : > { %v1483_v46 = vpop.f32.mrb[22].mxu0 }
 0x839   : > { %v3416_v47 = vpop.f32.mrb[23].mxu0 }
 0x899   : > { %v1547_v49 = vpop.xlane.xlu1 %1546 }
 0x89a   : > { %3685 = vrcp.f32 %v1547_v49  ;;  %v1823_v49 = vld [vmem:[%s4458_s11] sm:$0x3] }
 0x89d   : > { %v1552_v50 = vpop.permute.xlu1 %1551 }
 0x89e   : > { %v1557_v51 = vsel %vm1047_vm4, %v1552_v50, 0  ;;  %v1828_v50 = vrot.slane %v1823_v49, %v3921_v23 }
 0x89f   : > { %3424 = vmatpush3.bf16.msra.mxu0 %v1557_v51  ;;  %v1832_v51 = vrot.slane %v1823_v49, %v3913_v21 }
 0x8a0   : > { %3437 = vmatprep.subr.bf16.mxu0 %v3718_v18 }
 0x8a4   : > { %v3686_v11 = vpop.eup %3685 }
 0x8a5   : > { %v1549_v52 = vmul.f32 %v3686_v11, %v3684_v41 }
 0x8a7   : > { %v1550_v53 = vpack.c.bf16 %v1549_v52, %v1549_v52 }
 0x8a9   : > { %3426 = vmatmul.mubr.msk.bf16.vlgmr.msra.gmra.mrb[24].mxu0 %vm1031_vm3, %v1550_v53 }
 0x8aa   : > { %3453 = vmatprep.mubr.msk.bf16.mxu0 %vm3719_vm0, %v3718_v18  ;;  %3438 = vmatpush3.bf16.msra.mxu0 %v3600_v17 }
 0x8ab   : > { %3439 = vmatprep.subr.bf16.mxu0 %v3718_v18 }
 0x8ae   : > { %3440 = vmatpush3.bf16.msra.mxu0 %v3604_v12 }
 0x8af   : > { %3441 = vmatprep.subr.bf16.mxu0 %v3718_v18 }
 0x8b2   : > { %3442 = vmatpush3.bf16.msra.mxu0 %v3608_v24 }
 0x8b3   : > { %3443 = vmatprep.subr.bf16.mxu0 %v3718_v18 }
 0x8b6   : > { %3444 = vmatpush3.bf16.msra.mxu0 %v3612_v27 }
 0x8b7   : > { %3445 = vmatprep.subr.bf16.mxu0 %v3718_v18 }
 0x8ba   : > { %3446 = vmatpush3.bf16.msra.mxu0 %v3616_v30 }
 0x8bb   : > { %3447 = vmatprep.subr.bf16.mxu0 %v3718_v18 }
 0x8be   : > { %3448 = vmatpush3.bf16.msra.mxu0 %v3620_v35 }
 0x8bf   : > { %3449 = vmatprep.subr.bf16.mxu0 %v3718_v18 }
 0x8c2   : > { %3450 = vmatpush3.bf16.msra.mxu0 %v3621_v37 }
 0x8c3   : > { %3451 = vmatprep.subr.bf16.mxu0 %v3718_v18 }
 0x8c6   : > { %3452 = vmatpush3.bf16.msra.mxu0 %v3622_v38  ;;  %v3625_v38 = vld [vmem:[%s4459_s12 + $0x10] sm:$0xff]  }
 0x8c7   : > { %3457 = vmatprep.subr.bf16.mxu0 %v3718_v18 }
 0x97c   : > { %v1593_v55 = vpop.f32.mrb[24].mxu0 }
 0x97d   : > { %v1599_v56 = vpack.c.bf16 %v1593_v55, %v1593_v55  ;;  %v3427_v57 = vpop.f32.mrb[25].mxu0 }
 0x97e   : > { %v1596_v58 = vpop.f32.mrb[26].mxu0 }
 0x97f   : > { %v3428_v59 = vpop.f32.mrb[27].mxu0  ;;  %3434 = vmatmul.mubr.msk.bf16.vlgmr.msra.gmra.mrb[24].mxu1 %vm982_vm1, %v1599_v56 }
 0x980   : > { %1947 = vmatprep.mubr.bf16.mxu1 %v3717_v2  ;;  %1916 = vmatpush1.bf16.msra.mxu1 %v3591_v6 }
 0x981   : > { %1917 = vmatprep.subr.bf16.mxu1 %v3596_v8 }
 0x984   : > { %1918 = vmatpush1.bf16.msra.mxu1 %v3594_v9 }
 0x985   : > { %1919 = vmatprep.subr.bf16.mxu1 %v3599_v10 }
 0x988   : > { %1920 = vmatpush1.bf16.msra.mxu1 %v3597_v13 }
 0x989   : > { %1921 = vmatprep.subr.bf16.mxu1 %v3603_v14 }
 0x98c   : > { %1922 = vmatpush1.bf16.msra.mxu1 %v3601_v15 }
 0x98d   : > { %1923 = vmatprep.subr.bf16.mxu1 %v3607_v16 }
 0x990   : > { %1924 = vmatpush1.bf16.msra.mxu1 %v3605_v19 }
 0x991   : > { %1925 = vmatprep.subr.bf16.mxu1 %v3611_v25 }
 0x994   : > { %1926 = vmatpush1.bf16.msra.mxu1 %v3609_v26 }
 0x995   : > { %1927 = vmatprep.subr.bf16.mxu1 %v3615_v28 }
 0x998   : > { %1928 = vmatpush1.bf16.msra.mxu1 %v3613_v29 }
 0x999   : > { %1929 = vmatprep.subr.bf16.mxu1 %v3619_v31 }
 0x99c   : > { %1930 = vmatpush1.bf16.msra.mxu1 %v3617_v33 }
 0x99d   : > { %3463 = vmatprep.subr.bf16.mxu1 %v3718_v18 }
 0x99f   : > { %1948 = vmatmul.mubr.bf16.vlgmr.msra.gmra.mrb[28].mxu1 %v698_v36 }
 0x9a0   : > { %3465 = vmatprep.mubr.msk.bf16.mxu1 %vm3719_vm0, %v3718_v18 }
 0xa52   : > { %v1649_v60 = vpop.f32.mrb[24].mxu1 }
 0xa53   : > { %v1655_v62 = vadd.f32 %v1649_v60, %v1486_v44  ;;  %v3435_v63 = vpop.f32.mrb[25].mxu1  ;;  %v3155_v44 = vld [vmem:[%s4454_s7] ss:$0 sm:$0xff] }
 0xa54   : > { %v1652_v1 = vpop.f32.mrb[26].mxu1 }
 0xa55   : > { %v1663_v3 = vadd.f32 %v3153_v61, %v1655_v62  ;;  %v3436_v4 = vpop.f32.mrb[27].mxu1  ;;  %v3156_v61 = vld [vmem:[%s4456_s9] ss:$0 sm:$0xff] }
 0xa57   : > { %v1667_v5 = vadd.f32 %v1664_v0, %v1663_v3 }
 0xa59   : > { %1668 = vadd.xlane.f32.xlu1 %v1667_v5 }
 0xa72   : > { %v1949_v11 = vpop.f32.mrb[28].mxu1 }
 0xa73   : > { %v1950_v52 = vadd.f32 %v1949_v11, %v1828_v50  ;;  %v1951_v53 = vpop.f32.mrb[29].mxu1 }
 0xa74   : > { %v1952_v54 = vadd.f32 %v1951_v53, %v1832_v51  ;;  %v1953_v55 = vpop.f32.mrb[30].mxu1 }
 0xa75   : > { %v4200_v56 = vpack.c.bf16 %v1950_v52, %v1950_v52  ;;  %v1954_v57 = vpop.f32.mrb[31].mxu1 }
 0xa76   : > { %v4202_v58 = vpack.c.bf16 %v1952_v54, %v1952_v54 }
 0xa77   : > { %v1978_v59 = vsel %vm982_vm1, %v4200_v56, 0 }
 0xa78   : > { %v2037_v60 = vsel %vm1047_vm4, %v4202_v58, 0 }
 0xa79   : > { %3464 = vmatpush3.bf16.msra.mxu1 %v2037_v60 }
 0xa7a   : > { %3475 = vmatprep.subr.bf16.mxu1 %v3718_v18 }
 0xae6   : > { %v1669_v20 = vpop.xlane.xlu1 %1668 }
 0xae7   : > { %v1671_v22 = vmul.f32 0.0078125, %v1669_v20 }
 0xae9   : > { %v1672_v32 = vsub.f32 %v1667_v5, %v1671_v22 }
 0xaeb   : > { %v1673_v34 = vmul.f32 %v1672_v32, %v1672_v32 }
 0xaed   : > { %1674 = vadd.xlane.f32.xlu0 %v1673_v34 }
 0xb03   : > { %2084 = vrot.lane.b32.xlu0 %v4200_v56, %s3720_s23 }
 0xb7a   : > { %v1675_v39 = vpop.xlane.xlu0 %1674 }
 0xb7b   : > { %v1676_v40 = vmul.f32 0.0078125, %v1675_v39  ;;  %v3626_v39 = vld [vmem:[%s4459_s12 + $0x18] sm:$0xff]  }
 0xb7d   : > { %v1677_v41 = vadd.f32 1e-05, %v1676_v40 }
 0xb7e   : > { %v2085_v63 = vpop.permute.xlu0 %2084 }
 0xb7f   : > { %3687 = vrsqrt.f32 %v1677_v41  ;;  %v2090_v6 = vsel %vm982_vm1, %v2085_v63, 0 }
 0xb89   : > { %v3688_v42 = vpop.eup %3687 }
 0xb8a   : > { %v1679_v48 = vmul.f32 %v3688_v42, %v1672_v32 }
 0xb8c   : > { %v1686_v45 = vmul.f32 %v3154_v43, %v1679_v48 }
 0xb8e   : > { %v4189_v46 = vadd.f32 %v3155_v44, %v1686_v45  ;;  %v3623_v44 = vld [vmem:[%s4459_s12] sm:$0xff]  }
 0xb90   : > { %v1694_v47 = vpack.c.bf16 %v4189_v46, %v4189_v46 }
 0xb92   : > { %3454 = vmatmul.mubr.bf16.vlgmr.msra.gmra.mrb[28].mxu0 %v1694_v47  ;;  %v3624_v47 = vld [vmem:[%s4459_s12 + $0x8] sm:$0xff]  }
 0xb93   : > { %3459 = vmatprep.mubr.msk.bf16.mxu0 %vm3719_vm0, %v3718_v18  ;;  %3458 = vmatpush3.bf16.xpose.msra.mxu0 %v1978_v59 }
 0xb94   : > { %3469 = vmatprep.subr.bf16.mxu0 %v3718_v18 }
 0xc65   : > { %v1800_v62 = vpop.f32.mrb[28].mxu0 }
 0xc66   : > { %v1801_v0 = vadd.f32 %v3156_v61, %v1800_v62  ;;  %v3455_v1 = vpop.f32.mrb[29].mxu0 }
 0xc67   : > { %v1803_v3 = vpop.f32.mrb[30].mxu0 }
 0xc68   : > { %v4215_v4 = vpack.c.bf16 %v1801_v0, %v1801_v0  ;;  %v3456_v5 = vpop.f32.mrb[31].mxu0 }
 0xc6a   : > { %2081 = vrot.lane.b32.xlu0 %v4215_v4, %s3720_s23  ;;  %3460 = vmatmul.mubr.msk.bf16.vlgmr.msra.gmra.mrb[32].mxu0 %vm982_vm1, %v4215_v4 }
 0xc6b   : > { %3470 = vmatpush3.bf16.xpose.msra.mxu0 %v2090_v6  ;;  %3471 = vmatprep.mubr.msk.bf16.mxu0 %vm3719_vm0, %v3718_v18 }
 0xc6c   : > { %3481 = vmatprep.subr.bf16.mxu0 %v3718_v18 }
 0xcdc   : > { %v2082_v7 = vpop.permute.xlu0 %2081 }
 0xcdd   : > { %3472 = vmatmul.mubr.msk.bf16.vlgmr.msra.gmra.mrb[36].mxu0 %vm982_vm1, %v2082_v7 }
 0xcde   : > { %3485 = vmatprep.mubr.msk.bf16.mxu0 %vm3719_vm0, %v3718_v18  ;;  %3482 = vmatpush3.bf16.msra.mxu0 %v3625_v38 }
 0xcdf   : > { %3483 = vmatprep.subr.bf16.mxu0 %v3718_v18 }
 0xce2   : > { %3484 = vmatpush3.bf16.msra.mxu0 %v3626_v39 }
 0xce3   : > { %3497 = vmatprep.subr.bf16.mxu0 %v3718_v18 }
 0xd3d   : > { %v2014_v8 = vpop.f32.mrb[32].mxu0 }
 0xd3e   : > { %v2020_v17 = vmul.f32 0.17677669, %v2014_v8  ;;  %v3461_v9 = vpop.f32.mrb[33].mxu0 }
 0xd3f   : > { %v2017_v10 = vpop.f32.mrb[34].mxu0 }
 0xd40   : > { %v3462_v12 = vpop.f32.mrb[35].mxu0  ;;  %v2021_v13 = vsel %vm1031_vm3, %v2020_v17, -inf }
 0xd41   : > { %2022 = vmax.xlane.f32.xlu1 %v2021_v13 }
 0xdb0   : > { %v2126_v14 = vpop.f32.mrb[36].mxu0 }
 0xdb1   : > { %v2132_v15 = vmul.f32 0.17677669, %v2126_v14  ;;  %v3473_v16 = vpop.f32.mrb[37].mxu0 }
 0xdb2   : > { %v2129_v19 = vpop.f32.mrb[38].mxu0 }
 0xdb3   : > { %v3474_v20 = vpop.f32.mrb[39].mxu0  ;;  %v2133_v22 = vsel %vm1031_vm3, %v2132_v15, -inf }
 0xdb4   : > { %2134 = vmax.xlane.f32.xlu0 %v2133_v22 }
 0xdce   : > { %v2023_v32 = vpop.xlane.xlu1 %2022 }
 0xdcf   : > { %v2024_v34 = vsub.f32 %v2020_v17, %v2023_v32 }
 0xdd1   : > { %v2025_v24 = vmul.f32 1.442695, %v2024_v34 }
 0xdd3   : > { %3689 = vpow2.f32 %v2025_v24 }
 0xddd   : > { %v3690_v25 = vpop.eup %3689 }
 0xdde   : > { %v2027_v26 = vsel %vm1031_vm3, %v3690_v25, 0.0 }
 0xddf   : > { %2028 = vadd.xlane.f32.xlu1 %v2027_v26 }
 0xe41   : > { %v2135_v27 = vpop.xlane.xlu0 %2134 }
 0xe42   : > { %v2136_v28 = vsub.f32 %v2132_v15, %v2135_v27 }
 0xe44   : > { %v2137_v29 = vmul.f32 1.442695, %v2136_v28 }
 0xe46   : > { %3691 = vpow2.f32 %v2137_v29 }
 0xe50   : > { %v3692_v30 = vpop.eup %3691 }
 0xe51   : > { %v2139_v31 = vsel %vm1031_vm3, %v3692_v30, 0.0 }
 0xe52   : > { %2140 = vadd.xlane.f32.xlu1 %v2139_v31  ;;  %v3628_v31 = vld [vmem:[%s4459_s12 + $0x28] sm:$0xff]  }
 0xe63   : > { %2146 = vrot.lane.b32.xlu1 %v4202_v58, %s3720_s23 }
 0xe67   : > { %2307 = vrot.lane.b32.xlu1 %v4200_v56, %s4490_s1 }
 0xe6b   : > { %2305 = vrot.lane.b32.xlu1 %v4215_v4, %s4490_s1 }
 0xe6c   : > { %v2029_v33 = vpop.xlane.xlu1 %2028 }
 0xe6d   : > { %3693 = vrcp.f32 %v2029_v33 }
 0xe77   : > { %v3694_v35 = vpop.eup %3693 }
 0xe78   : > { %v2031_v36 = vmul.f32 %v3694_v35, %v3690_v25 }
 0xe7a   : > { %v2032_v37 = vpack.c.bf16 %v2031_v36, %v2031_v36 }
 0xe7c   : > { %3466 = vmatmul.mubr.msk.bf16.vlgmr.msra.gmra.mrb[32].mxu1 %vm1031_vm3, %v2032_v37 }
 0xe7d   : > { %3477 = vmatprep.mubr.msk.bf16.mxu1 %vm3719_vm0, %v3718_v18 }
 0xedf   : > { %v2141_v40 = vpop.xlane.xlu1 %2140 }
 0xee0   : > { %3695 = vrcp.f32 %v2141_v40 }
 0xee3   : > { %v2147_v41 = vpop.permute.xlu1 %2146 }
 0xee4   : > { %v2152_v42 = vsel %vm1047_vm4, %v2147_v41, 0 }
 0xee5   : > { %3476 = vmatpush3.bf16.msra.mxu1 %v2152_v42 }
 0xee6   : > { %3489 = vmatprep.subr.bf16.mxu1 %v3718_v18 }
 0xee7   : > { %v2308_v53 = vpop.permute.xlu1 %2307 }
 0xee8   : > { %v2313_v60 = vsel %vm982_vm1, %v2308_v53, 0 }
 0xeea   : > { %v3696_v43 = vpop.eup %3695 }
 0xeeb   : > { %v2143_v48 = vmul.f32 %v3696_v43, %v3692_v30  ;;  %v2306_v62 = vpop.permute.xlu1 %2305 }
 0xeed   : > { %v2144_v45 = vpack.c.bf16 %v2143_v48, %v2143_v48 }
 0xeef   : > { %3478 = vmatmul.mubr.msk.bf16.vlgmr.msra.gmra.mrb[36].mxu1 %vm1031_vm3, %v2144_v45 }
 0xef0   : > { %3490 = vmatpush3.bf16.msra.mxu1 %v3623_v44  ;;  %3493 = vmatprep.mubr.msk.bf16.mxu1 %vm3719_vm0, %v3718_v18 }
 0xef1   : > { %3491 = vmatprep.subr.bf16.mxu1 %v3718_v18 }
 0xef4   : > { %3492 = vmatpush3.bf16.msra.mxu1 %v3624_v47 }
 0xef5   : > { %3503 = vmatprep.subr.bf16.mxu1 %v3718_v18 }
 0xf4f   : > { %v2073_v49 = vpop.f32.mrb[32].mxu1 }
 0xf50   : > { %v2079_v50 = vpack.c.bf16 %v2073_v49, %v2073_v49  ;;  %v3467_v51 = vpop.f32.mrb[33].mxu1 }
 0xf51   : > { %v2076_v11 = vpop.f32.mrb[34].mxu1  ;;  %v3629_v51 = vld [vmem:[%s4459_s12 + $0x30] sm:$0xff]  }
 0xf52   : > { %v3468_v52 = vpop.f32.mrb[35].mxu1  ;;  %3494 = vmatmul.mubr.msk.bf16.vlgmr.msra.gmra.mrb[40].mxu1 %vm982_vm1, %v2079_v50 }
 0xf53   : > { %3505 = vmatprep.mubr.msk.bf16.mxu1 %vm3719_vm0, %v3718_v18 }
 0xfc2   : > { %v2188_v54 = vpop.f32.mrb[36].mxu1 }
 0xfc3   : > { %v2194_v55 = vpack.c.bf16 %v2188_v54, %v2188_v54  ;;  %v3479_v57 = vpop.f32.mrb[37].mxu1 }
 0xfc4   : > { %v2191_v59 = vpop.f32.mrb[38].mxu1 }
 0xfc5   : > { %v3480_v61 = vpop.f32.mrb[39].mxu1  ;;  %3486 = vmatmul.mubr.msk.bf16.vlgmr.msra.gmra.mrb[40].mxu0 %vm982_vm1, %v2194_v55 }
 0xfc6   : > { %3498 = vmatpush3.bf16.xpose.msra.mxu0 %v2313_v60  ;;  %3499 = vmatprep.mubr.msk.bf16.mxu0 %vm3719_vm0, %v3718_v18 }
 0xfc7   : > { %3509 = vmatprep.subr.bf16.mxu0 %v3718_v18 }
 0xfcd   : > { %3500 = vmatmul.mubr.msk.bf16.vlgmr.msra.gmra.mrb[44].mxu0 %vm982_vm1, %v2306_v62 }
 0xfce   : > { %3513 = vmatprep.mubr.msk.bf16.mxu0 %vm3719_vm0, %v3718_v18 }
0x1025   : > { %v2299_v63 = vpop.f32.mrb[40].mxu1 }
0x1026   : > { %v3495_v0 = vpop.f32.mrb[41].mxu1 }
0x1027   : > { %v2302_v1 = vpop.f32.mrb[42].mxu1 }
0x1028   : > { %v3496_v3 = vpop.f32.mrb[43].mxu1 }
0x1098   : > { %v2244_v5 = vpop.f32.mrb[40].mxu0 }
0x1099   : > { %v4273_v6 = vadd.f32 %v2299_v63, %v2244_v5  ;;  %v3487_v7 = vpop.f32.mrb[41].mxu0 }
0x109a   : > { %v2247_v8 = vpop.f32.mrb[42].mxu0  ;;  %v3201_v7 = vld [vmem:[%s4460_s13] ss:$0 sm:$0xff] }
0x109b   : > { %v3488_v17 = vpop.f32.mrb[43].mxu0 }
0x10a0   : > { %v2349_v9 = vpop.f32.mrb[44].mxu0 }
0x10a1   : > { %v2355_v10 = vmul.f32 0.17677669, %v2349_v9  ;;  %v3501_v12 = vpop.f32.mrb[45].mxu0 }
0x10a2   : > { %v2352_v13 = vpop.f32.mrb[46].mxu0 }
0x10a3   : > { %v3502_v14 = vpop.f32.mrb[47].mxu0  ;;  %v2356_v15 = vsel %vm1031_vm3, %v2355_v10, -inf  ;;  %v3631_v13 = vld [vmem:[%s4463_s16] ss:$8 sps:$4 sm:$0xff]  }
0x10a4   : > { %2357 = vmax.xlane.f32.xlu0 %v2356_v15  ;;  %v3633_v14 = vld [vmem:[%s4463_s16 + $0x4] ss:$8 sps:$4 sm:$0xff]   ;;  %v3636_v15 = vld [vmem:[%s4463_s16 + $0x14] ss:$8 sps:$4 sm:$0xff]  }
0x10ba   : > { %2368 = vrot.lane.b32.xlu0 %v4202_v58, %s4490_s1 }
0x10be   : > { %2475 = vrot.lane.b32.xlu0 %v4200_v56, %s4491_s30  ;;  %v3627_v56 = vld [vmem:[%s4459_s12 + $0x20] sm:$0xff]  }
0x10bf   : > { %3510 = vmatpush3.bf16.msra.mxu0 %v3627_v56  ;;  %v3640_v56 = vld [vmem:[%s4463_s16 + $0x30] ss:$8 sps:$4 sm:$0xff]  }
0x10c0   : > { %3511 = vmatprep.subr.bf16.mxu0 %v3718_v18 }
0x10c2   : > { %2473 = vrot.lane.b32.xlu0 %v4215_v4, %s4491_s30 }
0x10c3   : > { %3512 = vmatpush3.bf16.msra.mxu0 %v3628_v31  ;;  %v3652_v31 = vld [vmem:[%s4463_s16 + $0x70] ss:$8 sps:$4 sm:$0xff]  }
0x10c4   : > { %3523 = vmatprep.subr.bf16.mxu0 %v3718_v18 }
0x1131   : > { %v2358_v16 = vpop.xlane.xlu0 %2357 }
0x1132   : > { %v2359_v19 = vsub.f32 %v2355_v10, %v2358_v16  ;;  %v3634_v16 = vld [vmem:[%s4463_s16 + $0x10] ss:$8 sps:$4 sm:$0xff]  }
0x1134   : > { %v2360_v20 = vmul.f32 1.442695, %v2359_v19  ;;  %v3637_v19 = vld [vmem:[%s4463_s16 + $0x20] ss:$8 sps:$4 sm:$0xff]  }
0x1135   : > { %v2369_v22 = vpop.permute.xlu0 %2368 }
0x1136   : > { %3697 = vpow2.f32 %v2360_v20  ;;  %v2374_v32 = vsel %vm1047_vm4, %v2369_v22, 0 }
0x1137   : > { %3504 = vmatpush3.bf16.msra.mxu1 %v2374_v32 }
0x1138   : > { %3517 = vmatprep.subr.bf16.mxu1 %v3718_v18 }
0x1139   : > { %v2476_v27 = vpop.permute.xlu0 %2475 }
0x113a   : > { %v2481_v29 = vsel %vm982_vm1, %v2476_v27, 0  ;;  %v3646_v27 = vld [vmem:[%s4463_s16 + $0x50] ss:$8 sps:$4 sm:$0xff]  }
0x113d   : > { %v2474_v30 = vpop.permute.xlu0 %2473 }
0x1140   : > { %v3698_v34 = vpop.eup %3697 }
0x1141   : > { %v2362_v24 = vsel %vm1031_vm3, %v3698_v34, 0.0 }
0x1142   : > { %2363 = vadd.xlane.f32.xlu1 %v2362_v24  ;;  %v3642_v24 = vld [vmem:[%s4463_s16 + $0x34] ss:$8 sps:$4 sm:$0xff]  }
0x11cf   : > { %v2364_v4 = vpop.xlane.xlu1 %2363 }
0x11d0   : > { %3699 = vrcp.f32 %v2364_v4  ;;  %v3645_v4 = vld [vmem:[%s4463_s16 + $0x44] ss:$8 sps:$4 sm:$0xff]  }
0x11da   : > { %v3700_v25 = vpop.eup %3699 }
0x11db   : > { %v2366_v26 = vmul.f32 %v3700_v25, %v3698_v34  ;;  %v3643_v25 = vld [vmem:[%s4463_s16 + $0x40] ss:$8 sps:$4 sm:$0xff]  }
0x11dd   : > { %v2367_v28 = vpack.c.bf16 %v2366_v26, %v2366_v26  ;;  %v3648_v26 = vld [vmem:[%s4463_s16 + $0x54] ss:$8 sps:$4 sm:$0xff]  }
0x11df   : > { %3506 = vmatmul.mubr.msk.bf16.vlgmr.msra.gmra.mrb[44].mxu1 %vm1031_vm3, %v2367_v28  ;;  %v3651_v28 = vld [vmem:[%s4463_s16 + $0x64] ss:$8 sps:$4 sm:$0xff]  }
0x11e0   : > { %3518 = vmatpush3.bf16.xpose.msra.mxu1 %v2481_v29  ;;  %3519 = vmatprep.mubr.msk.bf16.mxu1 %vm3719_vm0, %v3718_v18  ;;  %v3649_v29 = vld [vmem:[%s4463_s16 + $0x60] ss:$8 sps:$4 sm:$0xff]  }
0x11e1   : > { %3529 = vmatprep.subr.bf16.mxu1 %v3718_v18 }
0x11e7   : > { %3520 = vmatmul.mubr.msk.bf16.vlgmr.msra.gmra.mrb[48].mxu1 %vm982_vm1, %v2474_v30  ;;  %v3654_v30 = vld [vmem:[%s4463_s16 + $0x74] ss:$8 sps:$4 sm:$0xff]  }
0x11e8   : > { %3533 = vmatprep.mubr.msk.bf16.mxu1 %vm3719_vm0, %v3718_v18  ;;  %3530 = vmatpush3.bf16.msra.mxu1 %v3629_v51  ;;  %v3202_v51 = vld [vmem:[%s4461_s14] ss:$0 sm:$0xff] }
0x11e9   : > { %3531 = vmatprep.subr.bf16.mxu1 %v3718_v18 }
0x12b2   : > { %v2410_v33 = vpop.f32.mrb[44].mxu1 }
0x12b3   : > { %v2416_v35 = vpack.c.bf16 %v2410_v33, %v2410_v33  ;;  %v3507_v36 = vpop.f32.mrb[45].mxu1  ;;  %v3655_v33 = vld [vmem:[%s4465_s18 + $0x40] sm:$0xff]  }
0x12b4   : > { %v2413_v37 = vpop.f32.mrb[46].mxu1  ;;  %v3657_v36 = vld [vmem:[%s4465_s18 + $0x48] sm:$0xff]  }
0x12b5   : > { %v3508_v38 = vpop.f32.mrb[47].mxu1  ;;  %3514 = vmatmul.mubr.msk.bf16.vlgmr.msra.gmra.mrb[48].mxu0 %vm982_vm1, %v2416_v35  ;;  %v3656_v35 = vld [vmem:[%s4465_s18] sm:$0xff]   ;;  %v3658_v37 = vld [vmem:[%s4465_s18 + $0x8] sm:$0xff]  }
0x12b6   : > { %3525 = vmatprep.mubr.msk.bf16.mxu0 %vm3719_vm0, %v3718_v18  ;;  %v3630_v18 = vld [vmem:[%s4459_s12 + $0x38] sm:$0xff]   ;;  %v3659_v38 = vld [vmem:[%s4465_s18 + $0x50] sm:$0xff]  }
0x12b7   : > { %3532 = vmatpush3.bf16.msra.mxu1 %v3630_v18 }
0x12b8   : > { %3315 = vmatprep.subr.bf16.mxu1 %v3655_v33 }
0x12ba   : > { %v2517_v39 = vpop.f32.mrb[48].mxu1 }
0x12bb   : > { %v2523_v40 = vmul.f32 0.17677669, %v2517_v39  ;;  %v3521_v41 = vpop.f32.mrb[49].mxu1  ;;  %v3660_v39 = vld [vmem:[%s4465_s18 + $0x10] sm:$0xff]  }
0x12bc   : > { %v2520_v42 = vpop.f32.mrb[50].mxu1  ;;  %v3662_v41 = vld [vmem:[%s4465_s18 + $0x18] sm:$0xff]  }
0x12bd   : > { %v3522_v43 = vpop.f32.mrb[51].mxu1  ;;  %v2524_v48 = vsel %vm1031_vm3, %v2523_v40, -inf  ;;  %v3663_v42 = vld [vmem:[%s4465_s18 + $0x60] sm:$0xff]  }
0x12be   : > { %2525 = vmax.xlane.f32.xlu0 %v2524_v48  ;;  %v3664_v43 = vld [vmem:[%s4465_s18 + $0x20] sm:$0xff]   ;;  %v3665_v48 = vld [vmem:[%s4465_s18 + $0x68] sm:$0xff]  }
0x134b   : > { %v2526_v44 = vpop.xlane.xlu0 %2525 }
0x134c   : > { %v2527_v45 = vsub.f32 %v2523_v40, %v2526_v44  ;;  %v3661_v40 = vld [vmem:[%s4465_s18 + $0x58] sm:$0xff]   ;;  %v3666_v44 = vld [vmem:[%s4465_s18 + $0x28] sm:$0xff]  }
0x134e   : > { %v2528_v47 = vmul.f32 1.442695, %v2527_v45 }
0x1350   : > { %3701 = vpow2.f32 %v2528_v47 }
0x135a   : > { %v3702_v49 = vpop.eup %3701 }
0x135b   : > { %v2530_v50 = vsel %vm1031_vm3, %v3702_v49, 0.0 }
0x135c   : > { %2531 = vadd.xlane.f32.xlu1 %v2530_v50 }
0x136d   : > { %2536 = vrot.lane.b32.xlu1 %v4202_v58, %s4491_s30 }
0x1388   : > { %v2466_v11 = vpop.f32.mrb[48].mxu0 }
0x1389   : > { %v2472_v52 = vadd.f32 %v2466_v11, %v4273_v6  ;;  %v3515_v53 = vpop.f32.mrb[49].mxu0 }
0x138a   : > { %v2469_v54 = vpop.f32.mrb[50].mxu0 }
0x138b   : > { %v3516_v55 = vpop.f32.mrb[51].mxu0 }
0x13e9   : > { %v2532_v57 = vpop.xlane.xlu1 %2531 }
0x13ea   : > { %3703 = vrcp.f32 %v2532_v57  ;;  %v3667_v57 = vld [vmem:[%s4465_s18 + $0x70] sm:$0xff]  }
0x13ed   : > { %v2537_v59 = vpop.permute.xlu1 %2536 }
0x13ee   : > { %v2542_v60 = vsel %vm1047_vm4, %v2537_v59, 0  ;;  %v3668_v59 = vld [vmem:[%s4465_s18 + $0x30] sm:$0xff]  }
0x13ef   : > { %3524 = vmatpush3.bf16.msra.mxu0 %v2542_v60  ;;  %v3669_v60 = vld [vmem:[%s4465_s18 + $0x78] sm:$0xff]  }
0x13f0   : > { %2819 = vmatprep.subr.bf16.mxu0 %v3633_v14 }
0x13f4   : > { %v3704_v58 = vpop.eup %3703 }
0x13f5   : > { %v2534_v61 = vmul.f32 %v3704_v58, %v3702_v49  ;;  %v3670_v58 = vld [vmem:[%s4465_s18 + $0x38] sm:$0xff]  }
0x13f7   : > { %v2535_v62 = vpack.c.bf16 %v2534_v61, %v2534_v61  ;;  %v2694_v61 = vld [vmem:[%s4464_s17] sm:$0x3] }
0x13f8   : > { %v2736_v18 = vrot.slane %v2694_v61, %v3913_v21 }
0x13f9   : > { %3526 = vmatmul.mubr.msk.bf16.vlgmr.msra.gmra.mrb[52].mxu0 %vm1031_vm3, %v2535_v62  ;;  %v2732_v62 = vrot.slane %v2694_v61, %v3921_v23 }
0x13fa   : > { %2851 = vmatprep.mubr.bf16.mxu0 %v3717_v2  ;;  %2820 = vmatpush1.bf16.msra.mxu0 %v3631_v13 }
0x13fb   : > { %2821 = vmatprep.subr.bf16.mxu0 %v3636_v15 }
0x13fe   : > { %2822 = vmatpush1.bf16.msra.mxu0 %v3634_v16 }
0x14cc   : > { %v2578_v63 = vpop.f32.mrb[52].mxu0 }
0x14cd   : > { %v2584_v0 = vpack.c.bf16 %v2578_v63, %v2578_v63  ;;  %v3527_v1 = vpop.f32.mrb[53].mxu0 }
0x14ce   : > { %v2581_v3 = vpop.f32.mrb[54].mxu0 }
0x14cf   : > { %v3528_v5 = vpop.f32.mrb[55].mxu0  ;;  %3534 = vmatmul.mubr.msk.bf16.vlgmr.msra.gmra.mrb[52].mxu1 %vm982_vm1, %v2584_v0 }
0x14d0   : > { %3316 = vmatpush3.bf16.msra.mxu1 %v3656_v35 }
0x14d1   : > { %3317 = vmatprep.subr.bf16.mxu1 %v3657_v36 }
0x14d4   : > { %3318 = vmatpush3.bf16.msra.mxu1 %v3658_v37 }
0x14d5   : > { %3319 = vmatprep.subr.bf16.mxu1 %v3659_v38 }
0x14d8   : > { %3320 = vmatpush3.bf16.msra.mxu1 %v3660_v39 }
0x14d9   : > { %3321 = vmatprep.subr.bf16.mxu1 %v3661_v40 }
0x14dc   : > { %3322 = vmatpush3.bf16.msra.mxu1 %v3662_v41 }
0x14dd   : > { %3323 = vmatprep.subr.bf16.mxu1 %v3663_v42 }
0x14e0   : > { %3324 = vmatpush3.bf16.msra.mxu1 %v3664_v43 }
0x14e1   : > { %3325 = vmatprep.subr.bf16.mxu1 %v3665_v48 }
0x14e4   : > { %3326 = vmatpush3.bf16.msra.mxu1 %v3666_v44 }
0x14e5   : > { %3327 = vmatprep.subr.bf16.mxu1 %v3667_v57 }
0x14e8   : > { %3328 = vmatpush3.bf16.msra.mxu1 %v3668_v59 }
0x14e9   : > { %3329 = vmatprep.subr.bf16.mxu1 %v3669_v60 }
0x14ec   : > { %3330 = vmatpush3.bf16.msra.mxu1 %v3670_v58 }
0x15a2   : > { %v2634_v6 = vpop.f32.mrb[52].mxu1 }
0x15a3   : > { %v2640_v8 = vadd.f32 %v2634_v6, %v2472_v52  ;;  %v3535_v17 = vpop.f32.mrb[53].mxu1  ;;  %v3203_v52 = vld [vmem:[%s4462_s15] ss:$0 sm:$0xff] }
0x15a4   : > { %v2637_v2 = vpop.f32.mrb[54].mxu1 }
0x15a5   : > { %v2648_v9 = vadd.f32 %v3201_v7, %v2640_v8  ;;  %v3536_v10 = vpop.f32.mrb[55].mxu1 }
0x15a6   : > { %v3220_v10 = vld [vmem:[%s4466_s19] ss:$0 sm:$0xff] }
0x15a7   : > { %v2651_v12 = vadd.f32 %v2648_v9, %v4189_v46  ;;  %v3639_v46 = vld [vmem:[%s4463_s16 + $0x24] ss:$8 sps:$4 sm:$0xff]  }
0x15a8   : > { %2823 = vmatprep.subr.bf16.mxu0 %v3639_v46 }
0x15a9   : > { %2652 = vadd.xlane.f32.xlu1 %v2651_v12  ;;  %2824 = vmatpush1.bf16.msra.mxu0 %v3637_v19 }
0x15aa   : > { %2825 = vmatprep.subr.bf16.mxu0 %v3642_v24 }
0x15ad   : > { %2826 = vmatpush1.bf16.msra.mxu0 %v3640_v56  ;;  %v3237_v56 = vld [vmem:[%s4467_s20] ss:$0 sm:$0xff] }
0x15ae   : > { %2827 = vmatprep.subr.bf16.mxu0 %v3645_v4 }
0x15b1   : > { %2828 = vmatpush1.bf16.msra.mxu0 %v3643_v25  ;;  %v3238_v25 = vld [vmem:[%s4468_s21] ss:$0 sm:$0xff] }
0x15b2   : > { %2829 = vmatprep.subr.bf16.mxu0 %v3648_v26 }
0x15b5   : > { %2830 = vmatpush1.bf16.msra.mxu0 %v3646_v27 }
0x15b6   : > { %2831 = vmatprep.subr.bf16.mxu0 %v3651_v28 }
0x15b9   : > { %2832 = vmatpush1.bf16.msra.mxu0 %v3649_v29 }
0x15ba   : > { %2833 = vmatprep.subr.bf16.mxu0 %v3654_v30 }
0x15bd   : > { %2834 = vmatpush1.bf16.msra.mxu0 %v3652_v31 }
0x1636   : > { %v2653_v20 = vpop.xlane.xlu1 %2652 }
0x1637   : > { %v2654_v22 = vmul.f32 0.0078125, %v2653_v20 }
0x1639   : > { %v2655_v32 = vsub.f32 %v2651_v12, %v2654_v22 }
0x163b   : > { %v2656_v34 = vmul.f32 %v2655_v32, %v2655_v32 }
0x163d   : > { %2657 = vadd.xlane.f32.xlu0 %v2656_v34 }
0x16ca   : > { %v2658_v45 = vpop.xlane.xlu0 %2657 }
0x16cb   : > { %v2659_v47 = vmul.f32 0.0078125, %v2658_v45 }
0x16cd   : > { %v2660_v49 = vadd.f32 1e-05, %v2659_v47 }
0x16cf   : > { %3705 = vrsqrt.f32 %v2660_v49 }
0x16d9   : > { %v3706_v50 = vpop.eup %3705 }
0x16da   : > { %v2662_v11 = vmul.f32 %v3706_v50, %v2655_v32 }
0x16dc   : > { %v2669_v53 = vmul.f32 %v3202_v51, %v2662_v11 }
0x16de   : > { %v2676_v54 = vadd.f32 %v3203_v52, %v2669_v53 }
0x16e0   : > { %v2677_v55 = vpack.c.bf16 %v2676_v54, %v2676_v54 }
0x16e2   : > { %2852 = vmatmul.mubr.bf16.vlgmr.msra.gmra.mrb[56].mxu0 %v2677_v55 }
0x17b5   : > { %v2853_v63 = vpop.f32.mrb[56].mxu0 }
0x17b6   : > { %v2854_v0 = vadd.f32 %v2853_v63, %v2732_v62  ;;  %v2855_v1 = vpop.f32.mrb[57].mxu0 }
0x17b7   : > { %v2856_v3 = vadd.f32 %v2855_v1, %v2736_v18  ;;  %v2857_v5 = vpop.f32.mrb[58].mxu0 }
0x17b8   : > { %v2860_v6 = vmax.f32 %v2854_v0, 0.0  ;;  %v2858_v7 = vpop.f32.mrb[59].mxu0 }
0x17b9   : > { %v2861_v8 = vmax.f32 %v2856_v3, 0.0 }
0x17ba   : > { %v2862_v2 = vpack.c.bf16 %v2860_v6, %v2860_v6 }
0x17bb   : > { %v2863_v17 = vpack.c.bf16 %v2861_v8, %v2861_v8 }
0x17bd   : > { %2998 = vmatprep.mubr.bf16.mxu1 %v2863_v17 }
0x17be   : > { %2999 = vmatmul.mubr.bf16.vlgmr.msra.gmra.mrb[56].mxu1 %v2862_v2 }
0x1891   : > { %v3331_v9 = vpop.f32.mrb[56].mxu1 }
0x1892   : > { %v3332_v23 = vpop.f32.mrb[57].mxu1 }
0x1893   : > { %v3333_v12 = vadd.f32 %v3332_v23, %v3331_v9  ;;  %v3334_v21 = vpop.f32.mrb[58].mxu1 }
0x1894   : > { %v3335_v13 = vpop.f32.mrb[59].mxu1 }
0x1895   : > { %v3001_v14 = vadd.f32 %v3333_v12, %v3220_v10 }
0x1897   : > { %v3008_v15 = vadd.f32 %v3001_v14, %v2676_v54 }
0x1899   : > { %3009 = vadd.xlane.f32.xlu0 %v3008_v15 }
0x1926   : > { %v3010_v16 = vpop.xlane.xlu0 %3009 }
0x1927   : > { %v3011_v46 = vmul.f32 0.0078125, %v3010_v16 }
0x1929   : > { %v3012_v19 = vsub.f32 %v3008_v15, %v3011_v46 }
0x192b   : > { %v3013_v20 = vmul.f32 %v3012_v19, %v3012_v19 }
0x192d   : > { %3014 = vadd.xlane.f32.xlu0 %v3013_v20 }
0x19ba   : > { %v3015_v22 = vpop.xlane.xlu0 %3014 }
0x19bb   : > { %v3016_v32 = vmul.f32 0.0078125, %v3015_v22 }
0x19bd   : > { %v3017_v34 = vadd.f32 1e-05, %v3016_v32 }
0x19bf   : > { %3707 = vrsqrt.f32 %v3017_v34 }
0x19c9   : > { %v3708_v24 = vpop.eup %3707 }
0x19ca   : > { %v3019_v4 = vmul.f32 %v3708_v24, %v3012_v19 }
0x19cc   : > { %v3026_v26 = vmul.f32 %v3237_v56, %v3019_v4 }
0x19ce   : > { %v3033_v27 = vadd.f32 %v3238_v25, %v3026_v26 }
0x19d0   : > { %v3034_v28 = vpack.c.bf16 %v3033_v27, %v3033_v27 }
0x19d2   : > { %3035 = vst [vmem:[%s695_s0] sm:$0xf] %v3034_v28 }
0x19d3 PF: > { %s32_s3 = sadd.s32 1, %s3715_s3  }
0x19d4   : > { %p29_p4 = scmp.ge.s32.totalorder %s32_s3, 4  }
0x19d6   :  { %31 = sbr.rel (!%p29_p4) target bundleno = 8 (0x8), region = 141 }

</bundles_post_ra>
